<compile_context>
chip_gen: v7x
topology: tpu7x:2x2x1
jax: 0.10.0
libtpu: 0.0.40
codegen_flags: <defaults>
</compile_context>

<pallas_src>
import functools

import jax
import jax.numpy as jnp
from jax import lax
from jax.experimental import pallas as pl
from jax.experimental.pallas import tpu as pltpu

EPS = 1e-5


# ----------------------------- weight preparation ----------------------------

def _fold_bn(w_oihw, gamma, beta):
    """Fold eval-mode BatchNorm (running mean=0, var=1, eps=1e-5) into conv."""
    s = gamma / jnp.sqrt(1.0 + EPS)
    return w_oihw * s[:, None, None, None], beta


def prepare_rfb_params(params, *, scale=0.1):
    """Fold BN, transpose to matmul layout, fold `scale` into ConvLinear.

    Done once, outside the per-call forward.
    """
    def w1x1(p):
        w, b = _fold_bn(*p)
        return jnp.transpose(w[:, :, 0, 0]), b          # (I, O), (O,)

    def w3x3(p):
        w, b = _fold_bn(*p)
        o, c, kh, kw = w.shape
        # (kh*kw, C, O) so tap k = i*3+j matches the in-kernel slab slicing
        return jnp.transpose(w, (2, 3, 1, 0)).reshape(kh * kw, c, o), b

    w00, b00 = w1x1(params["b0_0"])
    w10, b10 = w1x1(params["b1_0"])
    w01, b01 = w3x3(params["b0_1"])
    w02, b02 = w3x3(params["b0_2"])
    w11, b11 = w3x3(params["b1_1"])
    w12, b12 = w3x3(params["b1_2"])
    w13, b13 = w3x3(params["b1_3"])
    wl, bl = w1x1(params["lin"])                         # (4*inter, O)
    wsh, bsh = w1x1(params["short"])                     # (Cin, O)

    c02 = w02.shape[-1]                                  # branch0 out channels
    f32 = jnp.float32
    row = lambda b: b.reshape(1, -1).astype(f32)
    return {
        "w00": w00.astype(f32), "b00": row(b00),
        "w10": w10.astype(f32), "b10": row(b10),
        "w01": w01.astype(f32), "b01": row(b01),
        "w02": w02.astype(f32), "b02": row(b02),
        "w11": w11.astype(f32), "b11": row(b11),
        "w12": w12.astype(f32), "b12": row(b12),
        "w13": w13.astype(f32), "b13": row(b13),
        # ConvLinear split across branches, BN + `scale` folded into weights:
        "wl0": (wl[:c02] * scale).astype(f32),
        "wl1": (wl[c02:] * scale).astype(f32),
        "wsh": wsh.astype(f32),
        "bt": row(bl * scale + bsh),
    }


# ------------------------------- fused kernel --------------------------------

def _rfb_fused_kernel(
        x_ref,
        w00_ref, b00_ref, w10_ref, b10_ref,
        w01_ref, b01_ref, w02_ref, b02_ref,
        w11_ref, b11_ref, w12_ref, b12_ref, w13_ref, b13_ref,
        wl0_ref, wl1_ref, wsh_ref, bt_ref,
        o_ref,
        pb01, pb02, pb11, pb12, pb13,
        *, H, W, d2, d3):
    """Whole BasicRFB forward for one batch element, VMEM-resident."""
    f32 = jnp.float32
    HW = H * W
    x2d = x_ref[...]                                     # (HW, Cin)

    # ---- branch heads: two 1x1 conv+BN+ReLU on the same input --------------
    h0 = jnp.maximum(
        jnp.dot(x2d, w00_ref[...], preferred_element_type=f32) + b00_ref[...],
        0.0)
    h1 = jnp.maximum(
        jnp.dot(x2d, w10_ref[...], preferred_element_type=f32) + b10_ref[...],
        0.0)

    def conv3x3(pbuf, val, w_ref, b_ref, dil, relu):
        """3x3 conv, stride 1, padding == dilation.  val: (HW, C) -> (HW, O).

        The padded slab lives in VMEM scratch; the 9 shifted taps are read as
        static slices and accumulated into ONE f32 result (MRB-friendly on
        v7x; no im2col tensor is materialized).
        """
        C = pbuf.shape[-1]
        pbuf[...] = jnp.zeros_like(pbuf)                 # zero padding border
        pbuf[dil:dil + H, dil:dil + W, :] = val.reshape(H, W, C)
        acc = None
        for i in range(3):
            for j in range(3):
                tap = pbuf[i * dil:i * dil + H, j * dil:j * dil + W, :]
                d = jnp.dot(tap.reshape(HW, C), w_ref[i * 3 + j],
                            preferred_element_type=f32)
                acc = d if acc is None else acc + d
        acc = acc + b_ref[...]
        return jnp.maximum(acc, 0.0) if relu else acc

    # ---- branch0: 3x3 (ReLU) -> 3x3 dilated(visual+1) (no ReLU) ------------
    b0 = conv3x3(pb01, h0, w01_ref, b01_ref, 1, True)
    b0 = conv3x3(pb02, b0, w02_ref, b02_ref, d2, False)

    # ---- branch1: 3x3 (ReLU) -> 3x3 (ReLU) -> 3x3 dilated(2v+1) (no ReLU) --
    b1 = conv3x3(pb11, h1, w11_ref, b11_ref, 1, True)
    b1 = conv3x3(pb12, b1, w12_ref, b12_ref, 1, True)
    b1 = conv3x3(pb13, b1, w13_ref, b13_ref, d3, False)

    # ---- fused tail: ConvLinear (scale folded in) + shortcut + ReLU --------
    out = jnp.dot(b0, wl0_ref[...], preferred_element_type=f32)
    out = out + jnp.dot(b1, wl1_ref[...], preferred_element_type=f32)
    out = out + jnp.dot(x2d, wsh_ref[...], preferred_element_type=f32)
    out = out + bt_ref[...]
    o_ref[...] = jnp.maximum(out, 0.0).astype(o_ref.dtype)


# --------------------------------- wrapper -----------------------------------

def _full_spec(a):
    """Whole-array block, constant index map (weights/biases)."""
    zeros = (0,) * a.ndim
    return pl.BlockSpec(a.shape, lambda n, _z=zeros: _z)


def basic_rfb_forward(x_nchw, prep, *, stride=1, visual=1):
    """Fused BasicRFB forward.  x_nchw: (N, Cin, H, W) float32 NCHW."""
    if stride != 1:
        # TODO(synk): stride > 1 not supported in the fused kernel.
        raise NotImplementedError("fused BasicRFB kernel supports stride=1 only")
    N, Cin, H, W = x_nchw.shape
    HW = H * W
    d2, d3 = visual + 1, 2 * visual + 1

    # NCHW -> (N, HW, Cin); only boundary layout work happens in XLA.
    x2d = jnp.transpose(x_nchw, (0, 2, 3, 1)).reshape(N, HW, Cin)
    x2d = x2d.astype(jnp.float32)

    names = ("w00", "b00", "w10", "b10",
             "w01", "b01", "w02", "b02",
             "w11", "b11", "w12", "b12", "w13", "b13",
             "wl0", "wl1", "wsh", "bt")
    weights = [prep[k] for k in names]

    i0, i1 = prep["w00"].shape[1], prep["w10"].shape[1]
    c01, c02 = prep["w01"].shape[2], prep["w02"].shape[2]
    c11 = prep["w11"].shape[2]
    c12, c13 = prep["w12"].shape[2], prep["w13"].shape[2]
    O = prep["wl0"].shape[1]

    flops = 2 * N * HW * (
        Cin * (i0 + i1)
        + 9 * (i0 * c01 + c01 * c02 + i1 * c11 + c11 * c12 + c12 * c13)
        + (c02 + c13 + Cin) * O)
    bytes_accessed = 4 * (N * HW * (Cin + O) + sum(int(w.size) for w in weights))

    out = pl.pallas_call(
        functools.partial(_rfb_fused_kernel, H=H, W=W, d2=d2, d3=d3),
        out_shape=jax.ShapeDtypeStruct((N, HW, O), jnp.float32),
        grid=(N,),
        in_specs=[pl.BlockSpec((None, HW, Cin), lambda n: (n, 0, 0))]
                 + [_full_spec(w) for w in weights],
        out_specs=pl.BlockSpec((None, HW, O), lambda n: (n, 0, 0)),
        scratch_shapes=[
            pltpu.VMEM((H + 2, W + 2, i0), jnp.float32),            # b0_1 in
            pltpu.VMEM((H + 2 * d2, W + 2 * d2, c01), jnp.float32),  # b0_2 in
            pltpu.VMEM((H + 2, W + 2, i1), jnp.float32),            # b1_1 in
            pltpu.VMEM((H + 2, W + 2, c11), jnp.float32),           # b1_2 in
            pltpu.VMEM((H + 2 * d3, W + 2 * d3, c12), jnp.float32),  # b1_3 in
        ],
        compiler_params=pltpu.CompilerParams(
            dimension_semantics=("parallel",)),
        cost_estimate=pl.CostEstimate(flops=flops, transcendentals=0,
                                      bytes_accessed=bytes_accessed),
    )(x2d, *weights)

    out = out.reshape(N, H, W, O)
    return jnp.transpose(out, (0, 3, 1, 2))              # NHWC -> NCHW


# ---------------------------- pure-JAX reference -----------------------------

def _ref_conv(x, p, stride, padding, dilation, relu):
    w, b = _fold_bn(*p)
    whwio = jnp.transpose(w, (2, 3, 1, 0))
    out = lax.conv_general_dilated(
        x, whwio, window_strides=(stride, stride),
        padding=[(padding, padding), (padding, padding)],
        rhs_dilation=(dilation, dilation),
        dimension_numbers=("NHWC", "HWIO", "NHWC"))
    out = out + b
    return jnp.maximum(out, 0.0) if relu else out


def ref_rfb(x_nchw, p, *, stride=1, scale=0.1, visual=1):
    x = jnp.transpose(x_nchw, (0, 2, 3, 1))
    b0 = _ref_conv(x, p["b0_0"], 1, 0, 1, True)
    b0 = _ref_conv(b0, p["b0_1"], stride, 1, 1, True)
    b0 = _ref_conv(b0, p["b0_2"], 1, visual + 1, visual + 1, False)
    b1 = _ref_conv(x, p["b1_0"], 1, 0, 1, True)
    b1 = _ref_conv(b1, p["b1_1"], 1, 1, 1, True)
    b1 = _ref_conv(b1, p["b1_2"], stride, 1, 1, True)
    b1 = _ref_conv(b1, p["b1_3"], 1, 2 * visual + 1, 2 * visual + 1, False)
    cat = jnp.concatenate([b0, b1], axis=-1)
    out = _ref_conv(cat, p["lin"], 1, 0, 1, False)
    short = _ref_conv(x, p["short"], stride, 0, 1, False)
    out = jnp.maximum(out * scale + short, 0.0)
    return jnp.transpose(out, (0, 3, 1, 2))


# -------------------------------- init / main --------------------------------

def make_conv_params(key, o, i, kh, kw):
    k1, k2, k3 = jax.random.split(key, 3)
    fan_in = i * kh * kw
    w = jax.random.normal(k1, (o, i, kh, kw), jnp.float32) / jnp.sqrt(fan_in)
    gamma = 1.0 + 0.1 * jax.random.normal(k2, (o,), jnp.float32)
    beta = 0.1 * jax.random.normal(k3, (o,), jnp.float32)
    return (w, gamma, beta)


if __name__ == "__main__":
    in_planes, out_planes = 32, 32
    stride, scale, visual = 1, 0.1, 1
    inter = in_planes // 8                               # 4
    N, H, W = 2, 16, 16

    key = jax.random.PRNGKey(0)
    keys = jax.random.split(key, 10)
    params = {
        "b0_0": make_conv_params(keys[0], inter, in_planes, 1, 1),
        "b0_1": make_conv_params(keys[1], 2 * inter, inter, 3, 3),
        "b0_2": make_conv_params(keys[2], 2 * inter, 2 * inter, 3, 3),
        "b1_0": make_conv_params(keys[3], inter, in_planes, 1, 1),
        "b1_1": make_conv_params(keys[4], (inter // 2) * 3, inter, 3, 3),
        "b1_2": make_conv_params(keys[5], 2 * inter, (inter // 2) * 3, 3, 3),
        "b1_3": make_conv_params(keys[6], 2 * inter, 2 * inter, 3, 3),
        "lin":  make_conv_params(keys[7], out_planes, 4 * inter, 1, 1),
        "short": make_conv_params(keys[8], out_planes, in_planes, 1, 1),
    }
    x = jax.random.normal(keys[9], (N, in_planes, H, W), jnp.float32)  # NCHW

    # Weight folding / layout prep happens once, outside the forward.
    prep = prepare_rfb_params(params, scale=scale)

    fwd = jax.jit(functools.partial(basic_rfb_forward, stride=stride,
                                    visual=visual))
    out = jax.block_until_ready(fwd(x, prep))

    ref = jax.block_until_ready(
        ref_rfb(x, params, stride=stride, scale=scale, visual=visual))
    assert out.shape == (N, out_planes, H, W)
    err = float(jnp.max(jnp.abs(out - ref)))
    assert jnp.allclose(out, ref, atol=1e-4, rtol=1e-4), err

    print("KERNEL_OK")
</pallas_src>

<mosaic_0001>
module attributes {stable_mosaic.version = 11 : i64} {
  func.func @_rfb_fused_kernel(%arg0: i32, %arg1: memref<1x256x32xf32, #tpu.memory_space<vmem>>, %arg2: memref<32x4xf32, #tpu.memory_space<vmem>>, %arg3: memref<1x4xf32, #tpu.memory_space<vmem>>, %arg4: memref<32x4xf32, #tpu.memory_space<vmem>>, %arg5: memref<1x4xf32, #tpu.memory_space<vmem>>, %arg6: memref<9x4x8xf32, #tpu.memory_space<vmem>>, %arg7: memref<1x8xf32, #tpu.memory_space<vmem>>, %arg8: memref<9x8x8xf32, #tpu.memory_space<vmem>>, %arg9: memref<1x8xf32, #tpu.memory_space<vmem>>, %arg10: memref<9x4x6xf32, #tpu.memory_space<vmem>>, %arg11: memref<1x6xf32, #tpu.memory_space<vmem>>, %arg12: memref<9x6x8xf32, #tpu.memory_space<vmem>>, %arg13: memref<1x8xf32, #tpu.memory_space<vmem>>, %arg14: memref<9x8x8xf32, #tpu.memory_space<vmem>>, %arg15: memref<1x8xf32, #tpu.memory_space<vmem>>, %arg16: memref<8x32xf32, #tpu.memory_space<vmem>>, %arg17: memref<8x32xf32, #tpu.memory_space<vmem>>, %arg18: memref<32x32xf32, #tpu.memory_space<vmem>>, %arg19: memref<1x32xf32, #tpu.memory_space<vmem>>, %arg20: memref<1x256x32xf32, #tpu.memory_space<vmem>>, %arg21: memref<18x18x4xf32, #tpu.memory_space<vmem>>, %arg22: memref<20x20x8xf32, #tpu.memory_space<vmem>>, %arg23: memref<18x18x4xf32, #tpu.memory_space<vmem>>, %arg24: memref<18x18x6xf32, #tpu.memory_space<vmem>>, %arg25: memref<22x22x8xf32, #tpu.memory_space<vmem>>) attributes {dimension_semantics = [#tpu.dimension_semantics<parallel>], iteration_bounds = array<i64: 2>, scalar_prefetch = 0 : i64, scratch_operands = 5 : i64, tpu.core_type = #tpu.core_type<tc>, window_params = [{transform_indices = @transform_0, window_bounds = array<i64: 1, 256, 32>}, {pipeline_mode = #tpu.pipeline_mode<synchronous>, transform_indices = @transform_1, window_bounds = array<i64: 32, 4>}, {pipeline_mode = #tpu.pipeline_mode<synchronous>, transform_indices = @transform_2, window_bounds = array<i64: 1, 4>}, {pipeline_mode = #tpu.pipeline_mode<synchronous>, transform_indices = @transform_3, window_bounds = array<i64: 32, 4>}, {pipeline_mode = #tpu.pipeline_mode<synchronous>, transform_indices = @transform_4, window_bounds = array<i64: 1, 4>}, {pipeline_mode = #tpu.pipeline_mode<synchronous>, transform_indices = @transform_5, window_bounds = array<i64: 9, 4, 8>}, {pipeline_mode = #tpu.pipeline_mode<synchronous>, transform_indices = @transform_6, window_bounds = array<i64: 1, 8>}, {pipeline_mode = #tpu.pipeline_mode<synchronous>, transform_indices = @transform_7, window_bounds = array<i64: 9, 8, 8>}, {pipeline_mode = #tpu.pipeline_mode<synchronous>, transform_indices = @transform_8, window_bounds = array<i64: 1, 8>}, {pipeline_mode = #tpu.pipeline_mode<synchronous>, transform_indices = @transform_9, window_bounds = array<i64: 9, 4, 6>}, {pipeline_mode = #tpu.pipeline_mode<synchronous>, transform_indices = @transform_10, window_bounds = array<i64: 1, 6>}, {pipeline_mode = #tpu.pipeline_mode<synchronous>, transform_indices = @transform_11, window_bounds = array<i64: 9, 6, 8>}, {pipeline_mode = #tpu.pipeline_mode<synchronous>, transform_indices = @transform_12, window_bounds = array<i64: 1, 8>}, {pipeline_mode = #tpu.pipeline_mode<synchronous>, transform_indices = @transform_13, window_bounds = array<i64: 9, 8, 8>}, {pipeline_mode = #tpu.pipeline_mode<synchronous>, transform_indices = @transform_14, window_bounds = array<i64: 1, 8>}, {pipeline_mode = #tpu.pipeline_mode<synchronous>, transform_indices = @transform_15, window_bounds = array<i64: 8, 32>}, {pipeline_mode = #tpu.pipeline_mode<synchronous>, transform_indices = @transform_16, window_bounds = array<i64: 8, 32>}, {pipeline_mode = #tpu.pipeline_mode<synchronous>, transform_indices = @transform_17, window_bounds = array<i64: 32, 32>}, {pipeline_mode = #tpu.pipeline_mode<synchronous>, transform_indices = @transform_18, window_bounds = array<i64: 1, 32>}, {transform_indices = @transform_19, window_bounds = array<i64: 1, 256, 32>}]} {
    %c0 = arith.constant 0 : index
    %c0_0 = arith.constant 0 : index
    %c0_1 = arith.constant 0 : index
    %0 = vector.load %arg1[%c0, %c0_0, %c0_1] : memref<1x256x32xf32, #tpu.memory_space<vmem>>, vector<1x256x32xf32>
    %1 = vector.shape_cast %0 : vector<1x256x32xf32> to vector<256x32xf32>
    %c0_2 = arith.constant 0 : index
    %c0_3 = arith.constant 0 : index
    %2 = vector.load %arg2[%c0_2, %c0_3] : memref<32x4xf32, #tpu.memory_space<vmem>>, vector<32x4xf32>
    %cst = arith.constant dense<0.000000e+00> : vector<256x4xf32>
    %3 = tpu.matmul %1, %2, %cst {dimension_numbers = #tpu.dot_dimension_numbers<[1], [0], [0], [1], [0, 0, 1, 1], [], []>} : vector<256x32xf32>, vector<32x4xf32>, vector<256x4xf32> -> vector<256x4xf32>
    %c0_4 = arith.constant 0 : index
    %c0_5 = arith.constant 0 : index
    %4 = vector.load %arg3[%c0_4, %c0_5] : memref<1x4xf32, #tpu.memory_space<vmem>>, vector<1x4xf32>
    %5 = vector.broadcast %4 : vector<1x4xf32> to vector<256x4xf32>
    %6 = arith.addf %3, %5 : vector<256x4xf32>
    %cst_6 = arith.constant 0.000000e+00 : f32
    %7 = vector.broadcast %cst_6 : f32 to vector<256x4xf32>
    %8 = arith.maximumf %6, %7 : vector<256x4xf32>
    %c0_7 = arith.constant 0 : index
    %c0_8 = arith.constant 0 : index
    %9 = vector.load %arg4[%c0_7, %c0_8] : memref<32x4xf32, #tpu.memory_space<vmem>>, vector<32x4xf32>
    %cst_9 = arith.constant dense<0.000000e+00> : vector<256x4xf32>
    %10 = tpu.matmul %1, %9, %cst_9 {dimension_numbers = #tpu.dot_dimension_numbers<[1], [0], [0], [1], [0, 0, 1, 1], [], []>} : vector<256x32xf32>, vector<32x4xf32>, vector<256x4xf32> -> vector<256x4xf32>
    %c0_10 = arith.constant 0 : index
    %c0_11 = arith.constant 0 : index
    %11 = vector.load %arg5[%c0_10, %c0_11] : memref<1x4xf32, #tpu.memory_space<vmem>>, vector<1x4xf32>
    %12 = vector.broadcast %11 : vector<1x4xf32> to vector<256x4xf32>
    %13 = arith.addf %10, %12 : vector<256x4xf32>
    %cst_12 = arith.constant 0.000000e+00 : f32
    %14 = vector.broadcast %cst_12 : f32 to vector<256x4xf32>
    %15 = arith.maximumf %13, %14 : vector<256x4xf32>
    %cst_13 = arith.constant 0.000000e+00 : f32
    %16 = vector.broadcast %cst_13 : f32 to vector<18x18x4xf32>
    %c0_14 = arith.constant 0 : index
    %c0_15 = arith.constant 0 : index
    %c0_16 = arith.constant 0 : index
    %17 = vector.load %arg21[%c0_14, %c0_15, %c0_16] : memref<18x18x4xf32, #tpu.memory_space<vmem>>, vector<18x18x4xf32>
    tpu.vector_store %arg21[%c0_14, %c0_15, %c0_16], %16 {strides = array<i32>} : memref<18x18x4xf32, #tpu.memory_space<vmem>>, vector<18x18x4xf32>,
    %18 = vector.shape_cast %8 : vector<256x4xf32> to vector<16x16x4xf32>
    %c1 = arith.constant 1 : index
    %c1_17 = arith.constant 1 : index
    %c0_18 = arith.constant 0 : index
    %19 = vector.load %arg21[%c1, %c1_17, %c0_18] : memref<18x18x4xf32, #tpu.memory_space<vmem>>, vector<16x16x4xf32>
    tpu.vector_store %arg21[%c1, %c1_17, %c0_18], %18 {strides = array<i32>} : memref<18x18x4xf32, #tpu.memory_space<vmem>>, vector<16x16x4xf32>,
    %c0_19 = arith.constant 0 : index
    %c0_20 = arith.constant 0 : index
    %c0_21 = arith.constant 0 : index
    %20 = vector.load %arg21[%c0_19, %c0_20, %c0_21] : memref<18x18x4xf32, #tpu.memory_space<vmem>>, vector<16x16x4xf32>
    %21 = vector.shape_cast %20 : vector<16x16x4xf32> to vector<256x4xf32>
    %c0_22 = arith.constant 0 : index
    %c0_23 = arith.constant 0 : index
    %c0_24 = arith.constant 0 : index
    %22 = vector.load %arg6[%c0_22, %c0_23, %c0_24] : memref<9x4x8xf32, #tpu.memory_space<vmem>>, vector<1x4x8xf32>
    %23 = vector.shape_cast %22 : vector<1x4x8xf32> to vector<4x8xf32>
    %cst_25 = arith.constant dense<0.000000e+00> : vector<256x8xf32>
    %24 = tpu.matmul %21, %23, %cst_25 {dimension_numbers = #tpu.dot_dimension_numbers<[1], [0], [0], [1], [0, 0, 1, 1], [], []>} : vector<256x4xf32>, vector<4x8xf32>, vector<256x8xf32> -> vector<256x8xf32>
    %c0_26 = arith.constant 0 : index
    %c1_27 = arith.constant 1 : index
    %c0_28 = arith.constant 0 : index
    %25 = vector.load %arg21[%c0_26, %c1_27, %c0_28] : memref<18x18x4xf32, #tpu.memory_space<vmem>>, vector<16x16x4xf32>
    %26 = vector.shape_cast %25 : vector<16x16x4xf32> to vector<256x4xf32>
    %c1_29 = arith.constant 1 : index
    %c0_30 = arith.constant 0 : index
    %c0_31 = arith.constant 0 : index
    %27 = vector.load %arg6[%c1_29, %c0_30, %c0_31] : memref<9x4x8xf32, #tpu.memory_space<vmem>>, vector<1x4x8xf32>
    %28 = vector.shape_cast %27 : vector<1x4x8xf32> to vector<4x8xf32>
    %cst_32 = arith.constant dense<0.000000e+00> : vector<256x8xf32>
    %29 = tpu.matmul %26, %28, %cst_32 {dimension_numbers = #tpu.dot_dimension_numbers<[1], [0], [0], [1], [0, 0, 1, 1], [], []>} : vector<256x4xf32>, vector<4x8xf32>, vector<256x8xf32> -> vector<256x8xf32>
    %30 = arith.addf %24, %29 : vector<256x8xf32>
    %c0_33 = arith.constant 0 : index
    %c2 = arith.constant 2 : index
    %c0_34 = arith.constant 0 : index
    %31 = vector.load %arg21[%c0_33, %c2, %c0_34] : memref<18x18x4xf32, #tpu.memory_space<vmem>>, vector<16x16x4xf32>
    %32 = vector.shape_cast %31 : vector<16x16x4xf32> to vector<256x4xf32>
    %c2_35 = arith.constant 2 : index
    %c0_36 = arith.constant 0 : index
    %c0_37 = arith.constant 0 : index
    %33 = vector.load %arg6[%c2_35, %c0_36, %c0_37] : memref<9x4x8xf32, #tpu.memory_space<vmem>>, vector<1x4x8xf32>
    %34 = vector.shape_cast %33 : vector<1x4x8xf32> to vector<4x8xf32>
    %cst_38 = arith.constant dense<0.000000e+00> : vector<256x8xf32>
    %35 = tpu.matmul %32, %34, %cst_38 {dimension_numbers = #tpu.dot_dimension_numbers<[1], [0], [0], [1], [0, 0, 1, 1], [], []>} : vector<256x4xf32>, vector<4x8xf32>, vector<256x8xf32> -> vector<256x8xf32>
    %36 = arith.addf %30, %35 : vector<256x8xf32>
    %c1_39 = arith.constant 1 : index
    %c0_40 = arith.constant 0 : index
    %c0_41 = arith.constant 0 : index
    %37 = vector.load %arg21[%c1_39, %c0_40, %c0_41] : memref<18x18x4xf32, #tpu.memory_space<vmem>>, vector<16x16x4xf32>
    %38 = vector.shape_cast %37 : vector<16x16x4xf32> to vector<256x4xf32>
    %c3 = arith.constant 3 : index
    %c0_42 = arith.constant 0 : index
    %c0_43 = arith.constant 0 : index
    %39 = vector.load %arg6[%c3, %c0_42, %c0_43] : memref<9x4x8xf32, #tpu.memory_space<vmem>>, vector<1x4x8xf32>
    %40 = vector.shape_cast %39 : vector<1x4x8xf32> to vector<4x8xf32>
    %cst_44 = arith.constant dense<0.000000e+00> : vector<256x8xf32>
    %41 = tpu.matmul %38, %40, %cst_44 {dimension_numbers = #tpu.dot_dimension_numbers<[1], [0], [0], [1], [0, 0, 1, 1], [], []>} : vector<256x4xf32>, vector<4x8xf32>, vector<256x8xf32> -> vector<256x8xf32>
    %42 = arith.addf %36, %41 : vector<256x8xf32>
    %c1_45 = arith.constant 1 : index
    %c1_46 = arith.constant 1 : index
    %c0_47 = arith.constant 0 : index
    %43 = vector.load %arg21[%c1_45, %c1_46, %c0_47] : memref<18x18x4xf32, #tpu.memory_space<vmem>>, vector<16x16x4xf32>
    %44 = vector.shape_cast %43 : vector<16x16x4xf32> to vector<256x4xf32>
    %c4 = arith.constant 4 : index
    %c0_48 = arith.constant 0 : index
    %c0_49 = arith.constant 0 : index
    %45 = vector.load %arg6[%c4, %c0_48, %c0_49] : memref<9x4x8xf32, #tpu.memory_space<vmem>>, vector<1x4x8xf32>
    %46 = vector.shape_cast %45 : vector<1x4x8xf32> to vector<4x8xf32>
    %cst_50 = arith.constant dense<0.000000e+00> : vector<256x8xf32>
    %47 = tpu.matmul %44, %46, %cst_50 {dimension_numbers = #tpu.dot_dimension_numbers<[1], [0], [0], [1], [0, 0, 1, 1], [], []>} : vector<256x4xf32>, vector<4x8xf32>, vector<256x8xf32> -> vector<256x8xf32>
    %48 = arith.addf %42, %47 : vector<256x8xf32>
    %c1_51 = arith.constant 1 : index
    %c2_52 = arith.constant 2 : index
    %c0_53 = arith.constant 0 : index
    %49 = vector.load %arg21[%c1_51, %c2_52, %c0_53] : memref<18x18x4xf32, #tpu.memory_space<vmem>>, vector<16x16x4xf32>
    %50 = vector.shape_cast %49 : vector<16x16x4xf32> to vector<256x4xf32>
    %c5 = arith.constant 5 : index
    %c0_54 = arith.constant 0 : index
    %c0_55 = arith.constant 0 : index
    %51 = vector.load %arg6[%c5, %c0_54, %c0_55] : memref<9x4x8xf32, #tpu.memory_space<vmem>>, vector<1x4x8xf32>
    %52 = vector.shape_cast %51 : vector<1x4x8xf32> to vector<4x8xf32>
    %cst_56 = arith.constant dense<0.000000e+00> : vector<256x8xf32>
    %53 = tpu.matmul %50, %52, %cst_56 {dimension_numbers = #tpu.dot_dimension_numbers<[1], [0], [0], [1], [0, 0, 1, 1], [], []>} : vector<256x4xf32>, vector<4x8xf32>, vector<256x8xf32> -> vector<256x8xf32>
    %54 = arith.addf %48, %53 : vector<256x8xf32>
    %c2_57 = arith.constant 2 : index
    %c0_58 = arith.constant 0 : index
    %c0_59 = arith.constant 0 : index
    %55 = vector.load %arg21[%c2_57, %c0_58, %c0_59] : memref<18x18x4xf32, #tpu.memory_space<vmem>>, vector<16x16x4xf32>
    %56 = vector.shape_cast %55 : vector<16x16x4xf32> to vector<256x4xf32>
    %c6 = arith.constant 6 : index
    %c0_60 = arith.constant 0 : index
    %c0_61 = arith.constant 0 : index
    %57 = vector.load %arg6[%c6, %c0_60, %c0_61] : memref<9x4x8xf32, #tpu.memory_space<vmem>>, vector<1x4x8xf32>
    %58 = vector.shape_cast %57 : vector<1x4x8xf32> to vector<4x8xf32>
    %cst_62 = arith.constant dense<0.000000e+00> : vector<256x8xf32>
    %59 = tpu.matmul %56, %58, %cst_62 {dimension_numbers = #tpu.dot_dimension_numbers<[1], [0], [0], [1], [0, 0, 1, 1], [], []>} : vector<256x4xf32>, vector<4x8xf32>, vector<256x8xf32> -> vector<256x8xf32>
    %60 = arith.addf %54, %59 : vector<256x8xf32>
    %c2_63 = arith.constant 2 : index
    %c1_64 = arith.constant 1 : index
    %c0_65 = arith.constant 0 : index
    %61 = vector.load %arg21[%c2_63, %c1_64, %c0_65] : memref<18x18x4xf32, #tpu.memory_space<vmem>>, vector<16x16x4xf32>
    %62 = vector.shape_cast %61 : vector<16x16x4xf32> to vector<256x4xf32>
    %c7 = arith.constant 7 : index
    %c0_66 = arith.constant 0 : index
    %c0_67 = arith.constant 0 : index
    %63 = vector.load %arg6[%c7, %c0_66, %c0_67] : memref<9x4x8xf32, #tpu.memory_space<vmem>>, vector<1x4x8xf32>
    %64 = vector.shape_cast %63 : vector<1x4x8xf32> to vector<4x8xf32>
    %cst_68 = arith.constant dense<0.000000e+00> : vector<256x8xf32>
    %65 = tpu.matmul %62, %64, %cst_68 {dimension_numbers = #tpu.dot_dimension_numbers<[1], [0], [0], [1], [0, 0, 1, 1], [], []>} : vector<256x4xf32>, vector<4x8xf32>, vector<256x8xf32> -> vector<256x8xf32>
    %66 = arith.addf %60, %65 : vector<256x8xf32>
    %c2_69 = arith.constant 2 : index
    %c2_70 = arith.constant 2 : index
    %c0_71 = arith.constant 0 : index
    %67 = vector.load %arg21[%c2_69, %c2_70, %c0_71] : memref<18x18x4xf32, #tpu.memory_space<vmem>>, vector<16x16x4xf32>
    %68 = vector.shape_cast %67 : vector<16x16x4xf32> to vector<256x4xf32>
    %c8 = arith.constant 8 : index
    %c0_72 = arith.constant 0 : index
    %c0_73 = arith.constant 0 : index
    %69 = vector.load %arg6[%c8, %c0_72, %c0_73] : memref<9x4x8xf32, #tpu.memory_space<vmem>>, vector<1x4x8xf32>
    %70 = vector.shape_cast %69 : vector<1x4x8xf32> to vector<4x8xf32>
    %cst_74 = arith.constant dense<0.000000e+00> : vector<256x8xf32>
    %71 = tpu.matmul %68, %70, %cst_74 {dimension_numbers = #tpu.dot_dimension_numbers<[1], [0], [0], [1], [0, 0, 1, 1], [], []>} : vector<256x4xf32>, vector<4x8xf32>, vector<256x8xf32> -> vector<256x8xf32>
    %72 = arith.addf %66, %71 : vector<256x8xf32>
    %c0_75 = arith.constant 0 : index
    %c0_76 = arith.constant 0 : index
    %73 = vector.load %arg7[%c0_75, %c0_76] : memref<1x8xf32, #tpu.memory_space<vmem>>, vector<1x8xf32>
    %74 = vector.broadcast %73 : vector<1x8xf32> to vector<256x8xf32>
    %75 = arith.addf %72, %74 : vector<256x8xf32>
    %cst_77 = arith.constant 0.000000e+00 : f32
    %76 = vector.broadcast %cst_77 : f32 to vector<256x8xf32>
    %77 = arith.maximumf %75, %76 : vector<256x8xf32>
    %cst_78 = arith.constant 0.000000e+00 : f32
    %78 = vector.broadcast %cst_78 : f32 to vector<20x20x8xf32>
    %c0_79 = arith.constant 0 : index
    %c0_80 = arith.constant 0 : index
    %c0_81 = arith.constant 0 : index
    %79 = vector.load %arg22[%c0_79, %c0_80, %c0_81] : memref<20x20x8xf32, #tpu.memory_space<vmem>>, vector<20x20x8xf32>
    tpu.vector_store %arg22[%c0_79, %c0_80, %c0_81], %78 {strides = array<i32>} : memref<20x20x8xf32, #tpu.memory_space<vmem>>, vector<20x20x8xf32>,
    %80 = vector.shape_cast %77 : vector<256x8xf32> to vector<16x16x8xf32>
    %c2_82 = arith.constant 2 : index
    %c2_83 = arith.constant 2 : index
    %c0_84 = arith.constant 0 : index
    %81 = vector.load %arg22[%c2_82, %c2_83, %c0_84] : memref<20x20x8xf32, #tpu.memory_space<vmem>>, vector<16x16x8xf32>
    tpu.vector_store %arg22[%c2_82, %c2_83, %c0_84], %80 {strides = array<i32>} : memref<20x20x8xf32, #tpu.memory_space<vmem>>, vector<16x16x8xf32>,
    %c0_85 = arith.constant 0 : index
    %c0_86 = arith.constant 0 : index
    %c0_87 = arith.constant 0 : index
    %82 = vector.load %arg22[%c0_85, %c0_86, %c0_87] : memref<20x20x8xf32, #tpu.memory_space<vmem>>, vector<16x16x8xf32>
    %83 = vector.shape_cast %82 : vector<16x16x8xf32> to vector<256x8xf32>
    %c0_88 = arith.constant 0 : index
    %c0_89 = arith.constant 0 : index
    %c0_90 = arith.constant 0 : index
    %84 = vector.load %arg8[%c0_88, %c0_89, %c0_90] : memref<9x8x8xf32, #tpu.memory_space<vmem>>, vector<1x8x8xf32>
    %85 = vector.shape_cast %84 : vector<1x8x8xf32> to vector<8x8xf32>
    %cst_91 = arith.constant dense<0.000000e+00> : vector<256x8xf32>
    %86 = tpu.matmul %83, %85, %cst_91 {dimension_numbers = #tpu.dot_dimension_numbers<[1], [0], [0], [1], [0, 0, 1, 1], [], []>} : vector<256x8xf32>, vector<8x8xf32>, vector<256x8xf32> -> vector<256x8xf32>
    %c0_92 = arith.constant 0 : index
    %c2_93 = arith.constant 2 : index
    %c0_94 = arith.constant 0 : index
    %87 = vector.load %arg22[%c0_92, %c2_93, %c0_94] : memref<20x20x8xf32, #tpu.memory_space<vmem>>, vector<16x16x8xf32>
    %88 = vector.shape_cast %87 : vector<16x16x8xf32> to vector<256x8xf32>
    %c1_95 = arith.constant 1 : index
    %c0_96 = arith.constant 0 : index
    %c0_97 = arith.constant 0 : index
    %89 = vector.load %arg8[%c1_95, %c0_96, %c0_97] : memref<9x8x8xf32, #tpu.memory_space<vmem>>, vector<1x8x8xf32>
    %90 = vector.shape_cast %89 : vector<1x8x8xf32> to vector<8x8xf32>
    %cst_98 = arith.constant dense<0.000000e+00> : vector<256x8xf32>
    %91 = tpu.matmul %88, %90, %cst_98 {dimension_numbers = #tpu.dot_dimension_numbers<[1], [0], [0], [1], [0, 0, 1, 1], [], []>} : vector<256x8xf32>, vector<8x8xf32>, vector<256x8xf32> -> vector<256x8xf32>
    %92 = arith.addf %86, %91 : vector<256x8xf32>
    %c0_99 = arith.constant 0 : index
    %c4_100 = arith.constant 4 : index
    %c0_101 = arith.constant 0 : index
    %93 = vector.load %arg22[%c0_99, %c4_100, %c0_101] : memref<20x20x8xf32, #tpu.memory_space<vmem>>, vector<16x16x8xf32>
    %94 = vector.shape_cast %93 : vector<16x16x8xf32> to vector<256x8xf32>
    %c2_102 = arith.constant 2 : index
    %c0_103 = arith.constant 0 : index
    %c0_104 = arith.constant 0 : index
    %95 = vector.load %arg8[%c2_102, %c0_103, %c0_104] : memref<9x8x8xf32, #tpu.memory_space<vmem>>, vector<1x8x8xf32>
    %96 = vector.shape_cast %95 : vector<1x8x8xf32> to vector<8x8xf32>
    %cst_105 = arith.constant dense<0.000000e+00> : vector<256x8xf32>
    %97 = tpu.matmul %94, %96, %cst_105 {dimension_numbers = #tpu.dot_dimension_numbers<[1], [0], [0], [1], [0, 0, 1, 1], [], []>} : vector<256x8xf32>, vector<8x8xf32>, vector<256x8xf32> -> vector<256x8xf32>
    %98 = arith.addf %92, %97 : vector<256x8xf32>
    %c2_106 = arith.constant 2 : index
    %c0_107 = arith.constant 0 : index
    %c0_108 = arith.constant 0 : index
    %99 = vector.load %arg22[%c2_106, %c0_107, %c0_108] : memref<20x20x8xf32, #tpu.memory_space<vmem>>, vector<16x16x8xf32>
    %100 = vector.shape_cast %99 : vector<16x16x8xf32> to vector<256x8xf32>
    %c3_109 = arith.constant 3 : index
    %c0_110 = arith.constant 0 : index
    %c0_111 = arith.constant 0 : index
    %101 = vector.load %arg8[%c3_109, %c0_110, %c0_111] : memref<9x8x8xf32, #tpu.memory_space<vmem>>, vector<1x8x8xf32>
    %102 = vector.shape_cast %101 : vector<1x8x8xf32> to vector<8x8xf32>
    %cst_112 = arith.constant dense<0.000000e+00> : vector<256x8xf32>
    %103 = tpu.matmul %100, %102, %cst_112 {dimension_numbers = #tpu.dot_dimension_numbers<[1], [0], [0], [1], [0, 0, 1, 1], [], []>} : vector<256x8xf32>, vector<8x8xf32>, vector<256x8xf32> -> vector<256x8xf32>
    %104 = arith.addf %98, %103 : vector<256x8xf32>
    %c2_113 = arith.constant 2 : index
    %c2_114 = arith.constant 2 : index
    %c0_115 = arith.constant 0 : index
    %105 = vector.load %arg22[%c2_113, %c2_114, %c0_115] : memref<20x20x8xf32, #tpu.memory_space<vmem>>, vector<16x16x8xf32>
    %106 = vector.shape_cast %105 : vector<16x16x8xf32> to vector<256x8xf32>
    %c4_116 = arith.constant 4 : index
    %c0_117 = arith.constant 0 : index
    %c0_118 = arith.constant 0 : index
    %107 = vector.load %arg8[%c4_116, %c0_117, %c0_118] : memref<9x8x8xf32, #tpu.memory_space<vmem>>, vector<1x8x8xf32>
    %108 = vector.shape_cast %107 : vector<1x8x8xf32> to vector<8x8xf32>
    %cst_119 = arith.constant dense<0.000000e+00> : vector<256x8xf32>
    %109 = tpu.matmul %106, %108, %cst_119 {dimension_numbers = #tpu.dot_dimension_numbers<[1], [0], [0], [1], [0, 0, 1, 1], [], []>} : vector<256x8xf32>, vector<8x8xf32>, vector<256x8xf32> -> vector<256x8xf32>
    %110 = arith.addf %104, %109 : vector<256x8xf32>
    %c2_120 = arith.constant 2 : index
    %c4_121 = arith.constant 4 : index
    %c0_122 = arith.constant 0 : index
    %111 = vector.load %arg22[%c2_120, %c4_121, %c0_122] : memref<20x20x8xf32, #tpu.memory_space<vmem>>, vector<16x16x8xf32>
    %112 = vector.shape_cast %111 : vector<16x16x8xf32> to vector<256x8xf32>
    %c5_123 = arith.constant 5 : index
    %c0_124 = arith.constant 0 : index
    %c0_125 = arith.constant 0 : index
    %113 = vector.load %arg8[%c5_123, %c0_124, %c0_125] : memref<9x8x8xf32, #tpu.memory_space<vmem>>, vector<1x8x8xf32>
    %114 = vector.shape_cast %113 : vector<1x8x8xf32> to vector<8x8xf32>
    %cst_126 = arith.constant dense<0.000000e+00> : vector<256x8xf32>
    %115 = tpu.matmul %112, %114, %cst_126 {dimension_numbers = #tpu.dot_dimension_numbers<[1], [0], [0], [1], [0, 0, 1, 1], [], []>} : vector<256x8xf32>, vector<8x8xf32>, vector<256x8xf32> -> vector<256x8xf32>
    %116 = arith.addf %110, %115 : vector<256x8xf32>
    %c4_127 = arith.constant 4 : index
    %c0_128 = arith.constant 0 : index
    %c0_129 = arith.constant 0 : index
    %117 = vector.load %arg22[%c4_127, %c0_128, %c0_129] : memref<20x20x8xf32, #tpu.memory_space<vmem>>, vector<16x16x8xf32>
    %118 = vector.shape_cast %117 : vector<16x16x8xf32> to vector<256x8xf32>
    %c6_130 = arith.constant 6 : index
    %c0_131 = arith.constant 0 : index
    %c0_132 = arith.constant 0 : index
    %119 = vector.load %arg8[%c6_130, %c0_131, %c0_132] : memref<9x8x8xf32, #tpu.memory_space<vmem>>, vector<1x8x8xf32>
    %120 = vector.shape_cast %119 : vector<1x8x8xf32> to vector<8x8xf32>
    %cst_133 = arith.constant dense<0.000000e+00> : vector<256x8xf32>
    %121 = tpu.matmul %118, %120, %cst_133 {dimension_numbers = #tpu.dot_dimension_numbers<[1], [0], [0], [1], [0, 0, 1, 1], [], []>} : vector<256x8xf32>, vector<8x8xf32>, vector<256x8xf32> -> vector<256x8xf32>
    %122 = arith.addf %116, %121 : vector<256x8xf32>
    %c4_134 = arith.constant 4 : index
    %c2_135 = arith.constant 2 : index
    %c0_136 = arith.constant 0 : index
    %123 = vector.load %arg22[%c4_134, %c2_135, %c0_136] : memref<20x20x8xf32, #tpu.memory_space<vmem>>, vector<16x16x8xf32>
    %124 = vector.shape_cast %123 : vector<16x16x8xf32> to vector<256x8xf32>
    %c7_137 = arith.constant 7 : index
    %c0_138 = arith.constant 0 : index
    %c0_139 = arith.constant 0 : index
    %125 = vector.load %arg8[%c7_137, %c0_138, %c0_139] : memref<9x8x8xf32, #tpu.memory_space<vmem>>, vector<1x8x8xf32>
    %126 = vector.shape_cast %125 : vector<1x8x8xf32> to vector<8x8xf32>
    %cst_140 = arith.constant dense<0.000000e+00> : vector<256x8xf32>
    %127 = tpu.matmul %124, %126, %cst_140 {dimension_numbers = #tpu.dot_dimension_numbers<[1], [0], [0], [1], [0, 0, 1, 1], [], []>} : vector<256x8xf32>, vector<8x8xf32>, vector<256x8xf32> -> vector<256x8xf32>
    %128 = arith.addf %122, %127 : vector<256x8xf32>
    %c4_141 = arith.constant 4 : index
    %c4_142 = arith.constant 4 : index
    %c0_143 = arith.constant 0 : index
    %129 = vector.load %arg22[%c4_141, %c4_142, %c0_143] : memref<20x20x8xf32, #tpu.memory_space<vmem>>, vector<16x16x8xf32>
    %130 = vector.shape_cast %129 : vector<16x16x8xf32> to vector<256x8xf32>
    %c8_144 = arith.constant 8 : index
    %c0_145 = arith.constant 0 : index
    %c0_146 = arith.constant 0 : index
    %131 = vector.load %arg8[%c8_144, %c0_145, %c0_146] : memref<9x8x8xf32, #tpu.memory_space<vmem>>, vector<1x8x8xf32>
    %132 = vector.shape_cast %131 : vector<1x8x8xf32> to vector<8x8xf32>
    %cst_147 = arith.constant dense<0.000000e+00> : vector<256x8xf32>
    %133 = tpu.matmul %130, %132, %cst_147 {dimension_numbers = #tpu.dot_dimension_numbers<[1], [0], [0], [1], [0, 0, 1, 1], [], []>} : vector<256x8xf32>, vector<8x8xf32>, vector<256x8xf32> -> vector<256x8xf32>
    %134 = arith.addf %128, %133 : vector<256x8xf32>
    %c0_148 = arith.constant 0 : index
    %c0_149 = arith.constant 0 : index
    %135 = vector.load %arg9[%c0_148, %c0_149] : memref<1x8xf32, #tpu.memory_space<vmem>>, vector<1x8xf32>
    %136 = vector.broadcast %135 : vector<1x8xf32> to vector<256x8xf32>
    %137 = arith.addf %134, %136 : vector<256x8xf32>
    %cst_150 = arith.constant 0.000000e+00 : f32
    %138 = vector.broadcast %cst_150 : f32 to vector<18x18x4xf32>
    %c0_151 = arith.constant 0 : index
    %c0_152 = arith.constant 0 : index
    %c0_153 = arith.constant 0 : index
    %139 = vector.load %arg23[%c0_151, %c0_152, %c0_153] : memref<18x18x4xf32, #tpu.memory_space<vmem>>, vector<18x18x4xf32>
    tpu.vector_store %arg23[%c0_151, %c0_152, %c0_153], %138 {strides = array<i32>} : memref<18x18x4xf32, #tpu.memory_space<vmem>>, vector<18x18x4xf32>,
    %140 = vector.shape_cast %15 : vector<256x4xf32> to vector<16x16x4xf32>
    %c1_154 = arith.constant 1 : index
    %c1_155 = arith.constant 1 : index
    %c0_156 = arith.constant 0 : index
    %141 = vector.load %arg23[%c1_154, %c1_155, %c0_156] : memref<18x18x4xf32, #tpu.memory_space<vmem>>, vector<16x16x4xf32>
    tpu.vector_store %arg23[%c1_154, %c1_155, %c0_156], %140 {strides = array<i32>} : memref<18x18x4xf32, #tpu.memory_space<vmem>>, vector<16x16x4xf32>,
    %c0_157 = arith.constant 0 : index
    %c0_158 = arith.constant 0 : index
    %c0_159 = arith.constant 0 : index
    %142 = vector.load %arg23[%c0_157, %c0_158, %c0_159] : memref<18x18x4xf32, #tpu.memory_space<vmem>>, vector<16x16x4xf32>
    %143 = vector.shape_cast %142 : vector<16x16x4xf32> to vector<256x4xf32>
    %c0_160 = arith.constant 0 : index
    %c0_161 = arith.constant 0 : index
    %c0_162 = arith.constant 0 : index
    %144 = vector.load %arg10[%c0_160, %c0_161, %c0_162] : memref<9x4x6xf32, #tpu.memory_space<vmem>>, vector<1x4x6xf32>
    %145 = vector.shape_cast %144 : vector<1x4x6xf32> to vector<4x6xf32>
    %cst_163 = arith.constant dense<0.000000e+00> : vector<256x6xf32>
    %146 = tpu.matmul %143, %145, %cst_163 {dimension_numbers = #tpu.dot_dimension_numbers<[1], [0], [0], [1], [0, 0, 1, 1], [], []>} : vector<256x4xf32>, vector<4x6xf32>, vector<256x6xf32> -> vector<256x6xf32>
    %c0_164 = arith.constant 0 : index
    %c1_165 = arith.constant 1 : index
    %c0_166 = arith.constant 0 : index
    %147 = vector.load %arg23[%c0_164, %c1_165, %c0_166] : memref<18x18x4xf32, #tpu.memory_space<vmem>>, vector<16x16x4xf32>
    %148 = vector.shape_cast %147 : vector<16x16x4xf32> to vector<256x4xf32>
    %c1_167 = arith.constant 1 : index
    %c0_168 = arith.constant 0 : index
    %c0_169 = arith.constant 0 : index
    %149 = vector.load %arg10[%c1_167, %c0_168, %c0_169] : memref<9x4x6xf32, #tpu.memory_space<vmem>>, vector<1x4x6xf32>
    %150 = vector.shape_cast %149 : vector<1x4x6xf32> to vector<4x6xf32>
    %cst_170 = arith.constant dense<0.000000e+00> : vector<256x6xf32>
    %151 = tpu.matmul %148, %150, %cst_170 {dimension_numbers = #tpu.dot_dimension_numbers<[1], [0], [0], [1], [0, 0, 1, 1], [], []>} : vector<256x4xf32>, vector<4x6xf32>, vector<256x6xf32> -> vector<256x6xf32>
    %152 = arith.addf %146, %151 : vector<256x6xf32>
    %c0_171 = arith.constant 0 : index
    %c2_172 = arith.constant 2 : index
    %c0_173 = arith.constant 0 : index
    %153 = vector.load %arg23[%c0_171, %c2_172, %c0_173] : memref<18x18x4xf32, #tpu.memory_space<vmem>>, vector<16x16x4xf32>
    %154 = vector.shape_cast %153 : vector<16x16x4xf32> to vector<256x4xf32>
    %c2_174 = arith.constant 2 : index
    %c0_175 = arith.constant 0 : index
    %c0_176 = arith.constant 0 : index
    %155 = vector.load %arg10[%c2_174, %c0_175, %c0_176] : memref<9x4x6xf32, #tpu.memory_space<vmem>>, vector<1x4x6xf32>
    %156 = vector.shape_cast %155 : vector<1x4x6xf32> to vector<4x6xf32>
    %cst_177 = arith.constant dense<0.000000e+00> : vector<256x6xf32>
    %157 = tpu.matmul %154, %156, %cst_177 {dimension_numbers = #tpu.dot_dimension_numbers<[1], [0], [0], [1], [0, 0, 1, 1], [], []>} : vector<256x4xf32>, vector<4x6xf32>, vector<256x6xf32> -> vector<256x6xf32>
    %158 = arith.addf %152, %157 : vector<256x6xf32>
    %c1_178 = arith.constant 1 : index
    %c0_179 = arith.constant 0 : index
    %c0_180 = arith.constant 0 : index
    %159 = vector.load %arg23[%c1_178, %c0_179, %c0_180] : memref<18x18x4xf32, #tpu.memory_space<vmem>>, vector<16x16x4xf32>
    %160 = vector.shape_cast %159 : vector<16x16x4xf32> to vector<256x4xf32>
    %c3_181 = arith.constant 3 : index
    %c0_182 = arith.constant 0 : index
    %c0_183 = arith.constant 0 : index
    %161 = vector.load %arg10[%c3_181, %c0_182, %c0_183] : memref<9x4x6xf32, #tpu.memory_space<vmem>>, vector<1x4x6xf32>
    %162 = vector.shape_cast %161 : vector<1x4x6xf32> to vector<4x6xf32>
    %cst_184 = arith.constant dense<0.000000e+00> : vector<256x6xf32>
    %163 = tpu.matmul %160, %162, %cst_184 {dimension_numbers = #tpu.dot_dimension_numbers<[1], [0], [0], [1], [0, 0, 1, 1], [], []>} : vector<256x4xf32>, vector<4x6xf32>, vector<256x6xf32> -> vector<256x6xf32>
    %164 = arith.addf %158, %163 : vector<256x6xf32>
    %c1_185 = arith.constant 1 : index
    %c1_186 = arith.constant 1 : index
    %c0_187 = arith.constant 0 : index
    %165 = vector.load %arg23[%c1_185, %c1_186, %c0_187] : memref<18x18x4xf32, #tpu.memory_space<vmem>>, vector<16x16x4xf32>
    %166 = vector.shape_cast %165 : vector<16x16x4xf32> to vector<256x4xf32>
    %c4_188 = arith.constant 4 : index
    %c0_189 = arith.constant 0 : index
    %c0_190 = arith.constant 0 : index
    %167 = vector.load %arg10[%c4_188, %c0_189, %c0_190] : memref<9x4x6xf32, #tpu.memory_space<vmem>>, vector<1x4x6xf32>
    %168 = vector.shape_cast %167 : vector<1x4x6xf32> to vector<4x6xf32>
    %cst_191 = arith.constant dense<0.000000e+00> : vector<256x6xf32>
    %169 = tpu.matmul %166, %168, %cst_191 {dimension_numbers = #tpu.dot_dimension_numbers<[1], [0], [0], [1], [0, 0, 1, 1], [], []>} : vector<256x4xf32>, vector<4x6xf32>, vector<256x6xf32> -> vector<256x6xf32>
    %170 = arith.addf %164, %169 : vector<256x6xf32>
    %c1_192 = arith.constant 1 : index
    %c2_193 = arith.constant 2 : index
    %c0_194 = arith.constant 0 : index
    %171 = vector.load %arg23[%c1_192, %c2_193, %c0_194] : memref<18x18x4xf32, #tpu.memory_space<vmem>>, vector<16x16x4xf32>
    %172 = vector.shape_cast %171 : vector<16x16x4xf32> to vector<256x4xf32>
    %c5_195 = arith.constant 5 : index
    %c0_196 = arith.constant 0 : index
    %c0_197 = arith.constant 0 : index
    %173 = vector.load %arg10[%c5_195, %c0_196, %c0_197] : memref<9x4x6xf32, #tpu.memory_space<vmem>>, vector<1x4x6xf32>
    %174 = vector.shape_cast %173 : vector<1x4x6xf32> to vector<4x6xf32>
    %cst_198 = arith.constant dense<0.000000e+00> : vector<256x6xf32>
    %175 = tpu.matmul %172, %174, %cst_198 {dimension_numbers = #tpu.dot_dimension_numbers<[1], [0], [0], [1], [0, 0, 1, 1], [], []>} : vector<256x4xf32>, vector<4x6xf32>, vector<256x6xf32> -> vector<256x6xf32>
    %176 = arith.addf %170, %175 : vector<256x6xf32>
    %c2_199 = arith.constant 2 : index
    %c0_200 = arith.constant 0 : index
    %c0_201 = arith.constant 0 : index
    %177 = vector.load %arg23[%c2_199, %c0_200, %c0_201] : memref<18x18x4xf32, #tpu.memory_space<vmem>>, vector<16x16x4xf32>
    %178 = vector.shape_cast %177 : vector<16x16x4xf32> to vector<256x4xf32>
    %c6_202 = arith.constant 6 : index
    %c0_203 = arith.constant 0 : index
    %c0_204 = arith.constant 0 : index
    %179 = vector.load %arg10[%c6_202, %c0_203, %c0_204] : memref<9x4x6xf32, #tpu.memory_space<vmem>>, vector<1x4x6xf32>
    %180 = vector.shape_cast %179 : vector<1x4x6xf32> to vector<4x6xf32>
    %cst_205 = arith.constant dense<0.000000e+00> : vector<256x6xf32>
    %181 = tpu.matmul %178, %180, %cst_205 {dimension_numbers = #tpu.dot_dimension_numbers<[1], [0], [0], [1], [0, 0, 1, 1], [], []>} : vector<256x4xf32>, vector<4x6xf32>, vector<256x6xf32> -> vector<256x6xf32>
    %182 = arith.addf %176, %181 : vector<256x6xf32>
    %c2_206 = arith.constant 2 : index
    %c1_207 = arith.constant 1 : index
    %c0_208 = arith.constant 0 : index
    %183 = vector.load %arg23[%c2_206, %c1_207, %c0_208] : memref<18x18x4xf32, #tpu.memory_space<vmem>>, vector<16x16x4xf32>
    %184 = vector.shape_cast %183 : vector<16x16x4xf32> to vector<256x4xf32>
    %c7_209 = arith.constant 7 : index
    %c0_210 = arith.constant 0 : index
    %c0_211 = arith.constant 0 : index
    %185 = vector.load %arg10[%c7_209, %c0_210, %c0_211] : memref<9x4x6xf32, #tpu.memory_space<vmem>>, vector<1x4x6xf32>
    %186 = vector.shape_cast %185 : vector<1x4x6xf32> to vector<4x6xf32>
    %cst_212 = arith.constant dense<0.000000e+00> : vector<256x6xf32>
    %187 = tpu.matmul %184, %186, %cst_212 {dimension_numbers = #tpu.dot_dimension_numbers<[1], [0], [0], [1], [0, 0, 1, 1], [], []>} : vector<256x4xf32>, vector<4x6xf32>, vector<256x6xf32> -> vector<256x6xf32>
    %188 = arith.addf %182, %187 : vector<256x6xf32>
    %c2_213 = arith.constant 2 : index
    %c2_214 = arith.constant 2 : index
    %c0_215 = arith.constant 0 : index
    %189 = vector.load %arg23[%c2_213, %c2_214, %c0_215] : memref<18x18x4xf32, #tpu.memory_space<vmem>>, vector<16x16x4xf32>
    %190 = vector.shape_cast %189 : vector<16x16x4xf32> to vector<256x4xf32>
    %c8_216 = arith.constant 8 : index
    %c0_217 = arith.constant 0 : index
    %c0_218 = arith.constant 0 : index
    %191 = vector.load %arg10[%c8_216, %c0_217, %c0_218] : memref<9x4x6xf32, #tpu.memory_space<vmem>>, vector<1x4x6xf32>
    %192 = vector.shape_cast %191 : vector<1x4x6xf32> to vector<4x6xf32>
    %cst_219 = arith.constant dense<0.000000e+00> : vector<256x6xf32>
    %193 = tpu.matmul %190, %192, %cst_219 {dimension_numbers = #tpu.dot_dimension_numbers<[1], [0], [0], [1], [0, 0, 1, 1], [], []>} : vector<256x4xf32>, vector<4x6xf32>, vector<256x6xf32> -> vector<256x6xf32>
    %194 = arith.addf %188, %193 : vector<256x6xf32>
    %c0_220 = arith.constant 0 : index
    %c0_221 = arith.constant 0 : index
    %195 = vector.load %arg11[%c0_220, %c0_221] : memref<1x6xf32, #tpu.memory_space<vmem>>, vector<1x6xf32>
    %196 = vector.broadcast %195 : vector<1x6xf32> to vector<256x6xf32>
    %197 = arith.addf %194, %196 : vector<256x6xf32>
    %cst_222 = arith.constant 0.000000e+00 : f32
    %198 = vector.broadcast %cst_222 : f32 to vector<256x6xf32>
    %199 = arith.maximumf %197, %198 : vector<256x6xf32>
    %cst_223 = arith.constant 0.000000e+00 : f32
    %200 = vector.broadcast %cst_223 : f32 to vector<18x18x6xf32>
    %c0_224 = arith.constant 0 : index
    %c0_225 = arith.constant 0 : index
    %c0_226 = arith.constant 0 : index
    %201 = vector.load %arg24[%c0_224, %c0_225, %c0_226] : memref<18x18x6xf32, #tpu.memory_space<vmem>>, vector<18x18x6xf32>
    tpu.vector_store %arg24[%c0_224, %c0_225, %c0_226], %200 {strides = array<i32>} : memref<18x18x6xf32, #tpu.memory_space<vmem>>, vector<18x18x6xf32>,
    %202 = vector.shape_cast %199 : vector<256x6xf32> to vector<16x16x6xf32>
    %c1_227 = arith.constant 1 : index
    %c1_228 = arith.constant 1 : index
    %c0_229 = arith.constant 0 : index
    %203 = vector.load %arg24[%c1_227, %c1_228, %c0_229] : memref<18x18x6xf32, #tpu.memory_space<vmem>>, vector<16x16x6xf32>
    tpu.vector_store %arg24[%c1_227, %c1_228, %c0_229], %202 {strides = array<i32>} : memref<18x18x6xf32, #tpu.memory_space<vmem>>, vector<16x16x6xf32>,
    %c0_230 = arith.constant 0 : index
    %c0_231 = arith.constant 0 : index
    %c0_232 = arith.constant 0 : index
    %204 = vector.load %arg24[%c0_230, %c0_231, %c0_232] : memref<18x18x6xf32, #tpu.memory_space<vmem>>, vector<16x16x6xf32>
    %205 = vector.shape_cast %204 : vector<16x16x6xf32> to vector<256x6xf32>
    %c0_233 = arith.constant 0 : index
    %c0_234 = arith.constant 0 : index
    %c0_235 = arith.constant 0 : index
    %206 = vector.load %arg12[%c0_233, %c0_234, %c0_235] : memref<9x6x8xf32, #tpu.memory_space<vmem>>, vector<1x6x8xf32>
    %207 = vector.shape_cast %206 : vector<1x6x8xf32> to vector<6x8xf32>
    %cst_236 = arith.constant dense<0.000000e+00> : vector<256x8xf32>
    %208 = tpu.matmul %205, %207, %cst_236 {dimension_numbers = #tpu.dot_dimension_numbers<[1], [0], [0], [1], [0, 0, 1, 1], [], []>} : vector<256x6xf32>, vector<6x8xf32>, vector<256x8xf32> -> vector<256x8xf32>
    %c0_237 = arith.constant 0 : index
    %c1_238 = arith.constant 1 : index
    %c0_239 = arith.constant 0 : index
    %209 = vector.load %arg24[%c0_237, %c1_238, %c0_239] : memref<18x18x6xf32, #tpu.memory_space<vmem>>, vector<16x16x6xf32>
    %210 = vector.shape_cast %209 : vector<16x16x6xf32> to vector<256x6xf32>
    %c1_240 = arith.constant 1 : index
    %c0_241 = arith.constant 0 : index
    %c0_242 = arith.constant 0 : index
    %211 = vector.load %arg12[%c1_240, %c0_241, %c0_242] : memref<9x6x8xf32, #tpu.memory_space<vmem>>, vector<1x6x8xf32>
    %212 = vector.shape_cast %211 : vector<1x6x8xf32> to vector<6x8xf32>
    %cst_243 = arith.constant dense<0.000000e+00> : vector<256x8xf32>
    %213 = tpu.matmul %210, %212, %cst_243 {dimension_numbers = #tpu.dot_dimension_numbers<[1], [0], [0], [1], [0, 0, 1, 1], [], []>} : vector<256x6xf32>, vector<6x8xf32>, vector<256x8xf32> -> vector<256x8xf32>
    %214 = arith.addf %208, %213 : vector<256x8xf32>
    %c0_244 = arith.constant 0 : index
    %c2_245 = arith.constant 2 : index
    %c0_246 = arith.constant 0 : index
    %215 = vector.load %arg24[%c0_244, %c2_245, %c0_246] : memref<18x18x6xf32, #tpu.memory_space<vmem>>, vector<16x16x6xf32>
    %216 = vector.shape_cast %215 : vector<16x16x6xf32> to vector<256x6xf32>
    %c2_247 = arith.constant 2 : index
    %c0_248 = arith.constant 0 : index
    %c0_249 = arith.constant 0 : index
    %217 = vector.load %arg12[%c2_247, %c0_248, %c0_249] : memref<9x6x8xf32, #tpu.memory_space<vmem>>, vector<1x6x8xf32>
    %218 = vector.shape_cast %217 : vector<1x6x8xf32> to vector<6x8xf32>
    %cst_250 = arith.constant dense<0.000000e+00> : vector<256x8xf32>
    %219 = tpu.matmul %216, %218, %cst_250 {dimension_numbers = #tpu.dot_dimension_numbers<[1], [0], [0], [1], [0, 0, 1, 1], [], []>} : vector<256x6xf32>, vector<6x8xf32>, vector<256x8xf32> -> vector<256x8xf32>
    %220 = arith.addf %214, %219 : vector<256x8xf32>
    %c1_251 = arith.constant 1 : index
    %c0_252 = arith.constant 0 : index
    %c0_253 = arith.constant 0 : index
    %221 = vector.load %arg24[%c1_251, %c0_252, %c0_253] : memref<18x18x6xf32, #tpu.memory_space<vmem>>, vector<16x16x6xf32>
    %222 = vector.shape_cast %221 : vector<16x16x6xf32> to vector<256x6xf32>
    %c3_254 = arith.constant 3 : index
    %c0_255 = arith.constant 0 : index
    %c0_256 = arith.constant 0 : index
    %223 = vector.load %arg12[%c3_254, %c0_255, %c0_256] : memref<9x6x8xf32, #tpu.memory_space<vmem>>, vector<1x6x8xf32>
    %224 = vector.shape_cast %223 : vector<1x6x8xf32> to vector<6x8xf32>
    %cst_257 = arith.constant dense<0.000000e+00> : vector<256x8xf32>
    %225 = tpu.matmul %222, %224, %cst_257 {dimension_numbers = #tpu.dot_dimension_numbers<[1], [0], [0], [1], [0, 0, 1, 1], [], []>} : vector<256x6xf32>, vector<6x8xf32>, vector<256x8xf32> -> vector<256x8xf32>
    %226 = arith.addf %220, %225 : vector<256x8xf32>
    %c1_258 = arith.constant 1 : index
    %c1_259 = arith.constant 1 : index
    %c0_260 = arith.constant 0 : index
    %227 = vector.load %arg24[%c1_258, %c1_259, %c0_260] : memref<18x18x6xf32, #tpu.memory_space<vmem>>, vector<16x16x6xf32>
    %228 = vector.shape_cast %227 : vector<16x16x6xf32> to vector<256x6xf32>
    %c4_261 = arith.constant 4 : index
    %c0_262 = arith.constant 0 : index
    %c0_263 = arith.constant 0 : index
    %229 = vector.load %arg12[%c4_261, %c0_262, %c0_263] : memref<9x6x8xf32, #tpu.memory_space<vmem>>, vector<1x6x8xf32>
    %230 = vector.shape_cast %229 : vector<1x6x8xf32> to vector<6x8xf32>
    %cst_264 = arith.constant dense<0.000000e+00> : vector<256x8xf32>
    %231 = tpu.matmul %228, %230, %cst_264 {dimension_numbers = #tpu.dot_dimension_numbers<[1], [0], [0], [1], [0, 0, 1, 1], [], []>} : vector<256x6xf32>, vector<6x8xf32>, vector<256x8xf32> -> vector<256x8xf32>
    %232 = arith.addf %226, %231 : vector<256x8xf32>
    %c1_265 = arith.constant 1 : index
    %c2_266 = arith.constant 2 : index
    %c0_267 = arith.constant 0 : index
    %233 = vector.load %arg24[%c1_265, %c2_266, %c0_267] : memref<18x18x6xf32, #tpu.memory_space<vmem>>, vector<16x16x6xf32>
    %234 = vector.shape_cast %233 : vector<16x16x6xf32> to vector<256x6xf32>
    %c5_268 = arith.constant 5 : index
    %c0_269 = arith.constant 0 : index
    %c0_270 = arith.constant 0 : index
    %235 = vector.load %arg12[%c5_268, %c0_269, %c0_270] : memref<9x6x8xf32, #tpu.memory_space<vmem>>, vector<1x6x8xf32>
    %236 = vector.shape_cast %235 : vector<1x6x8xf32> to vector<6x8xf32>
    %cst_271 = arith.constant dense<0.000000e+00> : vector<256x8xf32>
    %237 = tpu.matmul %234, %236, %cst_271 {dimension_numbers = #tpu.dot_dimension_numbers<[1], [0], [0], [1], [0, 0, 1, 1], [], []>} : vector<256x6xf32>, vector<6x8xf32>, vector<256x8xf32> -> vector<256x8xf32>
    %238 = arith.addf %232, %237 : vector<256x8xf32>
    %c2_272 = arith.constant 2 : index
    %c0_273 = arith.constant 0 : index
    %c0_274 = arith.constant 0 : index
    %239 = vector.load %arg24[%c2_272, %c0_273, %c0_274] : memref<18x18x6xf32, #tpu.memory_space<vmem>>, vector<16x16x6xf32>
    %240 = vector.shape_cast %239 : vector<16x16x6xf32> to vector<256x6xf32>
    %c6_275 = arith.constant 6 : index
    %c0_276 = arith.constant 0 : index
    %c0_277 = arith.constant 0 : index
    %241 = vector.load %arg12[%c6_275, %c0_276, %c0_277] : memref<9x6x8xf32, #tpu.memory_space<vmem>>, vector<1x6x8xf32>
    %242 = vector.shape_cast %241 : vector<1x6x8xf32> to vector<6x8xf32>
    %cst_278 = arith.constant dense<0.000000e+00> : vector<256x8xf32>
    %243 = tpu.matmul %240, %242, %cst_278 {dimension_numbers = #tpu.dot_dimension_numbers<[1], [0], [0], [1], [0, 0, 1, 1], [], []>} : vector<256x6xf32>, vector<6x8xf32>, vector<256x8xf32> -> vector<256x8xf32>
    %244 = arith.addf %238, %243 : vector<256x8xf32>
    %c2_279 = arith.constant 2 : index
    %c1_280 = arith.constant 1 : index
    %c0_281 = arith.constant 0 : index
    %245 = vector.load %arg24[%c2_279, %c1_280, %c0_281] : memref<18x18x6xf32, #tpu.memory_space<vmem>>, vector<16x16x6xf32>
    %246 = vector.shape_cast %245 : vector<16x16x6xf32> to vector<256x6xf32>
    %c7_282 = arith.constant 7 : index
    %c0_283 = arith.constant 0 : index
    %c0_284 = arith.constant 0 : index
    %247 = vector.load %arg12[%c7_282, %c0_283, %c0_284] : memref<9x6x8xf32, #tpu.memory_space<vmem>>, vector<1x6x8xf32>
    %248 = vector.shape_cast %247 : vector<1x6x8xf32> to vector<6x8xf32>
    %cst_285 = arith.constant dense<0.000000e+00> : vector<256x8xf32>
    %249 = tpu.matmul %246, %248, %cst_285 {dimension_numbers = #tpu.dot_dimension_numbers<[1], [0], [0], [1], [0, 0, 1, 1], [], []>} : vector<256x6xf32>, vector<6x8xf32>, vector<256x8xf32> -> vector<256x8xf32>
    %250 = arith.addf %244, %249 : vector<256x8xf32>
    %c2_286 = arith.constant 2 : index
    %c2_287 = arith.constant 2 : index
    %c0_288 = arith.constant 0 : index
    %251 = vector.load %arg24[%c2_286, %c2_287, %c0_288] : memref<18x18x6xf32, #tpu.memory_space<vmem>>, vector<16x16x6xf32>
    %252 = vector.shape_cast %251 : vector<16x16x6xf32> to vector<256x6xf32>
    %c8_289 = arith.constant 8 : index
    %c0_290 = arith.constant 0 : index
    %c0_291 = arith.constant 0 : index
    %253 = vector.load %arg12[%c8_289, %c0_290, %c0_291] : memref<9x6x8xf32, #tpu.memory_space<vmem>>, vector<1x6x8xf32>
    %254 = vector.shape_cast %253 : vector<1x6x8xf32> to vector<6x8xf32>
    %cst_292 = arith.constant dense<0.000000e+00> : vector<256x8xf32>
    %255 = tpu.matmul %252, %254, %cst_292 {dimension_numbers = #tpu.dot_dimension_numbers<[1], [0], [0], [1], [0, 0, 1, 1], [], []>} : vector<256x6xf32>, vector<6x8xf32>, vector<256x8xf32> -> vector<256x8xf32>
    %256 = arith.addf %250, %255 : vector<256x8xf32>
    %c0_293 = arith.constant 0 : index
    %c0_294 = arith.constant 0 : index
    %257 = vector.load %arg13[%c0_293, %c0_294] : memref<1x8xf32, #tpu.memory_space<vmem>>, vector<1x8xf32>
    %258 = vector.broadcast %257 : vector<1x8xf32> to vector<256x8xf32>
    %259 = arith.addf %256, %258 : vector<256x8xf32>
    %cst_295 = arith.constant 0.000000e+00 : f32
    %260 = vector.broadcast %cst_295 : f32 to vector<256x8xf32>
    %261 = arith.maximumf %259, %260 : vector<256x8xf32>
    %cst_296 = arith.constant 0.000000e+00 : f32
    %262 = vector.broadcast %cst_296 : f32 to vector<22x22x8xf32>
    %c0_297 = arith.constant 0 : index
    %c0_298 = arith.constant 0 : index
    %c0_299 = arith.constant 0 : index
    %263 = vector.load %arg25[%c0_297, %c0_298, %c0_299] : memref<22x22x8xf32, #tpu.memory_space<vmem>>, vector<22x22x8xf32>
    tpu.vector_store %arg25[%c0_297, %c0_298, %c0_299], %262 {strides = array<i32>} : memref<22x22x8xf32, #tpu.memory_space<vmem>>, vector<22x22x8xf32>,
    %264 = vector.shape_cast %261 : vector<256x8xf32> to vector<16x16x8xf32>
    %c3_300 = arith.constant 3 : index
    %c3_301 = arith.constant 3 : index
    %c0_302 = arith.constant 0 : index
    %265 = vector.load %arg25[%c3_300, %c3_301, %c0_302] : memref<22x22x8xf32, #tpu.memory_space<vmem>>, vector<16x16x8xf32>
    tpu.vector_store %arg25[%c3_300, %c3_301, %c0_302], %264 {strides = array<i32>} : memref<22x22x8xf32, #tpu.memory_space<vmem>>, vector<16x16x8xf32>,
    %c0_303 = arith.constant 0 : index
    %c0_304 = arith.constant 0 : index
    %c0_305 = arith.constant 0 : index
    %266 = vector.load %arg25[%c0_303, %c0_304, %c0_305] : memref<22x22x8xf32, #tpu.memory_space<vmem>>, vector<16x16x8xf32>
    %267 = vector.shape_cast %266 : vector<16x16x8xf32> to vector<256x8xf32>
    %c0_306 = arith.constant 0 : index
    %c0_307 = arith.constant 0 : index
    %c0_308 = arith.constant 0 : index
    %268 = vector.load %arg14[%c0_306, %c0_307, %c0_308] : memref<9x8x8xf32, #tpu.memory_space<vmem>>, vector<1x8x8xf32>
    %269 = vector.shape_cast %268 : vector<1x8x8xf32> to vector<8x8xf32>
    %cst_309 = arith.constant dense<0.000000e+00> : vector<256x8xf32>
    %270 = tpu.matmul %267, %269, %cst_309 {dimension_numbers = #tpu.dot_dimension_numbers<[1], [0], [0], [1], [0, 0, 1, 1], [], []>} : vector<256x8xf32>, vector<8x8xf32>, vector<256x8xf32> -> vector<256x8xf32>
    %c0_310 = arith.constant 0 : index
    %c3_311 = arith.constant 3 : index
    %c0_312 = arith.constant 0 : index
    %271 = vector.load %arg25[%c0_310, %c3_311, %c0_312] : memref<22x22x8xf32, #tpu.memory_space<vmem>>, vector<16x16x8xf32>
    %272 = vector.shape_cast %271 : vector<16x16x8xf32> to vector<256x8xf32>
    %c1_313 = arith.constant 1 : index
    %c0_314 = arith.constant 0 : index
    %c0_315 = arith.constant 0 : index
    %273 = vector.load %arg14[%c1_313, %c0_314, %c0_315] : memref<9x8x8xf32, #tpu.memory_space<vmem>>, vector<1x8x8xf32>
    %274 = vector.shape_cast %273 : vector<1x8x8xf32> to vector<8x8xf32>
    %cst_316 = arith.constant dense<0.000000e+00> : vector<256x8xf32>
    %275 = tpu.matmul %272, %274, %cst_316 {dimension_numbers = #tpu.dot_dimension_numbers<[1], [0], [0], [1], [0, 0, 1, 1], [], []>} : vector<256x8xf32>, vector<8x8xf32>, vector<256x8xf32> -> vector<256x8xf32>
    %276 = arith.addf %270, %275 : vector<256x8xf32>
    %c0_317 = arith.constant 0 : index
    %c6_318 = arith.constant 6 : index
    %c0_319 = arith.constant 0 : index
    %277 = vector.load %arg25[%c0_317, %c6_318, %c0_319] : memref<22x22x8xf32, #tpu.memory_space<vmem>>, vector<16x16x8xf32>
    %278 = vector.shape_cast %277 : vector<16x16x8xf32> to vector<256x8xf32>
    %c2_320 = arith.constant 2 : index
    %c0_321 = arith.constant 0 : index
    %c0_322 = arith.constant 0 : index
    %279 = vector.load %arg14[%c2_320, %c0_321, %c0_322] : memref<9x8x8xf32, #tpu.memory_space<vmem>>, vector<1x8x8xf32>
    %280 = vector.shape_cast %279 : vector<1x8x8xf32> to vector<8x8xf32>
    %cst_323 = arith.constant dense<0.000000e+00> : vector<256x8xf32>
    %281 = tpu.matmul %278, %280, %cst_323 {dimension_numbers = #tpu.dot_dimension_numbers<[1], [0], [0], [1], [0, 0, 1, 1], [], []>} : vector<256x8xf32>, vector<8x8xf32>, vector<256x8xf32> -> vector<256x8xf32>
    %282 = arith.addf %276, %281 : vector<256x8xf32>
    %c3_324 = arith.constant 3 : index
    %c0_325 = arith.constant 0 : index
    %c0_326 = arith.constant 0 : index
    %283 = vector.load %arg25[%c3_324, %c0_325, %c0_326] : memref<22x22x8xf32, #tpu.memory_space<vmem>>, vector<16x16x8xf32>
    %284 = vector.shape_cast %283 : vector<16x16x8xf32> to vector<256x8xf32>
    %c3_327 = arith.constant 3 : index
    %c0_328 = arith.constant 0 : index
    %c0_329 = arith.constant 0 : index
    %285 = vector.load %arg14[%c3_327, %c0_328, %c0_329] : memref<9x8x8xf32, #tpu.memory_space<vmem>>, vector<1x8x8xf32>
    %286 = vector.shape_cast %285 : vector<1x8x8xf32> to vector<8x8xf32>
    %cst_330 = arith.constant dense<0.000000e+00> : vector<256x8xf32>
    %287 = tpu.matmul %284, %286, %cst_330 {dimension_numbers = #tpu.dot_dimension_numbers<[1], [0], [0], [1], [0, 0, 1, 1], [], []>} : vector<256x8xf32>, vector<8x8xf32>, vector<256x8xf32> -> vector<256x8xf32>
    %288 = arith.addf %282, %287 : vector<256x8xf32>
    %c3_331 = arith.constant 3 : index
    %c3_332 = arith.constant 3 : index
    %c0_333 = arith.constant 0 : index
    %289 = vector.load %arg25[%c3_331, %c3_332, %c0_333] : memref<22x22x8xf32, #tpu.memory_space<vmem>>, vector<16x16x8xf32>
    %290 = vector.shape_cast %289 : vector<16x16x8xf32> to vector<256x8xf32>
    %c4_334 = arith.constant 4 : index
    %c0_335 = arith.constant 0 : index
    %c0_336 = arith.constant 0 : index
    %291 = vector.load %arg14[%c4_334, %c0_335, %c0_336] : memref<9x8x8xf32, #tpu.memory_space<vmem>>, vector<1x8x8xf32>
    %292 = vector.shape_cast %291 : vector<1x8x8xf32> to vector<8x8xf32>
    %cst_337 = arith.constant dense<0.000000e+00> : vector<256x8xf32>
    %293 = tpu.matmul %290, %292, %cst_337 {dimension_numbers = #tpu.dot_dimension_numbers<[1], [0], [0], [1], [0, 0, 1, 1], [], []>} : vector<256x8xf32>, vector<8x8xf32>, vector<256x8xf32> -> vector<256x8xf32>
    %294 = arith.addf %288, %293 : vector<256x8xf32>
    %c3_338 = arith.constant 3 : index
    %c6_339 = arith.constant 6 : index
    %c0_340 = arith.constant 0 : index
    %295 = vector.load %arg25[%c3_338, %c6_339, %c0_340] : memref<22x22x8xf32, #tpu.memory_space<vmem>>, vector<16x16x8xf32>
    %296 = vector.shape_cast %295 : vector<16x16x8xf32> to vector<256x8xf32>
    %c5_341 = arith.constant 5 : index
    %c0_342 = arith.constant 0 : index
    %c0_343 = arith.constant 0 : index
    %297 = vector.load %arg14[%c5_341, %c0_342, %c0_343] : memref<9x8x8xf32, #tpu.memory_space<vmem>>, vector<1x8x8xf32>
    %298 = vector.shape_cast %297 : vector<1x8x8xf32> to vector<8x8xf32>
    %cst_344 = arith.constant dense<0.000000e+00> : vector<256x8xf32>
    %299 = tpu.matmul %296, %298, %cst_344 {dimension_numbers = #tpu.dot_dimension_numbers<[1], [0], [0], [1], [0, 0, 1, 1], [], []>} : vector<256x8xf32>, vector<8x8xf32>, vector<256x8xf32> -> vector<256x8xf32>
    %300 = arith.addf %294, %299 : vector<256x8xf32>
    %c6_345 = arith.constant 6 : index
    %c0_346 = arith.constant 0 : index
    %c0_347 = arith.constant 0 : index
    %301 = vector.load %arg25[%c6_345, %c0_346, %c0_347] : memref<22x22x8xf32, #tpu.memory_space<vmem>>, vector<16x16x8xf32>
    %302 = vector.shape_cast %301 : vector<16x16x8xf32> to vector<256x8xf32>
    %c6_348 = arith.constant 6 : index
    %c0_349 = arith.constant 0 : index
    %c0_350 = arith.constant 0 : index
    %303 = vector.load %arg14[%c6_348, %c0_349, %c0_350] : memref<9x8x8xf32, #tpu.memory_space<vmem>>, vector<1x8x8xf32>
    %304 = vector.shape_cast %303 : vector<1x8x8xf32> to vector<8x8xf32>
    %cst_351 = arith.constant dense<0.000000e+00> : vector<256x8xf32>
    %305 = tpu.matmul %302, %304, %cst_351 {dimension_numbers = #tpu.dot_dimension_numbers<[1], [0], [0], [1], [0, 0, 1, 1], [], []>} : vector<256x8xf32>, vector<8x8xf32>, vector<256x8xf32> -> vector<256x8xf32>
    %306 = arith.addf %300, %305 : vector<256x8xf32>
    %c6_352 = arith.constant 6 : index
    %c3_353 = arith.constant 3 : index
    %c0_354 = arith.constant 0 : index
    %307 = vector.load %arg25[%c6_352, %c3_353, %c0_354] : memref<22x22x8xf32, #tpu.memory_space<vmem>>, vector<16x16x8xf32>
    %308 = vector.shape_cast %307 : vector<16x16x8xf32> to vector<256x8xf32>
    %c7_355 = arith.constant 7 : index
    %c0_356 = arith.constant 0 : index
    %c0_357 = arith.constant 0 : index
    %309 = vector.load %arg14[%c7_355, %c0_356, %c0_357] : memref<9x8x8xf32, #tpu.memory_space<vmem>>, vector<1x8x8xf32>
    %310 = vector.shape_cast %309 : vector<1x8x8xf32> to vector<8x8xf32>
    %cst_358 = arith.constant dense<0.000000e+00> : vector<256x8xf32>
    %311 = tpu.matmul %308, %310, %cst_358 {dimension_numbers = #tpu.dot_dimension_numbers<[1], [0], [0], [1], [0, 0, 1, 1], [], []>} : vector<256x8xf32>, vector<8x8xf32>, vector<256x8xf32> -> vector<256x8xf32>
    %312 = arith.addf %306, %311 : vector<256x8xf32>
    %c6_359 = arith.constant 6 : index
    %c6_360 = arith.constant 6 : index
    %c0_361 = arith.constant 0 : index
    %313 = vector.load %arg25[%c6_359, %c6_360, %c0_361] : memref<22x22x8xf32, #tpu.memory_space<vmem>>, vector<16x16x8xf32>
    %314 = vector.shape_cast %313 : vector<16x16x8xf32> to vector<256x8xf32>
    %c8_362 = arith.constant 8 : index
    %c0_363 = arith.constant 0 : index
    %c0_364 = arith.constant 0 : index
    %315 = vector.load %arg14[%c8_362, %c0_363, %c0_364] : memref<9x8x8xf32, #tpu.memory_space<vmem>>, vector<1x8x8xf32>
    %316 = vector.shape_cast %315 : vector<1x8x8xf32> to vector<8x8xf32>
    %cst_365 = arith.constant dense<0.000000e+00> : vector<256x8xf32>
    %317 = tpu.matmul %314, %316, %cst_365 {dimension_numbers = #tpu.dot_dimension_numbers<[1], [0], [0], [1], [0, 0, 1, 1], [], []>} : vector<256x8xf32>, vector<8x8xf32>, vector<256x8xf32> -> vector<256x8xf32>
    %318 = arith.addf %312, %317 : vector<256x8xf32>
    %c0_366 = arith.constant 0 : index
    %c0_367 = arith.constant 0 : index
    %319 = vector.load %arg15[%c0_366, %c0_367] : memref<1x8xf32, #tpu.memory_space<vmem>>, vector<1x8xf32>
    %320 = vector.broadcast %319 : vector<1x8xf32> to vector<256x8xf32>
    %321 = arith.addf %318, %320 : vector<256x8xf32>
    %c0_368 = arith.constant 0 : index
    %c0_369 = arith.constant 0 : index
    %322 = vector.load %arg16[%c0_368, %c0_369] : memref<8x32xf32, #tpu.memory_space<vmem>>, vector<8x32xf32>
    %cst_370 = arith.constant dense<0.000000e+00> : vector<256x32xf32>
    %323 = tpu.matmul %137, %322, %cst_370 {dimension_numbers = #tpu.dot_dimension_numbers<[1], [0], [0], [1], [0, 0, 1, 1], [], []>} : vector<256x8xf32>, vector<8x32xf32>, vector<256x32xf32> -> vector<256x32xf32>
    %c0_371 = arith.constant 0 : index
    %c0_372 = arith.constant 0 : index
    %324 = vector.load %arg17[%c0_371, %c0_372] : memref<8x32xf32, #tpu.memory_space<vmem>>, vector<8x32xf32>
    %cst_373 = arith.constant dense<0.000000e+00> : vector<256x32xf32>
    %325 = tpu.matmul %321, %324, %cst_373 {dimension_numbers = #tpu.dot_dimension_numbers<[1], [0], [0], [1], [0, 0, 1, 1], [], []>} : vector<256x8xf32>, vector<8x32xf32>, vector<256x32xf32> -> vector<256x32xf32>
    %326 = arith.addf %323, %325 : vector<256x32xf32>
    %c0_374 = arith.constant 0 : index
    %c0_375 = arith.constant 0 : index
    %327 = vector.load %arg18[%c0_374, %c0_375] : memref<32x32xf32, #tpu.memory_space<vmem>>, vector<32x32xf32>
    %cst_376 = arith.constant dense<0.000000e+00> : vector<256x32xf32>
    %328 = tpu.matmul %1, %327, %cst_376 {dimension_numbers = #tpu.dot_dimension_numbers<[1], [0], [0], [1], [0, 0, 1, 1], [], []>} : vector<256x32xf32>, vector<32x32xf32>, vector<256x32xf32> -> vector<256x32xf32>
    %329 = arith.addf %326, %328 : vector<256x32xf32>
    %c0_377 = arith.constant 0 : index
    %c0_378 = arith.constant 0 : index
    %330 = vector.load %arg19[%c0_377, %c0_378] : memref<1x32xf32, #tpu.memory_space<vmem>>, vector<1x32xf32>
    %331 = vector.broadcast %330 : vector<1x32xf32> to vector<256x32xf32>
    %332 = arith.addf %329, %331 : vector<256x32xf32>
    %cst_379 = arith.constant 0.000000e+00 : f32
    %333 = vector.broadcast %cst_379 : f32 to vector<256x32xf32>
    %334 = arith.maximumf %332, %333 : vector<256x32xf32>
    %c0_380 = arith.constant 0 : index
    %c0_381 = arith.constant 0 : index
    %c0_382 = arith.constant 0 : index
    %335 = vector.load %arg20[%c0_380, %c0_381, %c0_382] : memref<1x256x32xf32, #tpu.memory_space<vmem>>, vector<1x256x32xf32>
    %336 = vector.shape_cast %335 : vector<1x256x32xf32> to vector<256x32xf32>
    %337 = vector.shape_cast %334 : vector<256x32xf32> to vector<1x256x32xf32>
    tpu.vector_store %arg20[%c0_380, %c0_381, %c0_382], %337 {strides = array<i32>} : memref<1x256x32xf32, #tpu.memory_space<vmem>>, vector<1x256x32xf32>,
    return
  }
  func.func @transform_0(%arg0: i32) -> (i32, i32, i32) {
    %c0_i32 = arith.constant 0 : i32
    %c0_i32_0 = arith.constant 0 : i32
    %c0_i32_1 = arith.constant 0 : i32
    return %arg0, %c0_i32, %c0_i32_0 : i32, i32, i32
  }
  func.func @transform_1(%arg0: i32) -> (i32, i32) {
    %c0_i32 = arith.constant 0 : i32
    %c0_i32_0 = arith.constant 0 : i32
    %c0_i32_1 = arith.constant 0 : i32
    return %c0_i32, %c0_i32_0 : i32, i32
  }
  func.func @transform_2(%arg0: i32) -> (i32, i32) {
    %c0_i32 = arith.constant 0 : i32
    %c0_i32_0 = arith.constant 0 : i32
    %c0_i32_1 = arith.constant 0 : i32
    return %c0_i32, %c0_i32_0 : i32, i32
  }
  func.func @transform_3(%arg0: i32) -> (i32, i32) {
    %c0_i32 = arith.constant 0 : i32
    %c0_i32_0 = arith.constant 0 : i32
    %c0_i32_1 = arith.constant 0 : i32
    return %c0_i32, %c0_i32_0 : i32, i32
  }
  func.func @transform_4(%arg0: i32) -> (i32, i32) {
    %c0_i32 = arith.constant 0 : i32
    %c0_i32_0 = arith.constant 0 : i32
    %c0_i32_1 = arith.constant 0 : i32
    return %c0_i32, %c0_i32_0 : i32, i32
  }
  func.func @transform_5(%arg0: i32) -> (i32, i32, i32) {
    %c0_i32 = arith.constant 0 : i32
    %c0_i32_0 = arith.constant 0 : i32
    %c0_i32_1 = arith.constant 0 : i32
    %c0_i32_2 = arith.constant 0 : i32
    return %c0_i32, %c0_i32_0, %c0_i32_1 : i32, i32, i32
  }
  func.func @transform_6(%arg0: i32) -> (i32, i32) {
    %c0_i32 = arith.constant 0 : i32
    %c0_i32_0 = arith.constant 0 : i32
    %c0_i32_1 = arith.constant 0 : i32
    return %c0_i32, %c0_i32_0 : i32, i32
  }
  func.func @transform_7(%arg0: i32) -> (i32, i32, i32) {
    %c0_i32 = arith.constant 0 : i32
    %c0_i32_0 = arith.constant 0 : i32
    %c0_i32_1 = arith.constant 0 : i32
    %c0_i32_2 = arith.constant 0 : i32
    return %c0_i32, %c0_i32_0, %c0_i32_1 : i32, i32, i32
  }
  func.func @transform_8(%arg0: i32) -> (i32, i32) {
    %c0_i32 = arith.constant 0 : i32
    %c0_i32_0 = arith.constant 0 : i32
    %c0_i32_1 = arith.constant 0 : i32
    return %c0_i32, %c0_i32_0 : i32, i32
  }
  func.func @transform_9(%arg0: i32) -> (i32, i32, i32) {
    %c0_i32 = arith.constant 0 : i32
    %c0_i32_0 = arith.constant 0 : i32
    %c0_i32_1 = arith.constant 0 : i32
    %c0_i32_2 = arith.constant 0 : i32
    return %c0_i32, %c0_i32_0, %c0_i32_1 : i32, i32, i32
  }
  func.func @transform_10(%arg0: i32) -> (i32, i32) {
    %c0_i32 = arith.constant 0 : i32
    %c0_i32_0 = arith.constant 0 : i32
    %c0_i32_1 = arith.constant 0 : i32
    return %c0_i32, %c0_i32_0 : i32, i32
  }
  func.func @transform_11(%arg0: i32) -> (i32, i32, i32) {
    %c0_i32 = arith.constant 0 : i32
    %c0_i32_0 = arith.constant 0 : i32
    %c0_i32_1 = arith.constant 0 : i32
    %c0_i32_2 = arith.constant 0 : i32
    return %c0_i32, %c0_i32_0, %c0_i32_1 : i32, i32, i32
  }
  func.func @transform_12(%arg0: i32) -> (i32, i32) {
    %c0_i32 = arith.constant 0 : i32
    %c0_i32_0 = arith.constant 0 : i32
    %c0_i32_1 = arith.constant 0 : i32
    return %c0_i32, %c0_i32_0 : i32, i32
  }
  func.func @transform_13(%arg0: i32) -> (i32, i32, i32) {
    %c0_i32 = arith.constant 0 : i32
    %c0_i32_0 = arith.constant 0 : i32
    %c0_i32_1 = arith.constant 0 : i32
    %c0_i32_2 = arith.constant 0 : i32
    return %c0_i32, %c0_i32_0, %c0_i32_1 : i32, i32, i32
  }
  func.func @transform_14(%arg0: i32) -> (i32, i32) {
    %c0_i32 = arith.constant 0 : i32
    %c0_i32_0 = arith.constant 0 : i32
    %c0_i32_1 = arith.constant 0 : i32
    return %c0_i32, %c0_i32_0 : i32, i32
  }
  func.func @transform_15(%arg0: i32) -> (i32, i32) {
    %c0_i32 = arith.constant 0 : i32
    %c0_i32_0 = arith.constant 0 : i32
    %c0_i32_1 = arith.constant 0 : i32
    return %c0_i32, %c0_i32_0 : i32, i32
  }
  func.func @transform_16(%arg0: i32) -> (i32, i32) {
    %c0_i32 = arith.constant 0 : i32
    %c0_i32_0 = arith.constant 0 : i32
    %c0_i32_1 = arith.constant 0 : i32
    return %c0_i32, %c0_i32_0 : i32, i32
  }
  func.func @transform_17(%arg0: i32) -> (i32, i32) {
    %c0_i32 = arith.constant 0 : i32
    %c0_i32_0 = arith.constant 0 : i32
    %c0_i32_1 = arith.constant 0 : i32
    return %c0_i32, %c0_i32_0 : i32, i32
  }
  func.func @transform_18(%arg0: i32) -> (i32, i32) {
    %c0_i32 = arith.constant 0 : i32
    %c0_i32_0 = arith.constant 0 : i32
    %c0_i32_1 = arith.constant 0 : i32
    return %c0_i32, %c0_i32_0 : i32, i32
  }
  func.func @transform_19(%arg0: i32) -> (i32, i32, i32) {
    %c0_i32 = arith.constant 0 : i32
    %c0_i32_0 = arith.constant 0 : i32
    %c0_i32_1 = arith.constant 0 : i32
    return %arg0, %c0_i32, %c0_i32_0 : i32, i32, i32
  }
}

</mosaic_0001>

<bundles_post_ra>
// kernel: basic_rfb_forward.1
= control target key start
LH: loop header
LB: loop body
LE: loop exit
PB: predicated region body
PF: predicated region fallthrough
CT: control target
= control target key end

     0   :  { %s34105_s0 = inlined_call_operand.vmem [shape: f32[2,256,32], index: 0, kind: input, shape index: {}]   ;;  %s34106_s1 = inlined_call_operand.vmem [shape: f32[32,4], index: 1, kind: input, shape index: {}]   ;;  %s34107_s2 = inlined_call_operand.hbm [shape: f32[1,4], index: 2, kind: input, shape index: {}]   ;;  %s34108_s3 = inlined_call_operand.vmem [shape: f32[32,4], index: 3, kind: input, shape index: {}]   ;;  %s34109_s4 = inlined_call_operand.hbm [shape: f32[1,4], index: 4, kind: input, shape index: {}]   ;;  %s34110_s5 = inlined_call_operand.vmem [shape: f32[9,4,8], index: 5, kind: input, shape index: {}]   ;;  %s34111_s6 = inlined_call_operand.hbm [shape: f32[1,8], index: 6, kind: input, shape index: {}]   ;;  %s34112_s7 = inlined_call_operand.vmem [shape: f32[9,8,8], index: 7, kind: input, shape index: {}]   ;;  %s34113_s8 = inlined_call_operand.hbm [shape: f32[1,8], index: 8, kind: input, shape index: {}]   ;;  %s34114_s9 = inlined_call_operand.vmem [shape: f32[9,4,6], index: 9, kind: input, shape index: {}]   ;;  %s34115_s10 = inlined_call_operand.hbm [shape: f32[1,6], index: 10, kind: input, shape index: {}]   ;;  %s34116_s11 = inlined_call_operand.vmem [shape: f32[9,6,8], index: 11, kind: input, shape index: {}]   ;;  %s34117_s12 = inlined_call_operand.hbm [shape: f32[1,8], index: 12, kind: input, shape index: {}]   ;;  %s34118_s13 = inlined_call_operand.vmem [shape: f32[9,8,8], index: 13, kind: input, shape index: {}]   ;;  %s34119_s14 = inlined_call_operand.hbm [shape: f32[1,8], index: 14, kind: input, shape index: {}]   ;;  %s34120_s15 = inlined_call_operand.vmem [shape: f32[8,32], index: 15, kind: input, shape index: {}]   ;;  %s34121_s16 = inlined_call_operand.vmem [shape: f32[8,32], index: 16, kind: input, shape index: {}]   ;;  %s34122_s17 = inlined_call_operand.hbm [shape: f32[32,32], index: 17, kind: input, shape index: {}]   ;;  %s34123_s18 = inlined_call_operand.hbm [shape: f32[1,32], index: 18, kind: input, shape index: {}]   ;;  %s34124_s19 = inlined_call_operand.hbm [shape: f32[2,256,32], index: 19, kind: output, shape index: {}]  }
   0x1   :  { %34349 = sst [smem:[#allocation100_spill]] %s34105_s0 }
   0x2   :  { %34350 = sst [smem:[#allocation101_spill]] %s34106_s1 }
   0x3   :  { %34351 = sst [smem:[#allocation102_spill]] %s34107_s2 }
   0x4   :  { %34352 = sst [smem:[#allocation103_spill]] %s34108_s3 }
   0x5   :  { %34353 = sst [smem:[#allocation104_spill]] %s34109_s4 }
   0x6   :  { %34354 = sst [smem:[#allocation105_spill]] %s34113_s8 }
   0x7   :  { %34355 = sst [smem:[#allocation106_spill]] %s34117_s12 }
   0x8   :  { %34356 = sst [smem:[#allocation107_spill]] %s34120_s15 }
   0x9   :  { %34357 = sst [smem:[#allocation108_spill]] %s34124_s19 }
   0xa   :  { %24 = vsyncpa [#allocation8], 0 }
   0xb   :  { %25 = vsyncpa [#allocation11], 0 }
   0xc   :  { %26 = vsyncpa [#allocation14], 0 }
   0xd   :  { %27 = vsyncpa [#allocation17], 0 }
   0xe   :  { %28 = vsyncpa [#allocation20], 0 }
   0xf   :  { %29 = vsyncpa [#allocation9], 0 }
  0x10   :  { %31 = vsyncpa [#allocation9 + $0x1], 0  ;;  %s28354_s0 = smov 0   ;;  %s28356_s30 = smov 0  }
  0x11   :  { %s28358_s20 = smov 0   ;;  %s28360_s21 = smov 0  }
  0x12 LB: > { %34358 = sst [smem:[#allocation29_spill]] %s28225_s0  ;;  %s28375_s1 = sadd.s32 4294967295, %s28237_s21   ;;  %s28237_s21 = sphi %s28360_s21, %s34801_s21   ;;  %s28233_s20 = sphi %s28358_s20, %s34804_s20   ;;  %s28229_s30 = sphi %s28356_s30, %s34803_s30   ;;  %s28225_s0 = sphi %s28354_s0, %s34802_s0  }
  0x13   : > { %34359 = sst [smem:[#allocation30_spill]] %s28229_s30  ;;  %s20482_s22 = sadd.s32 4294967294, %s28237_s21  }
  0x14   : > { %34360 = sst [smem:[#allocation31_spill]] %s28233_s20  ;;  %s28379_s2 = sadd.s32 1, %s28237_s21  }
  0x15   : > { %34361 = sst [smem:[#allocation32_spill]] %s28237_s21  ;;  %s448_s23 = sadd.s32 1, %s28233_s20 }
  0x16   : > { %34362 = sst [smem:[#allocation33_spill]] %s28379_s2  ;;  %s445_s24 = ssub.s32 %s28237_s21, %s28379_s2 }
  0x17   : > { %p458_p0 = scmp.ne.s32.totalorder %s28233_s20, %s28229_s30  ;;  %p446_p1 = scmp.eq.s32.totalorder %s445_s24, 0 }
  0x18   : > { %p459_p2 = scmp.eq.s32.totalorder %s28375_s1, 1  ;;  %p464_p3 = scmp.ne.s32.totalorder %s28229_s30, %s28225_s0 }
  0x19   : > { %p465_p4 = scmp.eq.s32.totalorder %s20482_s22, 1  ;;  %p20483_p7 = scmp.ge.s32.totalorder %s28237_s21, 1 }
  0x1a   : > { %s28390_s25 = scalar_select %p446_p1, %s28233_s20, %s448_s23  }
  0x1b   : > { %p28392_p5 = por %p459_p2, %p458_p0  ;;  %p28396_p6 = por %p465_p4, %p464_p3 }
  0x1c   : > { %34363 = sst [smem:[#allocation34_spill]] %s28390_s25  ;;  %p472_p8 = scmp.lt.s32.totalorder %s28237_s21, 3 }
  0x1d   : > { %s34364_s3 = scalar_select %p28392_p5, 1, 0 }
  0x1e   : > { %s34366_s26 = scalar_select %p28396_p6, 1, 0 }
  0x1f   : > { %34365 = sst [smem:[#allocation35_spill]] %s34364_s3  ;;  %p34135_p9 = scmp.eq.s32.totalorder %s28375_s1, 0 }
  0x20   : > { %34367 = sst [smem:[#allocation36_spill]] %s34366_s26  ;;  %p28403_p10 = pnand %p20483_p7, %p472_p8 }
  0x21   : > { %s28239_s28 = smov [#allocation10]   ;;  %s28240_s22 = smov [#allocation13]  }
  0x22   : > { %s34368_s27 = scalar_select %p28403_p10, 1, 0 }
  0x23   : > { %s502_s29 = sshll.u32 %s28239_s28, 4  ;;  %p27774_p11 = pneg %p28403_p10  ;;  %s503_s29 = int_to_ptr.vmem [resolvable:$true] %s502_s29 }
  0x24   : > { %s530_s23 = sshll.u32 %s28240_s22, 4  ;;  %s28241_s25 = smov [#allocation16]   ;;  %s28415_s23 = int_to_ptr.vmem [resolvable:$true] %s530_s23 }
  0x25   : > { %p28411_p12 = pnand %p34135_p9, %p27774_p11  ;;  %s558_s20 = sshll.u32 %s28241_s25, 4  ;;  %s28417_s20 = int_to_ptr.vmem [resolvable:$true] %s558_s20 }
  0x26   : > { %s34370_s4 = sld [smem:[#allocation104_spill]] }
  0x27   : > { %p28427_p0 = pneg %p28411_p12 }
  0x2c   : > { %s27903_s28 = scalar_lea.hbm %s34370_s4, 16 }
  0x2d   : > { %p27904_p13 = scmp.ne.s32.totalorder %s34370_s4, %s27903_s28  ;;  %p27910_p3 = scmp.lt.u32.totalorder %s27903_s28, %s34370_s4 }
  0x2f   : > { %p27906_p1 = pnand %p28427_p0, %p27904_p13 }
  0x31   : > { %p27907_p2 = pneg %p27906_p1 }
  0x33   : > { %p27912_p4 = pnand %p27910_p3, %p27907_p2 }
  0x35   : > { %27915 = shalt.err (!%p27912_p4)
}
  0x36   : > { %s27916_s2 = scalar_lea.vmem %s503_s29, 16  ;;  %s27923_s0 = scalar_lea.vmem %s503_s29, 32 }
  0x37   : > { %p27917_p7 = scmp.ne.s32.totalorder %s503_s29, %s27916_s2  ;;  %p27924_p9 = scmp.lt.s32.totalorder %s503_s29, %s503_s29 }
  0x38   : > { %p27925_p6 = scmp.lt.s32.totalorder %s27923_s0, %s27916_s2 }
  0x39   : > { %p27919_p8 = pnand %p27917_p7, %p28427_p0 }
  0x3a   : > { %p27926_p5 = por %p27925_p6, %p27924_p9 }
  0x3b   : > { %p27920_p11 = pneg %p27919_p8 }
  0x3d   : > { %p27927_p10 = pnand %p27926_p5, %p27920_p11 }
  0x3f   : > { %27930 = shalt.err (!%p27927_p10)
}
  0x40   : > { %27780 = dma.hbm_to_vmem [thread:$0]  (!%p28411_p12), %s34370_s4, 16, %s503_s29, [#allocation11]  }
  0x41   : > { %s34372_s8 = sld [smem:[#allocation105_spill]] }
  0x47   : > { %s27931_s25 = scalar_lea.hbm %s34372_s8, 16 }
  0x48   : > { %p27932_p13 = scmp.ne.s32.totalorder %s34372_s8, %s27931_s25  ;;  %p27938_p5 = scmp.lt.u32.totalorder %s27931_s25, %s34372_s8 }
  0x4a   : > { %p27934_p1 = pnand %p27932_p13, %p28427_p0 }
  0x4c   : > { %p27935_p6 = pneg %p27934_p1 }
  0x4e   : > { %p27940_p9 = pnand %p27938_p5, %p27935_p6 }
  0x50   : > { %27943 = shalt.err (!%p27940_p9)
}
  0x51   : > { %s27944_s29 = scalar_lea.vmem %s28415_s23, 16  ;;  %s27951_s30 = scalar_lea.vmem %s28415_s23, 32 }
  0x52   : > { %p27945_p10 = scmp.ne.s32.totalorder %s28415_s23, %s27944_s29  ;;  %p27952_p4 = scmp.lt.s32.totalorder %s28415_s23, %s28415_s23 }
  0x53   : > { %p27953_p7 = scmp.lt.s32.totalorder %s27951_s30, %s27944_s29 }
  0x54   : > { %p27947_p2 = pnand %p27945_p10, %p28427_p0 }
  0x55   : > { %p27954_p8 = por %p27953_p7, %p27952_p4 }
  0x56   : > { %p27948_p3 = pneg %p27947_p2 }
  0x58   : > { %p27955_p11 = pnand %p27954_p8, %p27948_p3 }
  0x5a   : > { %27958 = shalt.err (!%p27955_p11)
}
  0x5b   : > { %27786 = dma.hbm_to_vmem [thread:$0]  (!%p28411_p12), %s34372_s8, 16, %s28415_s23, [#allocation14]  }
  0x5c   : > { %s34373_s12 = sld [smem:[#allocation106_spill]] }
  0x62   : > { %s27959_s28 = scalar_lea.hbm %s34373_s12, 16 }
  0x63   : > { %p27960_p13 = scmp.ne.s32.totalorder %s34373_s12, %s27959_s28  ;;  %p27966_p5 = scmp.lt.u32.totalorder %s27959_s28, %s34373_s12 }
  0x65   : > { %p27962_p1 = pnand %p27960_p13, %p28427_p0 }
  0x67   : > { %p27963_p6 = pneg %p27962_p1 }
  0x69   : > { %p27968_p9 = pnand %p27966_p5, %p27963_p6 }
  0x6b   : > { %27971 = shalt.err (!%p27968_p9)
}
  0x6c   : > { %s27972_s23 = scalar_lea.vmem %s28417_s20, 16  ;;  %s27979_s30 = scalar_lea.vmem %s28417_s20, 32 }
  0x6d   : > { %p27973_p10 = scmp.ne.s32.totalorder %s28417_s20, %s27972_s23  ;;  %p27980_p4 = scmp.lt.s32.totalorder %s28417_s20, %s28417_s20 }
  0x6e   : > { %p27981_p7 = scmp.lt.s32.totalorder %s27979_s30, %s27972_s23 }
  0x6f   : > { %p27975_p2 = pnand %p27973_p10, %p28427_p0 }
  0x70   : > { %p27982_p8 = por %p27981_p7, %p27980_p4 }
  0x71   : > { %p27976_p3 = pneg %p27975_p2 }
  0x73   : > { %p27983_p11 = pnand %p27982_p8, %p27976_p3 }
  0x75   : > { %27986 = shalt.err (!%p27983_p11)
}
  0x76   : > { %27792 = dma.hbm_to_vmem [thread:$0]  (!%p28411_p12), %s34373_s12, 16, %s28417_s20, [#allocation17]  }
  0x77   : > { %s28242_s26 = smov [#allocation19]   ;;  %s27987_s2 = scalar_lea.hbm %s34122_s17, 512 }
  0x78   : > { %s588_s19 = sshll.u32 %s28242_s26, 4  ;;  %p27988_p13 = scmp.ne.s32.totalorder %s34122_s17, %s27987_s2  ;;  %s589_s19 = int_to_ptr.vmem [resolvable:$true] %s588_s19 }
  0x79   : > { %p27994_p5 = scmp.lt.u32.totalorder %s27987_s2, %s34122_s17 }
  0x7a   : > { %p27990_p1 = pnand %p27988_p13, %p28427_p0 }
  0x7c   : > { %p27991_p6 = pneg %p27990_p1 }
  0x7e   : > { %p27996_p9 = pnand %p27994_p5, %p27991_p6 }
  0x80   : > { %27999 = shalt.err (!%p27996_p9)
}
  0x81   : > { %s28000_s20 = scalar_lea.vmem %s589_s19, 512  ;;  %p28008_p4 = scmp.lt.s32.totalorder %s589_s19, %s589_s19 }
  0x82   : > { %p28001_p10 = scmp.ne.s32.totalorder %s589_s19, %s28000_s20  ;;  %p28009_p7 = scmp.lt.s32.totalorder %s28000_s20, %s28000_s20 }
  0x84   : > { %p28003_p2 = pnand %p28001_p10, %p28427_p0  ;;  %p28010_p8 = por %p28009_p7, %p28008_p4 }
  0x86   : > { %p28004_p3 = pneg %p28003_p2 }
  0x88   : > { %p28011_p11 = pnand %p28010_p8, %p28004_p3 }
  0x8a   : > { %28014 = shalt.err (!%p28011_p11)
}
  0x8b   : > { %s28243_s3 = smov 128   ;;  %s28244_s21 = smov 8  }
  0x8c   : > { %27798 = dma.hbm_to_vmem [thread:$0]  (!%p28411_p12), %s34122_s17, 512, %s589_s19, [#allocation20], %s28243_s3, %s28243_s3, %s28244_s21  }
  0x8d   : > { %s28245_s25 = smov [#allocation7]   ;;  %s28246_s0 = smov [#allocation12]  }
  0x8e   : > { %s488_s2 = sshll.u32 %s28245_s25, 4  ;;  %s516_s29 = sshll.u32 %s28246_s0, 4  ;;  %s489_s2 = int_to_ptr.vmem [resolvable:$true] %s488_s2  ;;  %s28509_s29 = int_to_ptr.vmem [resolvable:$true] %s516_s29 }
  0x8f   : > { %s34374_s20 = sld [smem:[#allocation102_spill]] }
  0x95   : > { %s34375_s4 = smov %s34374_s20  ;;  %s28015_s8 = scalar_lea.hbm %s34374_s20, 16 }
  0x96   : > { %p28016_p13 = scmp.ne.s32.totalorder %s34375_s4, %s28015_s8  ;;  %p28022_p5 = scmp.lt.u32.totalorder %s28015_s8, %s34375_s4 }
  0x98   : > { %p28018_p1 = pnand %p28016_p13, %p28427_p0 }
  0x9a   : > { %p28019_p6 = pneg %p28018_p1 }
  0x9c   : > { %p28024_p9 = pnand %p28022_p5, %p28019_p6 }
  0x9e   : > { %28027 = shalt.err (!%p28024_p9)
}
  0x9f   : > { %s28028_s3 = scalar_lea.vmem %s489_s2, 16  ;;  %s28035_s21 = scalar_lea.vmem %s489_s2, 32 }
  0xa0   : > { %p28029_p10 = scmp.ne.s32.totalorder %s489_s2, %s28028_s3  ;;  %p28036_p4 = scmp.lt.s32.totalorder %s489_s2, %s489_s2 }
  0xa1   : > { %p28037_p7 = scmp.lt.s32.totalorder %s28035_s21, %s28028_s3 }
  0xa2   : > { %p28031_p2 = pnand %p28029_p10, %p28427_p0 }
  0xa3   : > { %p28038_p8 = por %p28037_p7, %p28036_p4 }
  0xa4   : > { %p28032_p3 = pneg %p28031_p2 }
  0xa6   : > { %p28039_p11 = pnand %p28038_p8, %p28032_p3 }
  0xa8   : > { %28042 = shalt.err (!%p28039_p11)
}
  0xa9   : > { %27777 = dma.hbm_to_vmem [thread:$0]  (!%p28411_p12), %s34375_s4, 16, %s489_s2, [#allocation8]  }
  0xaa   : > { %s28043_s25 = scalar_lea.hbm %s34111_s6, 16 }
  0xab   : > { %p28044_p13 = scmp.ne.s32.totalorder %s34111_s6, %s28043_s25  ;;  %p28050_p5 = scmp.lt.u32.totalorder %s28043_s25, %s34111_s6 }
  0xad   : > { %p28046_p1 = pnand %p28044_p13, %p28427_p0 }
  0xaf   : > { %p28047_p6 = pneg %p28046_p1 }
  0xb1   : > { %p28052_p9 = pnand %p28050_p5, %p28047_p6 }
  0xb3   : > { %28055 = shalt.err (!%p28052_p9)
}
  0xb4   : > { %s28056_s2 = scalar_lea.vmem %s28509_s29, 16  ;;  %s28063_s26 = scalar_lea.vmem %s28509_s29, 32 }
  0xb5   : > { %p28057_p10 = scmp.ne.s32.totalorder %s28509_s29, %s28056_s2  ;;  %p28064_p4 = scmp.lt.s32.totalorder %s28509_s29, %s28509_s29 }
  0xb6   : > { %p28065_p7 = scmp.lt.s32.totalorder %s28063_s26, %s28056_s2 }
  0xb7   : > { %p28059_p2 = pnand %p28057_p10, %p28427_p0 }
  0xb8   : > { %p28066_p8 = por %p28065_p7, %p28064_p4 }
  0xb9   : > { %p28060_p3 = pneg %p28059_p2 }
  0xbb   : > { %p28067_p11 = pnand %p28066_p8, %p28060_p3 }
  0xbd   : > { %28070 = shalt.err (!%p28067_p11)
}
  0xbe   : > { %27783 = dma.hbm_to_vmem [thread:$0]  (!%p28411_p12), %s34111_s6, 16, %s28509_s29, [#allocation11]  }
  0xbf   : > { %s28247_s21 = smov [#allocation15]   ;;  %s28248_s15 = smov [#allocation18]  }
  0xc0   : > { %s544_s12 = sshll.u32 %s28247_s21, 4  ;;  %s572_s8 = sshll.u32 %s28248_s15, 4  ;;  %s545_s12 = int_to_ptr.vmem [resolvable:$true] %s544_s12  ;;  %s28553_s8 = int_to_ptr.vmem [resolvable:$true] %s572_s8 }
  0xc1   : > { %s28071_s0 = scalar_lea.hbm %s34115_s10, 16 }
  0xc2   : > { %p28072_p13 = scmp.ne.s32.totalorder %s34115_s10, %s28071_s0  ;;  %p28078_p5 = scmp.lt.u32.totalorder %s28071_s0, %s34115_s10 }
  0xc4   : > { %p28074_p1 = pnand %p28072_p13, %p28427_p0 }
  0xc6   : > { %p28075_p6 = pneg %p28074_p1 }
  0xc8   : > { %p28080_p9 = pnand %p28078_p5, %p28075_p6 }
  0xca   : > { %28083 = shalt.err (!%p28080_p9)
}
  0xcb   : > { %s28084_s2 = scalar_lea.vmem %s545_s12, 16  ;;  %s28091_s26 = scalar_lea.vmem %s545_s12, 32 }
  0xcc   : > { %p28085_p10 = scmp.ne.s32.totalorder %s545_s12, %s28084_s2  ;;  %p28092_p4 = scmp.lt.s32.totalorder %s545_s12, %s545_s12 }
  0xcd   : > { %p28093_p7 = scmp.lt.s32.totalorder %s28091_s26, %s28084_s2 }
  0xce   : > { %p28087_p2 = pnand %p28085_p10, %p28427_p0 }
  0xcf   : > { %p28094_p8 = por %p28093_p7, %p28092_p4 }
  0xd0   : > { %p28088_p3 = pneg %p28087_p2 }
  0xd2   : > { %p28095_p11 = pnand %p28094_p8, %p28088_p3 }
  0xd4   : > { %28098 = shalt.err (!%p28095_p11)
}
  0xd5   : > { %27789 = dma.hbm_to_vmem [thread:$0]  (!%p28411_p12), %s34115_s10, 16, %s545_s12, [#allocation14]  }
  0xd6   : > { %s28099_s28 = scalar_lea.hbm %s34119_s14, 16 }
  0xd7   : > { %p28100_p13 = scmp.ne.s32.totalorder %s34119_s14, %s28099_s28  ;;  %p28106_p5 = scmp.lt.u32.totalorder %s28099_s28, %s34119_s14 }
  0xd9   : > { %p28102_p1 = pnand %p28100_p13, %p28427_p0 }
  0xdb   : > { %p28103_p6 = pneg %p28102_p1 }
  0xdd   : > { %p28108_p9 = pnand %p28106_p5, %p28103_p6 }
  0xdf   : > { %28111 = shalt.err (!%p28108_p9)
}
  0xe0   : > { %s28112_s12 = scalar_lea.vmem %s28553_s8, 16  ;;  %s28119_s20 = scalar_lea.vmem %s28553_s8, 32 }
  0xe1   : > { %p28113_p10 = scmp.ne.s32.totalorder %s28553_s8, %s28112_s12  ;;  %p28120_p4 = scmp.lt.s32.totalorder %s28553_s8, %s28553_s8 }
  0xe2   : > { %p28121_p7 = scmp.lt.s32.totalorder %s28119_s20, %s28112_s12 }
  0xe3   : > { %p28115_p2 = pnand %p28113_p10, %p28427_p0 }
  0xe4   : > { %p28122_p8 = por %p28121_p7, %p28120_p4 }
  0xe5   : > { %p28116_p3 = pneg %p28115_p2 }
  0xe7   : > { %p28123_p11 = pnand %p28122_p8, %p28116_p3 }
  0xe9   : > { %28126 = shalt.err (!%p28123_p11)
}
  0xea   : > { %27795 = dma.hbm_to_vmem [thread:$0]  (!%p28411_p12), %s34119_s14, 16, %s28553_s8, [#allocation17]  }
  0xeb   : > { %s28249_s26 = smov [#allocation21]   ;;  %s28127_s15 = scalar_lea.hbm %s34123_s18, 16 }
  0xec   : > { %s602_s19 = sshll.u32 %s28249_s26, 4  ;;  %p28128_p13 = scmp.ne.s32.totalorder %s34123_s18, %s28127_s15  ;;  %s603_s19 = int_to_ptr.vmem [resolvable:$true] %s602_s19 }
  0xed   : > { %p28134_p5 = scmp.lt.u32.totalorder %s28127_s15, %s34123_s18 }
  0xee   : > { %p28130_p1 = pnand %p28128_p13, %p28427_p0 }
  0xf0   : > { %p28131_p6 = pneg %p28130_p1 }
  0xf2   : > { %p28136_p9 = pnand %p28134_p5, %p28131_p6 }
  0xf4   : > { %28139 = shalt.err (!%p28136_p9)
}
  0xf5   : > { %s28140_s8 = scalar_lea.vmem %s603_s19, 16  ;;  %s28147_s30 = scalar_lea.vmem %s603_s19, 32 }
  0xf6   : > { %p28141_p10 = scmp.ne.s32.totalorder %s603_s19, %s28140_s8  ;;  %p28148_p4 = scmp.lt.s32.totalorder %s603_s19, %s603_s19 }
  0xf7   : > { %p28149_p7 = scmp.lt.s32.totalorder %s28147_s30, %s28140_s8 }
  0xf8   : > { %p28143_p2 = pnand %p28141_p10, %p28427_p0 }
  0xf9   : > { %p28150_p8 = por %p28149_p7, %p28148_p4 }
  0xfa   : > { %p28144_p3 = pneg %p28143_p2 }
  0xfc   : > { %p28151_p11 = pnand %p28150_p8, %p28144_p3 }
  0xfe   : > { %28154 = shalt.err (!%p28151_p11)
}
  0xff   : > { %27801 = dma.hbm_to_vmem [thread:$0]  (!%p28411_p12), %s34123_s18, 16, %s603_s19, [#allocation20]  }
 0x100   : > { %p34376_p13 = scmp.ne.s32.totalorder %s34368_s27, 0 }
 0x102   : > { %623 = sbr.rel (%p34376_p13) target bundleno = 3579 (0xdfb), region = 96 }
 0x109   : > { %p34377_p1 = scmp.eq.s32.totalorder %s28375_s1, 0 }
 0x10b   : > { %28200 = dma.done.wait (%p34377_p1), [#allocation8], 16   ;;  %p34378_p0 = pmov %p34377_p1 }
 0x10d   : > { %28202 = vsyncadd (%p34378_p0), [#allocation8], 4294967280  ;;  %p34379_p6 = pmov %p34378_p0 }
 0x10e   : > { %p34380_p5 = pmov %p34378_p0 }
 0x10f   : > { %28204 = dma.done.wait (%p34379_p6), [#allocation11], 32  }
 0x110   : > { %28206 = vsyncadd (%p34380_p5), [#allocation11], 4294967264  ;;  %p34381_p9 = pmov %p34378_p0 }
 0x111   : > { %p34382_p12 = pmov %p34378_p0 }
 0x112   : > { %28208 = dma.done.wait (%p34381_p9), [#allocation14], 32  }
 0x113   : > { %28210 = vsyncadd (%p34382_p12), [#allocation14], 4294967264  ;;  %p34383_p10 = pmov %p34378_p0 }
 0x114   : > { %p34384_p2 = pmov %p34378_p0 }
 0x115   : > { %28212 = dma.done.wait (%p34383_p10), [#allocation17], 32  }
 0x116   : > { %28214 = vsyncadd (%p34384_p2), [#allocation17], 4294967264  ;;  %p34385_p3 = pmov %p34378_p0 }
 0x117   : > { %p34386_p4 = pmov %p34378_p0 }
 0x118   : > { %28216 = dma.done.wait (%p34385_p3), [#allocation20], 528  }
 0x119   : > { %28218 = vsyncadd (%p34386_p4), [#allocation20], 4294966768  ;;  %p711_p7 = scmp.lt.s32.totalorder %s28375_s1, 1  ;;  %s34387_s2 = sld [smem:[#allocation100_spill]]  ;;  %vm759_vm0 = vcmask 261120   ;;  %vm1381_vm1 = vcmask 31744  }
 0x11a   : > { %s34388_s21 = sld [smem:[#allocation101_spill]]  ;;  %v34142_v44 = vmov 0.0   ;;  %v28981_v45 = vld [vmem:[%s34110_s5] sm:$0xf]  ;;  %vm1633_vm2 = vcmask 1043456   ;;  %vm1384_vm3 = vcmask 25600  }
 0x11b   : > { %s712_s27 = scalar_select %p711_p7, %s28375_s1, 1  ;;  %1387 = vst.msk [vmem:[#allocation2 + $0x20] sm:$0xff] %vm1381_vm1, %v34142_v44  ;;  %1382 = vst.msk [vmem:[#allocation2] sm:$0xff] %vm1381_vm1, %v34142_v44  ;;  %24010 = vmatprep.subr.msk.mxu0 %vm1633_vm2, %v28981_v45  ;;  %v20640_v48 = vld [vmem:[%s34110_s5 + $0x8] sm:$0xf]  ;;  %vm4988_vm4 = vcmask 64512  }
 0x11c   : > { %1383 = vst.msk [vmem:[#allocation2 + $0x8] sm:$0xff] %vm1381_vm1, %v34142_v44  ;;  %1386 = vst.msk [vmem:[#allocation2 + $0x18] sm:$0xff] %vm1381_vm1, %v34142_v44  ;;  %24011 = vmatpush3.msk.msra.mxu0 %vm1633_vm2, %v28981_v45  ;;  %v20573_v49 = vld [vmem:[%s34110_s5 + $0x4] sm:$0xf]  ;;  %v20674_v52 = vld [vmem:[%s34110_s5 + $0xc] sm:$0xf] }
 0x11d   : > { %s22187_s24 = sshll.u32 %s712_s27, 8  ;;  %s34390_s27 = sld [smem:[#allocation103_spill]]  ;;  %1389 = vst.msk [vmem:[#allocation2 + $0x30] sm:$0xff] %vm1381_vm1, %v34142_v44  ;;  %1390 = vst.msk [vmem:[#allocation2 + $0x38] sm:$0xff] %vm1381_vm1, %v34142_v44  ;;  %24060 = vmatprep.subr.msk.mxu0 %vm1633_vm2, %v20640_v48  ;;  %v29129_v55 = vld [vmem:[%s34110_s5 + $0x10] sm:$0xf] }
 0x11e   : > { %1392 = vst.msk [vmem:[#allocation2 + $0x48] sm:$0xff] %vm1381_vm1, %v34142_v44  ;;  %1393 = vst.msk [vmem:[#allocation2 + $0x50] sm:$0xff] %vm1381_vm1, %v34142_v44  ;;  %v29133_v56 = vld [vmem:[#allocation7] ss:$0 sm:$0xff]  ;;  %vm4991_vm5 = vcmask 60416   ;;  %vm12145_vm6 = vcmask 48128  }
 0x11f   : > { %s28642_s26 = scalar_lea.vmem %s34387_s2, %s22187_s24  ;;  %1395 = vst.msk [vmem:[#allocation2 + $0x60] sm:$0xff] %vm1381_vm1, %v34142_v44  ;;  %1396 = vst.msk [vmem:[#allocation2 + $0x68] sm:$0xff] %vm1381_vm1, %v34142_v44  ;;  %vm12148_vm7 = vcmask 41984   ;;  %vm12397_vm8 = vcmask 1045504   ;;  %vm15754_vm9 = vcmask 62464   ;;  %s34760_s23 = sld [smem:[#allocation107_spill]] }
 0x120   : > { %s34389_s15 = smov %s34388_s21  ;;  %v748_v0 = vld [vmem:[%s34388_s21] sm:$0xff]  ;;  %v28662_v7 = vld [vmem:[%s28642_s26 + $0x8] sm:$0xff]  ;;  %v28665_v8 = vld [vmem:[%s28642_s26 + $0x10] sm:$0xff]  ;;  %1398 = vst.msk [vmem:[#allocation2 + $0x78] sm:$0xff] %vm1381_vm1, %v34142_v44  ;;  %s34793_s8 = sld [smem:[#allocation30_spill]] }
 0x121   : > { %v749_v1 = vld [vmem:[%s34389_s15 + $0x8] sm:$0xff]  ;;  %v750_v2 = vld [vmem:[%s34389_s15 + $0x10] sm:$0xff]  ;;  %v751_v4 = vld [vmem:[%s34389_s15 + $0x18] sm:$0xff]  ;;  %1399 = vst.msk [vmem:[#allocation2 + $0x80] sm:$0xff] %vm1381_vm1, %v34142_v44  ;;  %s34794_s24 = sld [smem:[#allocation35_spill]]  ;;  %s34795_s19 = sld [smem:[#allocation108_spill]] }
 0x122   : > { %v26366_v3 = vpack.c.bf16 %v749_v1, %v748_v0  ;;  %v28657_v5 = vld [vmem:[%s28642_s26] sm:$0xff]  ;;  %v26370_v6 = vpack.c.bf16 %v751_v4, %v750_v2  ;;  %v28670_v9 = vld [vmem:[%s28642_s26 + $0x18] sm:$0xff]  ;;  %v721_v17 = vld [vmem:[%s28642_s26 + $0x28] sm:$0xff]  ;;  %1401 = vst.msk [vmem:[#allocation2 + $0x90] sm:$0xff] %vm1381_vm1, %v34142_v44  ;;  %s28251_s28 = smov [#allocation22]  }
 0x123   : > { %23856 = vmatprep.mubr.msk.f32.mxu1 %vm759_vm0, %v28657_v5  ;;  %v1113_v10 = vld [vmem:[%s34390_s27] sm:$0xff]  ;;  %v1114_v11 = vld [vmem:[%s34390_s27 + $0x8] sm:$0xff]  ;;  %v1115_v12 = vld [vmem:[%s34390_s27 + $0x10] sm:$0xff]  ;;  %1402 = vst.msk [vmem:[#allocation2 + $0x98] sm:$0xff] %vm1381_vm1, %v34142_v44  ;;  %s28159_s25 = sshll.u32 %s28251_s28, 4  ;;  %s28160_s25 = int_to_ptr.vmem [resolvable:$false] %s28159_s25 }
 0x124   : > { %26367 = vmatprep.subr.bf16.mxu1 %v26366_v3  ;;  %v28684_v13 = vld [vmem:[%s28642_s26 + $0x20] sm:$0xff]  ;;  %v26374_v14 = vpack.c.bf16 %v1114_v11, %v1113_v10  ;;  %v1116_v15 = vld [vmem:[%s34390_s27 + $0x18] sm:$0xff]  ;;  %v722_v18 = vld [vmem:[%s28642_s26 + $0x30] sm:$0xff]  ;;  %1404 = vst.msk [vmem:[#allocation2 + $0xa8] sm:$0xff] %vm1381_vm1, %v34142_v44  ;;  %s28161_s0 = scalar_lea.vmem %s28160_s25, 8192 }
 0x125   : > { %26369 = vmatpush3.bf16.msra.mxu1 %v26366_v3  ;;  %v26378_v16 = vpack.c.bf16 %v1116_v15, %v1115_v12  ;;  %v723_v19 = vld [vmem:[%s28642_s26 + $0x38] sm:$0xff]  ;;  %v724_v20 = vld [vmem:[%s28642_s26 + $0x40] sm:$0xff]  ;;  %v28702_v21 = vld [vmem:[%s28642_s26 + $0x48] sm:$0xff]  ;;  %1405 = vst.msk [vmem:[#allocation2 + $0xb0] sm:$0xff] %vm1381_vm1, %v34142_v44 }
 0x126   : > { %26371 = vmatprep.subr.bf16.mxu1 %v26370_v6  ;;  %v28705_v22 = vld [vmem:[%s28642_s26 + $0x50] sm:$0xff]  ;;  %v28712_v23 = vld [vmem:[%s28642_s26 + $0x58] sm:$0xff]  ;;  %v28715_v24 = vld [vmem:[%s28642_s26 + $0x60] sm:$0xff]  ;;  %1407 = vst.msk [vmem:[#allocation2 + $0xc0] sm:$0xff] %vm1381_vm1, %v34142_v44  ;;  %s708_s30 = sand.u32 1, %s34793_s8  }
 0x127   : > { %v28722_v25 = vld [vmem:[%s28642_s26 + $0x68] sm:$0xff]  ;;  %v28725_v26 = vld [vmem:[%s28642_s26 + $0x70] sm:$0xff]  ;;  %v28732_v27 = vld [vmem:[%s28642_s26 + $0x78] sm:$0xff]  ;;  %1408 = vst.msk [vmem:[#allocation2 + $0xc8] sm:$0xff] %vm1381_vm1, %v34142_v44  ;;  %s20504_s12 = sshll.u32 %s708_s30, 8  ;;  %p34796_p11 = scmp.ne.s32.totalorder %s34794_s24, 0 }
 0x128   : > { %v28735_v28 = vld [vmem:[%s28642_s26 + $0x80] sm:$0xff]  ;;  %v28742_v29 = vld [vmem:[%s28642_s26 + $0x88] sm:$0xff]  ;;  %v28745_v30 = vld [vmem:[%s28642_s26 + $0x90] sm:$0xff]  ;;  %1410 = vst.msk [vmem:[#allocation2 + $0xd8] sm:$0xff] %vm1381_vm1, %v34142_v44  ;;  %s33957_s20 = scalar_lea.vmem [#allocation22], %s20504_s12 }
 0x129   : > { %26373 = vmatpush3.bf16.msra.mxu1 %v26370_v6  ;;  %v28752_v31 = vld [vmem:[%s28642_s26 + $0x98] sm:$0xff]  ;;  %v28755_v32 = vld [vmem:[%s28642_s26 + $0xa0] sm:$0xff]  ;;  %v28762_v33 = vld [vmem:[%s28642_s26 + $0xa8] sm:$0xff]  ;;  %1411 = vst.msk [vmem:[#allocation2 + $0xe0] sm:$0xff] %vm1381_vm1, %v34142_v44  ;;  %s20332_s22 = sshll.u32 %s33957_s20, 4  ;;  %s34056_s22 = int_to_ptr.vmem [resolvable:$true] %s20332_s22 }
 0x12a   : > { %26375 = vmatprep.subr.bf16.mxu1 %v26374_v14  ;;  %v28765_v34 = vld [vmem:[%s28642_s26 + $0xb0] sm:$0xff]  ;;  %v28772_v35 = vld [vmem:[%s28642_s26 + $0xb8] sm:$0xff]  ;;  %v28775_v36 = vld [vmem:[%s28642_s26 + $0xc0] sm:$0xff]  ;;  %1413 = vst.msk [vmem:[#allocation2 + $0xf0] sm:$0xff] %vm1381_vm1, %v34142_v44  ;;  %s28155_s21 = scalar_lea.vmem %s34056_s22, 4096  ;;  %p28162_p0 = scmp.lt.s32.totalorder %s34056_s22, %s28160_s25 }
 0x12b   : > { %v28782_v37 = vld [vmem:[%s28642_s26 + $0xc8] sm:$0xff]  ;;  %v28785_v38 = vld [vmem:[%s28642_s26 + $0xd0] sm:$0xff]  ;;  %v28792_v39 = vld [vmem:[%s28642_s26 + $0xd8] sm:$0xff]  ;;  %1414 = vst.msk [vmem:[#allocation2 + $0xf8] sm:$0xff] %vm1381_vm1, %v34142_v44  ;;  %p28156_p8 = scmp.ne.s32.totalorder %s34056_s22, %s28155_s21  ;;  %p28163_p6 = scmp.lt.s32.totalorder %s28161_s0, %s28155_s21 }
 0x12c   : > { %23857 = vmatmul.mubr.msk.f32.vlgmr.msra.gmra.mrb[0].mxu1 %vm759_vm0, %v28662_v7  ;;  %v28795_v40 = vld [vmem:[%s28642_s26 + $0xe0] sm:$0xff]  ;;  %v28802_v41 = vld [vmem:[%s28642_s26 + $0xe8] sm:$0xff]  ;;  %v28805_v42 = vld [vmem:[%s28642_s26 + $0xf0] sm:$0xff]  ;;  %1416 = vst.msk [vmem:[#allocation2 + $0x108] sm:$0xff] %vm1381_vm1, %v34142_v44 }
 0x12d   : > { %23859 = vmatprep.mubr.msk.f32.mxu1 %vm759_vm0, %v28665_v8  ;;  %26377 = vmatpush3.bf16.msra.mxu1 %v26374_v14  ;;  %v28812_v43 = vld [vmem:[%s28642_s26 + $0xf8] sm:$0xff]  ;;  %1417 = vst.msk [vmem:[#allocation2 + $0x110] sm:$0xff] %vm1381_vm1, %v34142_v44  ;;  %1419 = vst.msk [vmem:[#allocation2 + $0x120] sm:$0xff] %vm1381_vm1, %v34142_v44  ;;  %v1470_v46 = vld [vmem:[#allocation2] sm:$0xff]  ;;  %p28157_p13 = pnand %p28156_p8, %p34796_p11  ;;  %p28164_p5 = por %p28163_p6, %p28162_p0 }
 0x12e   : > { %26379 = vmatprep.subr.bf16.mxu1 %v26378_v16  ;;  %1420 = vst.msk [vmem:[#allocation2 + $0x128] sm:$0xff] %vm1381_vm1, %v34142_v44  ;;  %1422 = vst.msk [vmem:[#allocation2 + $0x138] sm:$0xff] %vm1381_vm1, %v34142_v44  ;;  %v1471_v47 = vld [vmem:[#allocation2 + $0x8] sm:$0xff]  ;;  %24012 = vmatprep.mubr.msk.f32.mxu0 %vm1381_vm1, %v1470_v46 }
 0x12f   : > { %1423 = vst.msk [vmem:[#allocation2 + $0x140] sm:$0xff] %vm1381_vm1, %v34142_v44  ;;  %1425 = vst.msk [vmem:[#allocation2 + $0x150] sm:$0xff] %vm1381_vm1, %v34142_v44  ;;  %24013 = vmatmul.mubr.msk.f32.vlgmr.msra.gmra.mrb[0].mxu0 %vm1381_vm1, %v1471_v47  ;;  %v2186_v50 = vld [vmem:[#allocation2 + $0x2] sm:$0xff]  ;;  %p28158_p1 = pneg %p28157_p13 }
 0x130   : > { %23860 = vmatmul.mubr.msk.f32.gmra.mrb[2].mxu1 %vm759_vm0, %v28670_v9  ;;  %1426 = vst.msk [vmem:[#allocation2 + $0x158] sm:$0xff] %vm1381_vm1, %v34142_v44  ;;  %1428 = vst.msk [vmem:[#allocation2 + $0x168] sm:$0xff] %vm1381_vm1, %v34142_v44  ;;  %24061 = vmatpush3.msk.msra.mxu0 %vm1633_vm2, %v20640_v48  ;;  %v1503_v53 = vld [vmem:[#allocation2 + $0x1] sm:$0xff] }
 0x131   : > { %23862 = vmatprep.mubr.msk.f32.mxu1 %vm759_vm0, %v28684_v13  ;;  %26381 = vmatpush3.bf16.msra.mxu1 %v26378_v16  ;;  %1429 = vst.msk [vmem:[#allocation2 + $0x170] sm:$0xff] %vm1381_vm1, %v34142_v44  ;;  %1431 = vst.msk [vmem:[#allocation2 + $0x180] sm:$0xff] %vm1381_vm1, %v34142_v44  ;;  %p28165_p9 = pnand %p28164_p5, %p28158_p1 }
 0x132   : > { %1432 = vst.msk [vmem:[#allocation2 + $0x188] sm:$0xff] %vm1381_vm1, %v34142_v44  ;;  %1434 = vst.msk [vmem:[#allocation2 + $0x198] sm:$0xff] %vm1381_vm1, %v34142_v44  ;;  %23960 = vmatprep.subr.msk.mxu1 %vm1633_vm2, %v20573_v49  ;;  %24062 = vmatprep.mubr.msk.f32.mxu0 %vm1381_vm1, %v2186_v50 }
 0x133   : > { %1435 = vst.msk [vmem:[#allocation2 + $0x1a0] sm:$0xff] %vm1381_vm1, %v34142_v44  ;;  %8541 = vst.msk [vmem:[#allocation4] sm:$0xff] %vm1381_vm1, %v34142_v44  ;;  %24110 = vmatprep.subr.msk.mxu0 %vm1633_vm2, %v20674_v52 }
 0x134   : > { %23863 = vmatmul.mubr.msk.f32.gmra.mrb[4].mxu1 %vm759_vm0, %v721_v17  ;;  %8542 = vst.msk [vmem:[#allocation4 + $0x8] sm:$0xff] %vm1381_vm1, %v34142_v44  ;;  %8544 = vst.msk [vmem:[#allocation4 + $0x18] sm:$0xff] %vm1381_vm1, %v34142_v44 }
 0x135   : > { %23865 = vmatprep.mubr.msk.f32.mxu1 %vm759_vm0, %v722_v18  ;;  %8545 = vst.msk [vmem:[#allocation4 + $0x20] sm:$0xff] %vm1381_vm1, %v34142_v44  ;;  %8547 = vst.msk [vmem:[#allocation4 + $0x30] sm:$0xff] %vm1381_vm1, %v34142_v44 }
 0x136   : > { %8548 = vst.msk [vmem:[#allocation4 + $0x38] sm:$0xff] %vm1381_vm1, %v34142_v44  ;;  %8550 = vst.msk [vmem:[#allocation4 + $0x48] sm:$0xff] %vm1381_vm1, %v34142_v44 }
 0x137   : > { %8551 = vst.msk [vmem:[#allocation4 + $0x50] sm:$0xff] %vm1381_vm1, %v34142_v44  ;;  %8553 = vst.msk [vmem:[#allocation4 + $0x60] sm:$0xff] %vm1381_vm1, %v34142_v44 }
 0x138   : > { %23866 = vmatmul.mubr.msk.f32.gmra.mrb[6].mxu1 %vm759_vm0, %v723_v19  ;;  %8554 = vst.msk [vmem:[#allocation4 + $0x68] sm:$0xff] %vm1381_vm1, %v34142_v44  ;;  %8556 = vst.msk [vmem:[#allocation4 + $0x78] sm:$0xff] %vm1381_vm1, %v34142_v44 }
 0x139   : > { %23868 = vmatprep.mubr.msk.f32.mxu1 %vm759_vm0, %v724_v20  ;;  %8557 = vst.msk [vmem:[#allocation4 + $0x80] sm:$0xff] %vm1381_vm1, %v34142_v44  ;;  %8559 = vst.msk [vmem:[#allocation4 + $0x90] sm:$0xff] %vm1381_vm1, %v34142_v44 }
 0x13a   : > { %8560 = vst.msk [vmem:[#allocation4 + $0x98] sm:$0xff] %vm1381_vm1, %v34142_v44  ;;  %8562 = vst.msk [vmem:[#allocation4 + $0xa8] sm:$0xff] %vm1381_vm1, %v34142_v44 }
 0x13b   : > { %8563 = vst.msk [vmem:[#allocation4 + $0xb0] sm:$0xff] %vm1381_vm1, %v34142_v44  ;;  %8565 = vst.msk [vmem:[#allocation4 + $0xc0] sm:$0xff] %vm1381_vm1, %v34142_v44 }
 0x13c   : > { %23869 = vmatmul.mubr.msk.f32.gmra.mrb[8].mxu1 %vm759_vm0, %v28702_v21  ;;  %8566 = vst.msk [vmem:[#allocation4 + $0xc8] sm:$0xff] %vm1381_vm1, %v34142_v44  ;;  %8568 = vst.msk [vmem:[#allocation4 + $0xd8] sm:$0xff] %vm1381_vm1, %v34142_v44 }
 0x13d   : > { %23871 = vmatprep.mubr.msk.f32.mxu1 %vm759_vm0, %v28705_v22  ;;  %8569 = vst.msk [vmem:[#allocation4 + $0xe0] sm:$0xff] %vm1381_vm1, %v34142_v44  ;;  %8571 = vst.msk [vmem:[#allocation4 + $0xf0] sm:$0xff] %vm1381_vm1, %v34142_v44 }
 0x13e   : > { %8572 = vst.msk [vmem:[#allocation4 + $0xf8] sm:$0xff] %vm1381_vm1, %v34142_v44  ;;  %8574 = vst.msk [vmem:[#allocation4 + $0x108] sm:$0xff] %vm1381_vm1, %v34142_v44 }
 0x13f   : > { %8575 = vst.msk [vmem:[#allocation4 + $0x110] sm:$0xff] %vm1381_vm1, %v34142_v44  ;;  %8577 = vst.msk [vmem:[#allocation4 + $0x120] sm:$0xff] %vm1381_vm1, %v34142_v44 }
 0x140   : > { %23872 = vmatmul.mubr.msk.f32.gmra.mrb[10].mxu1 %vm759_vm0, %v28712_v23  ;;  %8578 = vst.msk [vmem:[#allocation4 + $0x128] sm:$0xff] %vm1381_vm1, %v34142_v44  ;;  %8580 = vst.msk [vmem:[#allocation4 + $0x138] sm:$0xff] %vm1381_vm1, %v34142_v44 }
 0x141   : > { %23874 = vmatprep.mubr.msk.f32.mxu1 %vm759_vm0, %v28715_v24  ;;  %8581 = vst.msk [vmem:[#allocation4 + $0x140] sm:$0xff] %vm1381_vm1, %v34142_v44  ;;  %8583 = vst.msk [vmem:[#allocation4 + $0x150] sm:$0xff] %vm1381_vm1, %v34142_v44 }
 0x142   : > { %8584 = vst.msk [vmem:[#allocation4 + $0x158] sm:$0xff] %vm1381_vm1, %v34142_v44  ;;  %8586 = vst.msk [vmem:[#allocation4 + $0x168] sm:$0xff] %vm1381_vm1, %v34142_v44 }
 0x143   : > { %8587 = vst.msk [vmem:[#allocation4 + $0x170] sm:$0xff] %vm1381_vm1, %v34142_v44  ;;  %8589 = vst.msk [vmem:[#allocation4 + $0x180] sm:$0xff] %vm1381_vm1, %v34142_v44 }
 0x144   : > { %23875 = vmatmul.mubr.msk.f32.gmra.mrb[12].mxu1 %vm759_vm0, %v28722_v25  ;;  %8590 = vst.msk [vmem:[#allocation4 + $0x188] sm:$0xff] %vm1381_vm1, %v34142_v44  ;;  %8592 = vst.msk [vmem:[#allocation4 + $0x198] sm:$0xff] %vm1381_vm1, %v34142_v44 }
 0x145   : > { %23877 = vmatprep.mubr.msk.f32.mxu1 %vm759_vm0, %v28725_v26  ;;  %8593 = vst.msk [vmem:[#allocation4 + $0x1a0] sm:$0xff] %vm1381_vm1, %v34142_v44 }
 0x146   : > { %1388 = vst.msk [vmem:[#allocation2 + $0x28] sm:$0x3] %vm1384_vm3, %v34142_v44  ;;  %1385 = vst.msk [vmem:[#allocation2 + $0x10] sm:$0x3] %vm1384_vm3, %v34142_v44 }
 0x147   : > { %1391 = vst.msk [vmem:[#allocation2 + $0x40] sm:$0x3] %vm1384_vm3, %v34142_v44  ;;  %1394 = vst.msk [vmem:[#allocation2 + $0x58] sm:$0x3] %vm1384_vm3, %v34142_v44 }
 0x148   : > { %23878 = vmatmul.mubr.msk.f32.gmra.mrb[14].mxu1 %vm759_vm0, %v28732_v27  ;;  %1397 = vst.msk [vmem:[#allocation2 + $0x70] sm:$0x3] %vm1384_vm3, %v34142_v44  ;;  %1400 = vst.msk [vmem:[#allocation2 + $0x88] sm:$0x3] %vm1384_vm3, %v34142_v44 }
 0x149   : > { %23880 = vmatprep.mubr.msk.f32.mxu1 %vm759_vm0, %v28735_v28  ;;  %1403 = vst.msk [vmem:[#allocation2 + $0xa0] sm:$0x3] %vm1384_vm3, %v34142_v44  ;;  %1406 = vst.msk [vmem:[#allocation2 + $0xb8] sm:$0x3] %vm1384_vm3, %v34142_v44 }
 0x14a   : > { %1409 = vst.msk [vmem:[#allocation2 + $0xd0] sm:$0x3] %vm1384_vm3, %v34142_v44  ;;  %1412 = vst.msk [vmem:[#allocation2 + $0xe8] sm:$0x3] %vm1384_vm3, %v34142_v44 }
 0x14b   : > { %1415 = vst.msk [vmem:[#allocation2 + $0x100] sm:$0x3] %vm1384_vm3, %v34142_v44  ;;  %1418 = vst.msk [vmem:[#allocation2 + $0x118] sm:$0x3] %vm1384_vm3, %v34142_v44 }
 0x14c   : > { %23881 = vmatmul.mubr.msk.f32.gmra.mrb[16].mxu1 %vm759_vm0, %v28742_v29  ;;  %1421 = vst.msk [vmem:[#allocation2 + $0x130] sm:$0x3] %vm1384_vm3, %v34142_v44  ;;  %1424 = vst.msk [vmem:[#allocation2 + $0x148] sm:$0x3] %vm1384_vm3, %v34142_v44 }
 0x14d   : > { %23883 = vmatprep.mubr.msk.f32.mxu1 %vm759_vm0, %v28745_v30  ;;  %1427 = vst.msk [vmem:[#allocation2 + $0x160] sm:$0x3] %vm1384_vm3, %v34142_v44  ;;  %1430 = vst.msk [vmem:[#allocation2 + $0x178] sm:$0x3] %vm1384_vm3, %v34142_v44  ;;  %v2187_v51 = vld [vmem:[#allocation2 + $0xa] sm:$0xff] }
 0x14e   : > { %1433 = vst.msk [vmem:[#allocation2 + $0x190] sm:$0x3] %vm1384_vm3, %v34142_v44  ;;  %1436 = vst.msk [vmem:[#allocation2 + $0x1a8] sm:$0x3] %vm1384_vm3, %v34142_v44  ;;  %24063 = vmatmul.mubr.msk.f32.vlgmr.msra.gmra.mrb[0].mxu0 %vm1381_vm1, %v2187_v51  ;;  %v1504_v54 = vld [vmem:[#allocation2 + $0x9] sm:$0xff] }
 0x14f   : > { %8543 = vst.msk [vmem:[#allocation4 + $0x10] sm:$0x3] %vm1384_vm3, %v34142_v44  ;;  %8546 = vst.msk [vmem:[#allocation4 + $0x28] sm:$0x3] %vm1384_vm3, %v34142_v44  ;;  %24111 = vmatpush3.msk.msra.mxu0 %vm1633_vm2, %v20674_v52 }
 0x150   : > { %23884 = vmatmul.mubr.msk.f32.gmra.mrb[18].mxu1 %vm759_vm0, %v28752_v31  ;;  %8549 = vst.msk [vmem:[#allocation4 + $0x40] sm:$0x3] %vm1384_vm3, %v34142_v44  ;;  %8552 = vst.msk [vmem:[#allocation4 + $0x58] sm:$0x3] %vm1384_vm3, %v34142_v44  ;;  %24160 = vmatprep.subr.msk.mxu0 %vm1633_vm2, %v29129_v55 }
 0x151   : > { %23886 = vmatprep.mubr.msk.f32.mxu1 %vm759_vm0, %v28755_v32  ;;  %8555 = vst.msk [vmem:[#allocation4 + $0x70] sm:$0x3] %vm1384_vm3, %v34142_v44  ;;  %8558 = vst.msk [vmem:[#allocation4 + $0x88] sm:$0x3] %vm1384_vm3, %v34142_v44 }
 0x152   : > { %8561 = vst.msk [vmem:[#allocation4 + $0xa0] sm:$0x3] %vm1384_vm3, %v34142_v44  ;;  %8564 = vst.msk [vmem:[#allocation4 + $0xb8] sm:$0x3] %vm1384_vm3, %v34142_v44 }
 0x153   : > { %8567 = vst.msk [vmem:[#allocation4 + $0xd0] sm:$0x3] %vm1384_vm3, %v34142_v44  ;;  %8570 = vst.msk [vmem:[#allocation4 + $0xe8] sm:$0x3] %vm1384_vm3, %v34142_v44 }
 0x154   : > { %23887 = vmatmul.mubr.msk.f32.gmra.mrb[20].mxu1 %vm759_vm0, %v28762_v33  ;;  %8573 = vst.msk [vmem:[#allocation4 + $0x100] sm:$0x3] %vm1384_vm3, %v34142_v44  ;;  %8576 = vst.msk [vmem:[#allocation4 + $0x118] sm:$0x3] %vm1384_vm3, %v34142_v44 }
 0x155   : > { %23889 = vmatprep.mubr.msk.f32.mxu1 %vm759_vm0, %v28765_v34  ;;  %8579 = vst.msk [vmem:[#allocation4 + $0x130] sm:$0x3] %vm1384_vm3, %v34142_v44  ;;  %8582 = vst.msk [vmem:[#allocation4 + $0x148] sm:$0x3] %vm1384_vm3, %v34142_v44 }
 0x156   : > { %8585 = vst.msk [vmem:[#allocation4 + $0x160] sm:$0x3] %vm1384_vm3, %v34142_v44  ;;  %8588 = vst.msk [vmem:[#allocation4 + $0x178] sm:$0x3] %vm1384_vm3, %v34142_v44 }
 0x157   : > { %8591 = vst.msk [vmem:[#allocation4 + $0x190] sm:$0x3] %vm1384_vm3, %v34142_v44  ;;  %8594 = vst.msk [vmem:[#allocation4 + $0x1a8] sm:$0x3] %vm1384_vm3, %v34142_v44  ;;  %v29444_v44 = vld [vmem:[%s34110_s5 + $0x14] sm:$0xf] }
 0x158   : > { %23890 = vmatmul.mubr.msk.f32.gmra.mrb[22].mxu1 %vm759_vm0, %v28772_v35 }
 0x159   : > { %23892 = vmatprep.mubr.msk.f32.mxu1 %vm759_vm0, %v28775_v36 }
 0x15c   : > { %23893 = vmatmul.mubr.msk.f32.gmra.mrb[24].mxu1 %vm759_vm0, %v28782_v37 }
 0x15d   : > { %23895 = vmatprep.mubr.msk.f32.mxu1 %vm759_vm0, %v28785_v38 }
 0x160   : > { %23896 = vmatmul.mubr.msk.f32.gmra.mrb[26].mxu1 %vm759_vm0, %v28792_v39 }
 0x161   : > { %23898 = vmatprep.mubr.msk.f32.mxu1 %vm759_vm0, %v28795_v40 }
 0x164   : > { %23899 = vmatmul.mubr.msk.f32.gmra.mrb[28].mxu1 %vm759_vm0, %v28802_v41 }
 0x165   : > { %23901 = vmatprep.mubr.msk.f32.mxu1 %vm759_vm0, %v28805_v42 }
 0x168   : > { %23902 = vmatmul.mubr.msk.f32.gmra.mrb[30].mxu1 %vm759_vm0, %v28812_v43 }
 0x169   : > { %23912 = vmatprep.mubr.msk.f32.mxu1 %vm759_vm0, %v28657_v5 }
 0x16c   : > { %23913 = vmatmul.mubr.msk.f32.vlgmr.msra.gmra.mrb[32].mxu1 %vm759_vm0, %v28662_v7 }
 0x16d   : > { %23915 = vmatprep.mubr.msk.f32.mxu1 %vm759_vm0, %v28665_v8  ;;  %23961 = vmatpush3.msk.msra.mxu1 %vm1633_vm2, %v20573_v49 }
 0x16e   : > { %26390 = vmatprep.subr.msk.mxu1 %vm1633_vm2, %v28981_v45 }
 0x170   : > { %23916 = vmatmul.mubr.msk.f32.gmra.mrb[34].mxu1 %vm759_vm0, %v28670_v9 }
 0x171   : > { %23918 = vmatprep.mubr.msk.f32.mxu1 %vm759_vm0, %v28684_v13 }
 0x174   : > { %23919 = vmatmul.mubr.msk.f32.gmra.mrb[36].mxu1 %vm759_vm0, %v721_v17 }
 0x175   : > { %23921 = vmatprep.mubr.msk.f32.mxu1 %vm759_vm0, %v722_v18 }
 0x178   : > { %23922 = vmatmul.mubr.msk.f32.gmra.mrb[38].mxu1 %vm759_vm0, %v723_v19 }
 0x179   : > { %23924 = vmatprep.mubr.msk.f32.mxu1 %vm759_vm0, %v724_v20 }
 0x17c   : > { %23925 = vmatmul.mubr.msk.f32.gmra.mrb[40].mxu1 %vm759_vm0, %v28702_v21 }
 0x17d   : > { %23927 = vmatprep.mubr.msk.f32.mxu1 %vm759_vm0, %v28705_v22 }
 0x180   : > { %23928 = vmatmul.mubr.msk.f32.gmra.mrb[42].mxu1 %vm759_vm0, %v28712_v23 }
 0x181   : > { %23930 = vmatprep.mubr.msk.f32.mxu1 %vm759_vm0, %v28715_v24 }
 0x184   : > { %23931 = vmatmul.mubr.msk.f32.gmra.mrb[44].mxu1 %vm759_vm0, %v28722_v25 }
 0x185   : > { %23933 = vmatprep.mubr.msk.f32.mxu1 %vm759_vm0, %v28725_v26 }
 0x188   : > { %23934 = vmatmul.mubr.msk.f32.gmra.mrb[46].mxu1 %vm759_vm0, %v28732_v27 }
 0x189   : > { %23936 = vmatprep.mubr.msk.f32.mxu1 %vm759_vm0, %v28735_v28 }
 0x18c   : > { %23937 = vmatmul.mubr.msk.f32.gmra.mrb[48].mxu1 %vm759_vm0, %v28742_v29 }
 0x18d   : > { %23939 = vmatprep.mubr.msk.f32.mxu1 %vm759_vm0, %v28745_v30 }
 0x190   : > { %23940 = vmatmul.mubr.msk.f32.gmra.mrb[50].mxu1 %vm759_vm0, %v28752_v31 }
 0x191   : > { %23942 = vmatprep.mubr.msk.f32.mxu1 %vm759_vm0, %v28755_v32 }
 0x194   : > { %23943 = vmatmul.mubr.msk.f32.gmra.mrb[52].mxu1 %vm759_vm0, %v28762_v33 }
 0x195   : > { %23945 = vmatprep.mubr.msk.f32.mxu1 %vm759_vm0, %v28765_v34 }
 0x198   : > { %23946 = vmatmul.mubr.msk.f32.gmra.mrb[54].mxu1 %vm759_vm0, %v28772_v35 }
 0x199   : > { %23948 = vmatprep.mubr.msk.f32.mxu1 %vm759_vm0, %v28775_v36 }
 0x19c   : > { %23949 = vmatmul.mubr.msk.f32.gmra.mrb[56].mxu1 %vm759_vm0, %v28782_v37 }
 0x19d   : > { %23951 = vmatprep.mubr.msk.f32.mxu1 %vm759_vm0, %v28785_v38 }
 0x1a0   : > { %23952 = vmatmul.mubr.msk.f32.gmra.mrb[58].mxu1 %vm759_vm0, %v28792_v39 }
 0x1a1   : > { %23954 = vmatprep.mubr.msk.f32.mxu1 %vm759_vm0, %v28795_v40 }
 0x1a4   : > { %23955 = vmatmul.mubr.msk.f32.gmra.mrb[60].mxu1 %vm759_vm0, %v28802_v41 }
 0x1a5   : > { %23957 = vmatprep.mubr.msk.f32.mxu1 %vm759_vm0, %v28805_v42 }
 0x1a8   : > { %23958 = vmatmul.mubr.msk.f32.gmra.mrb[62].mxu1 %vm759_vm0, %v28812_v43 }
 0x1a9   : > { %23962 = vmatprep.mubr.msk.f32.mxu1 %vm1381_vm1, %v1503_v53 }
 0x1ac   : > { %23963 = vmatmul.mubr.msk.f32.vlgmr.msra.gmra.mrb[64].mxu1 %vm1381_vm1, %v1504_v54 }
 0x1ad   : > { %26391 = vmatpush3.msk.msra.mxu1 %vm1633_vm2, %v28981_v45 }
 0x1ff   : > { %v23858_v57 = vpop.f32.mrb[0].mxu1 }
 0x200   : > { %v928_v58 = vadd.f32 %v23858_v57, %v29133_v56  ;;  %v922_v59 = vpop.f32.mrb[1].mxu1 }
 0x201   : > { %v923_v60 = vadd.f32 %v29133_v56, %v922_v59 }
 0x202   : > { %v1082_v61 = vmax.f32 %v928_v58, 0.0 }
 0x203   : > { %v1081_v62 = vmax.f32 %v923_v60, 0.0  ;;  %v23861_v63 = vpop.f32.mrb[2].mxu1 }
 0x204   : > { %1439 = vst.msk [vmem:[#allocation2 + $0x21] sm:$0xff] %vm1381_vm1, %v1082_v61  ;;  %v938_v0 = vadd.f32 %v23861_v63, %v29133_v56  ;;  %v932_v1 = vpop.f32.mrb[3].mxu1 }
 0x205   : > { %1438 = vst.msk [vmem:[#allocation2 + $0x19] sm:$0xff] %vm1381_vm1, %v1081_v62  ;;  %v933_v2 = vadd.f32 %v29133_v56, %v932_v1 }
 0x206   : > { %v1084_v3 = vmax.f32 %v938_v0, 0.0 }
 0x207   : > { %v1083_v4 = vmax.f32 %v933_v2, 0.0  ;;  %v23864_v5 = vpop.f32.mrb[4].mxu1 }
 0x208   : > { %1441 = vst.msk [vmem:[#allocation2 + $0x39] sm:$0xff] %vm1381_vm1, %v1084_v3  ;;  %v948_v6 = vadd.f32 %v23864_v5, %v29133_v56  ;;  %v942_v7 = vpop.f32.mrb[5].mxu1 }
 0x209   : > { %1440 = vst.msk [vmem:[#allocation2 + $0x31] sm:$0xff] %vm1381_vm1, %v1083_v4  ;;  %v943_v8 = vadd.f32 %v29133_v56, %v942_v7 }
 0x20a   : > { %v1086_v9 = vmax.f32 %v948_v6, 0.0 }
 0x20b   : > { %v1085_v10 = vmax.f32 %v943_v8, 0.0  ;;  %v23867_v11 = vpop.f32.mrb[6].mxu1  ;;  %v29157_v17 = vld [vmem:[#allocation2 + $0x21] sm:$0xff] }
 0x20c   : > { %1443 = vst.msk [vmem:[#allocation2 + $0x51] sm:$0xff] %vm1381_vm1, %v1086_v9  ;;  %v958_v12 = vadd.f32 %v23867_v11, %v29133_v56  ;;  %v952_v13 = vpop.f32.mrb[7].mxu1  ;;  %v29147_v14 = vld [vmem:[#allocation2 + $0x19] sm:$0xff]  ;;  %v29159_v18 = vld [vmem:[#allocation2 + $0x22] sm:$0xff] }
 0x20d   : > { %v29149_v15 = vld [vmem:[#allocation2 + $0x1a] sm:$0xff]  ;;  %1442 = vst.msk [vmem:[#allocation2 + $0x49] sm:$0xff] %vm1381_vm1, %v1085_v10  ;;  %v953_v16 = vadd.f32 %v29133_v56, %v952_v13  ;;  %23965 = vmatprep.mubr.msk.f32.mxu1 %vm1381_vm1, %v29147_v14 }
 0x20e   : > { %24065 = vmatprep.mubr.msk.f32.mxu0 %vm1381_vm1, %v29149_v15  ;;  %v1088_v19 = vmax.f32 %v958_v12, 0.0  ;;  %23966 = vmatmul.mubr.msk.f32.gmra.mrb[66].mxu1 %vm1381_vm1, %v29157_v17 }
 0x20f   : > { %24066 = vmatmul.mubr.msk.f32.gmra.mrb[2].mxu0 %vm1381_vm1, %v29159_v18  ;;  %v1087_v20 = vmax.f32 %v953_v16, 0.0  ;;  %v23870_v21 = vpop.f32.mrb[8].mxu1  ;;  %v29177_v27 = vld [vmem:[#allocation2 + $0x39] sm:$0xff] }
 0x210   : > { %1445 = vst.msk [vmem:[#allocation2 + $0x69] sm:$0xff] %vm1381_vm1, %v1088_v19  ;;  %v968_v22 = vadd.f32 %v23870_v21, %v29133_v56  ;;  %v962_v23 = vpop.f32.mrb[9].mxu1  ;;  %v29167_v24 = vld [vmem:[#allocation2 + $0x31] sm:$0xff]  ;;  %v29179_v28 = vld [vmem:[#allocation2 + $0x3a] sm:$0xff] }
 0x211   : > { %v29169_v25 = vld [vmem:[#allocation2 + $0x32] sm:$0xff]  ;;  %1444 = vst.msk [vmem:[#allocation2 + $0x61] sm:$0xff] %vm1381_vm1, %v1087_v20  ;;  %v963_v26 = vadd.f32 %v29133_v56, %v962_v23  ;;  %23968 = vmatprep.mubr.msk.f32.mxu1 %vm1381_vm1, %v29167_v24 }
 0x212   : > { %24068 = vmatprep.mubr.msk.f32.mxu0 %vm1381_vm1, %v29169_v25  ;;  %v1090_v29 = vmax.f32 %v968_v22, 0.0  ;;  %23969 = vmatmul.mubr.msk.f32.gmra.mrb[68].mxu1 %vm1381_vm1, %v29177_v27 }
 0x213   : > { %24069 = vmatmul.mubr.msk.f32.gmra.mrb[4].mxu0 %vm1381_vm1, %v29179_v28  ;;  %v1089_v30 = vmax.f32 %v963_v26, 0.0  ;;  %v23873_v31 = vpop.f32.mrb[10].mxu1  ;;  %v29197_v37 = vld [vmem:[#allocation2 + $0x51] sm:$0xff] }
 0x214   : > { %1447 = vst.msk [vmem:[#allocation2 + $0x81] sm:$0xff] %vm1381_vm1, %v1090_v29  ;;  %v978_v32 = vadd.f32 %v23873_v31, %v29133_v56  ;;  %v972_v33 = vpop.f32.mrb[11].mxu1  ;;  %v29187_v34 = vld [vmem:[#allocation2 + $0x49] sm:$0xff]  ;;  %v29199_v38 = vld [vmem:[#allocation2 + $0x52] sm:$0xff] }
 0x215   : > { %v29189_v35 = vld [vmem:[#allocation2 + $0x4a] sm:$0xff]  ;;  %1446 = vst.msk [vmem:[#allocation2 + $0x79] sm:$0xff] %vm1381_vm1, %v1089_v30  ;;  %v973_v36 = vadd.f32 %v29133_v56, %v972_v33  ;;  %23971 = vmatprep.mubr.msk.f32.mxu1 %vm1381_vm1, %v29187_v34 }
 0x216   : > { %24071 = vmatprep.mubr.msk.f32.mxu0 %vm1381_vm1, %v29189_v35  ;;  %v1092_v39 = vmax.f32 %v978_v32, 0.0  ;;  %23972 = vmatmul.mubr.msk.f32.gmra.mrb[70].mxu1 %vm1381_vm1, %v29197_v37 }
 0x217   : > { %24072 = vmatmul.mubr.msk.f32.gmra.mrb[6].mxu0 %vm1381_vm1, %v29199_v38  ;;  %v1091_v40 = vmax.f32 %v973_v36, 0.0  ;;  %v23876_v41 = vpop.f32.mrb[12].mxu1  ;;  %v29217_v48 = vld [vmem:[#allocation2 + $0x69] sm:$0xff] }
 0x218   : > { %1449 = vst.msk [vmem:[#allocation2 + $0x99] sm:$0xff] %vm1381_vm1, %v1092_v39  ;;  %v988_v42 = vadd.f32 %v23876_v41, %v29133_v56  ;;  %v982_v43 = vpop.f32.mrb[13].mxu1  ;;  %v29207_v45 = vld [vmem:[#allocation2 + $0x61] sm:$0xff]  ;;  %v29219_v49 = vld [vmem:[#allocation2 + $0x6a] sm:$0xff] }
 0x219   : > { %v29209_v46 = vld [vmem:[#allocation2 + $0x62] sm:$0xff]  ;;  %1448 = vst.msk [vmem:[#allocation2 + $0x91] sm:$0xff] %vm1381_vm1, %v1091_v40  ;;  %v983_v47 = vadd.f32 %v29133_v56, %v982_v43  ;;  %23974 = vmatprep.mubr.msk.f32.mxu1 %vm1381_vm1, %v29207_v45 }
 0x21a   : > { %24074 = vmatprep.mubr.msk.f32.mxu0 %vm1381_vm1, %v29209_v46  ;;  %v1094_v50 = vmax.f32 %v988_v42, 0.0  ;;  %23975 = vmatmul.mubr.msk.f32.gmra.mrb[72].mxu1 %vm1381_vm1, %v29217_v48 }
 0x21b   : > { %24075 = vmatmul.mubr.msk.f32.gmra.mrb[8].mxu0 %vm1381_vm1, %v29219_v49  ;;  %v1093_v51 = vmax.f32 %v983_v47, 0.0  ;;  %v23879_v52 = vpop.f32.mrb[14].mxu1  ;;  %v29237_v60 = vld [vmem:[#allocation2 + $0x81] sm:$0xff] }
 0x21c   : > { %1451 = vst.msk [vmem:[#allocation2 + $0xb1] sm:$0xff] %vm1381_vm1, %v1094_v50  ;;  %v998_v53 = vadd.f32 %v23879_v52, %v29133_v56  ;;  %v992_v54 = vpop.f32.mrb[15].mxu1  ;;  %v29227_v57 = vld [vmem:[#allocation2 + $0x79] sm:$0xff]  ;;  %v29239_v61 = vld [vmem:[#allocation2 + $0x82] sm:$0xff] }
 0x21d   : > { %v29229_v58 = vld [vmem:[#allocation2 + $0x7a] sm:$0xff]  ;;  %1450 = vst.msk [vmem:[#allocation2 + $0xa9] sm:$0xff] %vm1381_vm1, %v1093_v51  ;;  %v993_v59 = vadd.f32 %v29133_v56, %v992_v54  ;;  %23977 = vmatprep.mubr.msk.f32.mxu1 %vm1381_vm1, %v29227_v57 }
 0x21e   : > { %24077 = vmatprep.mubr.msk.f32.mxu0 %vm1381_vm1, %v29229_v58  ;;  %v1096_v62 = vmax.f32 %v998_v53, 0.0  ;;  %23978 = vmatmul.mubr.msk.f32.gmra.mrb[74].mxu1 %vm1381_vm1, %v29237_v60 }
 0x21f   : > { %24078 = vmatmul.mubr.msk.f32.gmra.mrb[10].mxu0 %vm1381_vm1, %v29239_v61  ;;  %v1095_v63 = vmax.f32 %v993_v59, 0.0  ;;  %v23882_v0 = vpop.f32.mrb[16].mxu1  ;;  %v29257_v6 = vld [vmem:[#allocation2 + $0x99] sm:$0xff] }
 0x220   : > { %1453 = vst.msk [vmem:[#allocation2 + $0xc9] sm:$0xff] %vm1381_vm1, %v1096_v62  ;;  %v1008_v1 = vadd.f32 %v23882_v0, %v29133_v56  ;;  %v1002_v2 = vpop.f32.mrb[17].mxu1  ;;  %v29247_v3 = vld [vmem:[#allocation2 + $0x91] sm:$0xff]  ;;  %v29259_v7 = vld [vmem:[#allocation2 + $0x9a] sm:$0xff] }
 0x221   : > { %v29249_v4 = vld [vmem:[#allocation2 + $0x92] sm:$0xff]  ;;  %1452 = vst.msk [vmem:[#allocation2 + $0xc1] sm:$0xff] %vm1381_vm1, %v1095_v63  ;;  %v1003_v5 = vadd.f32 %v29133_v56, %v1002_v2  ;;  %23980 = vmatprep.mubr.msk.f32.mxu1 %vm1381_vm1, %v29247_v3 }
 0x222   : > { %24080 = vmatprep.mubr.msk.f32.mxu0 %vm1381_vm1, %v29249_v4  ;;  %v1098_v8 = vmax.f32 %v1008_v1, 0.0  ;;  %23981 = vmatmul.mubr.msk.f32.gmra.mrb[76].mxu1 %vm1381_vm1, %v29257_v6 }
 0x223   : > { %24081 = vmatmul.mubr.msk.f32.gmra.mrb[12].mxu0 %vm1381_vm1, %v29259_v7  ;;  %v1097_v9 = vmax.f32 %v1003_v5, 0.0  ;;  %v23885_v10 = vpop.f32.mrb[18].mxu1  ;;  %v29277_v20 = vld [vmem:[#allocation2 + $0xb1] sm:$0xff] }
 0x224   : > { %1455 = vst.msk [vmem:[#allocation2 + $0xe1] sm:$0xff] %vm1381_vm1, %v1098_v8  ;;  %v1018_v11 = vadd.f32 %v23885_v10, %v29133_v56  ;;  %v1012_v12 = vpop.f32.mrb[19].mxu1  ;;  %v29267_v13 = vld [vmem:[#allocation2 + $0xa9] sm:$0xff]  ;;  %v29279_v21 = vld [vmem:[#allocation2 + $0xb2] sm:$0xff] }
 0x225   : > { %v29269_v16 = vld [vmem:[#allocation2 + $0xaa] sm:$0xff]  ;;  %1454 = vst.msk [vmem:[#allocation2 + $0xd9] sm:$0xff] %vm1381_vm1, %v1097_v9  ;;  %v1013_v19 = vadd.f32 %v29133_v56, %v1012_v12  ;;  %23983 = vmatprep.mubr.msk.f32.mxu1 %vm1381_vm1, %v29267_v13 }
 0x226   : > { %24083 = vmatprep.mubr.msk.f32.mxu0 %vm1381_vm1, %v29269_v16  ;;  %v1100_v22 = vmax.f32 %v1018_v11, 0.0  ;;  %23984 = vmatmul.mubr.msk.f32.gmra.mrb[78].mxu1 %vm1381_vm1, %v29277_v20 }
 0x227   : > { %24084 = vmatmul.mubr.msk.f32.gmra.mrb[14].mxu0 %vm1381_vm1, %v29279_v21  ;;  %v1099_v23 = vmax.f32 %v1013_v19, 0.0  ;;  %v23888_v26 = vpop.f32.mrb[20].mxu1  ;;  %v29297_v36 = vld [vmem:[#allocation2 + $0xc9] sm:$0xff] }
 0x228   : > { %1457 = vst.msk [vmem:[#allocation2 + $0xf9] sm:$0xff] %vm1381_vm1, %v1100_v22  ;;  %v1028_v29 = vadd.f32 %v23888_v26, %v29133_v56  ;;  %v1022_v30 = vpop.f32.mrb[21].mxu1  ;;  %v29287_v31 = vld [vmem:[#allocation2 + $0xc1] sm:$0xff]  ;;  %v29299_v39 = vld [vmem:[#allocation2 + $0xca] sm:$0xff] }
 0x229   : > { %v29289_v32 = vld [vmem:[#allocation2 + $0xc2] sm:$0xff]  ;;  %1456 = vst.msk [vmem:[#allocation2 + $0xf1] sm:$0xff] %vm1381_vm1, %v1099_v23  ;;  %v1023_v33 = vadd.f32 %v29133_v56, %v1022_v30  ;;  %23986 = vmatprep.mubr.msk.f32.mxu1 %vm1381_vm1, %v29287_v31 }
 0x22a   : > { %24086 = vmatprep.mubr.msk.f32.mxu0 %vm1381_vm1, %v29289_v32  ;;  %v1102_v40 = vmax.f32 %v1028_v29, 0.0  ;;  %23987 = vmatmul.mubr.msk.f32.gmra.mrb[80].mxu1 %vm1381_vm1, %v29297_v36 }
 0x22b   : > { %24087 = vmatmul.mubr.msk.f32.gmra.mrb[16].mxu0 %vm1381_vm1, %v29299_v39  ;;  %v1101_v41 = vmax.f32 %v1023_v33, 0.0  ;;  %v23891_v42 = vpop.f32.mrb[22].mxu1  ;;  %v29317_v53 = vld [vmem:[#allocation2 + $0xe1] sm:$0xff] }
 0x22c   : > { %1459 = vst.msk [vmem:[#allocation2 + $0x111] sm:$0xff] %vm1381_vm1, %v1102_v40  ;;  %v1038_v43 = vadd.f32 %v23891_v42, %v29133_v56  ;;  %v1032_v47 = vpop.f32.mrb[23].mxu1  ;;  %v29307_v50 = vld [vmem:[#allocation2 + $0xd9] sm:$0xff]  ;;  %v29319_v54 = vld [vmem:[#allocation2 + $0xe2] sm:$0xff] }
 0x22d   : > { %v29309_v51 = vld [vmem:[#allocation2 + $0xda] sm:$0xff]  ;;  %1458 = vst.msk [vmem:[#allocation2 + $0x109] sm:$0xff] %vm1381_vm1, %v1101_v41  ;;  %v1033_v52 = vadd.f32 %v29133_v56, %v1032_v47  ;;  %23989 = vmatprep.mubr.msk.f32.mxu1 %vm1381_vm1, %v29307_v50  ;;  %34391 = vst [vmem:[#allocation37_spill] sm:$0xff] %v29319_v54 }
 0x22e   : > { %24089 = vmatprep.mubr.msk.f32.mxu0 %vm1381_vm1, %v29309_v51  ;;  %v1104_v59 = vmax.f32 %v1038_v43, 0.0  ;;  %23990 = vmatmul.mubr.msk.f32.gmra.mrb[82].mxu1 %vm1381_vm1, %v29317_v53 }
 0x22f   : > { %24090 = vmatmul.mubr.msk.f32.gmra.mrb[18].mxu0 %vm1381_vm1, %v29319_v54  ;;  %v1103_v62 = vmax.f32 %v1033_v52, 0.0  ;;  %v23894_v63 = vpop.f32.mrb[24].mxu1  ;;  %v29337_v9 = vld [vmem:[#allocation2 + $0xf9] sm:$0xff] }
 0x230   : > { %1461 = vst.msk [vmem:[#allocation2 + $0x129] sm:$0xff] %vm1381_vm1, %v1104_v59  ;;  %v1048_v0 = vadd.f32 %v23894_v63, %v29133_v56  ;;  %v1042_v1 = vpop.f32.mrb[25].mxu1  ;;  %v29327_v2 = vld [vmem:[#allocation2 + $0xf1] sm:$0xff]  ;;  %v29339_v10 = vld [vmem:[#allocation2 + $0xfa] sm:$0xff] }
 0x231   : > { %v29329_v5 = vld [vmem:[#allocation2 + $0xf2] sm:$0xff]  ;;  %1460 = vst.msk [vmem:[#allocation2 + $0x121] sm:$0xff] %vm1381_vm1, %v1103_v62  ;;  %v1043_v8 = vadd.f32 %v29133_v56, %v1042_v1  ;;  %23992 = vmatprep.mubr.msk.f32.mxu1 %vm1381_vm1, %v29327_v2  ;;  %34393 = vst [vmem:[#allocation39_spill] sm:$0xff] %v29339_v10 }
 0x232   : > { %34392 = vst [vmem:[#allocation38_spill] sm:$0xff] %v29329_v5  ;;  %24092 = vmatprep.mubr.msk.f32.mxu0 %vm1381_vm1, %v29329_v5  ;;  %v1106_v11 = vmax.f32 %v1048_v0, 0.0  ;;  %23993 = vmatmul.mubr.msk.f32.gmra.mrb[84].mxu1 %vm1381_vm1, %v29337_v9 }
 0x233   : > { %24093 = vmatmul.mubr.msk.f32.gmra.mrb[20].mxu0 %vm1381_vm1, %v29339_v10  ;;  %v1105_v12 = vmax.f32 %v1043_v8, 0.0  ;;  %v23897_v19 = vpop.f32.mrb[26].mxu1  ;;  %v29357_v33 = vld [vmem:[#allocation2 + $0x111] sm:$0xff] }
 0x234   : > { %1463 = vst.msk [vmem:[#allocation2 + $0x141] sm:$0xff] %vm1381_vm1, %v1106_v11  ;;  %v1058_v22 = vadd.f32 %v23897_v19, %v29133_v56  ;;  %v1052_v23 = vpop.f32.mrb[27].mxu1  ;;  %v29347_v26 = vld [vmem:[#allocation2 + $0x109] sm:$0xff]  ;;  %v29359_v40 = vld [vmem:[#allocation2 + $0x112] sm:$0xff] }
 0x235   : > { %v29349_v29 = vld [vmem:[#allocation2 + $0x10a] sm:$0xff]  ;;  %1462 = vst.msk [vmem:[#allocation2 + $0x139] sm:$0xff] %vm1381_vm1, %v1105_v12  ;;  %v1053_v30 = vadd.f32 %v29133_v56, %v1052_v23  ;;  %23995 = vmatprep.mubr.msk.f32.mxu1 %vm1381_vm1, %v29347_v26  ;;  %34395 = vst [vmem:[#allocation41_spill] sm:$0xff] %v29359_v40 }
 0x236   : > { %34394 = vst [vmem:[#allocation40_spill] sm:$0xff] %v29349_v29  ;;  %24095 = vmatprep.mubr.msk.f32.mxu0 %vm1381_vm1, %v29349_v29  ;;  %v1108_v41 = vmax.f32 %v1058_v22, 0.0  ;;  %23996 = vmatmul.mubr.msk.f32.gmra.mrb[86].mxu1 %vm1381_vm1, %v29357_v33 }
 0x237   : > { %24096 = vmatmul.mubr.msk.f32.gmra.mrb[22].mxu0 %vm1381_vm1, %v29359_v40  ;;  %v1107_v42 = vmax.f32 %v1053_v30, 0.0  ;;  %v23900_v43 = vpop.f32.mrb[28].mxu1  ;;  %v29377_v0 = vld [vmem:[#allocation2 + $0x129] sm:$0xff] }
 0x238   : > { %1465 = vst.msk [vmem:[#allocation2 + $0x159] sm:$0xff] %vm1381_vm1, %v1108_v41  ;;  %v1068_v47 = vadd.f32 %v23900_v43, %v29133_v56  ;;  %v1062_v52 = vpop.f32.mrb[29].mxu1  ;;  %v29367_v59 = vld [vmem:[#allocation2 + $0x121] sm:$0xff]  ;;  %v29379_v1 = vld [vmem:[#allocation2 + $0x12a] sm:$0xff] }
 0x239   : > { %v29369_v62 = vld [vmem:[#allocation2 + $0x122] sm:$0xff]  ;;  %1464 = vst.msk [vmem:[#allocation2 + $0x151] sm:$0xff] %vm1381_vm1, %v1107_v42  ;;  %v1063_v63 = vadd.f32 %v29133_v56, %v1062_v52  ;;  %23998 = vmatprep.mubr.msk.f32.mxu1 %vm1381_vm1, %v29367_v59  ;;  %34397 = vst [vmem:[#allocation43_spill] sm:$0xff] %v29379_v1 }
 0x23a   : > { %34396 = vst [vmem:[#allocation42_spill] sm:$0xff] %v29369_v62  ;;  %24098 = vmatprep.mubr.msk.f32.mxu0 %vm1381_vm1, %v29369_v62  ;;  %v1110_v8 = vmax.f32 %v1068_v47, 0.0  ;;  %23999 = vmatmul.mubr.msk.f32.gmra.mrb[88].mxu1 %vm1381_vm1, %v29377_v0 }
 0x23b   : > { %24099 = vmatmul.mubr.msk.f32.gmra.mrb[24].mxu0 %vm1381_vm1, %v29379_v1  ;;  %v1109_v11 = vmax.f32 %v1063_v63, 0.0  ;;  %v23903_v12 = vpop.f32.mrb[30].mxu1  ;;  %v29396_v41 = vld [vmem:[#allocation2 + $0x141] sm:$0xff] }
 0x23c   : > { %1467 = vst.msk [vmem:[#allocation2 + $0x171] sm:$0xff] %vm1381_vm1, %v1110_v8  ;;  %v29386_v19 = vld [vmem:[#allocation2 + $0x139] sm:$0xff]  ;;  %v1078_v23 = vadd.f32 %v23903_v12, %v29133_v56  ;;  %v1072_v30 = vpop.f32.mrb[31].mxu1  ;;  %v29398_v42 = vld [vmem:[#allocation2 + $0x142] sm:$0xff] }
 0x23d   : > { %v29388_v22 = vld [vmem:[#allocation2 + $0x13a] sm:$0xff]  ;;  %1466 = vst.msk [vmem:[#allocation2 + $0x169] sm:$0xff] %vm1381_vm1, %v1109_v11  ;;  %24001 = vmatprep.mubr.msk.f32.mxu1 %vm1381_vm1, %v29386_v19  ;;  %34399 = vst [vmem:[#allocation45_spill] sm:$0xff] %v29398_v42  ;;  %v1073_v43 = vadd.f32 %v29133_v56, %v1072_v30 }
 0x23e   : > { %34398 = vst [vmem:[#allocation44_spill] sm:$0xff] %v29388_v22  ;;  %24101 = vmatprep.mubr.msk.f32.mxu0 %vm1381_vm1, %v29388_v22  ;;  %24002 = vmatmul.mubr.msk.f32.gmra.mrb[90].mxu1 %vm1381_vm1, %v29396_v41  ;;  %v1112_v47 = vmax.f32 %v1078_v23, 0.0 }
 0x23f   : > { %24102 = vmatmul.mubr.msk.f32.gmra.mrb[26].mxu0 %vm1381_vm1, %v29398_v42  ;;  %v1111_v52 = vmax.f32 %v1073_v43, 0.0  ;;  %v29414_v56 = vld [vmem:[#allocation2 + $0x159] sm:$0xff] }
 0x240   : > { %v29405_v63 = vld [vmem:[#allocation2 + $0x151] sm:$0xff]  ;;  %1469 = vst.msk [vmem:[#allocation2 + $0x189] sm:$0xff] %vm1381_vm1, %v1112_v47  ;;  %v29416_v11 = vld [vmem:[#allocation2 + $0x15a] sm:$0xff] }
 0x241   : > { %v29407_v8 = vld [vmem:[#allocation2 + $0x152] sm:$0xff]  ;;  %24004 = vmatprep.mubr.msk.f32.mxu1 %vm1381_vm1, %v29405_v63  ;;  %34401 = vst [vmem:[#allocation47_spill] sm:$0xff] %v29416_v11  ;;  %1468 = vst.msk [vmem:[#allocation2 + $0x181] sm:$0xff] %vm1381_vm1, %v1111_v52  ;;  %v1473_v52 = vld [vmem:[#allocation2 + $0x20] sm:$0xff] }
 0x242   : > { %34400 = vst [vmem:[#allocation46_spill] sm:$0xff] %v29407_v8  ;;  %24104 = vmatprep.mubr.msk.f32.mxu0 %vm1381_vm1, %v29407_v8  ;;  %24005 = vmatmul.mubr.msk.f32.gmra.mrb[92].mxu1 %vm1381_vm1, %v29414_v56  ;;  %v1472_v47 = vld [vmem:[#allocation2 + $0x18] sm:$0xff] }
 0x243   : > { %24105 = vmatmul.mubr.msk.f32.gmra.mrb[28].mxu0 %vm1381_vm1, %v29416_v11  ;;  %v29431_v30 = vld [vmem:[#allocation2 + $0x171] sm:$0xff] }
 0x244   : > { %v29423_v12 = vld [vmem:[#allocation2 + $0x169] sm:$0xff]  ;;  %v29433_v43 = vld [vmem:[#allocation2 + $0x172] sm:$0xff] }
 0x245   : > { %v29425_v23 = vld [vmem:[#allocation2 + $0x16a] sm:$0xff]  ;;  %24007 = vmatprep.mubr.msk.f32.mxu1 %vm1381_vm1, %v29423_v12  ;;  %34403 = vst [vmem:[#allocation49_spill] sm:$0xff] %v29433_v43  ;;  %v29606_v22 = vld [vmem:[#allocation2 + $0x158] sm:$0xff] }
 0x246   : > { %34402 = vst [vmem:[#allocation48_spill] sm:$0xff] %v29425_v23  ;;  %24107 = vmatprep.mubr.msk.f32.mxu0 %vm1381_vm1, %v29425_v23  ;;  %24008 = vmatmul.mubr.msk.f32.gmra.mrb[94].mxu1 %vm1381_vm1, %v29431_v30  ;;  %v29448_v23 = vld [vmem:[#allocation2 + $0x30] sm:$0xff]  ;;  %34429 = vst [vmem:[#allocation75_spill] sm:$0xff] %v29606_v22  ;;  %v29613_v40 = vld [vmem:[#allocation2 + $0x168] sm:$0xff] }
 0x247   : > { %24108 = vmatmul.mubr.msk.f32.gmra.mrb[30].mxu0 %vm1381_vm1, %v29433_v43  ;;  %24015 = vmatprep.mubr.msk.f32.mxu1 %vm1381_vm1, %v1472_v47  ;;  %34404 = vst [vmem:[#allocation50_spill] sm:$0xff] %v29448_v23  ;;  %v23914_v43 = vpop.f32.mrb[32].mxu1  ;;  %34430 = vst [vmem:[#allocation76_spill] sm:$0xff] %v29613_v40  ;;  %v29626_v5 = vld [vmem:[#allocation2 + $0x170] sm:$0xff] }
 0x248   : > { %24112 = vmatprep.mubr.msk.f32.mxu0 %vm1381_vm1, %v1472_v47  ;;  %v29458_v47 = vld [vmem:[#allocation2 + $0x38] sm:$0xff]  ;;  %v1190_v11 = vpop.f32.mrb[33].mxu1  ;;  %v29622_v10 = vld [vmem:[#allocation2 + $0x180] sm:$0xff]  ;;  %34432 = vst [vmem:[#allocation78_spill] sm:$0xff] %v29626_v5 }
 0x249   : > { %34405 = vst [vmem:[#allocation51_spill] sm:$0xff] %v29458_v47  ;;  %v23917_v42 = vpop.f32.mrb[34].mxu1  ;;  %34431 = vst [vmem:[#allocation77_spill] sm:$0xff] %v29622_v10 }
 0x24a   : > { %24016 = vmatmul.mubr.msk.f32.vlgmr.msra.gmra.mrb[66].mxu1 %vm1381_vm1, %v1473_v52  ;;  %v1200_v62 = vpop.f32.mrb[35].mxu1 }
 0x24b   : > { %24113 = vmatmul.mubr.msk.f32.vlgmr.msra.gmra.mrb[0].mxu0 %vm1381_vm1, %v1473_v52  ;;  %24018 = vmatprep.mubr.msk.f32.mxu1 %vm1381_vm1, %v29448_v23  ;;  %v29464_v52 = vld [vmem:[#allocation2 + $0x48] sm:$0xff]  ;;  %v23920_v29 = vpop.f32.mrb[36].mxu1 }
 0x24c   : > { %24161 = vmatpush3.msk.msra.mxu0 %vm1633_vm2, %v29129_v55  ;;  %24115 = vmatprep.mubr.msk.f32.mxu0 %vm1381_vm1, %v29448_v23  ;;  %34406 = vst [vmem:[#allocation52_spill] sm:$0xff] %v29464_v52  ;;  %v29470_v55 = vld [vmem:[#allocation2 + $0x50] sm:$0xff]  ;;  %v29476_v23 = vld [vmem:[#allocation2 + $0x60] sm:$0xff] }
 0x24d   : > { %24210 = vmatprep.subr.msk.mxu0 %vm1633_vm2, %v29444_v44  ;;  %34407 = vst [vmem:[#allocation53_spill] sm:$0xff] %v29470_v55  ;;  %34408 = vst [vmem:[#allocation54_spill] sm:$0xff] %v29476_v23 }
 0x24e   : > { %24019 = vmatmul.mubr.msk.f32.gmra.mrb[68].mxu1 %vm1381_vm1, %v29458_v47 }
 0x24f   : > { %24116 = vmatmul.mubr.msk.f32.gmra.mrb[2].mxu0 %vm1381_vm1, %v29458_v47  ;;  %24021 = vmatprep.mubr.msk.f32.mxu1 %vm1381_vm1, %v29464_v52  ;;  %v29482_v47 = vld [vmem:[#allocation2 + $0x68] sm:$0xff] }
 0x250   : > { %24118 = vmatprep.mubr.msk.f32.mxu0 %vm1381_vm1, %v29464_v52  ;;  %34409 = vst [vmem:[#allocation55_spill] sm:$0xff] %v29482_v47  ;;  %v29488_v52 = vld [vmem:[#allocation2 + $0x78] sm:$0xff] }
 0x251   : > { %34410 = vst [vmem:[#allocation56_spill] sm:$0xff] %v29488_v52 }
 0x252   : > { %24022 = vmatmul.mubr.msk.f32.gmra.mrb[70].mxu1 %vm1381_vm1, %v29470_v55 }
 0x253   : > { %24119 = vmatmul.mubr.msk.f32.gmra.mrb[4].mxu0 %vm1381_vm1, %v29470_v55  ;;  %24024 = vmatprep.mubr.msk.f32.mxu1 %vm1381_vm1, %v29476_v23  ;;  %v29494_v55 = vld [vmem:[#allocation2 + $0x80] sm:$0xff] }
 0x254   : > { %24121 = vmatprep.mubr.msk.f32.mxu0 %vm1381_vm1, %v29476_v23  ;;  %34411 = vst [vmem:[#allocation57_spill] sm:$0xff] %v29494_v55  ;;  %v29500_v23 = vld [vmem:[#allocation2 + $0x90] sm:$0xff] }
 0x255   : > { %34412 = vst [vmem:[#allocation58_spill] sm:$0xff] %v29500_v23 }
 0x256   : > { %24025 = vmatmul.mubr.msk.f32.gmra.mrb[72].mxu1 %vm1381_vm1, %v29482_v47 }
 0x257   : > { %24122 = vmatmul.mubr.msk.f32.gmra.mrb[6].mxu0 %vm1381_vm1, %v29482_v47  ;;  %24027 = vmatprep.mubr.msk.f32.mxu1 %vm1381_vm1, %v29488_v52  ;;  %v29506_v47 = vld [vmem:[#allocation2 + $0x98] sm:$0xff] }
 0x258   : > { %24124 = vmatprep.mubr.msk.f32.mxu0 %vm1381_vm1, %v29488_v52  ;;  %34413 = vst [vmem:[#allocation59_spill] sm:$0xff] %v29506_v47  ;;  %v29512_v52 = vld [vmem:[#allocation2 + $0xa8] sm:$0xff] }
 0x259   : > { %34414 = vst [vmem:[#allocation60_spill] sm:$0xff] %v29512_v52 }
 0x25a   : > { %24028 = vmatmul.mubr.msk.f32.gmra.mrb[74].mxu1 %vm1381_vm1, %v29494_v55 }
 0x25b   : > { %24125 = vmatmul.mubr.msk.f32.gmra.mrb[8].mxu0 %vm1381_vm1, %v29494_v55  ;;  %24030 = vmatprep.mubr.msk.f32.mxu1 %vm1381_vm1, %v29500_v23  ;;  %v29518_v55 = vld [vmem:[#allocation2 + $0xb0] sm:$0xff] }
 0x25c   : > { %24127 = vmatprep.mubr.msk.f32.mxu0 %vm1381_vm1, %v29500_v23  ;;  %34415 = vst [vmem:[#allocation61_spill] sm:$0xff] %v29518_v55  ;;  %v29524_v23 = vld [vmem:[#allocation2 + $0xc0] sm:$0xff] }
 0x25d   : > { %34416 = vst [vmem:[#allocation62_spill] sm:$0xff] %v29524_v23 }
 0x25e   : > { %24031 = vmatmul.mubr.msk.f32.gmra.mrb[76].mxu1 %vm1381_vm1, %v29506_v47 }
 0x25f   : > { %24128 = vmatmul.mubr.msk.f32.gmra.mrb[10].mxu0 %vm1381_vm1, %v29506_v47  ;;  %24033 = vmatprep.mubr.msk.f32.mxu1 %vm1381_vm1, %v29512_v52  ;;  %v29530_v47 = vld [vmem:[#allocation2 + $0xc8] sm:$0xff] }
 0x260   : > { %24130 = vmatprep.mubr.msk.f32.mxu0 %vm1381_vm1, %v29512_v52  ;;  %34417 = vst [vmem:[#allocation63_spill] sm:$0xff] %v29530_v47  ;;  %v29536_v52 = vld [vmem:[#allocation2 + $0xd8] sm:$0xff] }
 0x261   : > { %34418 = vst [vmem:[#allocation64_spill] sm:$0xff] %v29536_v52 }
 0x262   : > { %24034 = vmatmul.mubr.msk.f32.gmra.mrb[78].mxu1 %vm1381_vm1, %v29518_v55 }
 0x263   : > { %24131 = vmatmul.mubr.msk.f32.gmra.mrb[12].mxu0 %vm1381_vm1, %v29518_v55  ;;  %24036 = vmatprep.mubr.msk.f32.mxu1 %vm1381_vm1, %v29524_v23  ;;  %v29542_v55 = vld [vmem:[#allocation2 + $0xe0] sm:$0xff] }
 0x264   : > { %24133 = vmatprep.mubr.msk.f32.mxu0 %vm1381_vm1, %v29524_v23  ;;  %34419 = vst [vmem:[#allocation65_spill] sm:$0xff] %v29542_v55  ;;  %v29548_v23 = vld [vmem:[#allocation2 + $0xf0] sm:$0xff] }
 0x265   : > { %34420 = vst [vmem:[#allocation66_spill] sm:$0xff] %v29548_v23 }
 0x266   : > { %24037 = vmatmul.mubr.msk.f32.gmra.mrb[80].mxu1 %vm1381_vm1, %v29530_v47 }
 0x267   : > { %24134 = vmatmul.mubr.msk.f32.gmra.mrb[14].mxu0 %vm1381_vm1, %v29530_v47  ;;  %24039 = vmatprep.mubr.msk.f32.mxu1 %vm1381_vm1, %v29536_v52  ;;  %v29554_v47 = vld [vmem:[#allocation2 + $0xf8] sm:$0xff] }
 0x268   : > { %24136 = vmatprep.mubr.msk.f32.mxu0 %vm1381_vm1, %v29536_v52  ;;  %34421 = vst [vmem:[#allocation67_spill] sm:$0xff] %v29554_v47  ;;  %v29560_v52 = vld [vmem:[#allocation2 + $0x108] sm:$0xff] }
 0x269   : > { %34422 = vst [vmem:[#allocation68_spill] sm:$0xff] %v29560_v52 }
 0x26a   : > { %24040 = vmatmul.mubr.msk.f32.gmra.mrb[82].mxu1 %vm1381_vm1, %v29542_v55 }
 0x26b   : > { %24137 = vmatmul.mubr.msk.f32.gmra.mrb[16].mxu0 %vm1381_vm1, %v29542_v55  ;;  %24042 = vmatprep.mubr.msk.f32.mxu1 %vm1381_vm1, %v29548_v23  ;;  %v29566_v55 = vld [vmem:[#allocation2 + $0x110] sm:$0xff] }
 0x26c   : > { %24139 = vmatprep.mubr.msk.f32.mxu0 %vm1381_vm1, %v29548_v23  ;;  %34423 = vst [vmem:[#allocation69_spill] sm:$0xff] %v29566_v55  ;;  %v29572_v23 = vld [vmem:[#allocation2 + $0x120] sm:$0xff] }
 0x26d   : > { %34424 = vst [vmem:[#allocation70_spill] sm:$0xff] %v29572_v23 }
 0x26e   : > { %24043 = vmatmul.mubr.msk.f32.gmra.mrb[84].mxu1 %vm1381_vm1, %v29554_v47 }
 0x26f   : > { %24140 = vmatmul.mubr.msk.f32.gmra.mrb[18].mxu0 %vm1381_vm1, %v29554_v47  ;;  %24045 = vmatprep.mubr.msk.f32.mxu1 %vm1381_vm1, %v29560_v52  ;;  %v29578_v47 = vld [vmem:[#allocation2 + $0x128] sm:$0xff] }
 0x270   : > { %24142 = vmatprep.mubr.msk.f32.mxu0 %vm1381_vm1, %v29560_v52  ;;  %34425 = vst [vmem:[#allocation71_spill] sm:$0xff] %v29578_v47  ;;  %v29584_v52 = vld [vmem:[#allocation2 + $0x138] sm:$0xff] }
 0x271   : > { %34426 = vst [vmem:[#allocation72_spill] sm:$0xff] %v29584_v52 }
 0x272   : > { %24046 = vmatmul.mubr.msk.f32.gmra.mrb[86].mxu1 %vm1381_vm1, %v29566_v55 }
 0x273   : > { %24143 = vmatmul.mubr.msk.f32.gmra.mrb[20].mxu0 %vm1381_vm1, %v29566_v55  ;;  %24048 = vmatprep.mubr.msk.f32.mxu1 %vm1381_vm1, %v29572_v23  ;;  %v29590_v55 = vld [vmem:[#allocation2 + $0x140] sm:$0xff] }
 0x274   : > { %24145 = vmatprep.mubr.msk.f32.mxu0 %vm1381_vm1, %v29572_v23  ;;  %34427 = vst [vmem:[#allocation73_spill] sm:$0xff] %v29590_v55  ;;  %v29596_v23 = vld [vmem:[#allocation2 + $0x150] sm:$0xff] }
 0x275   : > { %34428 = vst [vmem:[#allocation74_spill] sm:$0xff] %v29596_v23 }
 0x276   : > { %24049 = vmatmul.mubr.msk.f32.gmra.mrb[88].mxu1 %vm1381_vm1, %v29578_v47 }
 0x277   : > { %24146 = vmatmul.mubr.msk.f32.gmra.mrb[22].mxu0 %vm1381_vm1, %v29578_v47  ;;  %24051 = vmatprep.mubr.msk.f32.mxu1 %vm1381_vm1, %v29584_v52  ;;  %v29598_v47 = vld [vmem:[#allocation10] ss:$0 sm:$0xff] }
 0x278   : > { %24148 = vmatprep.mubr.msk.f32.mxu0 %vm1381_vm1, %v29584_v52  ;;  %v1196_v52 = vadd.f32 %v23914_v43, %v29598_v47  ;;  %v1191_v8 = vadd.f32 %v29598_v47, %v1190_v11  ;;  %v1206_v1 = vadd.f32 %v23917_v42, %v29598_v47  ;;  %v1201_v43 = vadd.f32 %v29598_v47, %v1200_v62 }
 0x279   : > { %v1216_v11 = vadd.f32 %v23920_v29, %v29598_v47 }
 0x27a   : > { %24052 = vmatmul.mubr.msk.f32.gmra.mrb[90].mxu1 %vm1381_vm1, %v29590_v55  ;;  %v1352_v42 = vmax.f32 %v1206_v1, 0.0 }
 0x27b   : > { %24149 = vmatmul.mubr.msk.f32.gmra.mrb[24].mxu0 %vm1381_vm1, %v29590_v55  ;;  %24054 = vmatprep.mubr.msk.f32.mxu1 %vm1381_vm1, %v29596_v23  ;;  %v1350_v55 = vmax.f32 %v1196_v52, 0.0  ;;  %v1210_v52 = vpop.f32.mrb[37].mxu1  ;;  %v1354_v54 = vmax.f32 %v1216_v11, 0.0 }
 0x27c   : > { %24151 = vmatprep.mubr.msk.f32.mxu0 %vm1381_vm1, %v29596_v23  ;;  %v1349_v23 = vmax.f32 %v1191_v8, 0.0  ;;  %v1351_v8 = vmax.f32 %v1201_v43, 0.0  ;;  %v1211_v62 = vadd.f32 %v29598_v47, %v1210_v52  ;;  %8599 = vst.msk [vmem:[#allocation4 + $0x39] sm:$0xff] %vm1381_vm1, %v1352_v42 }
 0x27d   : > { %8597 = vst.msk [vmem:[#allocation4 + $0x21] sm:$0xff] %vm1381_vm1, %v1350_v55  ;;  %8601 = vst.msk [vmem:[#allocation4 + $0x51] sm:$0xff] %vm1381_vm1, %v1354_v54 }
 0x27e   : > { %24055 = vmatmul.mubr.msk.f32.gmra.mrb[92].mxu1 %vm1381_vm1, %v29606_v22  ;;  %8596 = vst.msk [vmem:[#allocation4 + $0x19] sm:$0xff] %vm1381_vm1, %v1349_v23  ;;  %8598 = vst.msk [vmem:[#allocation4 + $0x31] sm:$0xff] %vm1381_vm1, %v1351_v8  ;;  %v1353_v29 = vmax.f32 %v1211_v62, 0.0  ;;  %v29642_v8 = vld [vmem:[#allocation2 + $0x188] sm:$0xff] }
 0x27f   : > { %24152 = vmatmul.mubr.msk.f32.gmra.mrb[26].mxu0 %vm1381_vm1, %v29606_v22  ;;  %24057 = vmatprep.mubr.msk.f32.mxu1 %vm1381_vm1, %v29613_v40  ;;  %v23923_v22 = vpop.f32.mrb[38].mxu1 }
 0x280   : > { %24154 = vmatprep.mubr.msk.f32.mxu0 %vm1381_vm1, %v29613_v40  ;;  %v1226_v40 = vadd.f32 %v23923_v22, %v29598_v47  ;;  %v1220_v55 = vpop.f32.mrb[39].mxu1  ;;  %8600 = vst.msk [vmem:[#allocation4 + $0x49] sm:$0xff] %vm1381_vm1, %v1353_v29 }
 0x281   : > { %v1221_v1 = vadd.f32 %v29598_v47, %v1220_v55  ;;  %v23926_v23 = vpop.f32.mrb[40].mxu1 }
 0x282   : > { %24058 = vmatmul.mubr.msk.f32.gmra.mrb[94].mxu1 %vm1381_vm1, %v29626_v5  ;;  %v1356_v43 = vmax.f32 %v1226_v40, 0.0  ;;  %v1236_v22 = vadd.f32 %v23926_v23, %v29598_v47  ;;  %v1230_v42 = vpop.f32.mrb[41].mxu1 }
 0x283   : > { %24155 = vmatmul.mubr.msk.f32.gmra.mrb[28].mxu0 %vm1381_vm1, %v29626_v5  ;;  %v1355_v11 = vmax.f32 %v1221_v1, 0.0  ;;  %v1231_v52 = vadd.f32 %v29598_v47, %v1230_v42  ;;  %v23929_v5 = vpop.f32.mrb[42].mxu1 }
 0x284   : > { %24157 = vmatprep.mubr.msk.f32.mxu0 %vm1381_vm1, %v29622_v10  ;;  %8603 = vst.msk [vmem:[#allocation4 + $0x69] sm:$0xff] %vm1381_vm1, %v1356_v43  ;;  %v1358_v62 = vmax.f32 %v1236_v22, 0.0  ;;  %v1246_v55 = vadd.f32 %v23929_v5, %v29598_v47  ;;  %v1240_v10 = vpop.f32.mrb[43].mxu1 }
 0x285   : > { %8602 = vst.msk [vmem:[#allocation4 + $0x61] sm:$0xff] %vm1381_vm1, %v1355_v11  ;;  %v1357_v54 = vmax.f32 %v1231_v52, 0.0  ;;  %v1241_v40 = vadd.f32 %v29598_v47, %v1240_v10  ;;  %v23932_v29 = vpop.f32.mrb[44].mxu1  ;;  %v29659_v10 = vld [vmem:[%s34110_s5 + $0x18] sm:$0xf] }
 0x286   : > { %8605 = vst.msk [vmem:[#allocation4 + $0x81] sm:$0xff] %vm1381_vm1, %v1358_v62  ;;  %v1360_v1 = vmax.f32 %v1246_v55, 0.0  ;;  %v1256_v23 = vadd.f32 %v23932_v29, %v29598_v47  ;;  %v1250_v43 = vpop.f32.mrb[45].mxu1 }
 0x287   : > { %24158 = vmatmul.mubr.msk.f32.gmra.mrb[30].mxu0 %vm1381_vm1, %v29642_v8  ;;  %8604 = vst.msk [vmem:[#allocation4 + $0x79] sm:$0xff] %vm1381_vm1, %v1357_v54  ;;  %v1359_v5 = vmax.f32 %v1241_v40, 0.0  ;;  %v1251_v22 = vadd.f32 %v29598_v47, %v1250_v43  ;;  %v23935_v42 = vpop.f32.mrb[46].mxu1 }
 0x288   : > { %24162 = vmatprep.mubr.msk.f32.mxu0 %vm1381_vm1, %v29147_v14  ;;  %8607 = vst.msk [vmem:[#allocation4 + $0x99] sm:$0xff] %vm1381_vm1, %v1360_v1  ;;  %v1362_v14 = vmax.f32 %v1256_v23, 0.0  ;;  %v1266_v11 = vadd.f32 %v23935_v42, %v29598_v47  ;;  %v1260_v52 = vpop.f32.mrb[47].mxu1 }
 0x289   : > { %8606 = vst.msk [vmem:[#allocation4 + $0x91] sm:$0xff] %vm1381_vm1, %v1359_v5  ;;  %v1361_v62 = vmax.f32 %v1251_v22, 0.0  ;;  %v1261_v55 = vadd.f32 %v29598_v47, %v1260_v52  ;;  %v23938_v40 = vpop.f32.mrb[48].mxu1 }
 0x28a   : > { %8609 = vst.msk [vmem:[#allocation4 + $0xb1] sm:$0xff] %vm1381_vm1, %v1362_v14  ;;  %v1364_v54 = vmax.f32 %v1266_v11, 0.0  ;;  %v1276_v29 = vadd.f32 %v23938_v40, %v29598_v47  ;;  %v1270_v1 = vpop.f32.mrb[49].mxu1 }
 0x28b   : > { %24163 = vmatmul.mubr.msk.f32.vlgmr.msra.gmra.mrb[0].mxu0 %vm1381_vm1, %v29157_v17  ;;  %8608 = vst.msk [vmem:[#allocation4 + $0xa9] sm:$0xff] %vm1381_vm1, %v1361_v62  ;;  %v1363_v17 = vmax.f32 %v1261_v55, 0.0  ;;  %v23941_v23 = vpop.f32.mrb[50].mxu1 }
 0x28c   : > { %24211 = vmatpush3.msk.msra.mxu0 %vm1633_vm2, %v29444_v44  ;;  %24165 = vmatprep.mubr.msk.f32.mxu0 %vm1381_vm1, %v29167_v24  ;;  %8611 = vst.msk [vmem:[#allocation4 + $0xc9] sm:$0xff] %vm1381_vm1, %v1364_v54  ;;  %v1271_v44 = vadd.f32 %v29598_v47, %v1270_v1  ;;  %v1366_v24 = vmax.f32 %v1276_v29, 0.0  ;;  %v1286_v43 = vadd.f32 %v23941_v23, %v29598_v47  ;;  %v1280_v5 = vpop.f32.mrb[51].mxu1 }
 0x28d   : > { %24260 = vmatprep.subr.msk.mxu0 %vm1633_vm2, %v29659_v10  ;;  %8610 = vst.msk [vmem:[#allocation4 + $0xc1] sm:$0xff] %vm1381_vm1, %v1363_v17  ;;  %v1281_v42 = vadd.f32 %v29598_v47, %v1280_v5  ;;  %v23944_v14 = vpop.f32.mrb[52].mxu1 }
 0x28e   : > { %v1365_v22 = vmax.f32 %v1271_v44, 0.0  ;;  %8613 = vst.msk [vmem:[#allocation4 + $0xe1] sm:$0xff] %vm1381_vm1, %v1366_v24  ;;  %v1368_v11 = vmax.f32 %v1286_v43, 0.0  ;;  %v1296_v52 = vadd.f32 %v23944_v14, %v29598_v47  ;;  %v1290_v62 = vpop.f32.mrb[53].mxu1 }
 0x28f   : > { %24166 = vmatmul.mubr.msk.f32.gmra.mrb[2].mxu0 %vm1381_vm1, %v29177_v27  ;;  %v1367_v27 = vmax.f32 %v1281_v42, 0.0  ;;  %v1291_v55 = vadd.f32 %v29598_v47, %v1290_v62  ;;  %v23947_v54 = vpop.f32.mrb[54].mxu1 }
 0x290   : > { %24168 = vmatprep.mubr.msk.f32.mxu0 %vm1381_vm1, %v29187_v34  ;;  %8612 = vst.msk [vmem:[#allocation4 + $0xd9] sm:$0xff] %vm1381_vm1, %v1365_v22  ;;  %8615 = vst.msk [vmem:[#allocation4 + $0xf9] sm:$0xff] %vm1381_vm1, %v1368_v11  ;;  %v1370_v34 = vmax.f32 %v1296_v52, 0.0  ;;  %v1306_v40 = vadd.f32 %v23947_v54, %v29598_v47  ;;  %v1300_v17 = vpop.f32.mrb[55].mxu1 }
 0x291   : > { %8614 = vst.msk [vmem:[#allocation4 + $0xf1] sm:$0xff] %vm1381_vm1, %v1367_v27  ;;  %v1369_v29 = vmax.f32 %v1291_v55, 0.0  ;;  %v1301_v1 = vadd.f32 %v29598_v47, %v1300_v17  ;;  %v23950_v44 = vpop.f32.mrb[56].mxu1 }
 0x292   : > { %8617 = vst.msk [vmem:[#allocation4 + $0x111] sm:$0xff] %vm1381_vm1, %v1370_v34  ;;  %v1372_v23 = vmax.f32 %v1306_v40, 0.0  ;;  %v1310_v24 = vpop.f32.mrb[57].mxu1 }
 0x293   : > { %24169 = vmatmul.mubr.msk.f32.gmra.mrb[4].mxu0 %vm1381_vm1, %v29197_v37  ;;  %v1316_v37 = vadd.f32 %v23950_v44, %v29598_v47  ;;  %8616 = vst.msk [vmem:[#allocation4 + $0x109] sm:$0xff] %vm1381_vm1, %v1369_v29  ;;  %v1371_v43 = vmax.f32 %v1301_v1, 0.0  ;;  %v1311_v5 = vadd.f32 %v29598_v47, %v1310_v24  ;;  %v23953_v22 = vpop.f32.mrb[58].mxu1 }
 0x294   : > { %24171 = vmatprep.mubr.msk.f32.mxu0 %vm1381_vm1, %v29207_v45  ;;  %8619 = vst.msk [vmem:[#allocation4 + $0x129] sm:$0xff] %vm1381_vm1, %v1372_v23  ;;  %v1326_v42 = vadd.f32 %v23953_v22, %v29598_v47  ;;  %v1320_v14 = vpop.f32.mrb[59].mxu1  ;;  %v34462_v22 = vld [vmem:[#allocation66_spill] sm:$0xff] }
 0x295   : > { %v1374_v45 = vmax.f32 %v1316_v37, 0.0  ;;  %8618 = vst.msk [vmem:[#allocation4 + $0x121] sm:$0xff] %vm1381_vm1, %v1371_v43  ;;  %v1373_v11 = vmax.f32 %v1311_v5, 0.0  ;;  %v1321_v52 = vadd.f32 %v29598_v47, %v1320_v14  ;;  %v23956_v62 = vpop.f32.mrb[60].mxu1  ;;  %v34461_v5 = vld [vmem:[#allocation65_spill] sm:$0xff]  ;;  %v34463_v14 = vld [vmem:[#allocation67_spill] sm:$0xff] }
 0x296   : > { %v1376_v27 = vmax.f32 %v1326_v42, 0.0  ;;  %v1330_v55 = vpop.f32.mrb[61].mxu1 }
 0x297   : > { %24172 = vmatmul.mubr.msk.f32.gmra.mrb[6].mxu0 %vm1381_vm1, %v29217_v48  ;;  %8621 = vst.msk [vmem:[#allocation4 + $0x141] sm:$0xff] %vm1381_vm1, %v1374_v45  ;;  %v1336_v48 = vadd.f32 %v23956_v62, %v29598_v47  ;;  %8620 = vst.msk [vmem:[#allocation4 + $0x139] sm:$0xff] %vm1381_vm1, %v1373_v11  ;;  %v1375_v54 = vmax.f32 %v1321_v52, 0.0  ;;  %v1331_v34 = vadd.f32 %v29598_v47, %v1330_v55  ;;  %v23959_v40 = vpop.f32.mrb[62].mxu1  ;;  %v34464_v11 = vld [vmem:[#allocation68_spill] sm:$0xff] }
 0x298   : > { %24174 = vmatprep.mubr.msk.f32.mxu0 %vm1381_vm1, %v29227_v57  ;;  %8623 = vst.msk [vmem:[#allocation4 + $0x159] sm:$0xff] %vm1381_vm1, %v1376_v27  ;;  %v1346_v17 = vadd.f32 %v23959_v40, %v29598_v47  ;;  %v1340_v29 = vpop.f32.mrb[63].mxu1  ;;  %v34465_v27 = vld [vmem:[#allocation69_spill] sm:$0xff]  ;;  %v34468_v40 = vld [vmem:[#allocation72_spill] sm:$0xff] }
 0x299   : > { %v1378_v57 = vmax.f32 %v1336_v48, 0.0  ;;  %8622 = vst.msk [vmem:[#allocation4 + $0x151] sm:$0xff] %vm1381_vm1, %v1375_v54  ;;  %v1377_v1 = vmax.f32 %v1331_v34, 0.0  ;;  %v1341_v44 = vadd.f32 %v29598_v47, %v1340_v29  ;;  %v29721_v23 = vpop.f32.mrb[64].mxu1  ;;  %v34460_v47 = vld [vmem:[#allocation64_spill] sm:$0xff]  ;;  %v34466_v48 = vld [vmem:[#allocation70_spill] sm:$0xff] }
 0x29a   : > { %v1380_v37 = vmax.f32 %v1346_v17, 0.0  ;;  %v34467_v34 = vld [vmem:[#allocation71_spill] sm:$0xff]  ;;  %v34469_v29 = vld [vmem:[#allocation73_spill] sm:$0xff] }
 0x29b   : > { %24175 = vmatmul.mubr.msk.f32.gmra.mrb[8].mxu0 %vm1381_vm1, %v29237_v60  ;;  %8625 = vst.msk [vmem:[#allocation4 + $0x171] sm:$0xff] %vm1381_vm1, %v1378_v57  ;;  %v29724_v60 = vpop.f32.mrb[65].mxu1  ;;  %8624 = vst.msk [vmem:[#allocation4 + $0x169] sm:$0xff] %vm1381_vm1, %v1377_v1  ;;  %v1379_v24 = vmax.f32 %v1341_v44, 0.0  ;;  %v34470_v1 = vld [vmem:[#allocation74_spill] sm:$0xff] }
 0x29c   : > { %24177 = vmatprep.mubr.msk.f32.mxu0 %vm1381_vm1, %v29247_v3  ;;  %8627 = vst.msk [vmem:[#allocation4 + $0x189] sm:$0xff] %vm1381_vm1, %v1380_v37  ;;  %v29767_v3 = vld [vmem:[#allocation2 + $0x181] sm:$0xff] }
 0x29d   : > { %8626 = vst.msk [vmem:[#allocation4 + $0x181] sm:$0xff] %vm1381_vm1, %v1379_v24  ;;  %v34471_v24 = vld [vmem:[#allocation75_spill] sm:$0xff] }
 0x29f   : > { %24178 = vmatmul.mubr.msk.f32.gmra.mrb[10].mxu0 %vm1381_vm1, %v29257_v6  ;;  %v29771_v6 = vld [vmem:[#allocation2 + $0x189] sm:$0xff] }
 0x2a0   : > { %24180 = vmatprep.mubr.msk.f32.mxu0 %vm1381_vm1, %v29267_v13  ;;  %v20810_v13 = vld [vmem:[%s34110_s5 + $0x1c] sm:$0xf] }
 0x2a3   : > { %24181 = vmatmul.mubr.msk.f32.gmra.mrb[12].mxu0 %vm1381_vm1, %v29277_v20  ;;  %v29841_v20 = vld [vmem:[#allocation2 + $0x182] sm:$0xff] }
 0x2a4   : > { %24183 = vmatprep.mubr.msk.f32.mxu0 %vm1381_vm1, %v29287_v31  ;;  %v34446_v31 = vld [vmem:[#allocation50_spill] sm:$0xff] }
 0x2a7   : > { %24184 = vmatmul.mubr.msk.f32.gmra.mrb[14].mxu0 %vm1381_vm1, %v29297_v36  ;;  %v34447_v36 = vld [vmem:[#allocation51_spill] sm:$0xff] }
 0x2a8   : > { %24186 = vmatprep.mubr.msk.f32.mxu0 %vm1381_vm1, %v29307_v50  ;;  %v34449_v50 = vld [vmem:[#allocation53_spill] sm:$0xff] }
 0x2ab   : > { %24187 = vmatmul.mubr.msk.f32.gmra.mrb[16].mxu0 %vm1381_vm1, %v29317_v53  ;;  %v34451_v53 = vld [vmem:[#allocation55_spill] sm:$0xff] }
 0x2ac   : > { %24189 = vmatprep.mubr.msk.f32.mxu0 %vm1381_vm1, %v29327_v2  ;;  %v34452_v2 = vld [vmem:[#allocation56_spill] sm:$0xff] }
 0x2af   : > { %24190 = vmatmul.mubr.msk.f32.gmra.mrb[18].mxu0 %vm1381_vm1, %v29337_v9  ;;  %v34453_v9 = vld [vmem:[#allocation57_spill] sm:$0xff] }
 0x2b0   : > { %24192 = vmatprep.mubr.msk.f32.mxu0 %vm1381_vm1, %v29347_v26  ;;  %v34454_v26 = vld [vmem:[#allocation58_spill] sm:$0xff] }
 0x2b3   : > { %24193 = vmatmul.mubr.msk.f32.gmra.mrb[20].mxu0 %vm1381_vm1, %v29357_v33  ;;  %v34455_v33 = vld [vmem:[#allocation59_spill] sm:$0xff] }
 0x2b4   : > { %24195 = vmatprep.mubr.msk.f32.mxu0 %vm1381_vm1, %v29367_v59  ;;  %v34456_v59 = vld [vmem:[#allocation60_spill] sm:$0xff] }
 0x2b7   : > { %24196 = vmatmul.mubr.msk.f32.gmra.mrb[22].mxu0 %vm1381_vm1, %v29377_v0 }
 0x2b8   : > { %24198 = vmatprep.mubr.msk.f32.mxu0 %vm1381_vm1, %v29386_v19 }
 0x2bb   : > { %24199 = vmatmul.mubr.msk.f32.gmra.mrb[24].mxu0 %vm1381_vm1, %v29396_v41  ;;  %v34457_v41 = vld [vmem:[#allocation61_spill] sm:$0xff] }
 0x2bc   : > { %24201 = vmatprep.mubr.msk.f32.mxu0 %vm1381_vm1, %v29405_v63  ;;  %v34458_v63 = vld [vmem:[#allocation62_spill] sm:$0xff] }
 0x2bf   : > { %24202 = vmatmul.mubr.msk.f32.gmra.mrb[26].mxu0 %vm1381_vm1, %v29414_v56 }
 0x2c0   : > { %24204 = vmatprep.mubr.msk.f32.mxu0 %vm1381_vm1, %v29423_v12 }
 0x2c3   : > { %24205 = vmatmul.mubr.msk.f32.gmra.mrb[28].mxu0 %vm1381_vm1, %v29431_v30  ;;  %v34459_v30 = vld [vmem:[#allocation63_spill] sm:$0xff] }
 0x2c4   : > { %24207 = vmatprep.mubr.msk.f32.mxu0 %vm1381_vm1, %v29767_v3 }
 0x2c7   : > { %24208 = vmatmul.mubr.msk.f32.gmra.mrb[30].mxu0 %vm1381_vm1, %v29771_v6 }
 0x2c8   : > { %24212 = vmatprep.mubr.msk.f32.mxu0 %vm1381_vm1, %v29149_v15  ;;  %v34433_v15 = vld [vmem:[#allocation37_spill] sm:$0xff] }
 0x2cb   : > { %24213 = vmatmul.mubr.msk.f32.vlgmr.msra.gmra.mrb[0].mxu0 %vm1381_vm1, %v29159_v18  ;;  %v34434_v18 = vld [vmem:[#allocation38_spill] sm:$0xff] }
 0x2cc   : > { %24261 = vmatpush3.msk.msra.mxu0 %vm1633_vm2, %v29659_v10  ;;  %24215 = vmatprep.mubr.msk.f32.mxu0 %vm1381_vm1, %v29169_v25  ;;  %v34435_v25 = vld [vmem:[#allocation39_spill] sm:$0xff] }
 0x2cd   : > { %24310 = vmatprep.subr.msk.mxu0 %vm1633_vm2, %v20810_v13 }
 0x2cf   : > { %24216 = vmatmul.mubr.msk.f32.gmra.mrb[2].mxu0 %vm1381_vm1, %v29179_v28  ;;  %v34436_v28 = vld [vmem:[#allocation40_spill] sm:$0xff] }
 0x2d0   : > { %24218 = vmatprep.mubr.msk.f32.mxu0 %vm1381_vm1, %v29189_v35  ;;  %v34437_v35 = vld [vmem:[#allocation41_spill] sm:$0xff] }
 0x2d3   : > { %24219 = vmatmul.mubr.msk.f32.gmra.mrb[4].mxu0 %vm1381_vm1, %v29199_v38  ;;  %v34438_v38 = vld [vmem:[#allocation42_spill] sm:$0xff] }
 0x2d4   : > { %24221 = vmatprep.mubr.msk.f32.mxu0 %vm1381_vm1, %v29209_v46  ;;  %v34439_v46 = vld [vmem:[#allocation43_spill] sm:$0xff] }
 0x2d7   : > { %24222 = vmatmul.mubr.msk.f32.gmra.mrb[6].mxu0 %vm1381_vm1, %v29219_v49  ;;  %v34440_v49 = vld [vmem:[#allocation44_spill] sm:$0xff] }
 0x2d8   : > { %24224 = vmatprep.mubr.msk.f32.mxu0 %vm1381_vm1, %v29229_v58  ;;  %v34441_v58 = vld [vmem:[#allocation45_spill] sm:$0xff] }
 0x2db   : > { %24225 = vmatmul.mubr.msk.f32.gmra.mrb[8].mxu0 %vm1381_vm1, %v29239_v61  ;;  %v34442_v61 = vld [vmem:[#allocation46_spill] sm:$0xff] }
 0x2dc   : > { %24227 = vmatprep.mubr.msk.f32.mxu0 %vm1381_vm1, %v29249_v4  ;;  %v34443_v4 = vld [vmem:[#allocation47_spill] sm:$0xff] }
 0x2df   : > { %24228 = vmatmul.mubr.msk.f32.gmra.mrb[10].mxu0 %vm1381_vm1, %v29259_v7  ;;  %v34444_v7 = vld [vmem:[#allocation48_spill] sm:$0xff] }
 0x2e0   : > { %24230 = vmatprep.mubr.msk.f32.mxu0 %vm1381_vm1, %v29269_v16  ;;  %v34445_v16 = vld [vmem:[#allocation49_spill] sm:$0xff] }
 0x2e3   : > { %24231 = vmatmul.mubr.msk.f32.gmra.mrb[12].mxu0 %vm1381_vm1, %v29279_v21  ;;  %v29845_v21 = vld [vmem:[#allocation2 + $0x18a] sm:$0xff] }
 0x2e4   : > { %24233 = vmatprep.mubr.msk.f32.mxu0 %vm1381_vm1, %v29289_v32  ;;  %v29854_v32 = vld [vmem:[%s34110_s5 + $0x20] sm:$0xf] }
 0x2e7   : > { %24234 = vmatmul.mubr.msk.f32.gmra.mrb[14].mxu0 %vm1381_vm1, %v29299_v39  ;;  %v34448_v39 = vld [vmem:[#allocation52_spill] sm:$0xff] }
 0x2e8   : > { %24236 = vmatprep.mubr.msk.f32.mxu0 %vm1381_vm1, %v29309_v51  ;;  %v34450_v51 = vld [vmem:[#allocation54_spill] sm:$0xff] }
 0x2eb   : > { %24237 = vmatmul.mubr.msk.f32.gmra.mrb[16].mxu0 %vm1381_vm1, %v34433_v15 }
 0x2ec   : > { %24239 = vmatprep.mubr.msk.f32.mxu0 %vm1381_vm1, %v34434_v18 }
 0x2ef   : > { %24240 = vmatmul.mubr.msk.f32.gmra.mrb[18].mxu0 %vm1381_vm1, %v34435_v25  ;;  %v34473_v25 = vld [vmem:[#allocation78_spill] sm:$0xff] }
 0x2f0   : > { %24242 = vmatprep.mubr.msk.f32.mxu0 %vm1381_vm1, %v34436_v28  ;;  %v34474_v28 = vld [vmem:[#allocation77_spill] sm:$0xff] }
 0x2f3   : > { %24243 = vmatmul.mubr.msk.f32.gmra.mrb[20].mxu0 %vm1381_vm1, %v34437_v35  ;;  %v3777_v35 = vld [vmem:[#allocation2 + $0x198] sm:$0xff] }
 0x2f4   : > { %24245 = vmatprep.mubr.msk.f32.mxu0 %vm1381_vm1, %v34438_v38 }
 0x2f7   : > { %24246 = vmatmul.mubr.msk.f32.gmra.mrb[22].mxu0 %vm1381_vm1, %v34439_v46 }
 0x2f8   : > { %24248 = vmatprep.mubr.msk.f32.mxu0 %vm1381_vm1, %v34440_v49  ;;  %v3778_v49 = vld [vmem:[#allocation2 + $0x1a0] sm:$0xff] }
 0x2fb   : > { %24249 = vmatmul.mubr.msk.f32.gmra.mrb[24].mxu0 %vm1381_vm1, %v34441_v58 }
 0x2fc   : > { %24251 = vmatprep.mubr.msk.f32.mxu0 %vm1381_vm1, %v34442_v61 }
 0x2ff   : > { %24252 = vmatmul.mubr.msk.f32.gmra.mrb[26].mxu0 %vm1381_vm1, %v34443_v4  ;;  %v4137_v4 = vld [vmem:[#allocation2 + $0x31] sm:$0xff] }
 0x300   : > { %24254 = vmatprep.mubr.msk.f32.mxu0 %vm1381_vm1, %v34444_v7 }
 0x303   : > { %24255 = vmatmul.mubr.msk.f32.gmra.mrb[28].mxu0 %vm1381_vm1, %v34445_v16  ;;  %v4138_v16 = vld [vmem:[#allocation2 + $0x39] sm:$0xff] }
 0x304   : > { %24257 = vmatprep.mubr.msk.f32.mxu0 %vm1381_vm1, %v29841_v20 }
 0x307   : > { %24258 = vmatmul.mubr.msk.f32.gmra.mrb[30].mxu0 %vm1381_vm1, %v29845_v21 }
 0x308   : > { %24262 = vmatprep.mubr.msk.f32.mxu0 %vm1381_vm1, %v34446_v31  ;;  %v29969_v31 = vld [vmem:[%s34114_s9 + $0x4] sm:$0xf] }
 0x30b   : > { %24263 = vmatmul.mubr.msk.f32.vlgmr.msra.gmra.mrb[0].mxu0 %vm1381_vm1, %v34447_v36  ;;  %v4139_v36 = vld [vmem:[#allocation2 + $0x49] sm:$0xff] }
 0x30c   : > { %24311 = vmatpush3.msk.msra.mxu0 %vm1633_vm2, %v20810_v13  ;;  %24265 = vmatprep.mubr.msk.f32.mxu0 %vm1381_vm1, %v34448_v39  ;;  %v34472_v13 = vld [vmem:[#allocation76_spill] sm:$0xff] }
 0x30d   : > { %24360 = vmatprep.subr.msk.mxu0 %vm1633_vm2, %v29854_v32 }
 0x30f   : > { %24266 = vmatmul.mubr.msk.f32.gmra.mrb[2].mxu0 %vm1381_vm1, %v34449_v50  ;;  %v4140_v50 = vld [vmem:[#allocation2 + $0x51] sm:$0xff] }
 0x310   : > { %24268 = vmatprep.mubr.msk.f32.mxu0 %vm1381_vm1, %v34450_v51 }
 0x313   : > { %24269 = vmatmul.mubr.msk.f32.gmra.mrb[4].mxu0 %vm1381_vm1, %v34451_v53  ;;  %v4141_v53 = vld [vmem:[#allocation2 + $0x61] sm:$0xff] }
 0x314   : > { %24271 = vmatprep.mubr.msk.f32.mxu0 %vm1381_vm1, %v34452_v2 }
 0x317   : > { %24272 = vmatmul.mubr.msk.f32.gmra.mrb[6].mxu0 %vm1381_vm1, %v34453_v9  ;;  %v4142_v9 = vld [vmem:[#allocation2 + $0x69] sm:$0xff] }
 0x318   : > { %24274 = vmatprep.mubr.msk.f32.mxu0 %vm1381_vm1, %v34454_v26 }
 0x31b   : > { %24275 = vmatmul.mubr.msk.f32.gmra.mrb[8].mxu0 %vm1381_vm1, %v34455_v33 }
 0x31c   : > { %24277 = vmatprep.mubr.msk.f32.mxu0 %vm1381_vm1, %v34456_v59  ;;  %v4144_v59 = vld [vmem:[#allocation2 + $0x81] sm:$0xff] }
 0x31d   : > { %v29879_v0 = vpop.f32.mrb[66].mxu1 }
 0x31e   : > { %v29881_v19 = vpop.f32.mrb[67].mxu1 }
 0x31f   : > { %24278 = vmatmul.mubr.msk.f32.gmra.mrb[10].mxu0 %vm1381_vm1, %v34457_v41 }
 0x320   : > { %24280 = vmatprep.mubr.msk.f32.mxu0 %vm1381_vm1, %v34458_v63  ;;  %v4145_v63 = vld [vmem:[#allocation2 + $0x91] sm:$0xff] }
 0x321   : > { %v29887_v56 = vpop.f32.mrb[68].mxu1 }
 0x322   : > { %v29889_v12 = vpop.f32.mrb[69].mxu1 }
 0x323   : > { %24281 = vmatmul.mubr.msk.f32.gmra.mrb[12].mxu0 %vm1381_vm1, %v34459_v30  ;;  %v4146_v30 = vld [vmem:[#allocation2 + $0x99] sm:$0xff] }
 0x324   : > { %24283 = vmatprep.mubr.msk.f32.mxu0 %vm1381_vm1, %v34460_v47  ;;  %v4147_v47 = vld [vmem:[#allocation2 + $0xa9] sm:$0xff] }
 0x325   : > { %v29895_v10 = vpop.f32.mrb[70].mxu1 }
 0x326   : > { %v29897_v43 = vpop.f32.mrb[71].mxu1 }
 0x327   : > { %24284 = vmatmul.mubr.msk.f32.gmra.mrb[14].mxu0 %vm1381_vm1, %v34461_v5  ;;  %v4148_v5 = vld [vmem:[#allocation2 + $0xb1] sm:$0xff] }
 0x328   : > { %24286 = vmatprep.mubr.msk.f32.mxu0 %vm1381_vm1, %v34462_v22  ;;  %v4149_v22 = vld [vmem:[#allocation2 + $0xc1] sm:$0xff] }
 0x329   : > { %v29903_v45 = vpop.f32.mrb[72].mxu1 }
 0x32a   : > { %v29905_v42 = vpop.f32.mrb[73].mxu1 }
 0x32b   : > { %24287 = vmatmul.mubr.msk.f32.gmra.mrb[16].mxu0 %vm1381_vm1, %v34463_v14  ;;  %v4150_v14 = vld [vmem:[#allocation2 + $0xc9] sm:$0xff] }
 0x32c   : > { %24289 = vmatprep.mubr.msk.f32.mxu0 %vm1381_vm1, %v34464_v11  ;;  %v4151_v11 = vld [vmem:[#allocation2 + $0xd9] sm:$0xff] }
 0x32d   : > { %v29911_v52 = vpop.f32.mrb[74].mxu1 }
 0x32e   : > { %v29913_v62 = vpop.f32.mrb[75].mxu1 }
 0x32f   : > { %24290 = vmatmul.mubr.msk.f32.gmra.mrb[18].mxu0 %vm1381_vm1, %v34465_v27  ;;  %v4152_v27 = vld [vmem:[#allocation2 + $0xe1] sm:$0xff] }
 0x330   : > { %24292 = vmatprep.mubr.msk.f32.mxu0 %vm1381_vm1, %v34466_v48  ;;  %v4153_v48 = vld [vmem:[#allocation2 + $0xf1] sm:$0xff] }
 0x331   : > { %v29919_v55 = vpop.f32.mrb[76].mxu1 }
 0x332   : > { %v29921_v54 = vpop.f32.mrb[77].mxu1 }
 0x333   : > { %24293 = vmatmul.mubr.msk.f32.gmra.mrb[20].mxu0 %vm1381_vm1, %v34467_v34  ;;  %v4154_v34 = vld [vmem:[#allocation2 + $0xf9] sm:$0xff] }
 0x334   : > { %24295 = vmatprep.mubr.msk.f32.mxu0 %vm1381_vm1, %v34468_v40  ;;  %v4155_v40 = vld [vmem:[#allocation2 + $0x109] sm:$0xff] }
 0x335   : > { %v29927_v57 = vpop.f32.mrb[78].mxu1 }
 0x336   : > { %v29929_v17 = vpop.f32.mrb[79].mxu1 }
 0x337   : > { %24296 = vmatmul.mubr.msk.f32.gmra.mrb[22].mxu0 %vm1381_vm1, %v34469_v29  ;;  %v4156_v29 = vld [vmem:[#allocation2 + $0x111] sm:$0xff] }
 0x338   : > { %24298 = vmatprep.mubr.msk.f32.mxu0 %vm1381_vm1, %v34470_v1  ;;  %v4157_v1 = vld [vmem:[#allocation2 + $0x121] sm:$0xff] }
 0x339   : > { %v29935_v44 = vpop.f32.mrb[80].mxu1 }
 0x33a   : > { %v29937_v37 = vpop.f32.mrb[81].mxu1 }
 0x33b   : > { %24299 = vmatmul.mubr.msk.f32.gmra.mrb[24].mxu0 %vm1381_vm1, %v34471_v24  ;;  %v4158_v24 = vld [vmem:[#allocation2 + $0x129] sm:$0xff] }
 0x33c   : > { %24301 = vmatprep.mubr.msk.f32.mxu0 %vm1381_vm1, %v34472_v13  ;;  %v4159_v13 = vld [vmem:[#allocation2 + $0x139] sm:$0xff] }
 0x33d   : > { %v29943_v15 = vpop.f32.mrb[82].mxu1 }
 0x33e   : > { %v29945_v18 = vpop.f32.mrb[83].mxu1 }
 0x33f   : > { %24302 = vmatmul.mubr.msk.f32.gmra.mrb[26].mxu0 %vm1381_vm1, %v34473_v25  ;;  %v4160_v25 = vld [vmem:[#allocation2 + $0x141] sm:$0xff] }
 0x340   : > { %24304 = vmatprep.mubr.msk.f32.mxu0 %vm1381_vm1, %v34474_v28  ;;  %v4161_v28 = vld [vmem:[#allocation2 + $0x151] sm:$0xff] }
 0x341   : > { %v29951_v38 = vpop.f32.mrb[84].mxu1 }
 0x342   : > { %v29953_v46 = vpop.f32.mrb[85].mxu1 }
 0x343   : > { %24305 = vmatmul.mubr.msk.f32.gmra.mrb[28].mxu0 %vm1381_vm1, %v29642_v8 }
 0x344   : > { %24307 = vmatprep.mubr.msk.f32.mxu0 %vm1381_vm1, %v3777_v35  ;;  %v4162_v35 = vld [vmem:[#allocation2 + $0x159] sm:$0xff] }
 0x345   : > { %v29958_v58 = vpop.f32.mrb[86].mxu1 }
 0x346   : > { %v29960_v61 = vpop.f32.mrb[87].mxu1 }
 0x347   : > { %24308 = vmatmul.mubr.msk.f32.gmra.mrb[30].mxu0 %vm1381_vm1, %v3778_v49  ;;  %v4163_v49 = vld [vmem:[#allocation2 + $0x169] sm:$0xff] }
 0x348   : > { %24312 = vmatprep.mubr.msk.f32.mxu0 %vm1381_vm1, %v4137_v4  ;;  %v4164_v4 = vld [vmem:[#allocation2 + $0x171] sm:$0xff] }
 0x349   : > { %v29964_v7 = vpop.f32.mrb[88].mxu1 }
 0x34a   : > { %v29971_v8 = vpop.f32.mrb[89].mxu1 }
 0x34b   : > { %24313 = vmatmul.mubr.msk.f32.vlgmr.msra.gmra.mrb[0].mxu0 %vm1381_vm1, %v4138_v16  ;;  %v4167_v16 = vld [vmem:[#allocation2 + $0x199] sm:$0xff] }
 0x34c   : > { %24361 = vmatpush3.msk.msra.mxu0 %vm1633_vm2, %v29854_v32  ;;  %24315 = vmatprep.mubr.msk.f32.mxu0 %vm1381_vm1, %v4139_v36  ;;  %v4143_v32 = vld [vmem:[#allocation2 + $0x79] sm:$0xff]  ;;  %v4168_v36 = vld [vmem:[#allocation2 + $0x1a1] sm:$0xff] }
 0x34d   : > { %24860 = vmatprep.subr.msk.mxu0 %vm1633_vm2, %v29969_v31  ;;  %v29979_v39 = vpop.f32.mrb[90].mxu1 }
 0x34e   : > { %v29981_v51 = vpop.f32.mrb[91].mxu1 }
 0x34f   : > { %24316 = vmatmul.mubr.msk.f32.gmra.mrb[2].mxu0 %vm1381_vm1, %v4140_v50  ;;  %v4527_v50 = vld [vmem:[#allocation2 + $0x32] sm:$0xff] }
 0x350   : > { %24318 = vmatprep.mubr.msk.f32.mxu0 %vm1381_vm1, %v4141_v53  ;;  %v4528_v53 = vld [vmem:[#allocation2 + $0x3a] sm:$0xff] }
 0x351   : > { %v29985_v2 = vpop.f32.mrb[92].mxu1 }
 0x352   : > { %v29987_v26 = vpop.f32.mrb[93].mxu1 }
 0x353   : > { %24319 = vmatmul.mubr.msk.f32.gmra.mrb[4].mxu0 %vm1381_vm1, %v4142_v9  ;;  %v30026_v9 = vld [vmem:[%s34114_s9] sm:$0xf] }
 0x354   : > { %24321 = vmatprep.mubr.msk.f32.mxu0 %vm1381_vm1, %v4143_v32  ;;  %v4531_v32 = vld [vmem:[#allocation2 + $0x62] sm:$0xff] }
 0x355   : > { %v29991_v33 = vpop.f32.mrb[94].mxu1 }
 0x356   : > { %v29993_v41 = vpop.f32.mrb[95].mxu1 }
 0x357   : > { %24322 = vmatmul.mubr.msk.f32.gmra.mrb[6].mxu0 %vm1381_vm1, %v4144_v59  ;;  %v4532_v59 = vld [vmem:[#allocation2 + $0x6a] sm:$0xff] }
 0x358   : > { %24324 = vmatprep.mubr.msk.f32.mxu0 %vm1381_vm1, %v4145_v63  ;;  %v4533_v63 = vld [vmem:[#allocation2 + $0x7a] sm:$0xff] }
 0x35b   : > { %24325 = vmatmul.mubr.msk.f32.gmra.mrb[8].mxu0 %vm1381_vm1, %v4146_v30  ;;  %v4534_v30 = vld [vmem:[#allocation2 + $0x82] sm:$0xff] }
 0x35c   : > { %24327 = vmatprep.mubr.msk.f32.mxu0 %vm1381_vm1, %v4147_v47  ;;  %v4536_v47 = vld [vmem:[#allocation2 + $0x9a] sm:$0xff] }
 0x35f   : > { %24328 = vmatmul.mubr.msk.f32.gmra.mrb[10].mxu0 %vm1381_vm1, %v4148_v5  ;;  %v4537_v5 = vld [vmem:[#allocation2 + $0xaa] sm:$0xff] }
 0x360   : > { %24330 = vmatprep.mubr.msk.f32.mxu0 %vm1381_vm1, %v4149_v22  ;;  %v4538_v22 = vld [vmem:[#allocation2 + $0xb2] sm:$0xff] }
 0x363   : > { %24331 = vmatmul.mubr.msk.f32.gmra.mrb[12].mxu0 %vm1381_vm1, %v4150_v14  ;;  %v4539_v14 = vld [vmem:[#allocation2 + $0xc2] sm:$0xff] }
 0x364   : > { %24333 = vmatprep.mubr.msk.f32.mxu0 %vm1381_vm1, %v4151_v11  ;;  %v4540_v11 = vld [vmem:[#allocation2 + $0xca] sm:$0xff] }
 0x367   : > { %24334 = vmatmul.mubr.msk.f32.gmra.mrb[14].mxu0 %vm1381_vm1, %v4152_v27  ;;  %v4541_v27 = vld [vmem:[#allocation2 + $0xda] sm:$0xff] }
 0x368   : > { %24336 = vmatprep.mubr.msk.f32.mxu0 %vm1381_vm1, %v4153_v48  ;;  %v4542_v48 = vld [vmem:[#allocation2 + $0xe2] sm:$0xff] }
 0x36b   : > { %24337 = vmatmul.mubr.msk.f32.gmra.mrb[16].mxu0 %vm1381_vm1, %v4154_v34  ;;  %v4543_v34 = vld [vmem:[#allocation2 + $0xf2] sm:$0xff] }
 0x36c   : > { %24339 = vmatprep.mubr.msk.f32.mxu0 %vm1381_vm1, %v4155_v40  ;;  %v4544_v40 = vld [vmem:[#allocation2 + $0xfa] sm:$0xff] }
 0x36f   : > { %24340 = vmatmul.mubr.msk.f32.gmra.mrb[18].mxu0 %vm1381_vm1, %v4156_v29  ;;  %v4545_v29 = vld [vmem:[#allocation2 + $0x10a] sm:$0xff] }
 0x370   : > { %24342 = vmatprep.mubr.msk.f32.mxu0 %vm1381_vm1, %v4157_v1  ;;  %v20879_v1 = vld [vmem:[%s34112_s7 + $0x8] sm:$0xff] }
 0x371   : > { %24410 = vmatprep.subr.mxu1 %v20879_v1 }
 0x372   : > { %24411 = vmatpush3.msra.mxu1 %v20879_v1  ;;  %v8679_v1 = vld [vmem:[#allocation4 + $0xd9] sm:$0xff] }
 0x373   : > { %24343 = vmatmul.mubr.msk.f32.gmra.mrb[20].mxu0 %vm1381_vm1, %v4158_v24  ;;  %v4546_v24 = vld [vmem:[#allocation2 + $0x112] sm:$0xff] }
 0x374   : > { %24345 = vmatprep.mubr.msk.f32.mxu0 %vm1381_vm1, %v4159_v13  ;;  %v4547_v13 = vld [vmem:[#allocation2 + $0x122] sm:$0xff] }
 0x377   : > { %24346 = vmatmul.mubr.msk.f32.gmra.mrb[22].mxu0 %vm1381_vm1, %v4160_v25  ;;  %v4548_v25 = vld [vmem:[#allocation2 + $0x12a] sm:$0xff] }
 0x378   : > { %24348 = vmatprep.mubr.msk.f32.mxu0 %vm1381_vm1, %v4161_v28  ;;  %v4549_v28 = vld [vmem:[#allocation2 + $0x13a] sm:$0xff] }
 0x37b   : > { %24349 = vmatmul.mubr.msk.f32.gmra.mrb[24].mxu0 %vm1381_vm1, %v4162_v35  ;;  %v4550_v35 = vld [vmem:[#allocation2 + $0x142] sm:$0xff] }
 0x37c   : > { %24351 = vmatprep.mubr.msk.f32.mxu0 %vm1381_vm1, %v4163_v49  ;;  %v4551_v49 = vld [vmem:[#allocation2 + $0x152] sm:$0xff] }
 0x37f   : > { %24352 = vmatmul.mubr.msk.f32.gmra.mrb[26].mxu0 %vm1381_vm1, %v4164_v4  ;;  %v4552_v4 = vld [vmem:[#allocation2 + $0x15a] sm:$0xff] }
 0x380   : > { %24354 = vmatprep.mubr.msk.f32.mxu0 %vm1381_vm1, %v29767_v3  ;;  %v4529_v3 = vld [vmem:[#allocation2 + $0x4a] sm:$0xff] }
 0x383   : > { %24355 = vmatmul.mubr.msk.f32.gmra.mrb[28].mxu0 %vm1381_vm1, %v29771_v6  ;;  %v4530_v6 = vld [vmem:[#allocation2 + $0x52] sm:$0xff] }
 0x384   : > { %24357 = vmatprep.mubr.msk.f32.mxu0 %vm1381_vm1, %v4167_v16  ;;  %v4553_v16 = vld [vmem:[#allocation2 + $0x16a] sm:$0xff] }
 0x387   : > { %24358 = vmatmul.mubr.msk.f32.gmra.mrb[30].mxu0 %vm1381_vm1, %v4168_v36  ;;  %v4554_v36 = vld [vmem:[#allocation2 + $0x172] sm:$0xff] }
 0x388   : > { %24362 = vmatprep.mubr.msk.f32.mxu0 %vm1381_vm1, %v4527_v50  ;;  %v4557_v50 = vld [vmem:[#allocation2 + $0x19a] sm:$0xff] }
 0x38b   : > { %24363 = vmatmul.mubr.msk.f32.vlgmr.msra.gmra.mrb[0].mxu0 %vm1381_vm1, %v4528_v53  ;;  %v4558_v53 = vld [vmem:[#allocation2 + $0x1a2] sm:$0xff] }
 0x38c   : > { %24861 = vmatpush3.msk.msra.mxu0 %vm1633_vm2, %v29969_v31  ;;  %24365 = vmatprep.mubr.msk.f32.mxu0 %vm1381_vm1, %v4529_v3  ;;  %v4535_v31 = vld [vmem:[#allocation2 + $0x92] sm:$0xff] }
 0x38d   : > { %24910 = vmatprep.subr.msk.mxu0 %vm1633_vm2, %v30026_v9  ;;  %v8661_v3 = vld [vmem:[#allocation4 + $0x1] sm:$0xff] }
 0x38f   : > { %24366 = vmatmul.mubr.msk.f32.gmra.mrb[2].mxu0 %vm1381_vm1, %v4530_v6  ;;  %v8662_v6 = vld [vmem:[#allocation4 + $0x9] sm:$0xff] }
 0x390   : > { %24368 = vmatprep.mubr.msk.f32.mxu0 %vm1381_vm1, %v4531_v32  ;;  %v8663_v32 = vld [vmem:[#allocation4 + $0x19] sm:$0xff] }
 0x393   : > { %24369 = vmatmul.mubr.msk.f32.gmra.mrb[4].mxu0 %vm1381_vm1, %v4532_v59  ;;  %v30072_v59 = vld [vmem:[%s34114_s9 + $0x8] sm:$0xf] }
 0x394   : > { %24371 = vmatprep.mubr.msk.f32.mxu0 %vm1381_vm1, %v4533_v63  ;;  %v8667_v63 = vld [vmem:[#allocation4 + $0x49] sm:$0xff] }
 0x397   : > { %24372 = vmatmul.mubr.msk.f32.gmra.mrb[6].mxu0 %vm1381_vm1, %v4534_v30  ;;  %v8666_v30 = vld [vmem:[#allocation4 + $0x39] sm:$0xff] }
 0x398   : > { %24374 = vmatprep.mubr.msk.f32.mxu0 %vm1381_vm1, %v4535_v31  ;;  %v8669_v31 = vld [vmem:[#allocation4 + $0x61] sm:$0xff] }
 0x39b   : > { %24375 = vmatmul.mubr.msk.f32.gmra.mrb[8].mxu0 %vm1381_vm1, %v4536_v47  ;;  %v8668_v47 = vld [vmem:[#allocation4 + $0x51] sm:$0xff] }
 0x39c   : > { %24377 = vmatprep.mubr.msk.f32.mxu0 %vm1381_vm1, %v4537_v5  ;;  %v8670_v5 = vld [vmem:[#allocation4 + $0x69] sm:$0xff] }
 0x39f   : > { %24378 = vmatmul.mubr.msk.f32.gmra.mrb[10].mxu0 %vm1381_vm1, %v4538_v22  ;;  %v8673_v22 = vld [vmem:[#allocation4 + $0x91] sm:$0xff] }
 0x3a0   : > { %24380 = vmatprep.mubr.msk.f32.mxu0 %vm1381_vm1, %v4539_v14  ;;  %v8672_v14 = vld [vmem:[#allocation4 + $0x81] sm:$0xff] }
 0x3a3   : > { %24381 = vmatmul.mubr.msk.f32.gmra.mrb[12].mxu0 %vm1381_vm1, %v4540_v11  ;;  %v30090_v11 = vld [vmem:[#allocation4 + $0xa9] sm:$0xff] }
 0x3a4   : > { %24383 = vmatprep.mubr.msk.f32.mxu0 %vm1381_vm1, %v4541_v27  ;;  %v34475_v27 = vmov 0.0  }
 0x3a5   : > { %4997 = vst.msk [vmem:[#allocation3 + $0x38] sm:$0xff] %vm4988_vm4, %v34475_v27  ;;  %4989 = vst.msk [vmem:[#allocation3] sm:$0xff] %vm4988_vm4, %v34475_v27 }
 0x3a6   : > { %4990 = vst.msk [vmem:[#allocation3 + $0x8] sm:$0xff] %vm4988_vm4, %v34475_v27  ;;  %4993 = vst.msk [vmem:[#allocation3 + $0x18] sm:$0xff] %vm4988_vm4, %v34475_v27 }
 0x3a7   : > { %24384 = vmatmul.mubr.msk.f32.gmra.mrb[14].mxu0 %vm1381_vm1, %v4542_v48  ;;  %4994 = vst.msk [vmem:[#allocation3 + $0x20] sm:$0xff] %vm4988_vm4, %v34475_v27  ;;  %4996 = vst.msk [vmem:[#allocation3 + $0x30] sm:$0xff] %vm4988_vm4, %v34475_v27  ;;  %v8674_v48 = vld [vmem:[#allocation4 + $0x99] sm:$0xff] }
 0x3a8   : > { %24386 = vmatprep.mubr.msk.f32.mxu0 %vm1381_vm1, %v4543_v34  ;;  %4999 = vst.msk [vmem:[#allocation3 + $0x48] sm:$0xff] %vm4988_vm4, %v34475_v27  ;;  %5000 = vst.msk [vmem:[#allocation3 + $0x50] sm:$0xff] %vm4988_vm4, %v34475_v27  ;;  %v8677_v34 = vld [vmem:[#allocation4 + $0xc1] sm:$0xff] }
 0x3a9   : > { %5002 = vst.msk [vmem:[#allocation3 + $0x60] sm:$0xff] %vm4988_vm4, %v34475_v27  ;;  %5003 = vst.msk [vmem:[#allocation3 + $0x68] sm:$0xff] %vm4988_vm4, %v34475_v27 }
 0x3aa   : > { %5005 = vst.msk [vmem:[#allocation3 + $0x78] sm:$0xff] %vm4988_vm4, %v34475_v27  ;;  %5006 = vst.msk [vmem:[#allocation3 + $0x80] sm:$0xff] %vm4988_vm4, %v34475_v27 }
 0x3ab   : > { %24387 = vmatmul.mubr.msk.f32.gmra.mrb[16].mxu0 %vm1381_vm1, %v4544_v40  ;;  %5008 = vst.msk [vmem:[#allocation3 + $0x90] sm:$0xff] %vm4988_vm4, %v34475_v27  ;;  %5009 = vst.msk [vmem:[#allocation3 + $0x98] sm:$0xff] %vm4988_vm4, %v34475_v27  ;;  %v8676_v40 = vld [vmem:[#allocation4 + $0xb1] sm:$0xff] }
 0x3ac   : > { %24389 = vmatprep.mubr.msk.f32.mxu0 %vm1381_vm1, %v4545_v29  ;;  %5011 = vst.msk [vmem:[#allocation3 + $0xa8] sm:$0xff] %vm4988_vm4, %v34475_v27  ;;  %5012 = vst.msk [vmem:[#allocation3 + $0xb0] sm:$0xff] %vm4988_vm4, %v34475_v27 }
 0x3ad   : > { %5014 = vst.msk [vmem:[#allocation3 + $0xc0] sm:$0xff] %vm4988_vm4, %v34475_v27  ;;  %5015 = vst.msk [vmem:[#allocation3 + $0xc8] sm:$0xff] %vm4988_vm4, %v34475_v27  ;;  %v5116_v29 = vld [vmem:[#allocation3 + $0x2] sm:$0xff] }
 0x3ae   : > { %5017 = vst.msk [vmem:[#allocation3 + $0xd8] sm:$0xff] %vm4988_vm4, %v34475_v27  ;;  %5018 = vst.msk [vmem:[#allocation3 + $0xe0] sm:$0xff] %vm4988_vm4, %v34475_v27  ;;  %24412 = vmatprep.mubr.msk.f32.mxu1 %vm4988_vm4, %v5116_v29  ;;  %v30370_v29 = vld [vmem:[#allocation4 + $0x78] sm:$0xff] }
 0x3af   : > { %24390 = vmatmul.mubr.msk.f32.gmra.mrb[18].mxu0 %vm1381_vm1, %v4546_v24  ;;  %5020 = vst.msk [vmem:[#allocation3 + $0xf0] sm:$0xff] %vm4988_vm4, %v34475_v27  ;;  %5021 = vst.msk [vmem:[#allocation3 + $0xf8] sm:$0xff] %vm4988_vm4, %v34475_v27 }
 0x3b0   : > { %24392 = vmatprep.mubr.msk.f32.mxu0 %vm1381_vm1, %v4547_v13  ;;  %5023 = vst.msk [vmem:[#allocation3 + $0x108] sm:$0xff] %vm4988_vm4, %v34475_v27  ;;  %5024 = vst.msk [vmem:[#allocation3 + $0x110] sm:$0xff] %vm4988_vm4, %v34475_v27  ;;  %v8678_v13 = vld [vmem:[#allocation4 + $0xc9] sm:$0xff] }
 0x3b1   : > { %5026 = vst.msk [vmem:[#allocation3 + $0x120] sm:$0xff] %vm4988_vm4, %v34475_v27  ;;  %5027 = vst.msk [vmem:[#allocation3 + $0x128] sm:$0xff] %vm4988_vm4, %v34475_v27 }
 0x3b2   : > { %5029 = vst.msk [vmem:[#allocation3 + $0x138] sm:$0xff] %vm4988_vm4, %v34475_v27  ;;  %5030 = vst.msk [vmem:[#allocation3 + $0x140] sm:$0xff] %vm4988_vm4, %v34475_v27 }
 0x3b3   : > { %24393 = vmatmul.mubr.msk.f32.gmra.mrb[20].mxu0 %vm1381_vm1, %v4548_v25  ;;  %5032 = vst.msk [vmem:[#allocation3 + $0x150] sm:$0xff] %vm4988_vm4, %v34475_v27  ;;  %5033 = vst.msk [vmem:[#allocation3 + $0x158] sm:$0xff] %vm4988_vm4, %v34475_v27  ;;  %v5118_v25 = vld [vmem:[#allocation3 + $0x1a] sm:$0xff] }
 0x3b4   : > { %24395 = vmatprep.mubr.msk.f32.mxu0 %vm1381_vm1, %v4549_v28  ;;  %5035 = vst.msk [vmem:[#allocation3 + $0x168] sm:$0xff] %vm4988_vm4, %v34475_v27  ;;  %5036 = vst.msk [vmem:[#allocation3 + $0x170] sm:$0xff] %vm4988_vm4, %v34475_v27  ;;  %v8681_v28 = vld [vmem:[#allocation4 + $0xf1] sm:$0xff] }
 0x3b5   : > { %5038 = vst.msk [vmem:[#allocation3 + $0x180] sm:$0xff] %vm4988_vm4, %v34475_v27  ;;  %5039 = vst.msk [vmem:[#allocation3 + $0x188] sm:$0xff] %vm4988_vm4, %v34475_v27 }
 0x3b6   : > { %5041 = vst.msk [vmem:[#allocation3 + $0x198] sm:$0xff] %vm4988_vm4, %v34475_v27  ;;  %5042 = vst.msk [vmem:[#allocation3 + $0x1a0] sm:$0xff] %vm4988_vm4, %v34475_v27 }
 0x3b7   : > { %24396 = vmatmul.mubr.msk.f32.gmra.mrb[22].mxu0 %vm1381_vm1, %v4550_v35  ;;  %5044 = vst.msk [vmem:[#allocation3 + $0x1b0] sm:$0xff] %vm4988_vm4, %v34475_v27  ;;  %5045 = vst.msk [vmem:[#allocation3 + $0x1b8] sm:$0xff] %vm4988_vm4, %v34475_v27 }
 0x3b8   : > { %24398 = vmatprep.mubr.msk.f32.mxu0 %vm1381_vm1, %v4551_v49  ;;  %5047 = vst.msk [vmem:[#allocation3 + $0x1c8] sm:$0xff] %vm4988_vm4, %v34475_v27  ;;  %5048 = vst.msk [vmem:[#allocation3 + $0x1d0] sm:$0xff] %vm4988_vm4, %v34475_v27  ;;  %v8680_v49 = vld [vmem:[#allocation4 + $0xe1] sm:$0xff] }
 0x3b9   : > { %15752 = vst.msk [vmem:[#allocation6] sm:$0xff] %vm4988_vm4, %v34475_v27  ;;  %15753 = vst.msk [vmem:[#allocation6 + $0x8] sm:$0xff] %vm4988_vm4, %v34475_v27 }
 0x3ba   : > { %15756 = vst.msk [vmem:[#allocation6 + $0x18] sm:$0xff] %vm4988_vm4, %v34475_v27  ;;  %15757 = vst.msk [vmem:[#allocation6 + $0x20] sm:$0xff] %vm4988_vm4, %v34475_v27 }
 0x3bb   : > { %24399 = vmatmul.mubr.msk.f32.gmra.mrb[24].mxu0 %vm1381_vm1, %v4552_v4  ;;  %15759 = vst.msk [vmem:[#allocation6 + $0x30] sm:$0xff] %vm4988_vm4, %v34475_v27  ;;  %15760 = vst.msk [vmem:[#allocation6 + $0x38] sm:$0xff] %vm4988_vm4, %v34475_v27  ;;  %v5115_v4 = vld [vmem:[%s34112_s7] sm:$0xff] }
 0x3bc   : > { %24401 = vmatprep.mubr.msk.f32.mxu0 %vm1381_vm1, %v4553_v16  ;;  %15762 = vst.msk [vmem:[#allocation6 + $0x48] sm:$0xff] %vm4988_vm4, %v34475_v27  ;;  %15763 = vst.msk [vmem:[#allocation6 + $0x50] sm:$0xff] %vm4988_vm4, %v34475_v27  ;;  %24460 = vmatprep.subr.mxu1 %v5115_v4  ;;  %v8683_v16 = vld [vmem:[#allocation4 + $0x109] sm:$0xff] }
 0x3bd   : > { %15765 = vst.msk [vmem:[#allocation6 + $0x60] sm:$0xff] %vm4988_vm4, %v34475_v27  ;;  %15766 = vst.msk [vmem:[#allocation6 + $0x68] sm:$0xff] %vm4988_vm4, %v34475_v27 }
 0x3be   : > { %15768 = vst.msk [vmem:[#allocation6 + $0x78] sm:$0xff] %vm4988_vm4, %v34475_v27  ;;  %15769 = vst.msk [vmem:[#allocation6 + $0x80] sm:$0xff] %vm4988_vm4, %v34475_v27 }
 0x3bf   : > { %24402 = vmatmul.mubr.msk.f32.gmra.mrb[26].mxu0 %vm1381_vm1, %v4554_v36  ;;  %15771 = vst.msk [vmem:[#allocation6 + $0x90] sm:$0xff] %vm4988_vm4, %v34475_v27  ;;  %15772 = vst.msk [vmem:[#allocation6 + $0x98] sm:$0xff] %vm4988_vm4, %v34475_v27  ;;  %v8682_v36 = vld [vmem:[#allocation4 + $0xf9] sm:$0xff] }
 0x3c0   : > { %24404 = vmatprep.mubr.msk.f32.mxu0 %vm1381_vm1, %v29841_v20  ;;  %v8665_v20 = vld [vmem:[#allocation4 + $0x31] sm:$0xff]  ;;  %15774 = vst.msk [vmem:[#allocation6 + $0xa8] sm:$0xff] %vm4988_vm4, %v34475_v27  ;;  %15775 = vst.msk [vmem:[#allocation6 + $0xb0] sm:$0xff] %vm4988_vm4, %v34475_v27 }
 0x3c1   : > { %15777 = vst.msk [vmem:[#allocation6 + $0xc0] sm:$0xff] %vm4988_vm4, %v34475_v27  ;;  %15778 = vst.msk [vmem:[#allocation6 + $0xc8] sm:$0xff] %vm4988_vm4, %v34475_v27 }
 0x3c2   : > { %15780 = vst.msk [vmem:[#allocation6 + $0xd8] sm:$0xff] %vm4988_vm4, %v34475_v27  ;;  %15781 = vst.msk [vmem:[#allocation6 + $0xe0] sm:$0xff] %vm4988_vm4, %v34475_v27 }
 0x3c3   : > { %24405 = vmatmul.mubr.msk.f32.gmra.mrb[28].mxu0 %vm1381_vm1, %v29845_v21  ;;  %v8664_v21 = vld [vmem:[#allocation4 + $0x21] sm:$0xff]  ;;  %15783 = vst.msk [vmem:[#allocation6 + $0xf0] sm:$0xff] %vm4988_vm4, %v34475_v27  ;;  %15784 = vst.msk [vmem:[#allocation6 + $0xf8] sm:$0xff] %vm4988_vm4, %v34475_v27 }
 0x3c4   : > { %24407 = vmatprep.mubr.msk.f32.mxu0 %vm1381_vm1, %v4557_v50  ;;  %15786 = vst.msk [vmem:[#allocation6 + $0x108] sm:$0xff] %vm4988_vm4, %v34475_v27  ;;  %15787 = vst.msk [vmem:[#allocation6 + $0x110] sm:$0xff] %vm4988_vm4, %v34475_v27  ;;  %v8685_v50 = vld [vmem:[#allocation4 + $0x121] sm:$0xff] }
 0x3c5   : > { %15789 = vst.msk [vmem:[#allocation6 + $0x120] sm:$0xff] %vm4988_vm4, %v34475_v27  ;;  %15790 = vst.msk [vmem:[#allocation6 + $0x128] sm:$0xff] %vm4988_vm4, %v34475_v27 }
 0x3c6   : > { %15792 = vst.msk [vmem:[#allocation6 + $0x138] sm:$0xff] %vm4988_vm4, %v34475_v27  ;;  %15793 = vst.msk [vmem:[#allocation6 + $0x140] sm:$0xff] %vm4988_vm4, %v34475_v27 }
 0x3c7   : > { %24408 = vmatmul.mubr.msk.f32.gmra.mrb[30].mxu0 %vm1381_vm1, %v4558_v53  ;;  %15795 = vst.msk [vmem:[#allocation6 + $0x150] sm:$0xff] %vm4988_vm4, %v34475_v27  ;;  %15796 = vst.msk [vmem:[#allocation6 + $0x158] sm:$0xff] %vm4988_vm4, %v34475_v27  ;;  %v8684_v53 = vld [vmem:[#allocation4 + $0x111] sm:$0xff] }
 0x3c8   : > { %24862 = vmatprep.mubr.msk.f32.mxu0 %vm1381_vm1, %v8661_v3  ;;  %15798 = vst.msk [vmem:[#allocation6 + $0x168] sm:$0xff] %vm4988_vm4, %v34475_v27  ;;  %15799 = vst.msk [vmem:[#allocation6 + $0x170] sm:$0xff] %vm4988_vm4, %v34475_v27  ;;  %v8687_v3 = vld [vmem:[#allocation4 + $0x139] sm:$0xff] }
 0x3c9   : > { %15801 = vst.msk [vmem:[#allocation6 + $0x180] sm:$0xff] %vm4988_vm4, %v34475_v27  ;;  %15802 = vst.msk [vmem:[#allocation6 + $0x188] sm:$0xff] %vm4988_vm4, %v34475_v27 }
 0x3ca   : > { %15804 = vst.msk [vmem:[#allocation6 + $0x198] sm:$0xff] %vm4988_vm4, %v34475_v27  ;;  %15805 = vst.msk [vmem:[#allocation6 + $0x1a0] sm:$0xff] %vm4988_vm4, %v34475_v27 }
 0x3cb   : > { %24863 = vmatmul.mubr.msk.f32.vlgmr.msra.gmra.mrb[32].mxu0 %vm1381_vm1, %v8662_v6  ;;  %15807 = vst.msk [vmem:[#allocation6 + $0x1b0] sm:$0xff] %vm4988_vm4, %v34475_v27  ;;  %15808 = vst.msk [vmem:[#allocation6 + $0x1b8] sm:$0xff] %vm4988_vm4, %v34475_v27  ;;  %v8686_v6 = vld [vmem:[#allocation4 + $0x129] sm:$0xff] }
 0x3cc   : > { %24911 = vmatpush3.msk.msra.mxu0 %vm1633_vm2, %v30026_v9  ;;  %24865 = vmatprep.mubr.msk.f32.mxu0 %vm1381_vm1, %v8663_v32  ;;  %v8671_v9 = vld [vmem:[#allocation4 + $0x79] sm:$0xff]  ;;  %15810 = vst.msk [vmem:[#allocation6 + $0x1c8] sm:$0xff] %vm4988_vm4, %v34475_v27  ;;  %15811 = vst.msk [vmem:[#allocation6 + $0x1d0] sm:$0xff] %vm4988_vm4, %v34475_v27  ;;  %v8689_v32 = vld [vmem:[#allocation4 + $0x151] sm:$0xff] }
 0x3cd   : > { %24960 = vmatprep.subr.msk.mxu0 %vm1633_vm2, %v30072_v59  ;;  %15813 = vst.msk [vmem:[#allocation6 + $0x1e0] sm:$0xff] %vm4988_vm4, %v34475_v27  ;;  %15814 = vst.msk [vmem:[#allocation6 + $0x1e8] sm:$0xff] %vm4988_vm4, %v34475_v27 }
 0x3ce   : > { %15816 = vst.msk [vmem:[#allocation6 + $0x1f8] sm:$0xff] %vm4988_vm4, %v34475_v27  ;;  %15817 = vst.msk [vmem:[#allocation6 + $0x200] sm:$0xff] %vm4988_vm4, %v34475_v27 }
 0x3cf   : > { %24866 = vmatmul.mubr.msk.f32.gmra.mrb[34].mxu0 %vm1381_vm1, %v8664_v21  ;;  %4998 = vst.msk [vmem:[#allocation3 + $0x40] sm:$0xf] %vm4991_vm5, %v34475_v27  ;;  %4992 = vst.msk [vmem:[#allocation3 + $0x10] sm:$0xf] %vm4991_vm5, %v34475_v27  ;;  %v8691_v21 = vld [vmem:[#allocation4 + $0x169] sm:$0xff] }
 0x3d0   : > { %24868 = vmatprep.mubr.msk.f32.mxu0 %vm1381_vm1, %v8665_v20  ;;  %4995 = vst.msk [vmem:[#allocation3 + $0x28] sm:$0xf] %vm4991_vm5, %v34475_v27  ;;  %5001 = vst.msk [vmem:[#allocation3 + $0x58] sm:$0xf] %vm4991_vm5, %v34475_v27  ;;  %v8688_v20 = vld [vmem:[#allocation4 + $0x141] sm:$0xff] }
 0x3d1   : > { %5004 = vst.msk [vmem:[#allocation3 + $0x70] sm:$0xf] %vm4991_vm5, %v34475_v27  ;;  %5007 = vst.msk [vmem:[#allocation3 + $0x88] sm:$0xf] %vm4991_vm5, %v34475_v27 }
 0x3d2   : > { %5010 = vst.msk [vmem:[#allocation3 + $0xa0] sm:$0xf] %vm4991_vm5, %v34475_v27  ;;  %5013 = vst.msk [vmem:[#allocation3 + $0xb8] sm:$0xf] %vm4991_vm5, %v34475_v27 }
 0x3d3   : > { %24869 = vmatmul.mubr.msk.f32.gmra.mrb[36].mxu0 %vm1381_vm1, %v8666_v30  ;;  %5016 = vst.msk [vmem:[#allocation3 + $0xd0] sm:$0xf] %vm4991_vm5, %v34475_v27  ;;  %5019 = vst.msk [vmem:[#allocation3 + $0xe8] sm:$0xf] %vm4991_vm5, %v34475_v27  ;;  %v8628_v30 = vld [vmem:[#allocation4] sm:$0xff] }
 0x3d4   : > { %24871 = vmatprep.mubr.msk.f32.mxu0 %vm1381_vm1, %v8667_v63  ;;  %5022 = vst.msk [vmem:[#allocation3 + $0x100] sm:$0xf] %vm4991_vm5, %v34475_v27  ;;  %5025 = vst.msk [vmem:[#allocation3 + $0x118] sm:$0xf] %vm4991_vm5, %v34475_v27  ;;  %v8690_v63 = vld [vmem:[#allocation4 + $0x159] sm:$0xff] }
 0x3d5   : > { %5028 = vst.msk [vmem:[#allocation3 + $0x130] sm:$0xf] %vm4991_vm5, %v34475_v27  ;;  %5031 = vst.msk [vmem:[#allocation3 + $0x148] sm:$0xf] %vm4991_vm5, %v34475_v27 }
 0x3d6   : > { %5034 = vst.msk [vmem:[#allocation3 + $0x160] sm:$0xf] %vm4991_vm5, %v34475_v27  ;;  %5037 = vst.msk [vmem:[#allocation3 + $0x178] sm:$0xf] %vm4991_vm5, %v34475_v27  ;;  %v5117_v24 = vld [vmem:[#allocation3 + $0xa] sm:$0xff] }
 0x3d7   : > { %24872 = vmatmul.mubr.msk.f32.gmra.mrb[38].mxu0 %vm1381_vm1, %v8668_v47  ;;  %5040 = vst.msk [vmem:[#allocation3 + $0x190] sm:$0xf] %vm4991_vm5, %v34475_v27  ;;  %5043 = vst.msk [vmem:[#allocation3 + $0x1a8] sm:$0xf] %vm4991_vm5, %v34475_v27  ;;  %24413 = vmatmul.mubr.msk.f32.vlgmr.msra.gmra.mrb[96].mxu1 %vm4988_vm4, %v5117_v24  ;;  %v5119_v35 = vld [vmem:[#allocation3 + $0x22] sm:$0xff]  ;;  %v30378_v24 = vld [vmem:[#allocation4 + $0x90] sm:$0xff] }
 0x3d8   : > { %24874 = vmatprep.mubr.msk.f32.mxu0 %vm1381_vm1, %v8669_v31  ;;  %5046 = vst.msk [vmem:[#allocation3 + $0x1c0] sm:$0xf] %vm4991_vm5, %v34475_v27  ;;  %5049 = vst.msk [vmem:[#allocation3 + $0x1d8] sm:$0xf] %vm4991_vm5, %v34475_v27  ;;  %24415 = vmatprep.mubr.msk.f32.mxu1 %vm4988_vm4, %v5118_v25  ;;  %v8692_v31 = vld [vmem:[#allocation4 + $0x171] sm:$0xff]  ;;  %v8629_v47 = vld [vmem:[#allocation4 + $0x8] sm:$0xff] }
 0x3d9   : > { %24461 = vmatpush3.msra.mxu1 %v5115_v4  ;;  %v30386_v25 = vld [vmem:[#allocation4 + $0xa8] sm:$0xff] }
 0x3da   : > { %v30404_v4 = vld [vmem:[#allocation4 + $0xc8] sm:$0xff] }
 0x3db   : > { %24875 = vmatmul.mubr.msk.f32.gmra.mrb[40].mxu0 %vm1381_vm1, %v8670_v5  ;;  %24416 = vmatmul.mubr.msk.f32.gmra.mrb[98].mxu1 %vm4988_vm4, %v5119_v35  ;;  %v30334_v5 = vld [vmem:[#allocation4 + $0x18] sm:$0xff]  ;;  %v30394_v35 = vld [vmem:[#allocation4 + $0xc0] sm:$0xff] }
 0x3dc   : > { %24877 = vmatprep.mubr.msk.f32.mxu0 %vm1381_vm1, %v8671_v9  ;;  %v30331_v9 = vld [vmem:[%s34114_s9 + $0xc] sm:$0xf]  ;;  %v9343_v27 = vld [vmem:[#allocation4 + $0x2] sm:$0xff] }
 0x3df   : > { %24878 = vmatmul.mubr.msk.f32.gmra.mrb[42].mxu0 %vm1381_vm1, %v8672_v14  ;;  %v30346_v14 = vld [vmem:[#allocation4 + $0x30] sm:$0xff] }
 0x3e0   : > { %24880 = vmatprep.mubr.msk.f32.mxu0 %vm1381_vm1, %v8673_v22  ;;  %v30342_v22 = vld [vmem:[#allocation4 + $0x20] sm:$0xff] }
 0x3e3   : > { %24881 = vmatmul.mubr.msk.f32.gmra.mrb[44].mxu0 %vm1381_vm1, %v8674_v48  ;;  %v30358_v48 = vld [vmem:[#allocation4 + $0x50] sm:$0xff] }
 0x3e4   : > { %24883 = vmatprep.mubr.msk.f32.mxu0 %vm1381_vm1, %v30090_v11  ;;  %v30350_v11 = vld [vmem:[#allocation4 + $0x38] sm:$0xff] }
 0x3e7   : > { %24884 = vmatmul.mubr.msk.f32.gmra.mrb[46].mxu0 %vm1381_vm1, %v8676_v40  ;;  %v30366_v40 = vld [vmem:[#allocation4 + $0x68] sm:$0xff] }
 0x3e8   : > { %24886 = vmatprep.mubr.msk.f32.mxu0 %vm1381_vm1, %v8677_v34  ;;  %v30362_v34 = vld [vmem:[#allocation4 + $0x60] sm:$0xff] }
 0x3eb   : > { %24887 = vmatmul.mubr.msk.f32.gmra.mrb[48].mxu0 %vm1381_vm1, %v8678_v13  ;;  %v30382_v13 = vld [vmem:[#allocation4 + $0x98] sm:$0xff] }
 0x3ec   : > { %24889 = vmatprep.mubr.msk.f32.mxu0 %vm1381_vm1, %v8679_v1  ;;  %v30374_v1 = vld [vmem:[#allocation4 + $0x80] sm:$0xff] }
 0x3ef   : > { %24890 = vmatmul.mubr.msk.f32.gmra.mrb[50].mxu0 %vm1381_vm1, %v8680_v49  ;;  %v30399_v49 = vld [vmem:[%s34112_s7 + $0x10] sm:$0xff] }
 0x3f0   : > { %24892 = vmatprep.mubr.msk.f32.mxu0 %vm1381_vm1, %v8681_v28  ;;  %v30390_v28 = vld [vmem:[#allocation4 + $0xb0] sm:$0xff]  ;;  %34476 = vst [vmem:[#allocation37_spill] sm:$0xff] %v30399_v49  ;;  %24510 = vmatprep.subr.mxu1 %v30399_v49 }
 0x3f3   : > { %24893 = vmatmul.mubr.msk.f32.gmra.mrb[52].mxu0 %vm1381_vm1, %v8682_v36  ;;  %v30412_v36 = vld [vmem:[#allocation4 + $0xe0] sm:$0xff] }
 0x3f4   : > { %24895 = vmatprep.mubr.msk.f32.mxu0 %vm1381_vm1, %v8683_v16  ;;  %v30408_v16 = vld [vmem:[#allocation4 + $0xd8] sm:$0xff]  ;;  %34477 = vst [vmem:[#allocation38_spill] sm:$0xff] %v30412_v36 }
 0x3f7   : > { %24896 = vmatmul.mubr.msk.f32.gmra.mrb[54].mxu0 %vm1381_vm1, %v8684_v53  ;;  %v30420_v53 = vld [vmem:[#allocation4 + $0xf8] sm:$0xff] }
 0x3f8   : > { %24898 = vmatprep.mubr.msk.f32.mxu0 %vm1381_vm1, %v8685_v50  ;;  %v30416_v50 = vld [vmem:[#allocation4 + $0xf0] sm:$0xff]  ;;  %34479 = vst [vmem:[#allocation40_spill] sm:$0xff] %v30420_v53 }
 0x3f9   : > { %34478 = vst [vmem:[#allocation39_spill] sm:$0xff] %v30416_v50 }
 0x3fb   : > { %24899 = vmatmul.mubr.msk.f32.gmra.mrb[56].mxu0 %vm1381_vm1, %v8686_v6  ;;  %v30428_v6 = vld [vmem:[#allocation4 + $0x110] sm:$0xff] }
 0x3fc   : > { %24901 = vmatprep.mubr.msk.f32.mxu0 %vm1381_vm1, %v8687_v3  ;;  %v30424_v3 = vld [vmem:[#allocation4 + $0x108] sm:$0xff]  ;;  %34481 = vst [vmem:[#allocation42_spill] sm:$0xff] %v30428_v6 }
 0x3fd   : > { %34480 = vst [vmem:[#allocation41_spill] sm:$0xff] %v30424_v3 }
 0x3ff   : > { %24902 = vmatmul.mubr.msk.f32.gmra.mrb[58].mxu0 %vm1381_vm1, %v8688_v20  ;;  %v30436_v20 = vld [vmem:[#allocation4 + $0x128] sm:$0xff] }
 0x400   : > { %24904 = vmatprep.mubr.msk.f32.mxu0 %vm1381_vm1, %v8689_v32  ;;  %v30432_v32 = vld [vmem:[#allocation4 + $0x120] sm:$0xff]  ;;  %34483 = vst [vmem:[#allocation44_spill] sm:$0xff] %v30436_v20 }
 0x401   : > { %34482 = vst [vmem:[#allocation43_spill] sm:$0xff] %v30432_v32 }
 0x403   : > { %24905 = vmatmul.mubr.msk.f32.gmra.mrb[60].mxu0 %vm1381_vm1, %v8690_v63  ;;  %v30444_v63 = vld [vmem:[#allocation4 + $0x140] sm:$0xff] }
 0x404   : > { %24907 = vmatprep.mubr.msk.f32.mxu0 %vm1381_vm1, %v8691_v21  ;;  %v30440_v21 = vld [vmem:[#allocation4 + $0x138] sm:$0xff]  ;;  %34485 = vst [vmem:[#allocation46_spill] sm:$0xff] %v30444_v63 }
 0x405   : > { %34484 = vst [vmem:[#allocation45_spill] sm:$0xff] %v30440_v21 }
 0x407   : > { %24908 = vmatmul.mubr.msk.f32.gmra.mrb[62].mxu0 %vm1381_vm1, %v8692_v31  ;;  %v30452_v31 = vld [vmem:[#allocation4 + $0x158] sm:$0xff] }
 0x408   : > { %24912 = vmatprep.mubr.msk.f32.mxu0 %vm1381_vm1, %v8628_v30  ;;  %v30448_v30 = vld [vmem:[#allocation4 + $0x150] sm:$0xff]  ;;  %34487 = vst [vmem:[#allocation48_spill] sm:$0xff] %v30452_v31 }
 0x409   : > { %34486 = vst [vmem:[#allocation47_spill] sm:$0xff] %v30448_v30 }
 0x40b   : > { %24913 = vmatmul.mubr.msk.f32.vlgmr.msra.gmra.mrb[32].mxu0 %vm1381_vm1, %v8629_v47  ;;  %v30456_v47 = vld [vmem:[#allocation4 + $0x168] sm:$0xff] }
 0x40c   : > { %24961 = vmatpush3.msk.msra.mxu0 %vm1633_vm2, %v30072_v59  ;;  %24915 = vmatprep.mubr.msk.f32.mxu0 %vm1381_vm1, %v30334_v5  ;;  %v30354_v59 = vld [vmem:[#allocation4 + $0x48] sm:$0xff]  ;;  %34488 = vst [vmem:[#allocation49_spill] sm:$0xff] %v30456_v47 }
 0x40d   : > { %25010 = vmatprep.subr.msk.mxu0 %vm1633_vm2, %v30331_v9 }
 0x40f   : > { %24916 = vmatmul.mubr.msk.f32.gmra.mrb[34].mxu0 %vm1381_vm1, %v30342_v22 }
 0x410   : > { %24918 = vmatprep.mubr.msk.f32.mxu0 %vm1381_vm1, %v30346_v14 }
 0x413   : > { %24919 = vmatmul.mubr.msk.f32.gmra.mrb[36].mxu0 %vm1381_vm1, %v30350_v11 }
 0x414   : > { %24921 = vmatprep.mubr.msk.f32.mxu0 %vm1381_vm1, %v30354_v59 }
 0x417   : > { %24922 = vmatmul.mubr.msk.f32.gmra.mrb[38].mxu0 %vm1381_vm1, %v30358_v48 }
 0x418   : > { %24924 = vmatprep.mubr.msk.f32.mxu0 %vm1381_vm1, %v30362_v34 }
 0x41b   : > { %24925 = vmatmul.mubr.msk.f32.gmra.mrb[40].mxu0 %vm1381_vm1, %v30366_v40 }
 0x41c   : > { %24927 = vmatprep.mubr.msk.f32.mxu0 %vm1381_vm1, %v30370_v29 }
 0x41f   : > { %24928 = vmatmul.mubr.msk.f32.gmra.mrb[42].mxu0 %vm1381_vm1, %v30374_v1 }
 0x420   : > { %24930 = vmatprep.mubr.msk.f32.mxu0 %vm1381_vm1, %v30378_v24 }
 0x423   : > { %24931 = vmatmul.mubr.msk.f32.gmra.mrb[44].mxu0 %vm1381_vm1, %v30382_v13 }
 0x424   : > { %24933 = vmatprep.mubr.msk.f32.mxu0 %vm1381_vm1, %v30386_v25 }
 0x427   : > { %24934 = vmatmul.mubr.msk.f32.gmra.mrb[46].mxu0 %vm1381_vm1, %v30390_v28 }
 0x428   : > { %24936 = vmatprep.mubr.msk.f32.mxu0 %vm1381_vm1, %v30394_v35 }
 0x42b   : > { %24937 = vmatmul.mubr.msk.f32.gmra.mrb[48].mxu0 %vm1381_vm1, %v30404_v4 }
 0x42c   : > { %24939 = vmatprep.mubr.msk.f32.mxu0 %vm1381_vm1, %v30408_v16 }
 0x42f   : > { %24940 = vmatmul.mubr.msk.f32.gmra.mrb[50].mxu0 %vm1381_vm1, %v30412_v36 }
 0x430   : > { %24942 = vmatprep.mubr.msk.f32.mxu0 %vm1381_vm1, %v30416_v50 }
 0x433   : > { %24943 = vmatmul.mubr.msk.f32.gmra.mrb[52].mxu0 %vm1381_vm1, %v30420_v53 }
 0x434   : > { %24945 = vmatprep.mubr.msk.f32.mxu0 %vm1381_vm1, %v30424_v3 }
 0x437   : > { %24946 = vmatmul.mubr.msk.f32.gmra.mrb[54].mxu0 %vm1381_vm1, %v30428_v6  ;;  %v9354_v6 = vld [vmem:[#allocation4 + $0x82] sm:$0xff] }
 0x438   : > { %24948 = vmatprep.mubr.msk.f32.mxu0 %vm1381_vm1, %v30432_v32  ;;  %v9353_v32 = vld [vmem:[#allocation4 + $0x7a] sm:$0xff] }
 0x43b   : > { %24949 = vmatmul.mubr.msk.f32.gmra.mrb[56].mxu0 %vm1381_vm1, %v30436_v20  ;;  %v9349_v20 = vld [vmem:[#allocation4 + $0x4a] sm:$0xff] }
 0x43c   : > { %24951 = vmatprep.mubr.msk.f32.mxu0 %vm1381_vm1, %v30440_v21  ;;  %v30460_v21 = vld [vmem:[#allocation4 + $0x170] sm:$0xff] }
 0x43d   : > { %34489 = vst [vmem:[#allocation50_spill] sm:$0xff] %v30460_v21 }
 0x43f   : > { %24952 = vmatmul.mubr.msk.f32.gmra.mrb[58].mxu0 %vm1381_vm1, %v30444_v63  ;;  %v9344_v63 = vld [vmem:[#allocation4 + $0xa] sm:$0xff] }
 0x440   : > { %24954 = vmatprep.mubr.msk.f32.mxu0 %vm1381_vm1, %v30448_v30  ;;  %v30468_v30 = vld [vmem:[%s34114_s9 + $0x10] sm:$0xf] }
 0x443   : > { %24955 = vmatmul.mubr.msk.f32.gmra.mrb[60].mxu0 %vm1381_vm1, %v30452_v31  ;;  %v9345_v31 = vld [vmem:[#allocation4 + $0x1a] sm:$0xff] }
 0x444   : > { %24957 = vmatprep.mubr.msk.f32.mxu0 %vm1381_vm1, %v30456_v47  ;;  %v9348_v47 = vld [vmem:[#allocation4 + $0x3a] sm:$0xff] }
 0x447   : > { %24958 = vmatmul.mubr.msk.f32.gmra.mrb[62].mxu0 %vm1381_vm1, %v30460_v21  ;;  %v9346_v21 = vld [vmem:[#allocation4 + $0x22] sm:$0xff] }
 0x448   : > { %24962 = vmatprep.mubr.msk.f32.mxu0 %vm1381_vm1, %v9343_v27  ;;  %v9347_v27 = vld [vmem:[#allocation4 + $0x32] sm:$0xff] }
 0x44b   : > { %24963 = vmatmul.mubr.msk.f32.vlgmr.msra.gmra.mrb[32].mxu0 %vm1381_vm1, %v9344_v63  ;;  %v9350_v63 = vld [vmem:[#allocation4 + $0x52] sm:$0xff] }
 0x44c   : > { %25011 = vmatpush3.msk.msra.mxu0 %vm1633_vm2, %v30331_v9  ;;  %24965 = vmatprep.mubr.msk.f32.mxu0 %vm1381_vm1, %v9345_v31  ;;  %v9351_v9 = vld [vmem:[#allocation4 + $0x62] sm:$0xff]  ;;  %v9352_v31 = vld [vmem:[#allocation4 + $0x6a] sm:$0xff] }
 0x44d   : > { %25060 = vmatprep.subr.msk.mxu0 %vm1633_vm2, %v30468_v30 }
 0x44f   : > { %24966 = vmatmul.mubr.msk.f32.gmra.mrb[34].mxu0 %vm1381_vm1, %v9346_v21 }
 0x450   : > { %24968 = vmatprep.mubr.msk.f32.mxu0 %vm1381_vm1, %v9347_v27  ;;  %v30484_v27 = vld [vmem:[#allocation12] ss:$0 sm:$0xff] }
 0x453   : > { %24969 = vmatmul.mubr.msk.f32.gmra.mrb[36].mxu0 %vm1381_vm1, %v9348_v47 }
 0x454   : > { %24971 = vmatprep.mubr.msk.f32.mxu0 %vm1381_vm1, %v9349_v20  ;;  %v9355_v20 = vld [vmem:[#allocation4 + $0x92] sm:$0xff] }
 0x457   : > { %24972 = vmatmul.mubr.msk.f32.gmra.mrb[38].mxu0 %vm1381_vm1, %v9350_v63 }
 0x458   : > { %24974 = vmatprep.mubr.msk.f32.mxu0 %vm1381_vm1, %v9351_v9 }
 0x45b   : > { %24975 = vmatmul.mubr.msk.f32.gmra.mrb[40].mxu0 %vm1381_vm1, %v9352_v31 }
 0x45c   : > { %24977 = vmatprep.mubr.msk.f32.mxu0 %vm1381_vm1, %v9353_v32  ;;  %v9356_v32 = vld [vmem:[#allocation4 + $0x9a] sm:$0xff] }
 0x45e   : > { %v24364_v21 = vpop.f32.mrb[0].mxu0 }
 0x45f   : > { %v26392_v47 = vadd.f32 %v24364_v21, %v29721_v23  ;;  %v4726_v3 = vpop.f32.mrb[1].mxu0  ;;  %24978 = vmatmul.mubr.msk.f32.gmra.mrb[42].mxu0 %vm1381_vm1, %v9354_v6  ;;  %v9357_v23 = vld [vmem:[#allocation4 + $0xaa] sm:$0xff] }
 0x460   : > { %v26393_v63 = vadd.f32 %v4726_v3, %v29724_v60  ;;  %24980 = vmatprep.mubr.msk.f32.mxu0 %vm1381_vm1, %v9355_v20  ;;  %v9358_v20 = vld [vmem:[#allocation4 + $0xb2] sm:$0xff] }
 0x461   : > { %v4925_v9 = vadd.f32 %v26392_v47, %v30484_v27 }
 0x462   : > { %v4924_v31 = vadd.f32 %v26393_v63, %v30484_v27  ;;  %v24367_v53 = vpop.f32.mrb[2].mxu0 }
 0x463   : > { %v4957_v50 = vmax.f32 %v4925_v9, 0.0  ;;  %v26394_v36 = vadd.f32 %v24367_v53, %v29879_v0  ;;  %v4736_v49 = vpop.f32.mrb[3].mxu0  ;;  %24981 = vmatmul.mubr.msk.f32.gmra.mrb[44].mxu0 %vm1381_vm1, %v9356_v32  ;;  %v9359_v9 = vld [vmem:[#allocation4 + $0xc2] sm:$0xff]  ;;  %v30508_v32 = vld [vmem:[#allocation4 + $0xca] sm:$0xff] }
 0x464   : > { %v4956_v21 = vmax.f32 %v4924_v31, 0.0  ;;  %v26395_v6 = vadd.f32 %v4736_v49, %v29881_v19  ;;  %24983 = vmatprep.mubr.msk.f32.mxu0 %vm1381_vm1, %v9357_v23 }
 0x465   : > { %5052 = vst.msk [vmem:[#allocation3 + $0x3a] sm:$0xff] %vm4988_vm4, %v4957_v50  ;;  %v4927_v60 = vadd.f32 %v26394_v36, %v30484_v27 }
 0x466   : > { %5051 = vst.msk [vmem:[#allocation3 + $0x32] sm:$0xff] %vm4988_vm4, %v4956_v21  ;;  %v4926_v3 = vadd.f32 %v26395_v6, %v30484_v27  ;;  %v24370_v47 = vpop.f32.mrb[4].mxu0 }
 0x467   : > { %v4959_v0 = vmax.f32 %v4927_v60, 0.0  ;;  %v26396_v53 = vadd.f32 %v24370_v47, %v29887_v56  ;;  %v4746_v63 = vpop.f32.mrb[5].mxu0  ;;  %24984 = vmatmul.mubr.msk.f32.gmra.mrb[46].mxu0 %vm1381_vm1, %v9358_v20 }
 0x468   : > { %v4958_v19 = vmax.f32 %v4926_v3, 0.0  ;;  %v26397_v49 = vadd.f32 %v4746_v63, %v29889_v12  ;;  %24986 = vmatprep.mubr.msk.f32.mxu0 %vm1381_vm1, %v9359_v9  ;;  %v9361_v12 = vld [vmem:[#allocation4 + $0xda] sm:$0xff] }
 0x469   : > { %5054 = vst.msk [vmem:[#allocation3 + $0x52] sm:$0xff] %vm4988_vm4, %v4959_v0  ;;  %v4929_v36 = vadd.f32 %v26396_v53, %v30484_v27  ;;  %v30520_v53 = vld [vmem:[#allocation4 + $0xe2] sm:$0xff] }
 0x46a   : > { %5053 = vst.msk [vmem:[#allocation3 + $0x4a] sm:$0xff] %vm4988_vm4, %v4958_v19  ;;  %v4928_v50 = vadd.f32 %v26397_v49, %v30484_v27  ;;  %v24373_v31 = vpop.f32.mrb[6].mxu0  ;;  %v30526_v19 = vld [vmem:[#allocation4 + $0xf2] sm:$0xff] }
 0x46b   : > { %v4961_v56 = vmax.f32 %v4929_v36, 0.0  ;;  %v26398_v23 = vadd.f32 %v24373_v31, %v29895_v10  ;;  %v4756_v21 = vpop.f32.mrb[7].mxu0  ;;  %24987 = vmatmul.mubr.msk.f32.gmra.mrb[48].mxu0 %vm1381_vm1, %v30508_v32 }
 0x46c   : > { %v4960_v6 = vmax.f32 %v4928_v50, 0.0  ;;  %v26399_v60 = vadd.f32 %v4756_v21, %v29897_v43  ;;  %24989 = vmatprep.mubr.msk.f32.mxu0 %vm1381_vm1, %v9361_v12  ;;  %v5121_v0 = vld [vmem:[#allocation3 + $0x3a] sm:$0xff] }
 0x46d   : > { %5056 = vst.msk [vmem:[#allocation3 + $0x6a] sm:$0xff] %vm4988_vm4, %v4961_v56  ;;  %v4931_v3 = vadd.f32 %v26398_v23, %v30484_v27  ;;  %v5120_v47 = vld [vmem:[#allocation3 + $0x32] sm:$0xff]  ;;  %v30536_v21 = vld [vmem:[#allocation4 + $0xfa] sm:$0xff] }
 0x46e   : > { %5055 = vst.msk [vmem:[#allocation3 + $0x62] sm:$0xff] %vm4988_vm4, %v4960_v6  ;;  %v4930_v20 = vadd.f32 %v26399_v60, %v30484_v27  ;;  %v24376_v10 = vpop.f32.mrb[8].mxu0  ;;  %24418 = vmatprep.mubr.msk.f32.mxu1 %vm4988_vm4, %v5120_v47  ;;  %v30542_v60 = vld [vmem:[#allocation4 + $0x10a] sm:$0xff] }
 0x46f   : > { %v4963_v63 = vmax.f32 %v4931_v3, 0.0  ;;  %v26400_v43 = vadd.f32 %v24376_v10, %v29903_v45  ;;  %v4766_v9 = vpop.f32.mrb[9].mxu0  ;;  %24419 = vmatmul.mubr.msk.f32.gmra.mrb[100].mxu1 %vm4988_vm4, %v5121_v0  ;;  %24990 = vmatmul.mubr.msk.f32.gmra.mrb[50].mxu0 %vm1381_vm1, %v30520_v53 }
 0x470   : > { %v4962_v49 = vmax.f32 %v4930_v20, 0.0  ;;  %v26401_v36 = vadd.f32 %v4766_v9, %v29905_v42  ;;  %24992 = vmatprep.mubr.msk.f32.mxu0 %vm1381_vm1, %v30526_v19  ;;  %v5123_v23 = vld [vmem:[#allocation3 + $0x52] sm:$0xff] }
 0x471   : > { %5058 = vst.msk [vmem:[#allocation3 + $0x82] sm:$0xff] %vm4988_vm4, %v4963_v63  ;;  %v4933_v50 = vadd.f32 %v26400_v43, %v30484_v27  ;;  %v5122_v31 = vld [vmem:[#allocation3 + $0x4a] sm:$0xff]  ;;  %v30552_v43 = vld [vmem:[#allocation4 + $0x112] sm:$0xff] }
 0x472   : > { %5057 = vst.msk [vmem:[#allocation3 + $0x7a] sm:$0xff] %vm4988_vm4, %v4962_v49  ;;  %v4932_v45 = vadd.f32 %v26401_v36, %v30484_v27  ;;  %v24379_v56 = vpop.f32.mrb[10].mxu0  ;;  %24421 = vmatprep.mubr.msk.f32.mxu1 %vm4988_vm4, %v5122_v31  ;;  %v30558_v36 = vld [vmem:[#allocation4 + $0x122] sm:$0xff] }
 0x473   : > { %v4965_v12 = vmax.f32 %v4933_v50, 0.0  ;;  %v26402_v42 = vadd.f32 %v24379_v56, %v29911_v52  ;;  %v4776_v6 = vpop.f32.mrb[11].mxu0  ;;  %24422 = vmatmul.mubr.msk.f32.gmra.mrb[102].mxu1 %vm4988_vm4, %v5123_v23  ;;  %24993 = vmatmul.mubr.msk.f32.gmra.mrb[52].mxu0 %vm1381_vm1, %v30536_v21 }
 0x474   : > { %v4964_v3 = vmax.f32 %v4932_v45, 0.0  ;;  %v26403_v47 = vadd.f32 %v4776_v6, %v29913_v62  ;;  %24995 = vmatprep.mubr.msk.f32.mxu0 %vm1381_vm1, %v30542_v60  ;;  %v5125_v63 = vld [vmem:[#allocation3 + $0x6a] sm:$0xff] }
 0x475   : > { %5060 = vst.msk [vmem:[#allocation3 + $0x9a] sm:$0xff] %vm4988_vm4, %v4965_v12  ;;  %v4935_v20 = vadd.f32 %v26402_v42, %v30484_v27  ;;  %v5124_v10 = vld [vmem:[#allocation3 + $0x62] sm:$0xff]  ;;  %v30568_v42 = vld [vmem:[#allocation4 + $0x12a] sm:$0xff] }
 0x476   : > { %5059 = vst.msk [vmem:[#allocation3 + $0x92] sm:$0xff] %vm4988_vm4, %v4964_v3  ;;  %v4934_v52 = vadd.f32 %v26403_v47, %v30484_v27  ;;  %v24382_v0 = vpop.f32.mrb[12].mxu0  ;;  %24424 = vmatprep.mubr.msk.f32.mxu1 %vm4988_vm4, %v5124_v10  ;;  %v30574_v47 = vld [vmem:[#allocation4 + $0x13a] sm:$0xff] }
 0x477   : > { %v4967_v9 = vmax.f32 %v4935_v20, 0.0  ;;  %v26404_v62 = vadd.f32 %v24382_v0, %v29919_v55  ;;  %v4786_v49 = vpop.f32.mrb[13].mxu0  ;;  %24425 = vmatmul.mubr.msk.f32.gmra.mrb[104].mxu1 %vm4988_vm4, %v5125_v63  ;;  %24996 = vmatmul.mubr.msk.f32.gmra.mrb[54].mxu0 %vm1381_vm1, %v30552_v43 }
 0x478   : > { %v4966_v50 = vmax.f32 %v4934_v52, 0.0  ;;  %v26405_v31 = vadd.f32 %v4786_v49, %v29921_v54  ;;  %24998 = vmatprep.mubr.msk.f32.mxu0 %vm1381_vm1, %v30558_v36  ;;  %v5127_v12 = vld [vmem:[#allocation3 + $0x82] sm:$0xff] }
 0x479   : > { %5062 = vst.msk [vmem:[#allocation3 + $0xb2] sm:$0xff] %vm4988_vm4, %v4967_v9  ;;  %v4937_v45 = vadd.f32 %v26404_v62, %v30484_v27  ;;  %v5126_v56 = vld [vmem:[#allocation3 + $0x7a] sm:$0xff]  ;;  %v30584_v62 = vld [vmem:[#allocation4 + $0x142] sm:$0xff] }
 0x47a   : > { %5061 = vst.msk [vmem:[#allocation3 + $0xaa] sm:$0xff] %vm4988_vm4, %v4966_v50  ;;  %v4936_v55 = vadd.f32 %v26405_v31, %v30484_v27  ;;  %v24385_v23 = vpop.f32.mrb[14].mxu0  ;;  %24427 = vmatprep.mubr.msk.f32.mxu1 %vm4988_vm4, %v5126_v56  ;;  %v30590_v31 = vld [vmem:[#allocation4 + $0x152] sm:$0xff] }
 0x47b   : > { %v4969_v6 = vmax.f32 %v4937_v45, 0.0  ;;  %v26406_v54 = vadd.f32 %v24385_v23, %v29927_v57  ;;  %v4796_v3 = vpop.f32.mrb[15].mxu0  ;;  %24428 = vmatmul.mubr.msk.f32.gmra.mrb[106].mxu1 %vm4988_vm4, %v5127_v12  ;;  %24999 = vmatmul.mubr.msk.f32.gmra.mrb[56].mxu0 %vm1381_vm1, %v30568_v42 }
 0x47c   : > { %v4968_v20 = vmax.f32 %v4936_v55, 0.0  ;;  %v26407_v10 = vadd.f32 %v4796_v3, %v29929_v17  ;;  %25001 = vmatprep.mubr.msk.f32.mxu0 %vm1381_vm1, %v30574_v47  ;;  %v5129_v9 = vld [vmem:[#allocation3 + $0x9a] sm:$0xff] }
 0x47d   : > { %5064 = vst.msk [vmem:[#allocation3 + $0xca] sm:$0xff] %vm4988_vm4, %v4969_v6  ;;  %v4939_v52 = vadd.f32 %v26406_v54, %v30484_v27  ;;  %v5128_v0 = vld [vmem:[#allocation3 + $0x92] sm:$0xff]  ;;  %v30600_v54 = vld [vmem:[#allocation4 + $0x15a] sm:$0xff] }
 0x47e   : > { %5063 = vst.msk [vmem:[#allocation3 + $0xc2] sm:$0xff] %vm4988_vm4, %v4968_v20  ;;  %v4938_v57 = vadd.f32 %v26407_v10, %v30484_v27  ;;  %v24388_v63 = vpop.f32.mrb[16].mxu0  ;;  %24430 = vmatprep.mubr.msk.f32.mxu1 %vm4988_vm4, %v5128_v0  ;;  %v30606_v10 = vld [vmem:[#allocation4 + $0x16a] sm:$0xff] }
 0x47f   : > { %v4971_v49 = vmax.f32 %v4939_v52, 0.0  ;;  %v26408_v17 = vadd.f32 %v24388_v63, %v29935_v44  ;;  %v4806_v50 = vpop.f32.mrb[17].mxu0  ;;  %24431 = vmatmul.mubr.msk.f32.gmra.mrb[108].mxu1 %vm4988_vm4, %v5129_v9  ;;  %25002 = vmatmul.mubr.msk.f32.gmra.mrb[58].mxu0 %vm1381_vm1, %v30584_v62 }
 0x480   : > { %v4970_v45 = vmax.f32 %v4938_v57, 0.0  ;;  %v26409_v56 = vadd.f32 %v4806_v50, %v29937_v37  ;;  %25004 = vmatprep.mubr.msk.f32.mxu0 %vm1381_vm1, %v30590_v31  ;;  %v5131_v6 = vld [vmem:[#allocation3 + $0xb2] sm:$0xff] }
 0x481   : > { %5066 = vst.msk [vmem:[#allocation3 + $0xe2] sm:$0xff] %vm4988_vm4, %v4971_v49  ;;  %v4941_v55 = vadd.f32 %v26408_v17, %v30484_v27  ;;  %v5130_v23 = vld [vmem:[#allocation3 + $0xaa] sm:$0xff]  ;;  %v30616_v17 = vld [vmem:[#allocation4 + $0x172] sm:$0xff] }
 0x482   : > { %5065 = vst.msk [vmem:[#allocation3 + $0xda] sm:$0xff] %vm4988_vm4, %v4970_v45  ;;  %v4940_v44 = vadd.f32 %v26409_v56, %v30484_v27  ;;  %v24391_v12 = vpop.f32.mrb[18].mxu0  ;;  %24433 = vmatprep.mubr.msk.f32.mxu1 %vm4988_vm4, %v5130_v23 }
 0x483   : > { %v4973_v3 = vmax.f32 %v4941_v55, 0.0  ;;  %v26410_v37 = vadd.f32 %v24391_v12, %v29943_v15  ;;  %v4816_v20 = vpop.f32.mrb[19].mxu0  ;;  %24434 = vmatmul.mubr.msk.f32.gmra.mrb[110].mxu1 %vm4988_vm4, %v5131_v6  ;;  %25005 = vmatmul.mubr.msk.f32.gmra.mrb[60].mxu0 %vm1381_vm1, %v30600_v54 }
 0x484   : > { %v4972_v52 = vmax.f32 %v4940_v44, 0.0  ;;  %v26411_v0 = vadd.f32 %v4816_v20, %v29945_v18  ;;  %25007 = vmatprep.mubr.msk.f32.mxu0 %vm1381_vm1, %v30606_v10  ;;  %v5133_v49 = vld [vmem:[#allocation3 + $0xca] sm:$0xff] }
 0x485   : > { %5068 = vst.msk [vmem:[#allocation3 + $0xfa] sm:$0xff] %vm4988_vm4, %v4973_v3  ;;  %v4943_v57 = vadd.f32 %v26410_v37, %v30484_v27  ;;  %v5132_v63 = vld [vmem:[#allocation3 + $0xc2] sm:$0xff] }
 0x486   : > { %5067 = vst.msk [vmem:[#allocation3 + $0xf2] sm:$0xff] %vm4988_vm4, %v4972_v52  ;;  %v4942_v15 = vadd.f32 %v26411_v0, %v30484_v27  ;;  %v24394_v9 = vpop.f32.mrb[20].mxu0  ;;  %24436 = vmatprep.mubr.msk.f32.mxu1 %vm4988_vm4, %v5132_v63 }
 0x487   : > { %v4975_v50 = vmax.f32 %v4943_v57, 0.0  ;;  %v26412_v18 = vadd.f32 %v24394_v9, %v29951_v38  ;;  %v4826_v45 = vpop.f32.mrb[21].mxu0  ;;  %24437 = vmatmul.mubr.msk.f32.gmra.mrb[112].mxu1 %vm4988_vm4, %v5133_v49  ;;  %25008 = vmatmul.mubr.msk.f32.gmra.mrb[62].mxu0 %vm1381_vm1, %v30616_v17 }
 0x488   : > { %v4974_v56 = vmax.f32 %v4942_v15, 0.0  ;;  %v26413_v55 = vadd.f32 %v4826_v45, %v29953_v46  ;;  %25012 = vmatprep.mubr.msk.f32.mxu0 %vm1381_vm1, %v30334_v5  ;;  %v5135_v6 = vld [vmem:[#allocation3 + $0xe2] sm:$0xff] }
 0x489   : > { %5070 = vst.msk [vmem:[#allocation3 + $0x112] sm:$0xff] %vm4988_vm4, %v4975_v50  ;;  %v4945_v23 = vadd.f32 %v26412_v18, %v30484_v27  ;;  %v5134_v44 = vld [vmem:[#allocation3 + $0xda] sm:$0xff]  ;;  %v30633_v46 = vld [vmem:[%s34114_s9 + $0x14] sm:$0xf] }
 0x48a   : > { %5069 = vst.msk [vmem:[#allocation3 + $0x10a] sm:$0xff] %vm4988_vm4, %v4974_v56  ;;  %v4944_v38 = vadd.f32 %v26413_v55, %v30484_v27  ;;  %v24397_v12 = vpop.f32.mrb[22].mxu0  ;;  %24439 = vmatprep.mubr.msk.f32.mxu1 %vm4988_vm4, %v5134_v44 }
 0x48b   : > { %v4977_v3 = vmax.f32 %v4945_v23, 0.0  ;;  %v26414_v5 = vadd.f32 %v24397_v12, %v29958_v58  ;;  %v4836_v37 = vpop.f32.mrb[23].mxu0  ;;  %24440 = vmatmul.mubr.msk.f32.gmra.mrb[114].mxu1 %vm4988_vm4, %v5135_v6  ;;  %25013 = vmatmul.mubr.msk.f32.vlgmr.msra.gmra.mrb[32].mxu0 %vm1381_vm1, %v30342_v22 }
 0x48c   : > { %v4976_v20 = vmax.f32 %v4944_v38, 0.0  ;;  %v26415_v52 = vadd.f32 %v4836_v37, %v29960_v61  ;;  %25061 = vmatpush3.msk.msra.mxu0 %vm1633_vm2, %v30468_v30  ;;  %25015 = vmatprep.mubr.msk.f32.mxu0 %vm1381_vm1, %v30346_v14  ;;  %v5137_v61 = vld [vmem:[#allocation3 + $0xfa] sm:$0xff] }
 0x48d   : > { %5072 = vst.msk [vmem:[#allocation3 + $0x12a] sm:$0xff] %vm4988_vm4, %v4977_v3  ;;  %v4947_v0 = vadd.f32 %v26414_v5, %v30484_v27  ;;  %v5136_v58 = vld [vmem:[#allocation3 + $0xf2] sm:$0xff]  ;;  %25110 = vmatprep.subr.msk.mxu0 %vm1633_vm2, %v30633_v46 }
 0x48e   : > { %5071 = vst.msk [vmem:[#allocation3 + $0x122] sm:$0xff] %vm4988_vm4, %v4976_v20  ;;  %v4946_v22 = vadd.f32 %v26415_v52, %v30484_v27  ;;  %v24400_v57 = vpop.f32.mrb[24].mxu0  ;;  %24442 = vmatprep.mubr.msk.f32.mxu1 %vm4988_vm4, %v5136_v58 }
 0x48f   : > { %v4979_v30 = vmax.f32 %v4947_v0, 0.0  ;;  %v26416_v63 = vadd.f32 %v24400_v57, %v29964_v7  ;;  %v4846_v14 = vpop.f32.mrb[25].mxu0  ;;  %24443 = vmatmul.mubr.msk.f32.gmra.mrb[116].mxu1 %vm4988_vm4, %v5137_v61  ;;  %25016 = vmatmul.mubr.msk.f32.gmra.mrb[34].mxu0 %vm1381_vm1, %v30350_v11 }
 0x490   : > { %v4978_v15 = vmax.f32 %v4946_v22, 0.0  ;;  %v26417_v9 = vadd.f32 %v4846_v14, %v29971_v8  ;;  %25018 = vmatprep.mubr.msk.f32.mxu0 %vm1381_vm1, %v30354_v59  ;;  %v5139_v45 = vld [vmem:[#allocation3 + $0x112] sm:$0xff]  ;;  %v34491_v14 = vld [vmem:[#allocation38_spill] sm:$0xff] }
 0x491   : > { %5074 = vst.msk [vmem:[#allocation3 + $0x142] sm:$0xff] %vm4988_vm4, %v4979_v30  ;;  %v4949_v49 = vadd.f32 %v26416_v63, %v30484_v27  ;;  %v5138_v50 = vld [vmem:[#allocation3 + $0x10a] sm:$0xff] }
 0x492   : > { %5073 = vst.msk [vmem:[#allocation3 + $0x13a] sm:$0xff] %vm4988_vm4, %v4978_v15  ;;  %v4948_v7 = vadd.f32 %v26417_v9, %v30484_v27  ;;  %v24403_v18 = vpop.f32.mrb[26].mxu0  ;;  %24445 = vmatprep.mubr.msk.f32.mxu1 %vm4988_vm4, %v5138_v50  ;;  %v30716_v63 = vld [vmem:[%s34112_s7 + $0x18] sm:$0xff]  ;;  %v30729_v15 = vld [vmem:[#allocation3 + $0x30] sm:$0xff]  ;;  %v34493_v9 = vld [vmem:[#allocation40_spill] sm:$0xff] }
 0x493   : > { %v4981_v11 = vmax.f32 %v4949_v49, 0.0  ;;  %v26418_v56 = vadd.f32 %v24403_v18, %v29979_v39  ;;  %v4856_v8 = vpop.f32.mrb[27].mxu0  ;;  %24446 = vmatmul.mubr.msk.f32.gmra.mrb[118].mxu1 %vm4988_vm4, %v5139_v45  ;;  %25019 = vmatmul.mubr.msk.f32.gmra.mrb[36].mxu0 %vm1381_vm1, %v30358_v48  ;;  %v30741_v49 = vld [vmem:[#allocation3 + $0x48] sm:$0xff]  ;;  %v34494_v50 = vld [vmem:[#allocation41_spill] sm:$0xff] }
 0x494   : > { %v4980_v59 = vmax.f32 %v4948_v7, 0.0  ;;  %v26419_v55 = vadd.f32 %v4856_v8, %v29981_v51  ;;  %25021 = vmatprep.mubr.msk.f32.mxu0 %vm1381_vm1, %v30362_v34  ;;  %v5141_v12 = vld [vmem:[#allocation3 + $0x12a] sm:$0xff]  ;;  %v30753_v45 = vld [vmem:[#allocation3 + $0x60] sm:$0xff]  ;;  %v34497_v8 = vld [vmem:[#allocation44_spill] sm:$0xff] }
 0x495   : > { %5076 = vst.msk [vmem:[#allocation3 + $0x15a] sm:$0xff] %vm4988_vm4, %v4981_v11  ;;  %v4951_v23 = vadd.f32 %v26418_v56, %v30484_v27  ;;  %v5140_v44 = vld [vmem:[#allocation3 + $0x122] sm:$0xff]  ;;  %v30747_v7 = vld [vmem:[#allocation3 + $0x50] sm:$0xff] }
 0x496   : > { %5075 = vst.msk [vmem:[#allocation3 + $0x152] sm:$0xff] %vm4988_vm4, %v4980_v59  ;;  %v4950_v39 = vadd.f32 %v26419_v55, %v30484_v27  ;;  %v24406_v38 = vpop.f32.mrb[28].mxu0  ;;  %24448 = vmatprep.mubr.msk.f32.mxu1 %vm4988_vm4, %v5140_v44  ;;  %v34495_v18 = vld [vmem:[#allocation42_spill] sm:$0xff]  ;;  %v34496_v11 = vld [vmem:[#allocation43_spill] sm:$0xff]  ;;  %v30765_v59 = vld [vmem:[#allocation3 + $0x78] sm:$0xff] }
 0x497   : > { %v4983_v48 = vmax.f32 %v4951_v23, 0.0  ;;  %v26420_v6 = vadd.f32 %v24406_v38, %v29985_v2  ;;  %v4866_v51 = vpop.f32.mrb[29].mxu0  ;;  %24449 = vmatmul.mubr.msk.f32.gmra.mrb[120].mxu1 %vm4988_vm4, %v5141_v12  ;;  %25022 = vmatmul.mubr.msk.f32.gmra.mrb[38].mxu0 %vm1381_vm1, %v30366_v40  ;;  %v30759_v56 = vld [vmem:[#allocation3 + $0x68] sm:$0xff]  ;;  %v34498_v55 = vld [vmem:[#allocation45_spill] sm:$0xff]  ;;  %v34500_v38 = vld [vmem:[#allocation47_spill] sm:$0xff] }
 0x498   : > { %v4982_v34 = vmax.f32 %v4950_v39, 0.0  ;;  %v26421_v3 = vadd.f32 %v4866_v51, %v29987_v26  ;;  %25024 = vmatprep.mubr.msk.f32.mxu0 %vm1381_vm1, %v30370_v29  ;;  %v5143_v52 = vld [vmem:[#allocation3 + $0x142] sm:$0xff]  ;;  %v30777_v39 = vld [vmem:[#allocation3 + $0x90] sm:$0xff]  ;;  %v30783_v12 = vld [vmem:[#allocation3 + $0x98] sm:$0xff] }
 0x499   : > { %5078 = vst.msk [vmem:[#allocation3 + $0x172] sm:$0xff] %vm4988_vm4, %v4983_v48  ;;  %v4953_v5 = vadd.f32 %v26420_v6, %v30484_v27  ;;  %v5142_v37 = vld [vmem:[#allocation3 + $0x13a] sm:$0xff]  ;;  %v34499_v44 = vld [vmem:[#allocation46_spill] sm:$0xff] }
 0x49a   : > { %5077 = vst.msk [vmem:[#allocation3 + $0x16a] sm:$0xff] %vm4988_vm4, %v4982_v34  ;;  %v4952_v2 = vadd.f32 %v26421_v3, %v30484_v27  ;;  %v24409_v20 = vpop.f32.mrb[30].mxu0  ;;  %24451 = vmatprep.mubr.msk.f32.mxu1 %vm4988_vm4, %v5142_v37  ;;  %v30771_v23 = vld [vmem:[#allocation3 + $0x80] sm:$0xff]  ;;  %v34501_v48 = vld [vmem:[#allocation48_spill] sm:$0xff]  ;;  %v30789_v6 = vld [vmem:[#allocation3 + $0xa8] sm:$0xff] }
 0x49b   : > { %v4985_v40 = vmax.f32 %v4953_v5, 0.0  ;;  %v26422_v0 = vadd.f32 %v24409_v20, %v29991_v33  ;;  %v4876_v26 = vpop.f32.mrb[31].mxu0  ;;  %24452 = vmatmul.mubr.msk.f32.gmra.mrb[122].mxu1 %vm4988_vm4, %v5143_v52  ;;  %25025 = vmatmul.mubr.msk.f32.gmra.mrb[40].mxu0 %vm1381_vm1, %v30374_v1  ;;  %v34502_v51 = vld [vmem:[#allocation49_spill] sm:$0xff]  ;;  %v30795_v34 = vld [vmem:[#allocation3 + $0xb0] sm:$0xff]  ;;  %v34503_v3 = vld [vmem:[#allocation50_spill] sm:$0xff] }
 0x49c   : > { %v4984_v29 = vmax.f32 %v4952_v2, 0.0  ;;  %v26423_v58 = vadd.f32 %v4876_v26, %v29993_v41  ;;  %25027 = vmatprep.mubr.msk.f32.mxu0 %vm1381_vm1, %v30378_v24  ;;  %v5145_v61 = vld [vmem:[#allocation3 + $0x15a] sm:$0xff]  ;;  %v30809_v2 = vld [vmem:[#allocation3 + $0xc8] sm:$0xff] }
 0x49d   : > { %5080 = vst.msk [vmem:[#allocation3 + $0x18a] sm:$0xff] %vm4988_vm4, %v4985_v40  ;;  %v4955_v22 = vadd.f32 %v26422_v0, %v30484_v27  ;;  %v5144_v57 = vld [vmem:[#allocation3 + $0x152] sm:$0xff]  ;;  %v5083_v24 = vld [vmem:[#allocation3] sm:$0xff]  ;;  %v30811_v20 = vld [vmem:[#allocation4 + $0x188] sm:$0xff] }
 0x49e   : > { %5079 = vst.msk [vmem:[#allocation3 + $0x182] sm:$0xff] %vm4988_vm4, %v4984_v29  ;;  %v4954_v33 = vadd.f32 %v26423_v58, %v30484_v27  ;;  %24454 = vmatprep.mubr.msk.f32.mxu1 %vm4988_vm4, %v5144_v57  ;;  %v30801_v5 = vld [vmem:[#allocation3 + $0xc0] sm:$0xff]  ;;  %v30817_v52 = vld [vmem:[#allocation3 + $0xd8] sm:$0xff]  ;;  %v30827_v29 = vld [vmem:[%s34114_s9 + $0x18] sm:$0xf] }
 0x49f   : > { %v4987_v30 = vmax.f32 %v4955_v22, 0.0  ;;  %24455 = vmatmul.mubr.msk.f32.gmra.mrb[124].mxu1 %vm4988_vm4, %v5145_v61  ;;  %25028 = vmatmul.mubr.msk.f32.gmra.mrb[42].mxu0 %vm1381_vm1, %v30382_v13  ;;  %v5084_v13 = vld [vmem:[#allocation3 + $0x8] sm:$0xff]  ;;  %v30803_v37 = vld [vmem:[#allocation4 + $0x180] sm:$0xff]  ;;  %v30832_v58 = vld [vmem:[#allocation3 + $0xf0] sm:$0xff] }
 0x4a0   : > { %v4986_v41 = vmax.f32 %v4954_v33, 0.0  ;;  %25030 = vmatprep.mubr.msk.f32.mxu0 %vm1381_vm1, %v30386_v25  ;;  %v5147_v27 = vld [vmem:[#allocation3 + $0x172] sm:$0xff]  ;;  %v30822_v0 = vld [vmem:[#allocation3 + $0xe0] sm:$0xff]  ;;  %v30854_v61 = vld [vmem:[#allocation4 + $0x49] sm:$0xff] }
 0x4a1   : > { %5082 = vst.msk [vmem:[#allocation3 + $0x1a2] sm:$0xff] %vm4988_vm4, %v4987_v30  ;;  %v5146_v1 = vld [vmem:[#allocation3 + $0x16a] sm:$0xff]  ;;  %v5085_v25 = vld [vmem:[#allocation3 + $0x18] sm:$0xff]  ;;  %v10124_v26 = vld [vmem:[#allocation4 + $0x21] sm:$0xff] }
 0x4a2   : > { %5081 = vst.msk [vmem:[#allocation3 + $0x19a] sm:$0xff] %vm4988_vm4, %v4986_v41  ;;  %24457 = vmatprep.mubr.msk.f32.mxu1 %vm4988_vm4, %v5146_v1  ;;  %v10123_v40 = vld [vmem:[#allocation4 + $0x19] sm:$0xff]  ;;  %v30838_v22 = vld [vmem:[#allocation4 + $0x31] sm:$0xff] }
 0x4a3   : > { %24458 = vmatmul.mubr.msk.f32.gmra.mrb[126].mxu1 %vm4988_vm4, %v5147_v27  ;;  %25031 = vmatmul.mubr.msk.f32.gmra.mrb[44].mxu0 %vm1381_vm1, %v30390_v28  ;;  %v34490_v28 = vld [vmem:[#allocation37_spill] sm:$0xff]  ;;  %v30844_v57 = vld [vmem:[#allocation3 + $0xf8] sm:$0xff]  ;;  %v30860_v30 = vld [vmem:[#allocation3 + $0x110] sm:$0xff] }
 0x4a4   : > { %25033 = vmatprep.mubr.msk.f32.mxu0 %vm1381_vm1, %v30394_v35  ;;  %24462 = vmatprep.mubr.msk.f32.mxu1 %vm4988_vm4, %v5083_v24  ;;  %v5086_v35 = vld [vmem:[#allocation3 + $0x20] sm:$0xff]  ;;  %v30862_v41 = vld [vmem:[#allocation4 + $0x51] sm:$0xff]  ;;  %v30876_v27 = vld [vmem:[#allocation3 + $0x128] sm:$0xff] }
 0x4a5   : > { %v30846_v33 = vld [vmem:[#allocation4 + $0x39] sm:$0xff]  ;;  %v30870_v24 = vld [vmem:[#allocation4 + $0x61] sm:$0xff] }
 0x4a6   : > { %v30868_v1 = vld [vmem:[#allocation3 + $0x120] sm:$0xff] }
 0x4a7   : > { %24463 = vmatmul.mubr.msk.f32.vlgmr.msra.gmra.mrb[96].mxu1 %vm4988_vm4, %v5084_v13  ;;  %25034 = vmatmul.mubr.msk.f32.gmra.mrb[46].mxu0 %vm1381_vm1, %v30404_v4  ;;  %v34492_v4 = vld [vmem:[#allocation39_spill] sm:$0xff] }
 0x4a8   : > { %25036 = vmatprep.mubr.msk.f32.mxu0 %vm1381_vm1, %v30408_v16  ;;  %24511 = vmatpush3.msra.mxu1 %v34490_v28  ;;  %v30735_v16 = vld [vmem:[#allocation3 + $0x38] sm:$0xff]  ;;  %v30878_v13 = vld [vmem:[#allocation4 + $0x69] sm:$0xff] }
 0x4a9   : > { %24465 = vmatprep.mubr.msk.f32.mxu1 %vm4988_vm4, %v5085_v25  ;;  %24560 = vmatprep.subr.mxu1 %v30716_v63  ;;  %v30884_v25 = vld [vmem:[#allocation3 + $0x138] sm:$0xff] }
 0x4aa   : > { %v30886_v28 = vld [vmem:[#allocation4 + $0x79] sm:$0xff] }
 0x4ab   : > { %24466 = vmatmul.mubr.msk.f32.gmra.mrb[98].mxu1 %vm4988_vm4, %v5086_v35  ;;  %25037 = vmatmul.mubr.msk.f32.gmra.mrb[48].mxu0 %vm1381_vm1, %v34491_v14  ;;  %v30892_v35 = vld [vmem:[#allocation3 + $0x140] sm:$0xff] }
 0x4ac   : > { %24468 = vmatprep.mubr.msk.f32.mxu1 %vm4988_vm4, %v30729_v15  ;;  %25039 = vmatprep.mubr.msk.f32.mxu0 %vm1381_vm1, %v34492_v4  ;;  %v30894_v14 = vld [vmem:[#allocation4 + $0x81] sm:$0xff]  ;;  %v30900_v4 = vld [vmem:[#allocation3 + $0x150] sm:$0xff] }
 0x4af   : > { %24469 = vmatmul.mubr.msk.f32.gmra.mrb[100].mxu1 %vm4988_vm4, %v30735_v16  ;;  %25040 = vmatmul.mubr.msk.f32.gmra.mrb[50].mxu0 %vm1381_vm1, %v34493_v9  ;;  %v30902_v9 = vld [vmem:[#allocation4 + $0x91] sm:$0xff] }
 0x4b0   : > { %24471 = vmatprep.mubr.msk.f32.mxu1 %vm4988_vm4, %v30741_v49  ;;  %25042 = vmatprep.mubr.msk.f32.mxu0 %vm1381_vm1, %v34494_v50  ;;  %v30908_v50 = vld [vmem:[#allocation3 + $0x158] sm:$0xff] }
 0x4b3   : > { %24472 = vmatmul.mubr.msk.f32.gmra.mrb[102].mxu1 %vm4988_vm4, %v30747_v7  ;;  %25043 = vmatmul.mubr.msk.f32.gmra.mrb[52].mxu0 %vm1381_vm1, %v34495_v18  ;;  %v30910_v18 = vld [vmem:[#allocation4 + $0x99] sm:$0xff] }
 0x4b4   : > { %24474 = vmatprep.mubr.msk.f32.mxu1 %vm4988_vm4, %v30753_v45  ;;  %25045 = vmatprep.mubr.msk.f32.mxu0 %vm1381_vm1, %v34496_v11  ;;  %v30916_v11 = vld [vmem:[#allocation3 + $0x168] sm:$0xff] }
 0x4b7   : > { %24475 = vmatmul.mubr.msk.f32.gmra.mrb[104].mxu1 %vm4988_vm4, %v30759_v56  ;;  %25046 = vmatmul.mubr.msk.f32.gmra.mrb[54].mxu0 %vm1381_vm1, %v34497_v8  ;;  %v30918_v8 = vld [vmem:[#allocation4 + $0xa9] sm:$0xff] }
 0x4b8   : > { %24477 = vmatprep.mubr.msk.f32.mxu1 %vm4988_vm4, %v30765_v59  ;;  %25048 = vmatprep.mubr.msk.f32.mxu0 %vm1381_vm1, %v34498_v55  ;;  %v5792_v55 = vld [vmem:[#allocation3 + $0x4] sm:$0xff] }
 0x4bb   : > { %24478 = vmatmul.mubr.msk.f32.gmra.mrb[106].mxu1 %vm4988_vm4, %v30771_v23  ;;  %25049 = vmatmul.mubr.msk.f32.gmra.mrb[56].mxu0 %vm1381_vm1, %v34499_v44  ;;  %v30924_v44 = vld [vmem:[#allocation3 + $0x170] sm:$0xff] }
 0x4bc   : > { %24480 = vmatprep.mubr.msk.f32.mxu1 %vm4988_vm4, %v30777_v39  ;;  %25051 = vmatprep.mubr.msk.f32.mxu0 %vm1381_vm1, %v34500_v38  ;;  %v30926_v38 = vld [vmem:[#allocation4 + $0xb1] sm:$0xff] }
 0x4bd   : > { %34504 = vst [vmem:[#allocation51_spill] sm:$0xff] %v30926_v38 }
 0x4bf   : > { %24481 = vmatmul.mubr.msk.f32.gmra.mrb[108].mxu1 %vm4988_vm4, %v30783_v12  ;;  %25052 = vmatmul.mubr.msk.f32.gmra.mrb[58].mxu0 %vm1381_vm1, %v34501_v48  ;;  %v30932_v48 = vld [vmem:[#allocation4 + $0xc1] sm:$0xff] }
 0x4c0   : > { %24483 = vmatprep.mubr.msk.f32.mxu1 %vm4988_vm4, %v30789_v6  ;;  %25054 = vmatprep.mubr.msk.f32.mxu0 %vm1381_vm1, %v34502_v51  ;;  %34505 = vst [vmem:[#allocation52_spill] sm:$0xff] %v30932_v48  ;;  %v5793_v51 = vld [vmem:[#allocation3 + $0xc] sm:$0xff] }
 0x4c3   : > { %24484 = vmatmul.mubr.msk.f32.gmra.mrb[110].mxu1 %vm4988_vm4, %v30795_v34  ;;  %25055 = vmatmul.mubr.msk.f32.gmra.mrb[60].mxu0 %vm1381_vm1, %v34503_v3  ;;  %v30937_v3 = vld [vmem:[#allocation4 + $0xc9] sm:$0xff] }
 0x4c4   : > { %24486 = vmatprep.mubr.msk.f32.mxu1 %vm4988_vm4, %v30801_v5  ;;  %25057 = vmatprep.mubr.msk.f32.mxu0 %vm1381_vm1, %v30803_v37  ;;  %34506 = vst [vmem:[#allocation53_spill] sm:$0xff] %v30937_v3 }
 0x4c7   : > { %24487 = vmatmul.mubr.msk.f32.gmra.mrb[112].mxu1 %vm4988_vm4, %v30809_v2  ;;  %25058 = vmatmul.mubr.msk.f32.gmra.mrb[62].mxu0 %vm1381_vm1, %v30811_v20 }
 0x4c8   : > { %24489 = vmatprep.mubr.msk.f32.mxu1 %vm4988_vm4, %v30817_v52  ;;  %25062 = vmatprep.mubr.msk.f32.mxu0 %vm1381_vm1, %v10123_v40  ;;  %v5794_v40 = vld [vmem:[#allocation3 + $0x1c] sm:$0xff] }
 0x4cb   : > { %24490 = vmatmul.mubr.msk.f32.gmra.mrb[114].mxu1 %vm4988_vm4, %v30822_v0  ;;  %25063 = vmatmul.mubr.msk.f32.vlgmr.msra.gmra.mrb[32].mxu0 %vm1381_vm1, %v10124_v26  ;;  %v30942_v26 = vld [vmem:[%s34112_s7 + $0x20] sm:$0xff] }
 0x4cc   : > { %25111 = vmatpush3.msk.msra.mxu0 %vm1633_vm2, %v30633_v46  ;;  %24492 = vmatprep.mubr.msk.f32.mxu1 %vm4988_vm4, %v30832_v58  ;;  %v30852_v46 = vld [vmem:[#allocation3 + $0x108] sm:$0xff] }
 0x4cd   : > { %25065 = vmatprep.mubr.msk.f32.mxu0 %vm1381_vm1, %v30838_v22  ;;  %25160 = vmatprep.subr.msk.mxu0 %vm1633_vm2, %v30827_v29 }
 0x4cf   : > { %24493 = vmatmul.mubr.msk.f32.gmra.mrb[116].mxu1 %vm4988_vm4, %v30844_v57  ;;  %25066 = vmatmul.mubr.msk.f32.gmra.mrb[34].mxu0 %vm1381_vm1, %v30846_v33 }
 0x4d0   : > { %24495 = vmatprep.mubr.msk.f32.mxu1 %vm4988_vm4, %v30852_v46  ;;  %25068 = vmatprep.mubr.msk.f32.mxu0 %vm1381_vm1, %v30854_v61 }
 0x4d3   : > { %24496 = vmatmul.mubr.msk.f32.gmra.mrb[118].mxu1 %vm4988_vm4, %v30860_v30  ;;  %25069 = vmatmul.mubr.msk.f32.gmra.mrb[36].mxu0 %vm1381_vm1, %v30862_v41 }
 0x4d4   : > { %24498 = vmatprep.mubr.msk.f32.mxu1 %vm4988_vm4, %v30868_v1  ;;  %25071 = vmatprep.mubr.msk.f32.mxu0 %vm1381_vm1, %v30870_v24 }
 0x4d7   : > { %24499 = vmatmul.mubr.msk.f32.gmra.mrb[120].mxu1 %vm4988_vm4, %v30876_v27  ;;  %25072 = vmatmul.mubr.msk.f32.gmra.mrb[38].mxu0 %vm1381_vm1, %v30878_v13 }
 0x4d8   : > { %24501 = vmatprep.mubr.msk.f32.mxu1 %vm4988_vm4, %v30884_v25  ;;  %25074 = vmatprep.mubr.msk.f32.mxu0 %vm1381_vm1, %v30886_v28 }
 0x4db   : > { %24502 = vmatmul.mubr.msk.f32.gmra.mrb[122].mxu1 %vm4988_vm4, %v30892_v35  ;;  %25075 = vmatmul.mubr.msk.f32.gmra.mrb[40].mxu0 %vm1381_vm1, %v30894_v14 }
 0x4dc   : > { %24504 = vmatprep.mubr.msk.f32.mxu1 %vm4988_vm4, %v30900_v4  ;;  %25077 = vmatprep.mubr.msk.f32.mxu0 %vm1381_vm1, %v30902_v9 }
 0x4df   : > { %24505 = vmatmul.mubr.msk.f32.gmra.mrb[124].mxu1 %vm4988_vm4, %v30908_v50  ;;  %25078 = vmatmul.mubr.msk.f32.gmra.mrb[42].mxu0 %vm1381_vm1, %v30910_v18 }
 0x4e0   : > { %24507 = vmatprep.mubr.msk.f32.mxu1 %vm4988_vm4, %v30916_v11  ;;  %25080 = vmatprep.mubr.msk.f32.mxu0 %vm1381_vm1, %v30918_v8 }
 0x4e3   : > { %24508 = vmatmul.mubr.msk.f32.gmra.mrb[126].mxu1 %vm4988_vm4, %v30924_v44  ;;  %25081 = vmatmul.mubr.msk.f32.gmra.mrb[44].mxu0 %vm1381_vm1, %v30926_v38  ;;  %v30947_v38 = vld [vmem:[#allocation4 + $0xd9] sm:$0xff] }
 0x4e4   : > { %25083 = vmatprep.mubr.msk.f32.mxu0 %vm1381_vm1, %v30932_v48  ;;  %24512 = vmatprep.mubr.msk.f32.mxu1 %vm4988_vm4, %v5792_v55  ;;  %34507 = vst [vmem:[#allocation54_spill] sm:$0xff] %v30947_v38  ;;  %v5795_v55 = vld [vmem:[#allocation3 + $0x24] sm:$0xff] }
 0x4e5   : > { %v30954_v48 = vld [vmem:[#allocation4 + $0xe1] sm:$0xff] }
 0x4e6   : > { %34508 = vst [vmem:[#allocation55_spill] sm:$0xff] %v30954_v48 }
 0x4e7   : > { %24513 = vmatmul.mubr.msk.f32.vlgmr.msra.gmra.mrb[96].mxu1 %vm4988_vm4, %v5793_v51  ;;  %25084 = vmatmul.mubr.msk.f32.gmra.mrb[46].mxu0 %vm1381_vm1, %v30937_v3  ;;  %v30959_v51 = vld [vmem:[#allocation3 + $0x34] sm:$0xff] }
 0x4e8   : > { %25086 = vmatprep.mubr.msk.f32.mxu0 %vm1381_vm1, %v30947_v38  ;;  %24561 = vmatpush3.msra.mxu1 %v30716_v63  ;;  %34509 = vst [vmem:[#allocation56_spill] sm:$0xff] %v30959_v51  ;;  %v30961_v3 = vld [vmem:[#allocation4 + $0xf1] sm:$0xff]  ;;  %v30967_v63 = vld [vmem:[#allocation3 + $0x3c] sm:$0xff] }
 0x4e9   : > { %24515 = vmatprep.mubr.msk.f32.mxu1 %vm4988_vm4, %v5794_v40  ;;  %24610 = vmatprep.subr.mxu1 %v30942_v26  ;;  %34510 = vst [vmem:[#allocation57_spill] sm:$0xff] %v30961_v3  ;;  %34511 = vst [vmem:[#allocation58_spill] sm:$0xff] %v30967_v63  ;;  %v30969_v40 = vld [vmem:[#allocation4 + $0xf9] sm:$0xff]  ;;  %v30985_v38 = vld [vmem:[#allocation4 + $0x111] sm:$0xff] }
 0x4ea   : > { %34512 = vst [vmem:[#allocation59_spill] sm:$0xff] %v30969_v40  ;;  %34516 = vst [vmem:[#allocation63_spill] sm:$0xff] %v30985_v38 }
 0x4eb   : > { %24516 = vmatmul.mubr.msk.f32.gmra.mrb[98].mxu1 %vm4988_vm4, %v5795_v55  ;;  %25087 = vmatmul.mubr.msk.f32.gmra.mrb[48].mxu0 %vm1381_vm1, %v30954_v48  ;;  %v30975_v55 = vld [vmem:[#allocation3 + $0x4c] sm:$0xff] }
 0x4ec   : > { %24518 = vmatprep.mubr.msk.f32.mxu1 %vm4988_vm4, %v30959_v51  ;;  %25089 = vmatprep.mubr.msk.f32.mxu0 %vm1381_vm1, %v30961_v3  ;;  %34513 = vst [vmem:[#allocation60_spill] sm:$0xff] %v30975_v55  ;;  %v30977_v48 = vld [vmem:[#allocation4 + $0x109] sm:$0xff]  ;;  %v30983_v3 = vld [vmem:[#allocation3 + $0x54] sm:$0xff] }
 0x4ed   : > { %34514 = vst [vmem:[#allocation61_spill] sm:$0xff] %v30977_v48  ;;  %34515 = vst [vmem:[#allocation62_spill] sm:$0xff] %v30983_v3  ;;  %v31081_v51 = vld [vmem:[%s34114_s9 + $0x1c] sm:$0xf] }
 0x4ef   : > { %24519 = vmatmul.mubr.msk.f32.gmra.mrb[100].mxu1 %vm4988_vm4, %v30967_v63  ;;  %25090 = vmatmul.mubr.msk.f32.gmra.mrb[50].mxu0 %vm1381_vm1, %v30969_v40  ;;  %v30991_v40 = vld [vmem:[#allocation3 + $0x64] sm:$0xff] }
 0x4f0   : > { %24521 = vmatprep.mubr.msk.f32.mxu1 %vm4988_vm4, %v30975_v55  ;;  %25092 = vmatprep.mubr.msk.f32.mxu0 %vm1381_vm1, %v30977_v48  ;;  %34517 = vst [vmem:[#allocation64_spill] sm:$0xff] %v30991_v40  ;;  %v30993_v63 = vld [vmem:[#allocation4 + $0x121] sm:$0xff]  ;;  %v30999_v48 = vld [vmem:[#allocation3 + $0x6c] sm:$0xff] }
 0x4f1   : > { %34518 = vst [vmem:[#allocation65_spill] sm:$0xff] %v30993_v63  ;;  %34519 = vst [vmem:[#allocation66_spill] sm:$0xff] %v30999_v48  ;;  %v31001_v55 = vld [vmem:[#allocation4 + $0x129] sm:$0xff] }
 0x4f2   : > { %34520 = vst [vmem:[#allocation67_spill] sm:$0xff] %v31001_v55 }
 0x4f3   : > { %24522 = vmatmul.mubr.msk.f32.gmra.mrb[102].mxu1 %vm4988_vm4, %v30983_v3  ;;  %25093 = vmatmul.mubr.msk.f32.gmra.mrb[52].mxu0 %vm1381_vm1, %v30985_v38  ;;  %v31007_v38 = vld [vmem:[#allocation3 + $0x7c] sm:$0xff] }
 0x4f4   : > { %24524 = vmatprep.mubr.msk.f32.mxu1 %vm4988_vm4, %v30991_v40  ;;  %25095 = vmatprep.mubr.msk.f32.mxu0 %vm1381_vm1, %v30993_v63  ;;  %34521 = vst [vmem:[#allocation68_spill] sm:$0xff] %v31007_v38  ;;  %v31009_v3 = vld [vmem:[#allocation4 + $0x139] sm:$0xff]  ;;  %v31015_v63 = vld [vmem:[#allocation3 + $0x84] sm:$0xff] }
 0x4f5   : > { %34522 = vst [vmem:[#allocation69_spill] sm:$0xff] %v31009_v3  ;;  %34523 = vst [vmem:[#allocation70_spill] sm:$0xff] %v31015_v63  ;;  %v31017_v40 = vld [vmem:[#allocation4 + $0x141] sm:$0xff] }
 0x4f6   : > { %34524 = vst [vmem:[#allocation71_spill] sm:$0xff] %v31017_v40 }
 0x4f7   : > { %24525 = vmatmul.mubr.msk.f32.gmra.mrb[104].mxu1 %vm4988_vm4, %v30999_v48  ;;  %25096 = vmatmul.mubr.msk.f32.gmra.mrb[54].mxu0 %vm1381_vm1, %v31001_v55  ;;  %v31023_v55 = vld [vmem:[#allocation3 + $0x94] sm:$0xff] }
 0x4f8   : > { %24527 = vmatprep.mubr.msk.f32.mxu1 %vm4988_vm4, %v31007_v38  ;;  %25098 = vmatprep.mubr.msk.f32.mxu0 %vm1381_vm1, %v31009_v3  ;;  %34525 = vst [vmem:[#allocation72_spill] sm:$0xff] %v31023_v55  ;;  %v31025_v48 = vld [vmem:[#allocation4 + $0x151] sm:$0xff]  ;;  %v31031_v3 = vld [vmem:[#allocation3 + $0x9c] sm:$0xff] }
 0x4f9   : > { %34526 = vst [vmem:[#allocation73_spill] sm:$0xff] %v31025_v48  ;;  %34527 = vst [vmem:[#allocation74_spill] sm:$0xff] %v31031_v3  ;;  %v31033_v38 = vld [vmem:[#allocation4 + $0x159] sm:$0xff] }
 0x4fa   : > { %34528 = vst [vmem:[#allocation75_spill] sm:$0xff] %v31033_v38 }
 0x4fb   : > { %24528 = vmatmul.mubr.msk.f32.gmra.mrb[106].mxu1 %vm4988_vm4, %v31015_v63  ;;  %25099 = vmatmul.mubr.msk.f32.gmra.mrb[56].mxu0 %vm1381_vm1, %v31017_v40  ;;  %v31039_v40 = vld [vmem:[#allocation3 + $0xac] sm:$0xff] }
 0x4fc   : > { %24530 = vmatprep.mubr.msk.f32.mxu1 %vm4988_vm4, %v31023_v55  ;;  %25101 = vmatprep.mubr.msk.f32.mxu0 %vm1381_vm1, %v31025_v48  ;;  %34529 = vst [vmem:[#allocation76_spill] sm:$0xff] %v31039_v40  ;;  %v31041_v63 = vld [vmem:[#allocation4 + $0x169] sm:$0xff]  ;;  %v31047_v48 = vld [vmem:[#allocation3 + $0xb4] sm:$0xff] }
 0x4fd   : > { %34530 = vst [vmem:[#allocation78_spill] sm:$0xff] %v31041_v63  ;;  %34531 = vst [vmem:[#allocation77_spill] sm:$0xff] %v31047_v48  ;;  %v31049_v55 = vld [vmem:[#allocation4 + $0x171] sm:$0xff] }
 0x4fe   : > { %34532 = vst [vmem:[#allocation37_spill] sm:$0xff] %v31049_v55 }
 0x4ff   : > { %24531 = vmatmul.mubr.msk.f32.gmra.mrb[108].mxu1 %vm4988_vm4, %v31031_v3  ;;  %25102 = vmatmul.mubr.msk.f32.gmra.mrb[58].mxu0 %vm1381_vm1, %v31033_v38  ;;  %v31055_v38 = vld [vmem:[#allocation3 + $0xc4] sm:$0xff] }
 0x500   : > { %24533 = vmatprep.mubr.msk.f32.mxu1 %vm4988_vm4, %v31039_v40  ;;  %25104 = vmatprep.mubr.msk.f32.mxu0 %vm1381_vm1, %v31041_v63  ;;  %34533 = vst [vmem:[#allocation38_spill] sm:$0xff] %v31055_v38  ;;  %v31057_v3 = vld [vmem:[#allocation4 + $0x181] sm:$0xff]  ;;  %v31063_v63 = vld [vmem:[#allocation3 + $0xcc] sm:$0xff] }
 0x501   : > { %34534 = vst [vmem:[#allocation39_spill] sm:$0xff] %v31057_v3  ;;  %v31065_v40 = vld [vmem:[#allocation4 + $0x189] sm:$0xff] }
 0x502   : > { %34535 = vst [vmem:[#allocation40_spill] sm:$0xff] %v31065_v40 }
 0x503   : > { %24534 = vmatmul.mubr.msk.f32.gmra.mrb[110].mxu1 %vm4988_vm4, %v31047_v48  ;;  %25105 = vmatmul.mubr.msk.f32.gmra.mrb[60].mxu0 %vm1381_vm1, %v31049_v55  ;;  %v31071_v55 = vld [vmem:[#allocation3 + $0xdc] sm:$0xff] }
 0x504   : > { %24536 = vmatprep.mubr.msk.f32.mxu1 %vm4988_vm4, %v31055_v38  ;;  %25107 = vmatprep.mubr.msk.f32.mxu0 %vm1381_vm1, %v31057_v3  ;;  %34536 = vst [vmem:[#allocation41_spill] sm:$0xff] %v31071_v55  ;;  %v10513_v48 = vld [vmem:[#allocation4 + $0x1a] sm:$0xff]  ;;  %v31076_v38 = vld [vmem:[#allocation3 + $0xe4] sm:$0xff] }
 0x505   : > { %34537 = vst [vmem:[#allocation42_spill] sm:$0xff] %v31076_v38  ;;  %v10514_v3 = vld [vmem:[#allocation4 + $0x22] sm:$0xff] }
 0x507   : > { %24537 = vmatmul.mubr.msk.f32.gmra.mrb[112].mxu1 %vm4988_vm4, %v31063_v63  ;;  %25108 = vmatmul.mubr.msk.f32.gmra.mrb[62].mxu0 %vm1381_vm1, %v31065_v40  ;;  %v31086_v40 = vld [vmem:[#allocation3 + $0xf4] sm:$0xff] }
 0x508   : > { %24539 = vmatprep.mubr.msk.f32.mxu1 %vm4988_vm4, %v31071_v55  ;;  %25112 = vmatprep.mubr.msk.f32.mxu0 %vm1381_vm1, %v10513_v48  ;;  %34538 = vst [vmem:[#allocation43_spill] sm:$0xff] %v31086_v40  ;;  %v31092_v48 = vld [vmem:[#allocation4 + $0x32] sm:$0xff]  ;;  %v31098_v55 = vld [vmem:[#allocation3 + $0xfc] sm:$0xff] }
 0x509   : > { %34539 = vst [vmem:[#allocation44_spill] sm:$0xff] %v31092_v48  ;;  %34540 = vst [vmem:[#allocation45_spill] sm:$0xff] %v31098_v55 }
 0x50b   : > { %24540 = vmatmul.mubr.msk.f32.gmra.mrb[114].mxu1 %vm4988_vm4, %v31076_v38  ;;  %25113 = vmatmul.mubr.msk.f32.vlgmr.msra.gmra.mrb[32].mxu0 %vm1381_vm1, %v10514_v3  ;;  %v31100_v38 = vld [vmem:[#allocation4 + $0x3a] sm:$0xff]  ;;  %v31108_v3 = vld [vmem:[#allocation4 + $0x4a] sm:$0xff] }
 0x50c   : > { %25161 = vmatpush3.msk.msra.mxu0 %vm1633_vm2, %v30827_v29  ;;  %24542 = vmatprep.mubr.msk.f32.mxu1 %vm4988_vm4, %v31086_v40  ;;  %34541 = vst [vmem:[#allocation46_spill] sm:$0xff] %v31100_v38  ;;  %v31106_v29 = vld [vmem:[#allocation3 + $0x10c] sm:$0xff]  ;;  %34543 = vst [vmem:[#allocation48_spill] sm:$0xff] %v31108_v3 }
 0x50d   : > { %25115 = vmatprep.mubr.msk.f32.mxu0 %vm1381_vm1, %v31092_v48  ;;  %25210 = vmatprep.subr.msk.mxu0 %vm1633_vm2, %v31081_v51  ;;  %34542 = vst [vmem:[#allocation47_spill] sm:$0xff] %v31106_v29  ;;  %v31114_v48 = vld [vmem:[#allocation3 + $0x114] sm:$0xff] }
 0x50e   : > { %34544 = vst [vmem:[#allocation49_spill] sm:$0xff] %v31114_v48  ;;  %v31116_v40 = vld [vmem:[#allocation4 + $0x52] sm:$0xff] }
 0x50f   : > { %24543 = vmatmul.mubr.msk.f32.gmra.mrb[116].mxu1 %vm4988_vm4, %v31098_v55  ;;  %25116 = vmatmul.mubr.msk.f32.gmra.mrb[34].mxu0 %vm1381_vm1, %v31100_v38  ;;  %34545 = vst [vmem:[#allocation50_spill] sm:$0xff] %v31116_v40  ;;  %v31122_v38 = vld [vmem:[#allocation3 + $0x124] sm:$0xff] }
 0x510   : > { %24545 = vmatprep.mubr.msk.f32.mxu1 %vm4988_vm4, %v31106_v29  ;;  %25118 = vmatprep.mubr.msk.f32.mxu0 %vm1381_vm1, %v31108_v3  ;;  %34546 = vst [vmem:[#allocation79_spill] sm:$0xff] %v31122_v38  ;;  %v31124_v55 = vld [vmem:[#allocation4 + $0x62] sm:$0xff]  ;;  %v31130_v3 = vld [vmem:[#allocation3 + $0x12c] sm:$0xff] }
 0x511   : > { %34547 = vst [vmem:[#allocation80_spill] sm:$0xff] %v31124_v55  ;;  %34548 = vst [vmem:[#allocation81_spill] sm:$0xff] %v31130_v3  ;;  %v31132_v29 = vld [vmem:[#allocation4 + $0x6a] sm:$0xff] }
 0x512   : > { %34549 = vst [vmem:[#allocation82_spill] sm:$0xff] %v31132_v29 }
 0x513   : > { %24546 = vmatmul.mubr.msk.f32.gmra.mrb[118].mxu1 %vm4988_vm4, %v31114_v48  ;;  %25119 = vmatmul.mubr.msk.f32.gmra.mrb[36].mxu0 %vm1381_vm1, %v31116_v40  ;;  %v31138_v40 = vld [vmem:[#allocation3 + $0x13c] sm:$0xff] }
 0x514   : > { %24548 = vmatprep.mubr.msk.f32.mxu1 %vm4988_vm4, %v31122_v38  ;;  %25121 = vmatprep.mubr.msk.f32.mxu0 %vm1381_vm1, %v31124_v55  ;;  %34550 = vst [vmem:[#allocation83_spill] sm:$0xff] %v31138_v40  ;;  %v31140_v48 = vld [vmem:[#allocation4 + $0x7a] sm:$0xff]  ;;  %v31146_v55 = vld [vmem:[#allocation3 + $0x144] sm:$0xff] }
 0x515   : > { %34551 = vst [vmem:[#allocation84_spill] sm:$0xff] %v31140_v48  ;;  %34552 = vst [vmem:[#allocation85_spill] sm:$0xff] %v31146_v55  ;;  %v31148_v38 = vld [vmem:[#allocation4 + $0x82] sm:$0xff] }
 0x516   : > { %34553 = vst [vmem:[#allocation86_spill] sm:$0xff] %v31148_v38 }
 0x517   : > { %24549 = vmatmul.mubr.msk.f32.gmra.mrb[120].mxu1 %vm4988_vm4, %v31130_v3  ;;  %25122 = vmatmul.mubr.msk.f32.gmra.mrb[38].mxu0 %vm1381_vm1, %v31132_v29  ;;  %v31154_v29 = vld [vmem:[#allocation3 + $0x154] sm:$0xff] }
 0x518   : > { %24551 = vmatprep.mubr.msk.f32.mxu1 %vm4988_vm4, %v31138_v40  ;;  %25124 = vmatprep.mubr.msk.f32.mxu0 %vm1381_vm1, %v31140_v48  ;;  %34554 = vst [vmem:[#allocation87_spill] sm:$0xff] %v31154_v29  ;;  %v31156_v3 = vld [vmem:[#allocation4 + $0x92] sm:$0xff]  ;;  %v31162_v48 = vld [vmem:[#allocation3 + $0x15c] sm:$0xff] }
 0x519   : > { %34555 = vst [vmem:[#allocation88_spill] sm:$0xff] %v31156_v3  ;;  %v31164_v40 = vld [vmem:[#allocation4 + $0x9a] sm:$0xff] }
 0x51a   : > { %34556 = vst [vmem:[#allocation89_spill] sm:$0xff] %v31164_v40 }
 0x51b   : > { %24552 = vmatmul.mubr.msk.f32.gmra.mrb[122].mxu1 %vm4988_vm4, %v31146_v55  ;;  %25125 = vmatmul.mubr.msk.f32.gmra.mrb[40].mxu0 %vm1381_vm1, %v31148_v38  ;;  %v31170_v38 = vld [vmem:[#allocation3 + $0x16c] sm:$0xff] }
 0x51c   : > { %24554 = vmatprep.mubr.msk.f32.mxu1 %vm4988_vm4, %v31154_v29  ;;  %25127 = vmatprep.mubr.msk.f32.mxu0 %vm1381_vm1, %v31156_v3  ;;  %v31172_v55 = vld [vmem:[#allocation4 + $0xaa] sm:$0xff]  ;;  %v31178_v3 = vld [vmem:[#allocation3 + $0x174] sm:$0xff] }
 0x51d   : > { %34557 = vst [vmem:[#allocation90_spill] sm:$0xff] %v31172_v55  ;;  %v31180_v29 = vld [vmem:[#allocation4 + $0xb2] sm:$0xff] }
 0x51e   : > { %34558 = vst [vmem:[#allocation91_spill] sm:$0xff] %v31180_v29 }
 0x51f   : > { %24555 = vmatmul.mubr.msk.f32.gmra.mrb[124].mxu1 %vm4988_vm4, %v31162_v48  ;;  %25128 = vmatmul.mubr.msk.f32.gmra.mrb[42].mxu0 %vm1381_vm1, %v31164_v40  ;;  %v31186_v40 = vld [vmem:[#allocation4 + $0xc2] sm:$0xff] }
 0x520   : > { %24557 = vmatprep.mubr.msk.f32.mxu1 %vm4988_vm4, %v31170_v38  ;;  %25130 = vmatprep.mubr.msk.f32.mxu0 %vm1381_vm1, %v31172_v55  ;;  %v31196_v55 = vld [vmem:[#allocation4 + $0xda] sm:$0xff] }
 0x523   : > { %24558 = vmatmul.mubr.msk.f32.gmra.mrb[126].mxu1 %vm4988_vm4, %v31178_v3  ;;  %25131 = vmatmul.mubr.msk.f32.gmra.mrb[44].mxu0 %vm1381_vm1, %v31180_v29  ;;  %v31201_v29 = vld [vmem:[%s34112_s7 + $0x28] sm:$0xff] }
 0x524   : > { %24562 = vmatprep.mubr.msk.f32.mxu1 %vm4988_vm4, %v30729_v15  ;;  %25133 = vmatprep.mubr.msk.f32.mxu0 %vm1381_vm1, %v31186_v40  ;;  %v10914_v15 = vld [vmem:[#allocation4 + $0xa8] sm:$0xff] }
 0x527   : > { %24563 = vmatmul.mubr.msk.f32.vlgmr.msra.gmra.mrb[96].mxu1 %vm4988_vm4, %v30735_v16  ;;  %25134 = vmatmul.mubr.msk.f32.gmra.mrb[46].mxu0 %vm1381_vm1, %v30508_v32  ;;  %v31261_v32 = vld [vmem:[#allocation4 + $0x182] sm:$0xff] }
 0x528   : > { %24565 = vmatprep.mubr.msk.f32.mxu1 %vm4988_vm4, %v30741_v49  ;;  %25136 = vmatprep.mubr.msk.f32.mxu0 %vm1381_vm1, %v31196_v55  ;;  %v31317_v16 = vld [vmem:[#allocation3 + $0x188] sm:$0xff]  ;;  %v10915_v49 = vld [vmem:[#allocation4 + $0xb0] sm:$0xff] }
 0x529   : > { %24611 = vmatpush3.msra.mxu1 %v30942_v26  ;;  %v31377_v26 = vld [vmem:[#allocation3 + $0xaa] sm:$0xff] }
 0x52a   : > { %24660 = vmatprep.subr.mxu1 %v31201_v29 }
 0x52b   : > { %24566 = vmatmul.mubr.msk.f32.gmra.mrb[98].mxu1 %vm4988_vm4, %v30747_v7  ;;  %25137 = vmatmul.mubr.msk.f32.gmra.mrb[48].mxu0 %vm1381_vm1, %v30520_v53  ;;  %v31267_v53 = vld [vmem:[#allocation4 + $0x18a] sm:$0xff]  ;;  %v31322_v7 = vld [vmem:[#allocation3 + $0x198] sm:$0xff] }
 0x52c   : > { %24568 = vmatprep.mubr.msk.f32.mxu1 %vm4988_vm4, %v30753_v45  ;;  %25139 = vmatprep.mubr.msk.f32.mxu0 %vm1381_vm1, %v30526_v19  ;;  %v10904_v19 = vld [vmem:[#allocation4 + $0x30] sm:$0xff]  ;;  %v10916_v45 = vld [vmem:[#allocation4 + $0xc0] sm:$0xff] }
 0x52f   : > { %24569 = vmatmul.mubr.msk.f32.gmra.mrb[100].mxu1 %vm4988_vm4, %v30759_v56  ;;  %25140 = vmatmul.mubr.msk.f32.gmra.mrb[50].mxu0 %vm1381_vm1, %v30536_v21  ;;  %v10905_v21 = vld [vmem:[#allocation4 + $0x38] sm:$0xff]  ;;  %v31327_v56 = vld [vmem:[#allocation3 + $0x1a0] sm:$0xff] }
 0x530   : > { %24571 = vmatprep.mubr.msk.f32.mxu1 %vm4988_vm4, %v30765_v59  ;;  %25142 = vmatprep.mubr.msk.f32.mxu0 %vm1381_vm1, %v30542_v60  ;;  %v31279_v60 = vld [vmem:[%s34114_s9 + $0x20] sm:$0xf]  ;;  %v10917_v59 = vld [vmem:[#allocation4 + $0xc8] sm:$0xff] }
 0x533   : > { %24572 = vmatmul.mubr.msk.f32.gmra.mrb[102].mxu1 %vm4988_vm4, %v30771_v23  ;;  %25143 = vmatmul.mubr.msk.f32.gmra.mrb[52].mxu0 %vm1381_vm1, %v30552_v43  ;;  %v10906_v43 = vld [vmem:[#allocation4 + $0x48] sm:$0xff]  ;;  %v6566_v23 = vld [vmem:[#allocation3 + $0x32] sm:$0xff] }
 0x534   : > { %24574 = vmatprep.mubr.msk.f32.mxu1 %vm4988_vm4, %v30777_v39  ;;  %25145 = vmatprep.mubr.msk.f32.mxu0 %vm1381_vm1, %v30558_v36  ;;  %v10907_v36 = vld [vmem:[#allocation4 + $0x50] sm:$0xff]  ;;  %v10918_v39 = vld [vmem:[#allocation4 + $0xd8] sm:$0xff] }
 0x537   : > { %24575 = vmatmul.mubr.msk.f32.gmra.mrb[104].mxu1 %vm4988_vm4, %v30783_v12  ;;  %25146 = vmatmul.mubr.msk.f32.gmra.mrb[54].mxu0 %vm1381_vm1, %v30568_v42  ;;  %v10908_v42 = vld [vmem:[#allocation4 + $0x60] sm:$0xff] }
 0x538   : > { %24577 = vmatprep.mubr.msk.f32.mxu1 %vm4988_vm4, %v30789_v6  ;;  %25148 = vmatprep.mubr.msk.f32.mxu0 %vm1381_vm1, %v30574_v47  ;;  %v10909_v47 = vld [vmem:[#allocation4 + $0x68] sm:$0xff]  ;;  %v6567_v12 = vld [vmem:[#allocation3 + $0x3a] sm:$0xff] }
 0x539   : > { %v10919_v6 = vld [vmem:[#allocation4 + $0xe0] sm:$0xff] }
 0x53b   : > { %24578 = vmatmul.mubr.msk.f32.gmra.mrb[106].mxu1 %vm4988_vm4, %v30795_v34  ;;  %25149 = vmatmul.mubr.msk.f32.gmra.mrb[56].mxu0 %vm1381_vm1, %v30584_v62  ;;  %v10910_v62 = vld [vmem:[#allocation4 + $0x78] sm:$0xff]  ;;  %v6568_v34 = vld [vmem:[#allocation3 + $0x4a] sm:$0xff] }
 0x53c   : > { %24580 = vmatprep.mubr.msk.f32.mxu1 %vm4988_vm4, %v30801_v5  ;;  %25151 = vmatprep.mubr.msk.f32.mxu0 %vm1381_vm1, %v30590_v31  ;;  %v10911_v31 = vld [vmem:[#allocation4 + $0x80] sm:$0xff]  ;;  %v10920_v5 = vld [vmem:[#allocation4 + $0xf0] sm:$0xff] }
 0x53f   : > { %24581 = vmatmul.mubr.msk.f32.gmra.mrb[108].mxu1 %vm4988_vm4, %v30809_v2  ;;  %25152 = vmatmul.mubr.msk.f32.gmra.mrb[58].mxu0 %vm1381_vm1, %v30600_v54  ;;  %v10912_v54 = vld [vmem:[#allocation4 + $0x90] sm:$0xff]  ;;  %v31339_v2 = vld [vmem:[%s34112_s7 + $0x30] sm:$0xff] }
 0x540   : > { %24583 = vmatprep.mubr.msk.f32.mxu1 %vm4988_vm4, %v30817_v52  ;;  %25154 = vmatprep.mubr.msk.f32.mxu0 %vm1381_vm1, %v30606_v10  ;;  %v10913_v10 = vld [vmem:[#allocation4 + $0x98] sm:$0xff] }
 0x541   : > { %v6569_v52 = vld [vmem:[#allocation3 + $0x52] sm:$0xff] }
 0x543   : > { %24584 = vmatmul.mubr.msk.f32.gmra.mrb[110].mxu1 %vm4988_vm4, %v30822_v0  ;;  %25155 = vmatmul.mubr.msk.f32.gmra.mrb[60].mxu0 %vm1381_vm1, %v30616_v17  ;;  %v31312_v17 = vld [vmem:[#allocation3 + $0x180] sm:$0xff]  ;;  %v10921_v0 = vld [vmem:[#allocation4 + $0xf8] sm:$0xff] }
 0x544   : > { %24586 = vmatprep.mubr.msk.f32.mxu1 %vm4988_vm4, %v30832_v58  ;;  %25157 = vmatprep.mubr.msk.f32.mxu0 %vm1381_vm1, %v31261_v32  ;;  %v31347_v58 = vld [vmem:[#allocation3 + $0x62] sm:$0xff] }
 0x547   : > { %24587 = vmatmul.mubr.msk.f32.gmra.mrb[112].mxu1 %vm4988_vm4, %v30844_v57  ;;  %25158 = vmatmul.mubr.msk.f32.gmra.mrb[62].mxu0 %vm1381_vm1, %v31267_v53  ;;  %v10922_v57 = vld [vmem:[#allocation4 + $0x108] sm:$0xff] }
 0x548   : > { %24589 = vmatprep.mubr.msk.f32.mxu1 %vm4988_vm4, %v30852_v46  ;;  %25162 = vmatprep.mubr.msk.f32.mxu0 %vm1381_vm1, %v10904_v19  ;;  %v31352_v46 = vld [vmem:[#allocation3 + $0x6a] sm:$0xff]  ;;  %v10929_v19 = vld [vmem:[#allocation4 + $0x158] sm:$0xff] }
 0x54b   : > { %24590 = vmatmul.mubr.msk.f32.gmra.mrb[114].mxu1 %vm4988_vm4, %v30860_v30  ;;  %25163 = vmatmul.mubr.msk.f32.vlgmr.msra.gmra.mrb[32].mxu0 %vm1381_vm1, %v10905_v21  ;;  %v10923_v30 = vld [vmem:[#allocation4 + $0x110] sm:$0xff]  ;;  %v31387_v21 = vld [vmem:[#allocation3 + $0xc2] sm:$0xff] }
 0x54c   : > { %25211 = vmatpush3.msk.msra.mxu0 %vm1633_vm2, %v31081_v51  ;;  %24592 = vmatprep.mubr.msk.f32.mxu1 %vm4988_vm4, %v30868_v1  ;;  %v31357_v1 = vld [vmem:[#allocation3 + $0x7a] sm:$0xff]  ;;  %v10928_v51 = vld [vmem:[#allocation4 + $0x150] sm:$0xff] }
 0x54d   : > { %25165 = vmatprep.mubr.msk.f32.mxu0 %vm1381_vm1, %v10906_v43  ;;  %25260 = vmatprep.subr.msk.mxu0 %vm1633_vm2, %v31279_v60  ;;  %v10930_v43 = vld [vmem:[#allocation4 + $0x168] sm:$0xff] }
 0x54f   : > { %24593 = vmatmul.mubr.msk.f32.gmra.mrb[116].mxu1 %vm4988_vm4, %v30876_v27  ;;  %25166 = vmatmul.mubr.msk.f32.gmra.mrb[34].mxu0 %vm1381_vm1, %v10907_v36  ;;  %v10924_v27 = vld [vmem:[#allocation4 + $0x120] sm:$0xff]  ;;  %v31392_v36 = vld [vmem:[#allocation3 + $0xca] sm:$0xff] }
 0x550   : > { %24595 = vmatprep.mubr.msk.f32.mxu1 %vm4988_vm4, %v30884_v25  ;;  %25168 = vmatprep.mubr.msk.f32.mxu0 %vm1381_vm1, %v10908_v42  ;;  %v31362_v25 = vld [vmem:[#allocation3 + $0x82] sm:$0xff]  ;;  %v10931_v42 = vld [vmem:[#allocation4 + $0x170] sm:$0xff] }
 0x553   : > { %24596 = vmatmul.mubr.msk.f32.gmra.mrb[118].mxu1 %vm4988_vm4, %v30892_v35  ;;  %25169 = vmatmul.mubr.msk.f32.gmra.mrb[36].mxu0 %vm1381_vm1, %v10909_v47  ;;  %v10925_v35 = vld [vmem:[#allocation4 + $0x128] sm:$0xff]  ;;  %v31397_v47 = vld [vmem:[#allocation3 + $0xda] sm:$0xff] }
 0x554   : > { %24598 = vmatprep.mubr.msk.f32.mxu1 %vm4988_vm4, %v30900_v4  ;;  %25171 = vmatprep.mubr.msk.f32.mxu0 %vm1381_vm1, %v10910_v62  ;;  %v31367_v4 = vld [vmem:[#allocation3 + $0x92] sm:$0xff] }
 0x555   : > { %v10934_v62 = vld [vmem:[#allocation4 + $0x198] sm:$0xff] }
 0x557   : > { %24599 = vmatmul.mubr.msk.f32.gmra.mrb[120].mxu1 %vm4988_vm4, %v30908_v50  ;;  %25172 = vmatmul.mubr.msk.f32.gmra.mrb[38].mxu0 %vm1381_vm1, %v10911_v31  ;;  %v10926_v50 = vld [vmem:[#allocation4 + $0x138] sm:$0xff]  ;;  %v31403_v31 = vld [vmem:[#allocation3 + $0xe2] sm:$0xff] }
 0x558   : > { %24601 = vmatprep.mubr.msk.f32.mxu1 %vm4988_vm4, %v30916_v11  ;;  %25174 = vmatprep.mubr.msk.f32.mxu0 %vm1381_vm1, %v10912_v54  ;;  %v31372_v11 = vld [vmem:[#allocation3 + $0x9a] sm:$0xff]  ;;  %v31409_v54 = vld [vmem:[#allocation3 + $0xf2] sm:$0xff] }
 0x55b   : > { %24602 = vmatmul.mubr.msk.f32.gmra.mrb[122].mxu1 %vm4988_vm4, %v30924_v44  ;;  %25175 = vmatmul.mubr.msk.f32.gmra.mrb[40].mxu0 %vm1381_vm1, %v10913_v10  ;;  %v10927_v44 = vld [vmem:[#allocation4 + $0x140] sm:$0xff] }
 0x55c   : > { %24604 = vmatprep.mubr.msk.f32.mxu1 %vm4988_vm4, %v31312_v17  ;;  %25177 = vmatprep.mubr.msk.f32.mxu0 %vm1381_vm1, %v10914_v15  ;;  %v10935_v10 = vld [vmem:[#allocation4 + $0x1a0] sm:$0xff] }
 0x55d   : > { %v31414_v15 = vld [vmem:[#allocation3 + $0xfa] sm:$0xff] }
 0x55f   : > { %24605 = vmatmul.mubr.msk.f32.gmra.mrb[124].mxu1 %vm4988_vm4, %v31317_v16  ;;  %25178 = vmatmul.mubr.msk.f32.gmra.mrb[42].mxu0 %vm1381_vm1, %v10915_v49  ;;  %v31431_v49 = vld [vmem:[#allocation3 + $0x122] sm:$0xff] }
 0x560   : > { %24607 = vmatprep.mubr.msk.f32.mxu1 %vm4988_vm4, %v31322_v7  ;;  %25180 = vmatprep.mubr.msk.f32.mxu0 %vm1381_vm1, %v10916_v45  ;;  %v31493_v45 = vld [vmem:[#allocation3 + $0x19a] sm:$0xff] }
 0x563   : > { %24608 = vmatmul.mubr.msk.f32.gmra.mrb[126].mxu1 %vm4988_vm4, %v31327_v56  ;;  %25181 = vmatmul.mubr.msk.f32.gmra.mrb[44].mxu0 %vm1381_vm1, %v10917_v59  ;;  %v31499_v59 = vld [vmem:[#allocation3 + $0x1a2] sm:$0xff] }
 0x564   : > { %24612 = vmatprep.mubr.msk.f32.mxu1 %vm4988_vm4, %v6566_v23  ;;  %25183 = vmatprep.mubr.msk.f32.mxu0 %vm1381_vm1, %v10918_v39  ;;  %v34562_v23 = vld [vmem:[#allocation56_spill] sm:$0xff]  ;;  %v34563_v39 = vld [vmem:[#allocation54_spill] sm:$0xff] }
 0x567   : > { %24613 = vmatmul.mubr.msk.f32.vlgmr.msra.gmra.mrb[96].mxu1 %vm4988_vm4, %v6567_v12  ;;  %25184 = vmatmul.mubr.msk.f32.gmra.mrb[46].mxu0 %vm1381_vm1, %v10919_v6  ;;  %v34564_v12 = vld [vmem:[#allocation58_spill] sm:$0xff]  ;;  %v34565_v6 = vld [vmem:[#allocation55_spill] sm:$0xff] }
 0x568   : > { %24615 = vmatprep.mubr.msk.f32.mxu1 %vm4988_vm4, %v6568_v34  ;;  %25186 = vmatprep.mubr.msk.f32.mxu0 %vm1381_vm1, %v10920_v5  ;;  %v31516_v34 = vld [vmem:[%s34112_s7 + $0x38] sm:$0xff]  ;;  %v34566_v5 = vld [vmem:[#allocation60_spill] sm:$0xff] }
 0x569   : > { %24661 = vmatpush3.msra.mxu1 %v31201_v29  ;;  %v31382_v29 = vld [vmem:[#allocation3 + $0xb2] sm:$0xff] }
 0x56a   : > { %24710 = vmatprep.subr.mxu1 %v31339_v2 }
 0x56b   : > { %24616 = vmatmul.mubr.msk.f32.gmra.mrb[98].mxu1 %vm4988_vm4, %v6569_v52  ;;  %25187 = vmatmul.mubr.msk.f32.gmra.mrb[48].mxu0 %vm1381_vm1, %v10921_v0  ;;  %v34567_v52 = vld [vmem:[#allocation57_spill] sm:$0xff]  ;;  %v34568_v0 = vld [vmem:[#allocation62_spill] sm:$0xff] }
 0x56c   : > { %24618 = vmatprep.mubr.msk.f32.mxu1 %vm4988_vm4, %v31347_v58  ;;  %25189 = vmatprep.mubr.msk.f32.mxu0 %vm1381_vm1, %v10922_v57  ;;  %v34569_v57 = vld [vmem:[#allocation59_spill] sm:$0xff] }
 0x56f   : > { %24619 = vmatmul.mubr.msk.f32.gmra.mrb[100].mxu1 %vm4988_vm4, %v31352_v46  ;;  %25190 = vmatmul.mubr.msk.f32.gmra.mrb[50].mxu0 %vm1381_vm1, %v10923_v30  ;;  %v34570_v30 = vld [vmem:[#allocation64_spill] sm:$0xff] }
 0x570   : > { %24621 = vmatprep.mubr.msk.f32.mxu1 %vm4988_vm4, %v31357_v1  ;;  %25192 = vmatprep.mubr.msk.f32.mxu0 %vm1381_vm1, %v10924_v27  ;;  %v34571_v27 = vld [vmem:[#allocation61_spill] sm:$0xff] }
 0x573   : > { %24622 = vmatmul.mubr.msk.f32.gmra.mrb[102].mxu1 %vm4988_vm4, %v31362_v25  ;;  %25193 = vmatmul.mubr.msk.f32.gmra.mrb[52].mxu0 %vm1381_vm1, %v10925_v35  ;;  %v34572_v35 = vld [vmem:[#allocation66_spill] sm:$0xff] }
 0x574   : > { %24624 = vmatprep.mubr.msk.f32.mxu1 %vm4988_vm4, %v31367_v4  ;;  %25195 = vmatprep.mubr.msk.f32.mxu0 %vm1381_vm1, %v10926_v50  ;;  %v34573_v50 = vld [vmem:[#allocation63_spill] sm:$0xff] }
 0x577   : > { %24625 = vmatmul.mubr.msk.f32.gmra.mrb[104].mxu1 %vm4988_vm4, %v31372_v11  ;;  %25196 = vmatmul.mubr.msk.f32.gmra.mrb[54].mxu0 %vm1381_vm1, %v10927_v44  ;;  %v34575_v44 = vld [vmem:[#allocation65_spill] sm:$0xff] }
 0x578   : > { %24627 = vmatprep.mubr.msk.f32.mxu1 %vm4988_vm4, %v31377_v26  ;;  %25198 = vmatprep.mubr.msk.f32.mxu0 %vm1381_vm1, %v10928_v51  ;;  %v34576_v51 = vld [vmem:[#allocation70_spill] sm:$0xff] }
 0x57b   : > { %24628 = vmatmul.mubr.msk.f32.gmra.mrb[106].mxu1 %vm4988_vm4, %v31382_v29  ;;  %25199 = vmatmul.mubr.msk.f32.gmra.mrb[56].mxu0 %vm1381_vm1, %v10929_v19  ;;  %v34577_v19 = vld [vmem:[#allocation67_spill] sm:$0xff] }
 0x57c   : > { %24630 = vmatprep.mubr.msk.f32.mxu1 %vm4988_vm4, %v31387_v21  ;;  %25201 = vmatprep.mubr.msk.f32.mxu0 %vm1381_vm1, %v10930_v43  ;;  %v34578_v43 = vld [vmem:[#allocation72_spill] sm:$0xff] }
 0x57f   : > { %24631 = vmatmul.mubr.msk.f32.gmra.mrb[108].mxu1 %vm4988_vm4, %v31392_v36  ;;  %25202 = vmatmul.mubr.msk.f32.gmra.mrb[58].mxu0 %vm1381_vm1, %v10931_v42  ;;  %v34579_v42 = vld [vmem:[#allocation69_spill] sm:$0xff] }
 0x580   : > { %24633 = vmatprep.mubr.msk.f32.mxu1 %vm4988_vm4, %v31397_v47  ;;  %25204 = vmatprep.mubr.msk.f32.mxu0 %vm1381_vm1, %v30803_v37  ;;  %v31419_v37 = vld [vmem:[#allocation3 + $0x10a] sm:$0xff] }
 0x583   : > { %24634 = vmatmul.mubr.msk.f32.gmra.mrb[110].mxu1 %vm4988_vm4, %v31403_v31  ;;  %25205 = vmatmul.mubr.msk.f32.gmra.mrb[60].mxu0 %vm1381_vm1, %v30811_v20  ;;  %v31425_v20 = vld [vmem:[#allocation3 + $0x112] sm:$0xff] }
 0x584   : > { %24636 = vmatprep.mubr.msk.f32.mxu1 %vm4988_vm4, %v31409_v54  ;;  %25207 = vmatprep.mubr.msk.f32.mxu0 %vm1381_vm1, %v10934_v62  ;;  %v34580_v62 = vld [vmem:[#allocation74_spill] sm:$0xff] }
 0x587   : > { %24637 = vmatmul.mubr.msk.f32.gmra.mrb[112].mxu1 %vm4988_vm4, %v31414_v15  ;;  %25208 = vmatmul.mubr.msk.f32.gmra.mrb[62].mxu0 %vm1381_vm1, %v10935_v10  ;;  %v34581_v10 = vld [vmem:[#allocation71_spill] sm:$0xff] }
 0x588   : > { %24639 = vmatprep.mubr.msk.f32.mxu1 %vm4988_vm4, %v31419_v37  ;;  %25212 = vmatprep.mubr.msk.f32.mxu0 %vm1381_vm1, %v30838_v22  ;;  %v31439_v22 = vld [vmem:[#allocation3 + $0x12a] sm:$0xff] }
 0x58b   : > { %24640 = vmatmul.mubr.msk.f32.gmra.mrb[114].mxu1 %vm4988_vm4, %v31425_v20  ;;  %25213 = vmatmul.mubr.msk.f32.vlgmr.msra.gmra.mrb[32].mxu0 %vm1381_vm1, %v30846_v33  ;;  %v31445_v33 = vld [vmem:[#allocation3 + $0x13a] sm:$0xff] }
 0x58c   : > { %25261 = vmatpush3.msk.msra.mxu0 %vm1633_vm2, %v31279_v60  ;;  %24642 = vmatprep.mubr.msk.f32.mxu1 %vm4988_vm4, %v31431_v49  ;;  %v31451_v60 = vld [vmem:[#allocation3 + $0x142] sm:$0xff] }
 0x58d   : > { %25215 = vmatprep.mubr.msk.f32.mxu0 %vm1381_vm1, %v30854_v61  ;;  %v31457_v61 = vld [vmem:[#allocation3 + $0x152] sm:$0xff] }
 0x58f   : > { %24643 = vmatmul.mubr.msk.f32.gmra.mrb[116].mxu1 %vm4988_vm4, %v31439_v22  ;;  %25216 = vmatmul.mubr.msk.f32.gmra.mrb[34].mxu0 %vm1381_vm1, %v30862_v41  ;;  %v31463_v41 = vld [vmem:[#allocation3 + $0x15a] sm:$0xff] }
 0x590   : > { %24645 = vmatprep.mubr.msk.f32.mxu1 %vm4988_vm4, %v31445_v33  ;;  %25218 = vmatprep.mubr.msk.f32.mxu0 %vm1381_vm1, %v30870_v24  ;;  %v31469_v24 = vld [vmem:[#allocation3 + $0x16a] sm:$0xff] }
 0x593   : > { %24646 = vmatmul.mubr.msk.f32.gmra.mrb[118].mxu1 %vm4988_vm4, %v31451_v60  ;;  %25219 = vmatmul.mubr.msk.f32.gmra.mrb[36].mxu0 %vm1381_vm1, %v30878_v13  ;;  %v31475_v13 = vld [vmem:[#allocation3 + $0x172] sm:$0xff] }
 0x594   : > { %24648 = vmatprep.mubr.msk.f32.mxu1 %vm4988_vm4, %v31457_v61  ;;  %25221 = vmatprep.mubr.msk.f32.mxu0 %vm1381_vm1, %v30886_v28  ;;  %v31481_v28 = vld [vmem:[#allocation3 + $0x182] sm:$0xff] }
 0x597   : > { %24649 = vmatmul.mubr.msk.f32.gmra.mrb[120].mxu1 %vm4988_vm4, %v31463_v41  ;;  %25222 = vmatmul.mubr.msk.f32.gmra.mrb[38].mxu0 %vm1381_vm1, %v30894_v14  ;;  %v31487_v14 = vld [vmem:[#allocation3 + $0x18a] sm:$0xff] }
 0x598   : > { %24651 = vmatprep.mubr.msk.f32.mxu1 %vm4988_vm4, %v31469_v24  ;;  %25224 = vmatprep.mubr.msk.f32.mxu0 %vm1381_vm1, %v30902_v9  ;;  %v34559_v9 = vld [vmem:[#allocation51_spill] sm:$0xff] }
 0x59b   : > { %24652 = vmatmul.mubr.msk.f32.gmra.mrb[122].mxu1 %vm4988_vm4, %v31475_v13  ;;  %25225 = vmatmul.mubr.msk.f32.gmra.mrb[40].mxu0 %vm1381_vm1, %v30910_v18  ;;  %v34560_v18 = vld [vmem:[#allocation52_spill] sm:$0xff] }
 0x59c   : > { %24654 = vmatprep.mubr.msk.f32.mxu1 %vm4988_vm4, %v31481_v28  ;;  %25227 = vmatprep.mubr.msk.f32.mxu0 %vm1381_vm1, %v30918_v8  ;;  %v34561_v8 = vld [vmem:[#allocation53_spill] sm:$0xff] }
 0x59f   : > { %24655 = vmatmul.mubr.msk.f32.gmra.mrb[124].mxu1 %vm4988_vm4, %v31487_v14  ;;  %25228 = vmatmul.mubr.msk.f32.gmra.mrb[42].mxu0 %vm1381_vm1, %v34559_v9  ;;  %v34582_v9 = vld [vmem:[#allocation76_spill] sm:$0xff] }
 0x5a0   : > { %24657 = vmatprep.mubr.msk.f32.mxu1 %vm4988_vm4, %v31493_v45  ;;  %25230 = vmatprep.mubr.msk.f32.mxu0 %vm1381_vm1, %v34560_v18  ;;  %v34583_v18 = vld [vmem:[#allocation73_spill] sm:$0xff] }
 0x5a3   : > { %24658 = vmatmul.mubr.msk.f32.gmra.mrb[126].mxu1 %vm4988_vm4, %v31499_v59  ;;  %25231 = vmatmul.mubr.msk.f32.gmra.mrb[44].mxu0 %vm1381_vm1, %v34561_v8  ;;  %v34584_v8 = vld [vmem:[#allocation77_spill] sm:$0xff] }
 0x5a4   : > { %24662 = vmatprep.mubr.msk.f32.mxu1 %vm4988_vm4, %v34562_v23  ;;  %25233 = vmatprep.mubr.msk.f32.mxu0 %vm1381_vm1, %v34563_v39  ;;  %v34585_v23 = vld [vmem:[#allocation75_spill] sm:$0xff]  ;;  %v34586_v39 = vld [vmem:[#allocation38_spill] sm:$0xff] }
 0x5a7   : > { %24663 = vmatmul.mubr.msk.f32.vlgmr.msra.gmra.mrb[96].mxu1 %vm4988_vm4, %v34564_v12  ;;  %25234 = vmatmul.mubr.msk.f32.gmra.mrb[46].mxu0 %vm1381_vm1, %v34565_v6  ;;  %v34587_v12 = vld [vmem:[#allocation78_spill] sm:$0xff]  ;;  %v34588_v6 = vld [vmem:[#allocation37_spill] sm:$0xff] }
 0x5a8   : > { %24665 = vmatprep.mubr.msk.f32.mxu1 %vm4988_vm4, %v34566_v5  ;;  %25236 = vmatprep.mubr.msk.f32.mxu0 %vm1381_vm1, %v34567_v52  ;;  %v34589_v5 = vld [vmem:[#allocation41_spill] sm:$0xff]  ;;  %v34590_v52 = vld [vmem:[#allocation39_spill] sm:$0xff] }
 0x5a9   : > { %24711 = vmatpush3.msra.mxu1 %v31339_v2  ;;  %v34574_v2 = vld [vmem:[#allocation68_spill] sm:$0xff] }
 0x5aa   : > { %24760 = vmatprep.subr.mxu1 %v31516_v34 }
 0x5ab   : > { %24666 = vmatmul.mubr.msk.f32.gmra.mrb[98].mxu1 %vm4988_vm4, %v34568_v0  ;;  %25237 = vmatmul.mubr.msk.f32.gmra.mrb[48].mxu0 %vm1381_vm1, %v34569_v57  ;;  %v11324_v0 = vld [vmem:[#allocation4 + $0x199] sm:$0xff]  ;;  %v34591_v57 = vld [vmem:[#allocation42_spill] sm:$0xff] }
 0x5ac   : > { %24668 = vmatprep.mubr.msk.f32.mxu1 %vm4988_vm4, %v34570_v30  ;;  %25239 = vmatprep.mubr.msk.f32.mxu0 %vm1381_vm1, %v34571_v27  ;;  %v34592_v30 = vld [vmem:[#allocation40_spill] sm:$0xff]  ;;  %v34593_v27 = vld [vmem:[#allocation43_spill] sm:$0xff] }
 0x5af   : > { %24669 = vmatmul.mubr.msk.f32.gmra.mrb[100].mxu1 %vm4988_vm4, %v34572_v35  ;;  %25240 = vmatmul.mubr.msk.f32.gmra.mrb[50].mxu0 %vm1381_vm1, %v34573_v50  ;;  %v34594_v35 = vld [vmem:[#allocation45_spill] sm:$0xff]  ;;  %v34595_v50 = vld [vmem:[#allocation47_spill] sm:$0xff] }
 0x5b0   : > { %24671 = vmatprep.mubr.msk.f32.mxu1 %vm4988_vm4, %v34574_v2  ;;  %25242 = vmatprep.mubr.msk.f32.mxu0 %vm1381_vm1, %v34575_v44  ;;  %v34596_v2 = vld [vmem:[#allocation44_spill] sm:$0xff]  ;;  %v34597_v44 = vld [vmem:[#allocation49_spill] sm:$0xff] }
 0x5b3   : > { %24672 = vmatmul.mubr.msk.f32.gmra.mrb[102].mxu1 %vm4988_vm4, %v34576_v51  ;;  %25243 = vmatmul.mubr.msk.f32.gmra.mrb[52].mxu0 %vm1381_vm1, %v34577_v19  ;;  %v34598_v51 = vld [vmem:[#allocation46_spill] sm:$0xff]  ;;  %v34599_v19 = vld [vmem:[#allocation79_spill] sm:$0xff] }
 0x5b4   : > { %24674 = vmatprep.mubr.msk.f32.mxu1 %vm4988_vm4, %v34578_v43  ;;  %25245 = vmatprep.mubr.msk.f32.mxu0 %vm1381_vm1, %v34579_v42  ;;  %v34600_v43 = vld [vmem:[#allocation48_spill] sm:$0xff]  ;;  %v34601_v42 = vld [vmem:[#allocation81_spill] sm:$0xff] }
 0x5b7   : > { %24675 = vmatmul.mubr.msk.f32.gmra.mrb[104].mxu1 %vm4988_vm4, %v34580_v62  ;;  %25246 = vmatmul.mubr.msk.f32.gmra.mrb[54].mxu0 %vm1381_vm1, %v34581_v10  ;;  %v34602_v62 = vld [vmem:[#allocation50_spill] sm:$0xff]  ;;  %v34603_v10 = vld [vmem:[#allocation83_spill] sm:$0xff] }
 0x5b8   : > { %24677 = vmatprep.mubr.msk.f32.mxu1 %vm4988_vm4, %v34582_v9  ;;  %25248 = vmatprep.mubr.msk.f32.mxu0 %vm1381_vm1, %v34583_v18  ;;  %v34604_v9 = vld [vmem:[#allocation80_spill] sm:$0xff]  ;;  %v34605_v18 = vld [vmem:[#allocation85_spill] sm:$0xff] }
 0x5bb   : > { %24678 = vmatmul.mubr.msk.f32.gmra.mrb[106].mxu1 %vm4988_vm4, %v34584_v8  ;;  %25249 = vmatmul.mubr.msk.f32.gmra.mrb[56].mxu0 %vm1381_vm1, %v34585_v23  ;;  %v34606_v8 = vld [vmem:[#allocation82_spill] sm:$0xff]  ;;  %v34607_v23 = vld [vmem:[#allocation87_spill] sm:$0xff] }
 0x5bc   : > { %24680 = vmatprep.mubr.msk.f32.mxu1 %vm4988_vm4, %v34586_v39  ;;  %25251 = vmatprep.mubr.msk.f32.mxu0 %vm1381_vm1, %v34587_v12  ;;  %v34608_v39 = vld [vmem:[#allocation84_spill] sm:$0xff]  ;;  %v34609_v12 = vld [vmem:[#allocation86_spill] sm:$0xff] }
 0x5bf   : > { %24681 = vmatmul.mubr.msk.f32.gmra.mrb[108].mxu1 %vm4988_vm4, %v31063_v63  ;;  %25252 = vmatmul.mubr.msk.f32.gmra.mrb[58].mxu0 %vm1381_vm1, %v34588_v6  ;;  %v11325_v63 = vld [vmem:[#allocation4 + $0x1a1] sm:$0xff]  ;;  %v34610_v6 = vld [vmem:[#allocation88_spill] sm:$0xff] }
 0x5c0   : > { %24683 = vmatprep.mubr.msk.f32.mxu1 %vm4988_vm4, %v34589_v5  ;;  %25254 = vmatprep.mubr.msk.f32.mxu0 %vm1381_vm1, %v34590_v52  ;;  %v34611_v5 = vld [vmem:[#allocation89_spill] sm:$0xff] }
 0x5c1   : > { %v31622_v52 = vld [vmem:[#allocation3 + $0x184] sm:$0xff] }
 0x5c3   : > { %24684 = vmatmul.mubr.msk.f32.gmra.mrb[110].mxu1 %vm4988_vm4, %v34591_v57  ;;  %25255 = vmatmul.mubr.msk.f32.gmra.mrb[60].mxu0 %vm1381_vm1, %v34592_v30  ;;  %v31640_v57 = vld [vmem:[#allocation3 + $0x1a4] sm:$0xff] }
 0x5c4   : > { %24686 = vmatprep.mubr.msk.f32.mxu1 %vm4988_vm4, %v34593_v27  ;;  %25257 = vmatprep.mubr.msk.f32.mxu0 %vm1381_vm1, %v11324_v0  ;;  %v31628_v0 = vld [vmem:[#allocation3 + $0x18c] sm:$0xff]  ;;  %v7341_v27 = vld [vmem:[#allocation3 + $0x60] sm:$0xff] }
 0x5c5   : > { %v11697_v30 = vld [vmem:[#allocation4 + $0xca] sm:$0xff] }
 0x5c7   : > { %24687 = vmatmul.mubr.msk.f32.gmra.mrb[112].mxu1 %vm4988_vm4, %v34594_v35  ;;  %25258 = vmatmul.mubr.msk.f32.gmra.mrb[62].mxu0 %vm1381_vm1, %v11325_v63  ;;  %v7342_v63 = vld [vmem:[#allocation3 + $0x68] sm:$0xff] }
 0x5c8   : > { %24689 = vmatprep.mubr.msk.f32.mxu1 %vm4988_vm4, %v34595_v50  ;;  %25262 = vmatprep.mubr.msk.f32.mxu0 %vm1381_vm1, %v34596_v2  ;;  %v11699_v35 = vld [vmem:[#allocation4 + $0xe2] sm:$0xff]  ;;  %v11700_v50 = vld [vmem:[#allocation4 + $0xf2] sm:$0xff] }
 0x5c9   : > { %v31653_v2 = vld [vmem:[%s34112_s7 + $0x40] sm:$0xff] }
 0x5cb   : > { %24690 = vmatmul.mubr.msk.f32.gmra.mrb[114].mxu1 %vm4988_vm4, %v34597_v44  ;;  %25263 = vmatmul.mubr.msk.f32.vlgmr.msra.gmra.mrb[32].mxu0 %vm1381_vm1, %v34598_v51  ;;  %v11701_v44 = vld [vmem:[#allocation4 + $0xfa] sm:$0xff]  ;;  %v7345_v51 = vld [vmem:[#allocation3 + $0x90] sm:$0xff] }
 0x5cc   : > { %24692 = vmatprep.mubr.msk.f32.mxu1 %vm4988_vm4, %v34599_v19  ;;  %25265 = vmatprep.mubr.msk.f32.mxu0 %vm1381_vm1, %v34600_v43  ;;  %v11702_v19 = vld [vmem:[#allocation4 + $0x10a] sm:$0xff]  ;;  %v7346_v43 = vld [vmem:[#allocation3 + $0x98] sm:$0xff] }
 0x5cf   : > { %24693 = vmatmul.mubr.msk.f32.gmra.mrb[116].mxu1 %vm4988_vm4, %v34601_v42  ;;  %25266 = vmatmul.mubr.msk.f32.gmra.mrb[34].mxu0 %vm1381_vm1, %v34602_v62  ;;  %v11703_v42 = vld [vmem:[#allocation4 + $0x112] sm:$0xff]  ;;  %v11704_v62 = vld [vmem:[#allocation4 + $0x122] sm:$0xff] }
 0x5d0   : > { %24695 = vmatprep.mubr.msk.f32.mxu1 %vm4988_vm4, %v34603_v10  ;;  %25268 = vmatprep.mubr.msk.f32.mxu0 %vm1381_vm1, %v34604_v9  ;;  %v7348_v10 = vld [vmem:[#allocation3 + $0xb0] sm:$0xff] }
 0x5d1   : > { %v11705_v9 = vld [vmem:[#allocation4 + $0x12a] sm:$0xff] }
 0x5d3   : > { %24696 = vmatmul.mubr.msk.f32.gmra.mrb[118].mxu1 %vm4988_vm4, %v34605_v18  ;;  %25269 = vmatmul.mubr.msk.f32.gmra.mrb[36].mxu0 %vm1381_vm1, %v34606_v8  ;;  %v7349_v18 = vld [vmem:[#allocation3 + $0xc0] sm:$0xff] }
 0x5d4   : > { %24698 = vmatprep.mubr.msk.f32.mxu1 %vm4988_vm4, %v34607_v23  ;;  %25271 = vmatprep.mubr.msk.f32.mxu0 %vm1381_vm1, %v34608_v39  ;;  %v11706_v8 = vld [vmem:[#allocation4 + $0x13a] sm:$0xff]  ;;  %v7350_v23 = vld [vmem:[#allocation3 + $0xc8] sm:$0xff] }
 0x5d5   : > { %v11707_v39 = vld [vmem:[#allocation4 + $0x142] sm:$0xff] }
 0x5d7   : > { %24699 = vmatmul.mubr.msk.f32.gmra.mrb[120].mxu1 %vm4988_vm4, %v31162_v48  ;;  %25272 = vmatmul.mubr.msk.f32.gmra.mrb[38].mxu0 %vm1381_vm1, %v34609_v12  ;;  %v34612_v48 = vld [vmem:[#allocation90_spill] sm:$0xff]  ;;  %v7351_v12 = vld [vmem:[#allocation3 + $0xd8] sm:$0xff] }
 0x5d8   : > { %24701 = vmatprep.mubr.msk.f32.mxu1 %vm4988_vm4, %v31170_v38  ;;  %25274 = vmatprep.mubr.msk.f32.mxu0 %vm1381_vm1, %v34610_v6  ;;  %v34613_v38 = vld [vmem:[#allocation91_spill] sm:$0xff] }
 0x5d9   : > { %v11708_v6 = vld [vmem:[#allocation4 + $0x152] sm:$0xff] }
 0x5db   : > { %24702 = vmatmul.mubr.msk.f32.gmra.mrb[122].mxu1 %vm4988_vm4, %v31178_v3  ;;  %25275 = vmatmul.mubr.msk.f32.gmra.mrb[40].mxu0 %vm1381_vm1, %v34611_v5  ;;  %v31634_v3 = vld [vmem:[#allocation3 + $0x19c] sm:$0xff] }
 0x5dc   : > { %24704 = vmatprep.mubr.msk.f32.mxu1 %vm4988_vm4, %v31622_v52  ;;  %25277 = vmatprep.mubr.msk.f32.mxu0 %vm1381_vm1, %v34612_v48  ;;  %v7352_v5 = vld [vmem:[#allocation3 + $0xe0] sm:$0xff] }
 0x5dd   : > { %v11709_v48 = vld [vmem:[#allocation4 + $0x15a] sm:$0xff] }
 0x5df   : > { %24705 = vmatmul.mubr.msk.f32.gmra.mrb[124].mxu1 %vm4988_vm4, %v31628_v0  ;;  %25278 = vmatmul.mubr.msk.f32.gmra.mrb[42].mxu0 %vm1381_vm1, %v34613_v38  ;;  %v7353_v38 = vld [vmem:[#allocation3 + $0xf0] sm:$0xff] }
 0x5e0   : > { %24707 = vmatprep.mubr.msk.f32.mxu1 %vm4988_vm4, %v31634_v3  ;;  %25280 = vmatprep.mubr.msk.f32.mxu0 %vm1381_vm1, %v31186_v40  ;;  %v7343_v40 = vld [vmem:[#allocation3 + $0x78] sm:$0xff] }
 0x5e3   : > { %24708 = vmatmul.mubr.msk.f32.gmra.mrb[126].mxu1 %vm4988_vm4, %v31640_v57  ;;  %25281 = vmatmul.mubr.msk.f32.gmra.mrb[44].mxu0 %vm1381_vm1, %v11697_v30  ;;  %v11710_v30 = vld [vmem:[#allocation4 + $0x16a] sm:$0xff] }
 0x5e4   : > { %24712 = vmatprep.mubr.msk.f32.mxu1 %vm4988_vm4, %v7341_v27  ;;  %25283 = vmatprep.mubr.msk.f32.mxu0 %vm1381_vm1, %v31196_v55  ;;  %v7344_v55 = vld [vmem:[#allocation3 + $0x80] sm:$0xff]  ;;  %v7354_v27 = vld [vmem:[#allocation3 + $0xf8] sm:$0xff] }
 0x5e7   : > { %24713 = vmatmul.mubr.msk.f32.vlgmr.msra.gmra.mrb[96].mxu1 %vm4988_vm4, %v7342_v63  ;;  %25284 = vmatmul.mubr.msk.f32.gmra.mrb[46].mxu0 %vm1381_vm1, %v11699_v35  ;;  %v11711_v63 = vld [vmem:[#allocation4 + $0x172] sm:$0xff]  ;;  %v7355_v35 = vld [vmem:[#allocation3 + $0x108] sm:$0xff] }
 0x5e8   : > { %24715 = vmatprep.mubr.msk.f32.mxu1 %vm4988_vm4, %v7343_v40  ;;  %25286 = vmatprep.mubr.msk.f32.mxu0 %vm1381_vm1, %v11700_v50  ;;  %v11714_v40 = vld [vmem:[#allocation4 + $0x19a] sm:$0xff]  ;;  %v7356_v50 = vld [vmem:[#allocation3 + $0x110] sm:$0xff] }
 0x5e9   : > { %24761 = vmatpush3.msra.mxu1 %v31516_v34  ;;  %v7347_v34 = vld [vmem:[#allocation3 + $0xa8] sm:$0xff] }
 0x5ea   : > { %24810 = vmatprep.subr.mxu1 %v31653_v2 }
 0x5eb   : > { %24716 = vmatmul.mubr.msk.f32.gmra.mrb[98].mxu1 %vm4988_vm4, %v7344_v55  ;;  %25287 = vmatmul.mubr.msk.f32.gmra.mrb[48].mxu0 %vm1381_vm1, %v11701_v44  ;;  %v7357_v55 = vld [vmem:[#allocation3 + $0x120] sm:$0xff] }
 0x5ec   : > { %24718 = vmatprep.mubr.msk.f32.mxu1 %vm4988_vm4, %v7345_v51  ;;  %25289 = vmatprep.mubr.msk.f32.mxu0 %vm1381_vm1, %v11702_v19  ;;  %v11715_v44 = vld [vmem:[#allocation4 + $0x1a2] sm:$0xff]  ;;  %v7359_v19 = vld [vmem:[#allocation3 + $0x138] sm:$0xff] }
 0x5ed   : > { %v7358_v51 = vld [vmem:[#allocation3 + $0x128] sm:$0xff] }
 0x5ef   : > { %24719 = vmatmul.mubr.msk.f32.gmra.mrb[100].mxu1 %vm4988_vm4, %v7346_v43  ;;  %25290 = vmatmul.mubr.msk.f32.gmra.mrb[50].mxu0 %vm1381_vm1, %v11703_v42  ;;  %v7361_v43 = vld [vmem:[#allocation3 + $0x150] sm:$0xff]  ;;  %v7363_v42 = vld [vmem:[#allocation3 + $0x168] sm:$0xff] }
 0x5f0   : > { %24721 = vmatprep.mubr.msk.f32.mxu1 %vm4988_vm4, %v7347_v34  ;;  %25292 = vmatprep.mubr.msk.f32.mxu0 %vm1381_vm1, %v11704_v62  ;;  %v7364_v34 = vld [vmem:[#allocation3 + $0x170] sm:$0xff] }
 0x5f1   : > { %v7369_v62 = vld [vmem:[#allocation3 + $0x1b0] sm:$0xff] }
 0x5f3   : > { %24722 = vmatmul.mubr.msk.f32.gmra.mrb[102].mxu1 %vm4988_vm4, %v7348_v10  ;;  %25293 = vmatmul.mubr.msk.f32.gmra.mrb[52].mxu0 %vm1381_vm1, %v11705_v9  ;;  %v7370_v10 = vld [vmem:[#allocation3 + $0x1b8] sm:$0xff]  ;;  %v7371_v9 = vld [vmem:[#allocation3 + $0x1c8] sm:$0xff] }
 0x5f4   : > { %24724 = vmatprep.mubr.msk.f32.mxu1 %vm4988_vm4, %v7349_v18  ;;  %25295 = vmatprep.mubr.msk.f32.mxu0 %vm1381_vm1, %v11706_v8  ;;  %v7372_v18 = vld [vmem:[#allocation3 + $0x1d0] sm:$0xff]  ;;  %v8144_v8 = vld [vmem:[#allocation3 + $0x1bc] sm:$0xff] }
 0x5f7   : > { %24725 = vmatmul.mubr.msk.f32.gmra.mrb[104].mxu1 %vm4988_vm4, %v7350_v23  ;;  %25296 = vmatmul.mubr.msk.f32.gmra.mrb[54].mxu0 %vm1381_vm1, %v11707_v39  ;;  %v8145_v23 = vld [vmem:[#allocation3 + $0x1cc] sm:$0xff] }
 0x5f8   : > { %24727 = vmatprep.mubr.msk.f32.mxu1 %vm4988_vm4, %v7351_v12  ;;  %25298 = vmatprep.mubr.msk.f32.mxu0 %vm1381_vm1, %v11708_v6 }
 0x5fb   : > { %24728 = vmatmul.mubr.msk.f32.gmra.mrb[106].mxu1 %vm4988_vm4, %v7352_v5  ;;  %25299 = vmatmul.mubr.msk.f32.gmra.mrb[56].mxu0 %vm1381_vm1, %v11709_v48 }
 0x5fc   : > { %24730 = vmatprep.mubr.msk.f32.mxu1 %vm4988_vm4, %v7353_v38  ;;  %25301 = vmatprep.mubr.msk.f32.mxu0 %vm1381_vm1, %v11710_v30 }
 0x5ff   : > { %24731 = vmatmul.mubr.msk.f32.gmra.mrb[108].mxu1 %vm4988_vm4, %v7354_v27  ;;  %25302 = vmatmul.mubr.msk.f32.gmra.mrb[58].mxu0 %vm1381_vm1, %v11711_v63 }
 0x600   : > { %24733 = vmatprep.mubr.msk.f32.mxu1 %vm4988_vm4, %v7355_v35  ;;  %25304 = vmatprep.mubr.msk.f32.mxu0 %vm1381_vm1, %v31261_v32  ;;  %v7360_v32 = vld [vmem:[#allocation3 + $0x140] sm:$0xff] }
 0x603   : > { %24734 = vmatmul.mubr.msk.f32.gmra.mrb[110].mxu1 %vm4988_vm4, %v7356_v50  ;;  %25305 = vmatmul.mubr.msk.f32.gmra.mrb[60].mxu0 %vm1381_vm1, %v31267_v53  ;;  %v7362_v53 = vld [vmem:[#allocation3 + $0x158] sm:$0xff] }
 0x604   : > { %24736 = vmatprep.mubr.msk.f32.mxu1 %vm4988_vm4, %v7357_v55  ;;  %25307 = vmatprep.mubr.msk.f32.mxu0 %vm1381_vm1, %v11714_v40  ;;  %v31938_v55 = vld [vmem:[%s34116_s11 + $0x10] sm:$0x3f] }
 0x607   : > { %24737 = vmatmul.mubr.msk.f32.gmra.mrb[112].mxu1 %vm4988_vm4, %v7358_v51  ;;  %25308 = vmatmul.mubr.msk.f32.gmra.mrb[62].mxu0 %vm1381_vm1, %v11715_v44 }
 0x608   : > { %24739 = vmatprep.mubr.msk.f32.mxu1 %vm4988_vm4, %v7359_v19 }
 0x60b   : > { %24740 = vmatmul.mubr.msk.f32.gmra.mrb[114].mxu1 %vm4988_vm4, %v7360_v32 }
 0x60c   : > { %24742 = vmatprep.mubr.msk.f32.mxu1 %vm4988_vm4, %v7361_v43 }
 0x60f   : > { %24743 = vmatmul.mubr.msk.f32.gmra.mrb[116].mxu1 %vm4988_vm4, %v7362_v53 }
 0x610   : > { %24745 = vmatprep.mubr.msk.f32.mxu1 %vm4988_vm4, %v7363_v42 }
 0x613   : > { %24746 = vmatmul.mubr.msk.f32.gmra.mrb[118].mxu1 %vm4988_vm4, %v7364_v34 }
 0x614   : > { %24748 = vmatprep.mubr.msk.f32.mxu1 %vm4988_vm4, %v31312_v17  ;;  %v34614_v17 = vmov 0.0  }
 0x615   : > { %12151 = vst.msk [vmem:[#allocation5 + $0x20] sm:$0xff] %vm12145_vm6, %v34614_v17  ;;  %12146 = vst.msk [vmem:[#allocation5] sm:$0xff] %vm12145_vm6, %v34614_v17 }
 0x616   : > { %12152 = vst.msk [vmem:[#allocation5 + $0x28] sm:$0x3] %vm12148_vm7, %v34614_v17  ;;  %12149 = vst.msk [vmem:[#allocation5 + $0x10] sm:$0x3] %vm12148_vm7, %v34614_v17 }
 0x617   : > { %24749 = vmatmul.mubr.msk.f32.gmra.mrb[120].mxu1 %vm4988_vm4, %v31317_v16  ;;  %12147 = vst.msk [vmem:[#allocation5 + $0x8] sm:$0xff] %vm12145_vm6, %v34614_v17  ;;  %12150 = vst.msk [vmem:[#allocation5 + $0x18] sm:$0xff] %vm12145_vm6, %v34614_v17  ;;  %v21482_v16 = vld [vmem:[%s34116_s11 + $0x8] sm:$0x3f] }
 0x618   : > { %24751 = vmatprep.mubr.msk.f32.mxu1 %vm4988_vm4, %v31322_v7  ;;  %12153 = vst.msk [vmem:[#allocation5 + $0x30] sm:$0xff] %vm12145_vm6, %v34614_v17  ;;  %12154 = vst.msk [vmem:[#allocation5 + $0x38] sm:$0xff] %vm12145_vm6, %v34614_v17  ;;  %v7756_v7 = vld [vmem:[#allocation3 + $0x1b2] sm:$0xff] }
 0x619   : > { %12155 = vst.msk [vmem:[#allocation5 + $0x40] sm:$0x3] %vm12148_vm7, %v34614_v17  ;;  %12158 = vst.msk [vmem:[#allocation5 + $0x58] sm:$0x3] %vm12148_vm7, %v34614_v17 }
 0x61a   : > { %12156 = vst.msk [vmem:[#allocation5 + $0x48] sm:$0xff] %vm12145_vm6, %v34614_v17  ;;  %12157 = vst.msk [vmem:[#allocation5 + $0x50] sm:$0xff] %vm12145_vm6, %v34614_v17 }
 0x61b   : > { %24752 = vmatmul.mubr.msk.f32.gmra.mrb[122].mxu1 %vm4988_vm4, %v31327_v56  ;;  %12159 = vst.msk [vmem:[#allocation5 + $0x60] sm:$0xff] %vm12145_vm6, %v34614_v17  ;;  %12160 = vst.msk [vmem:[#allocation5 + $0x68] sm:$0xff] %vm12145_vm6, %v34614_v17  ;;  %v7757_v56 = vld [vmem:[#allocation3 + $0x1ba] sm:$0xff] }
 0x61c   : > { %24754 = vmatprep.mubr.msk.f32.mxu1 %vm4988_vm4, %v7369_v62  ;;  %12161 = vst.msk [vmem:[#allocation5 + $0x70] sm:$0x3] %vm12148_vm7, %v34614_v17  ;;  %12164 = vst.msk [vmem:[#allocation5 + $0x88] sm:$0x3] %vm12148_vm7, %v34614_v17 }
 0x61d   : > { %12162 = vst.msk [vmem:[#allocation5 + $0x78] sm:$0xff] %vm12145_vm6, %v34614_v17  ;;  %12163 = vst.msk [vmem:[#allocation5 + $0x80] sm:$0xff] %vm12145_vm6, %v34614_v17 }
 0x61e   : > { %12165 = vst.msk [vmem:[#allocation5 + $0x90] sm:$0xff] %vm12145_vm6, %v34614_v17  ;;  %12166 = vst.msk [vmem:[#allocation5 + $0x98] sm:$0xff] %vm12145_vm6, %v34614_v17  ;;  %v12267_v5 = vld [vmem:[#allocation5 + $0x1] sm:$0xff]  ;;  %v12268_v63 = vld [vmem:[#allocation5 + $0x9] sm:$0xff] }
 0x61f   : > { %24755 = vmatmul.mubr.msk.f32.gmra.mrb[124].mxu1 %vm4988_vm4, %v7370_v10  ;;  %12167 = vst.msk [vmem:[#allocation5 + $0xa0] sm:$0x3] %vm12148_vm7, %v34614_v17  ;;  %12170 = vst.msk [vmem:[#allocation5 + $0xb8] sm:$0x3] %vm12148_vm7, %v34614_v17 }
 0x620   : > { %24757 = vmatprep.mubr.msk.f32.mxu1 %vm4988_vm4, %v7371_v9  ;;  %12168 = vst.msk [vmem:[#allocation5 + $0xa8] sm:$0xff] %vm12145_vm6, %v34614_v17  ;;  %12169 = vst.msk [vmem:[#allocation5 + $0xb0] sm:$0xff] %vm12145_vm6, %v34614_v17 }
 0x621   : > { %12171 = vst.msk [vmem:[#allocation5 + $0xc0] sm:$0xff] %vm12145_vm6, %v34614_v17  ;;  %12172 = vst.msk [vmem:[#allocation5 + $0xc8] sm:$0xff] %vm12145_vm6, %v34614_v17 }
 0x622   : > { %12173 = vst.msk [vmem:[#allocation5 + $0xd0] sm:$0x3] %vm12148_vm7, %v34614_v17  ;;  %12176 = vst.msk [vmem:[#allocation5 + $0xe8] sm:$0x3] %vm12148_vm7, %v34614_v17 }
 0x623   : > { %12174 = vst.msk [vmem:[#allocation5 + $0xd8] sm:$0xff] %vm12145_vm6, %v34614_v17  ;;  %12175 = vst.msk [vmem:[#allocation5 + $0xe0] sm:$0xff] %vm12145_vm6, %v34614_v17  ;;  %24758 = vmatmul.mubr.msk.f32.gmra.mrb[126].mxu1 %vm4988_vm4, %v7372_v18 }
 0x624   : > { %12177 = vst.msk [vmem:[#allocation5 + $0xf0] sm:$0xff] %vm12145_vm6, %v34614_v17  ;;  %12178 = vst.msk [vmem:[#allocation5 + $0xf8] sm:$0xff] %vm12145_vm6, %v34614_v17  ;;  %24762 = vmatprep.mubr.msk.f32.mxu1 %vm4988_vm4, %v31347_v58  ;;  %v7758_v58 = vld [vmem:[#allocation3 + $0x1ca] sm:$0xff] }
 0x625   : > { %12179 = vst.msk [vmem:[#allocation5 + $0x100] sm:$0x3] %vm12148_vm7, %v34614_v17  ;;  %12182 = vst.msk [vmem:[#allocation5 + $0x118] sm:$0x3] %vm12148_vm7, %v34614_v17 }
 0x626   : > { %12180 = vst.msk [vmem:[#allocation5 + $0x108] sm:$0xff] %vm12145_vm6, %v34614_v17  ;;  %12181 = vst.msk [vmem:[#allocation5 + $0x110] sm:$0xff] %vm12145_vm6, %v34614_v17 }
 0x627   : > { %12183 = vst.msk [vmem:[#allocation5 + $0x120] sm:$0xff] %vm12145_vm6, %v34614_v17  ;;  %12184 = vst.msk [vmem:[#allocation5 + $0x128] sm:$0xff] %vm12145_vm6, %v34614_v17  ;;  %24763 = vmatmul.mubr.msk.f32.vlgmr.msra.gmra.mrb[96].mxu1 %vm4988_vm4, %v31352_v46  ;;  %v7759_v46 = vld [vmem:[#allocation3 + $0x1d2] sm:$0xff] }
 0x628   : > { %12185 = vst.msk [vmem:[#allocation5 + $0x130] sm:$0x3] %vm12148_vm7, %v34614_v17  ;;  %12188 = vst.msk [vmem:[#allocation5 + $0x148] sm:$0x3] %vm12148_vm7, %v34614_v17  ;;  %24765 = vmatprep.mubr.msk.f32.mxu1 %vm4988_vm4, %v31357_v1  ;;  %24811 = vmatpush3.msra.mxu1 %v31653_v2  ;;  %v8115_v1 = vld [vmem:[#allocation3 + $0x64] sm:$0xff] }
 0x629   : > { %12186 = vst.msk [vmem:[#allocation5 + $0x138] sm:$0xff] %vm12145_vm6, %v34614_v17  ;;  %12187 = vst.msk [vmem:[#allocation5 + $0x140] sm:$0xff] %vm12145_vm6, %v34614_v17  ;;  %25310 = vmatprep.subr.msk.mxu1 %vm12397_vm8, %v21482_v16  ;;  %v31923_v2 = vld [vmem:[#allocation15] ss:$0 sm:$0xff] }
 0x62a   : > { %12189 = vst.msk [vmem:[#allocation5 + $0x150] sm:$0xff] %vm12145_vm6, %v34614_v17  ;;  %12190 = vst.msk [vmem:[#allocation5 + $0x158] sm:$0xff] %vm12145_vm6, %v34614_v17 }
 0x62b   : > { %12191 = vst.msk [vmem:[#allocation5 + $0x160] sm:$0x3] %vm12148_vm7, %v34614_v17  ;;  %12194 = vst.msk [vmem:[#allocation5 + $0x178] sm:$0x3] %vm12148_vm7, %v34614_v17  ;;  %24766 = vmatmul.mubr.msk.f32.gmra.mrb[98].mxu1 %vm4988_vm4, %v31362_v25  ;;  %v8116_v25 = vld [vmem:[#allocation3 + $0x6c] sm:$0xff] }
 0x62c   : > { %12192 = vst.msk [vmem:[#allocation5 + $0x168] sm:$0xff] %vm12145_vm6, %v34614_v17  ;;  %12193 = vst.msk [vmem:[#allocation5 + $0x170] sm:$0xff] %vm12145_vm6, %v34614_v17  ;;  %24768 = vmatprep.mubr.msk.f32.mxu1 %vm4988_vm4, %v31367_v4  ;;  %v31886_v4 = vld [vmem:[%s34116_s11] sm:$0x3f] }
 0x62d   : > { %12195 = vst.msk [vmem:[#allocation5 + $0x180] sm:$0xff] %vm12145_vm6, %v34614_v17  ;;  %12196 = vst.msk [vmem:[#allocation5 + $0x188] sm:$0xff] %vm12145_vm6, %v34614_v17 }
 0x62e   : > { %12197 = vst.msk [vmem:[#allocation5 + $0x190] sm:$0x3] %vm12148_vm7, %v34614_v17  ;;  %12200 = vst.msk [vmem:[#allocation5 + $0x1a8] sm:$0x3] %vm12148_vm7, %v34614_v17 }
 0x62f   : > { %12198 = vst.msk [vmem:[#allocation5 + $0x198] sm:$0xff] %vm12145_vm6, %v34614_v17  ;;  %12199 = vst.msk [vmem:[#allocation5 + $0x1a0] sm:$0xff] %vm12145_vm6, %v34614_v17  ;;  %24769 = vmatmul.mubr.msk.f32.gmra.mrb[100].mxu1 %vm4988_vm4, %v31372_v11  ;;  %v8117_v11 = vld [vmem:[#allocation3 + $0x7c] sm:$0xff]  ;;  %v32258_v17 = vld [vmem:[%s34116_s11 + $0x20] sm:$0x3f] }
 0x630   : > { %24771 = vmatprep.mubr.msk.f32.mxu1 %vm4988_vm4, %v31377_v26  ;;  %v8118_v26 = vld [vmem:[#allocation3 + $0x84] sm:$0xff] }
 0x633   : > { %24772 = vmatmul.mubr.msk.f32.gmra.mrb[102].mxu1 %vm4988_vm4, %v31382_v29  ;;  %v8119_v29 = vld [vmem:[#allocation3 + $0x94] sm:$0xff] }
 0x634   : > { %24774 = vmatprep.mubr.msk.f32.mxu1 %vm4988_vm4, %v31387_v21  ;;  %v8120_v21 = vld [vmem:[#allocation3 + $0x9c] sm:$0xff] }
 0x637   : > { %24775 = vmatmul.mubr.msk.f32.gmra.mrb[104].mxu1 %vm4988_vm4, %v31392_v36  ;;  %v8121_v36 = vld [vmem:[#allocation3 + $0xac] sm:$0xff] }
 0x638   : > { %24777 = vmatprep.mubr.msk.f32.mxu1 %vm4988_vm4, %v31397_v47  ;;  %v8122_v47 = vld [vmem:[#allocation3 + $0xb4] sm:$0xff] }
 0x63b   : > { %24778 = vmatmul.mubr.msk.f32.gmra.mrb[106].mxu1 %vm4988_vm4, %v31403_v31  ;;  %v8123_v31 = vld [vmem:[#allocation3 + $0xc4] sm:$0xff] }
 0x63c   : > { %24780 = vmatprep.mubr.msk.f32.mxu1 %vm4988_vm4, %v31409_v54  ;;  %v8124_v54 = vld [vmem:[#allocation3 + $0xcc] sm:$0xff] }
 0x63f   : > { %24781 = vmatmul.mubr.msk.f32.gmra.mrb[108].mxu1 %vm4988_vm4, %v31414_v15  ;;  %v8125_v15 = vld [vmem:[#allocation3 + $0xdc] sm:$0xff] }
 0x640   : > { %24783 = vmatprep.mubr.msk.f32.mxu1 %vm4988_vm4, %v31419_v37  ;;  %v8126_v37 = vld [vmem:[#allocation3 + $0xe4] sm:$0xff] }
 0x643   : > { %24784 = vmatmul.mubr.msk.f32.gmra.mrb[110].mxu1 %vm4988_vm4, %v31425_v20  ;;  %v8127_v20 = vld [vmem:[#allocation3 + $0xf4] sm:$0xff] }
 0x644   : > { %24786 = vmatprep.mubr.msk.f32.mxu1 %vm4988_vm4, %v31431_v49  ;;  %v8128_v49 = vld [vmem:[#allocation3 + $0xfc] sm:$0xff] }
 0x647   : > { %24787 = vmatmul.mubr.msk.f32.gmra.mrb[112].mxu1 %vm4988_vm4, %v31439_v22  ;;  %v8129_v22 = vld [vmem:[#allocation3 + $0x10c] sm:$0xff] }
 0x648   : > { %24789 = vmatprep.mubr.msk.f32.mxu1 %vm4988_vm4, %v31445_v33  ;;  %v8130_v33 = vld [vmem:[#allocation3 + $0x114] sm:$0xff] }
 0x64b   : > { %24790 = vmatmul.mubr.msk.f32.gmra.mrb[114].mxu1 %vm4988_vm4, %v31451_v60  ;;  %v8131_v60 = vld [vmem:[#allocation3 + $0x124] sm:$0xff] }
 0x64c   : > { %24792 = vmatprep.mubr.msk.f32.mxu1 %vm4988_vm4, %v31457_v61  ;;  %v8132_v61 = vld [vmem:[#allocation3 + $0x12c] sm:$0xff] }
 0x64f   : > { %24793 = vmatmul.mubr.msk.f32.gmra.mrb[116].mxu1 %vm4988_vm4, %v31463_v41  ;;  %v8133_v41 = vld [vmem:[#allocation3 + $0x13c] sm:$0xff] }
 0x650   : > { %24795 = vmatprep.mubr.msk.f32.mxu1 %vm4988_vm4, %v31469_v24  ;;  %v8134_v24 = vld [vmem:[#allocation3 + $0x144] sm:$0xff] }
 0x653   : > { %24796 = vmatmul.mubr.msk.f32.gmra.mrb[118].mxu1 %vm4988_vm4, %v31475_v13  ;;  %v8135_v13 = vld [vmem:[#allocation3 + $0x154] sm:$0xff] }
 0x654   : > { %24798 = vmatprep.mubr.msk.f32.mxu1 %vm4988_vm4, %v31481_v28  ;;  %v8136_v28 = vld [vmem:[#allocation3 + $0x15c] sm:$0xff] }
 0x657   : > { %24799 = vmatmul.mubr.msk.f32.gmra.mrb[120].mxu1 %vm4988_vm4, %v31487_v14  ;;  %v8137_v14 = vld [vmem:[#allocation3 + $0x16c] sm:$0xff] }
 0x658   : > { %24801 = vmatprep.mubr.msk.f32.mxu1 %vm4988_vm4, %v31493_v45  ;;  %v8138_v45 = vld [vmem:[#allocation3 + $0x174] sm:$0xff] }
 0x65b   : > { %24802 = vmatmul.mubr.msk.f32.gmra.mrb[122].mxu1 %vm4988_vm4, %v31499_v59  ;;  %v8143_v59 = vld [vmem:[#allocation3 + $0x1b4] sm:$0xff] }
 0x65c   : > { %24804 = vmatprep.mubr.msk.f32.mxu1 %vm4988_vm4, %v7756_v7 }
 0x65f   : > { %24805 = vmatmul.mubr.msk.f32.gmra.mrb[124].mxu1 %vm4988_vm4, %v7757_v56 }
 0x660   : > { %24807 = vmatprep.mubr.msk.f32.mxu1 %vm4988_vm4, %v7758_v58 }
 0x663   : > { %24808 = vmatmul.mubr.msk.f32.gmra.mrb[126].mxu1 %vm4988_vm4, %v7759_v46 }
 0x664   : > { %24812 = vmatprep.mubr.msk.f32.mxu1 %vm4988_vm4, %v8115_v1 }
 0x667   : > { %24813 = vmatmul.mubr.msk.f32.vlgmr.msra.gmra.mrb[96].mxu1 %vm4988_vm4, %v8116_v25 }
 0x668   : > { %24815 = vmatprep.mubr.msk.f32.mxu1 %vm4988_vm4, %v8117_v11  ;;  %25311 = vmatpush3.msk.msra.mxu1 %vm12397_vm8, %v21482_v16 }
 0x669   : > { %25360 = vmatprep.subr.msk.mxu1 %vm12397_vm8, %v31886_v4 }
 0x66b   : > { %24816 = vmatmul.mubr.msk.f32.gmra.mrb[98].mxu1 %vm4988_vm4, %v8118_v26 }
 0x66c   : > { %24818 = vmatprep.mubr.msk.f32.mxu1 %vm4988_vm4, %v8119_v29 }
 0x66f   : > { %24819 = vmatmul.mubr.msk.f32.gmra.mrb[100].mxu1 %vm4988_vm4, %v8120_v21 }
 0x670   : > { %24821 = vmatprep.mubr.msk.f32.mxu1 %vm4988_vm4, %v8121_v36 }
 0x673   : > { %24822 = vmatmul.mubr.msk.f32.gmra.mrb[102].mxu1 %vm4988_vm4, %v8122_v47 }
 0x674   : > { %24824 = vmatprep.mubr.msk.f32.mxu1 %vm4988_vm4, %v8123_v31 }
 0x677   : > { %24825 = vmatmul.mubr.msk.f32.gmra.mrb[104].mxu1 %vm4988_vm4, %v8124_v54 }
 0x678   : > { %24827 = vmatprep.mubr.msk.f32.mxu1 %vm4988_vm4, %v8125_v15 }
 0x67b   : > { %24828 = vmatmul.mubr.msk.f32.gmra.mrb[106].mxu1 %vm4988_vm4, %v8126_v37 }
 0x67c   : > { %24830 = vmatprep.mubr.msk.f32.mxu1 %vm4988_vm4, %v8127_v20 }
 0x67f   : > { %24831 = vmatmul.mubr.msk.f32.gmra.mrb[108].mxu1 %vm4988_vm4, %v8128_v49 }
 0x680   : > { %24833 = vmatprep.mubr.msk.f32.mxu1 %vm4988_vm4, %v8129_v22 }
 0x683   : > { %24834 = vmatmul.mubr.msk.f32.gmra.mrb[110].mxu1 %vm4988_vm4, %v8130_v33 }
 0x684   : > { %24836 = vmatprep.mubr.msk.f32.mxu1 %vm4988_vm4, %v8131_v60 }
 0x687   : > { %24837 = vmatmul.mubr.msk.f32.gmra.mrb[112].mxu1 %vm4988_vm4, %v8132_v61 }
 0x688   : > { %24839 = vmatprep.mubr.msk.f32.mxu1 %vm4988_vm4, %v8133_v41 }
 0x68b   : > { %24840 = vmatmul.mubr.msk.f32.gmra.mrb[114].mxu1 %vm4988_vm4, %v8134_v24 }
 0x68c   : > { %24842 = vmatprep.mubr.msk.f32.mxu1 %vm4988_vm4, %v8135_v13 }
 0x68f   : > { %24843 = vmatmul.mubr.msk.f32.gmra.mrb[116].mxu1 %vm4988_vm4, %v8136_v28 }
 0x690   : > { %24845 = vmatprep.mubr.msk.f32.mxu1 %vm4988_vm4, %v8137_v14 }
 0x693   : > { %24846 = vmatmul.mubr.msk.f32.gmra.mrb[118].mxu1 %vm4988_vm4, %v8138_v45 }
 0x694   : > { %24848 = vmatprep.mubr.msk.f32.mxu1 %vm4988_vm4, %v31622_v52 }
 0x697   : > { %24849 = vmatmul.mubr.msk.f32.gmra.mrb[120].mxu1 %vm4988_vm4, %v31628_v0 }
 0x698   : > { %24851 = vmatprep.mubr.msk.f32.mxu1 %vm4988_vm4, %v31634_v3  ;;  %v8146_v3 = vld [vmem:[#allocation3 + $0x1d4] sm:$0xff] }
 0x69b   : > { %24852 = vmatmul.mubr.msk.f32.gmra.mrb[122].mxu1 %vm4988_vm4, %v31640_v57 }
 0x69c   : > { %24854 = vmatprep.mubr.msk.f32.mxu1 %vm4988_vm4, %v8143_v59 }
 0x69e   : > { %v25264_v39 = vpop.f32.mrb[32].mxu0 }
 0x69f   : > { %v12082_v12 = vadd.f32 %v25264_v39, %v31923_v2  ;;  %24855 = vmatmul.mubr.msk.f32.gmra.mrb[124].mxu1 %vm4988_vm4, %v8144_v8  ;;  %v11883_v52 = vpop.f32.mrb[33].mxu0 }
 0x6a0   : > { %v12081_v0 = vadd.f32 %v31923_v2, %v11883_v52  ;;  %24857 = vmatprep.mubr.msk.f32.mxu1 %vm4988_vm4, %v8145_v23 }
 0x6a1   : > { %v12114_v6 = vmax.f32 %v12082_v12, 0.0 }
 0x6a2   : > { %v12113_v57 = vmax.f32 %v12081_v0, 0.0  ;;  %v25267_v48 = vpop.f32.mrb[34].mxu0 }
 0x6a3   : > { %12203 = vst.msk [vmem:[#allocation5 + $0x21] sm:$0xff] %vm12145_vm6, %v12114_v6  ;;  %v12084_v38 = vadd.f32 %v25267_v48, %v31923_v2  ;;  %24858 = vmatmul.mubr.msk.f32.gmra.mrb[126].mxu1 %vm4988_vm4, %v8146_v3  ;;  %v11893_v30 = vpop.f32.mrb[35].mxu0 }
 0x6a4   : > { %12202 = vst.msk [vmem:[#allocation5 + $0x19] sm:$0xff] %vm12145_vm6, %v12113_v57  ;;  %v12083_v27 = vadd.f32 %v31923_v2, %v11893_v30  ;;  %25312 = vmatprep.mubr.msk.f32.mxu1 %vm12145_vm6, %v12267_v5 }
 0x6a5   : > { %v12116_v35 = vmax.f32 %v12084_v38, 0.0 }
 0x6a6   : > { %v12115_v40 = vmax.f32 %v12083_v27, 0.0  ;;  %v25270_v50 = vpop.f32.mrb[36].mxu0 }
 0x6a7   : > { %12205 = vst.msk [vmem:[#allocation5 + $0x39] sm:$0xff] %vm12145_vm6, %v12116_v35  ;;  %v12086_v44 = vadd.f32 %v25270_v50, %v31923_v2  ;;  %v11903_v51 = vpop.f32.mrb[37].mxu0  ;;  %25313 = vmatmul.mubr.msk.f32.vlgmr.msra.gmra.mrb[128].mxu1 %vm12145_vm6, %v12268_v63 }
 0x6a8   : > { %12204 = vst.msk [vmem:[#allocation5 + $0x31] sm:$0xff] %vm12145_vm6, %v12115_v40  ;;  %v12085_v19 = vadd.f32 %v31923_v2, %v11903_v51  ;;  %25361 = vmatpush3.msk.msra.mxu1 %vm12397_vm8, %v31886_v4 }
 0x6a9   : > { %v12118_v32 = vmax.f32 %v12086_v44, 0.0  ;;  %25410 = vmatprep.subr.msk.mxu1 %vm12397_vm8, %v31938_v55 }
 0x6aa   : > { %v12117_v43 = vmax.f32 %v12085_v19, 0.0  ;;  %v25273_v53 = vpop.f32.mrb[38].mxu0  ;;  %v31957_v9 = vld [vmem:[#allocation5 + $0x21] sm:$0xff] }
 0x6ab   : > { %12207 = vst.msk [vmem:[#allocation5 + $0x51] sm:$0xff] %vm12145_vm6, %v12118_v32  ;;  %v12088_v42 = vadd.f32 %v25273_v53, %v31923_v2  ;;  %v11913_v34 = vpop.f32.mrb[39].mxu0  ;;  %v31951_v62 = vld [vmem:[#allocation5 + $0x19] sm:$0xff] }
 0x6ac   : > { %12206 = vst.msk [vmem:[#allocation5 + $0x49] sm:$0xff] %vm12145_vm6, %v12117_v43  ;;  %v12087_v10 = vadd.f32 %v31923_v2, %v11913_v34  ;;  %25315 = vmatprep.mubr.msk.f32.mxu1 %vm12145_vm6, %v31951_v62 }
 0x6ad   : > { %v12120_v18 = vmax.f32 %v12088_v42, 0.0  ;;  %25316 = vmatmul.mubr.msk.f32.gmra.mrb[130].mxu1 %vm12145_vm6, %v31957_v9 }
 0x6ae   : > { %v12119_v16 = vmax.f32 %v12087_v10, 0.0  ;;  %v25276_v7 = vpop.f32.mrb[40].mxu0  ;;  %v31969_v25 = vld [vmem:[#allocation5 + $0x39] sm:$0xff] }
 0x6af   : > { %12209 = vst.msk [vmem:[#allocation5 + $0x69] sm:$0xff] %vm12145_vm6, %v12120_v18  ;;  %v12090_v56 = vadd.f32 %v25276_v7, %v31923_v2  ;;  %v11923_v58 = vpop.f32.mrb[41].mxu0  ;;  %v31963_v46 = vld [vmem:[#allocation5 + $0x31] sm:$0xff] }
 0x6b0   : > { %12208 = vst.msk [vmem:[#allocation5 + $0x61] sm:$0xff] %vm12145_vm6, %v12119_v16  ;;  %v12089_v1 = vadd.f32 %v31923_v2, %v11923_v58  ;;  %25318 = vmatprep.mubr.msk.f32.mxu1 %vm12145_vm6, %v31963_v46 }
 0x6b1   : > { %v12122_v4 = vmax.f32 %v12090_v56, 0.0  ;;  %25319 = vmatmul.mubr.msk.f32.gmra.mrb[132].mxu1 %vm12145_vm6, %v31969_v25 }
 0x6b2   : > { %v12121_v11 = vmax.f32 %v12089_v1, 0.0  ;;  %v25279_v26 = vpop.f32.mrb[42].mxu0  ;;  %v31981_v31 = vld [vmem:[#allocation5 + $0x51] sm:$0xff] }
 0x6b3   : > { %12211 = vst.msk [vmem:[#allocation5 + $0x81] sm:$0xff] %vm12145_vm6, %v12122_v4  ;;  %v12092_v29 = vadd.f32 %v25279_v26, %v31923_v2  ;;  %v11933_v21 = vpop.f32.mrb[43].mxu0  ;;  %v31975_v36 = vld [vmem:[#allocation5 + $0x49] sm:$0xff] }
 0x6b4   : > { %12210 = vst.msk [vmem:[#allocation5 + $0x79] sm:$0xff] %vm12145_vm6, %v12121_v11  ;;  %v12091_v47 = vadd.f32 %v31923_v2, %v11933_v21  ;;  %25321 = vmatprep.mubr.msk.f32.mxu1 %vm12145_vm6, %v31975_v36 }
 0x6b5   : > { %v12124_v54 = vmax.f32 %v12092_v29, 0.0  ;;  %25322 = vmatmul.mubr.msk.f32.gmra.mrb[134].mxu1 %vm12145_vm6, %v31981_v31 }
 0x6b6   : > { %v12123_v15 = vmax.f32 %v12091_v47, 0.0  ;;  %v25282_v37 = vpop.f32.mrb[44].mxu0  ;;  %v31993_v60 = vld [vmem:[#allocation5 + $0x69] sm:$0xff] }
 0x6b7   : > { %12213 = vst.msk [vmem:[#allocation5 + $0x99] sm:$0xff] %vm12145_vm6, %v12124_v54  ;;  %v12094_v20 = vadd.f32 %v25282_v37, %v31923_v2  ;;  %v11943_v49 = vpop.f32.mrb[45].mxu0  ;;  %v31987_v22 = vld [vmem:[#allocation5 + $0x61] sm:$0xff] }
 0x6b8   : > { %12212 = vst.msk [vmem:[#allocation5 + $0x91] sm:$0xff] %vm12145_vm6, %v12123_v15  ;;  %v12093_v33 = vadd.f32 %v31923_v2, %v11943_v49  ;;  %25324 = vmatprep.mubr.msk.f32.mxu1 %vm12145_vm6, %v31987_v22 }
 0x6b9   : > { %v12126_v61 = vmax.f32 %v12094_v20, 0.0  ;;  %25325 = vmatmul.mubr.msk.f32.gmra.mrb[136].mxu1 %vm12145_vm6, %v31993_v60 }
 0x6ba   : > { %v12125_v41 = vmax.f32 %v12093_v33, 0.0  ;;  %v25285_v24 = vpop.f32.mrb[46].mxu0  ;;  %v32005_v59 = vld [vmem:[#allocation5 + $0x81] sm:$0xff] }
 0x6bb   : > { %12215 = vst.msk [vmem:[#allocation5 + $0xb1] sm:$0xff] %vm12145_vm6, %v12126_v61  ;;  %v12096_v13 = vadd.f32 %v25285_v24, %v31923_v2  ;;  %v11953_v28 = vpop.f32.mrb[47].mxu0  ;;  %v31999_v14 = vld [vmem:[#allocation5 + $0x79] sm:$0xff] }
 0x6bc   : > { %12214 = vst.msk [vmem:[#allocation5 + $0xa9] sm:$0xff] %vm12145_vm6, %v12125_v41  ;;  %v12095_v45 = vadd.f32 %v31923_v2, %v11953_v28  ;;  %25327 = vmatprep.mubr.msk.f32.mxu1 %vm12145_vm6, %v31999_v14 }
 0x6bd   : > { %v12128_v8 = vmax.f32 %v12096_v13, 0.0  ;;  %25328 = vmatmul.mubr.msk.f32.gmra.mrb[138].mxu1 %vm12145_vm6, %v32005_v59 }
 0x6be   : > { %v12127_v23 = vmax.f32 %v12095_v45, 0.0  ;;  %v25288_v39 = vpop.f32.mrb[48].mxu0  ;;  %v32017_v6 = vld [vmem:[#allocation5 + $0x99] sm:$0xff] }
 0x6bf   : > { %12217 = vst.msk [vmem:[#allocation5 + $0xc9] sm:$0xff] %vm12145_vm6, %v12128_v8  ;;  %v12098_v12 = vadd.f32 %v25288_v39, %v31923_v2  ;;  %v11963_v52 = vpop.f32.mrb[49].mxu0  ;;  %v32011_v0 = vld [vmem:[#allocation5 + $0x91] sm:$0xff] }
 0x6c0   : > { %12216 = vst.msk [vmem:[#allocation5 + $0xc1] sm:$0xff] %vm12145_vm6, %v12127_v23  ;;  %v12097_v3 = vadd.f32 %v31923_v2, %v11963_v52  ;;  %25330 = vmatprep.mubr.msk.f32.mxu1 %vm12145_vm6, %v32011_v0 }
 0x6c1   : > { %v12130_v5 = vmax.f32 %v12098_v12, 0.0  ;;  %25331 = vmatmul.mubr.msk.f32.gmra.mrb[140].mxu1 %vm12145_vm6, %v32017_v6 }
 0x6c2   : > { %v12129_v57 = vmax.f32 %v12097_v3, 0.0  ;;  %v25291_v48 = vpop.f32.mrb[50].mxu0  ;;  %v32029_v35 = vld [vmem:[#allocation5 + $0xb1] sm:$0xff] }
 0x6c3   : > { %12219 = vst.msk [vmem:[#allocation5 + $0xe1] sm:$0xff] %vm12145_vm6, %v12130_v5  ;;  %v12100_v38 = vadd.f32 %v25291_v48, %v31923_v2  ;;  %v11973_v30 = vpop.f32.mrb[51].mxu0  ;;  %v32023_v27 = vld [vmem:[#allocation5 + $0xa9] sm:$0xff] }
 0x6c4   : > { %12218 = vst.msk [vmem:[#allocation5 + $0xd9] sm:$0xff] %vm12145_vm6, %v12129_v57  ;;  %v12099_v63 = vadd.f32 %v31923_v2, %v11973_v30  ;;  %25333 = vmatprep.mubr.msk.f32.mxu1 %vm12145_vm6, %v32023_v27 }
 0x6c5   : > { %v12132_v40 = vmax.f32 %v12100_v38, 0.0  ;;  %25334 = vmatmul.mubr.msk.f32.gmra.mrb[142].mxu1 %vm12145_vm6, %v32029_v35 }
 0x6c6   : > { %v12131_v50 = vmax.f32 %v12099_v63, 0.0  ;;  %v25294_v44 = vpop.f32.mrb[52].mxu0  ;;  %v32041_v53 = vld [vmem:[#allocation5 + $0xc9] sm:$0xff] }
 0x6c7   : > { %12221 = vst.msk [vmem:[#allocation5 + $0xf9] sm:$0xff] %vm12145_vm6, %v12132_v40  ;;  %v12102_v51 = vadd.f32 %v25294_v44, %v31923_v2  ;;  %v11983_v19 = vpop.f32.mrb[53].mxu0  ;;  %v32035_v32 = vld [vmem:[#allocation5 + $0xc1] sm:$0xff] }
 0x6c8   : > { %12220 = vst.msk [vmem:[#allocation5 + $0xf1] sm:$0xff] %vm12145_vm6, %v12131_v50  ;;  %v12101_v43 = vadd.f32 %v31923_v2, %v11983_v19  ;;  %25336 = vmatprep.mubr.msk.f32.mxu1 %vm12145_vm6, %v32035_v32 }
 0x6c9   : > { %v12134_v42 = vmax.f32 %v12102_v51, 0.0  ;;  %25337 = vmatmul.mubr.msk.f32.gmra.mrb[144].mxu1 %vm12145_vm6, %v32041_v53 }
 0x6ca   : > { %v12133_v34 = vmax.f32 %v12101_v43, 0.0  ;;  %v25297_v10 = vpop.f32.mrb[54].mxu0  ;;  %v32053_v58 = vld [vmem:[#allocation5 + $0xe1] sm:$0xff] }
 0x6cb   : > { %12223 = vst.msk [vmem:[#allocation5 + $0x111] sm:$0xff] %vm12145_vm6, %v12134_v42  ;;  %v12104_v18 = vadd.f32 %v25297_v10, %v31923_v2  ;;  %v11993_v16 = vpop.f32.mrb[55].mxu0  ;;  %v32047_v7 = vld [vmem:[#allocation5 + $0xd9] sm:$0xff] }
 0x6cc   : > { %12222 = vst.msk [vmem:[#allocation5 + $0x109] sm:$0xff] %vm12145_vm6, %v12133_v34  ;;  %v12103_v56 = vadd.f32 %v31923_v2, %v11993_v16  ;;  %25339 = vmatprep.mubr.msk.f32.mxu1 %vm12145_vm6, %v32047_v7  ;;  %v12234_v43 = vld [vmem:[#allocation5] sm:$0xff]  ;;  %v12235_v34 = vld [vmem:[#allocation5 + $0x8] sm:$0xff]  ;;  %v32127_v10 = vld [vmem:[%s34116_s11 + $0x18] sm:$0x3f] }
 0x6cd   : > { %v12136_v1 = vmax.f32 %v12104_v18, 0.0  ;;  %25340 = vmatmul.mubr.msk.f32.gmra.mrb[146].mxu1 %vm12145_vm6, %v32053_v58  ;;  %v32130_v18 = vld [vmem:[#allocation5 + $0x18] sm:$0xff]  ;;  %v32138_v16 = vld [vmem:[#allocation5 + $0x20] sm:$0xff] }
 0x6ce   : > { %v12135_v4 = vmax.f32 %v12103_v56, 0.0  ;;  %v25300_v11 = vpop.f32.mrb[56].mxu0  ;;  %v32065_v54 = vld [vmem:[#allocation5 + $0xf9] sm:$0xff]  ;;  %v32142_v56 = vld [vmem:[#allocation5 + $0x30] sm:$0xff] }
 0x6cf   : > { %12225 = vst.msk [vmem:[#allocation5 + $0x129] sm:$0xff] %vm12145_vm6, %v12136_v1  ;;  %v12106_v26 = vadd.f32 %v25300_v11, %v31923_v2  ;;  %v12003_v29 = vpop.f32.mrb[57].mxu0  ;;  %v32059_v21 = vld [vmem:[#allocation5 + $0xf1] sm:$0xff]  ;;  %v32158_v11 = vld [vmem:[#allocation5 + $0x60] sm:$0xff] }
 0x6d0   : > { %12224 = vst.msk [vmem:[#allocation5 + $0x121] sm:$0xff] %vm12145_vm6, %v12135_v4  ;;  %v12105_v47 = vadd.f32 %v31923_v2, %v12003_v29  ;;  %25342 = vmatprep.mubr.msk.f32.mxu1 %vm12145_vm6, %v32059_v21  ;;  %v32146_v1 = vld [vmem:[#allocation5 + $0x38] sm:$0xff]  ;;  %v32154_v4 = vld [vmem:[#allocation5 + $0x50] sm:$0xff] }
 0x6d1   : > { %v12138_v15 = vmax.f32 %v12106_v26, 0.0  ;;  %25343 = vmatmul.mubr.msk.f32.gmra.mrb[148].mxu1 %vm12145_vm6, %v32065_v54  ;;  %v32162_v26 = vld [vmem:[#allocation5 + $0x68] sm:$0xff]  ;;  %v32166_v29 = vld [vmem:[#allocation5 + $0x78] sm:$0xff] }
 0x6d2   : > { %v12137_v37 = vmax.f32 %v12105_v47, 0.0  ;;  %v25303_v20 = vpop.f32.mrb[58].mxu0  ;;  %v32077_v24 = vld [vmem:[#allocation5 + $0x111] sm:$0xff]  ;;  %v32170_v47 = vld [vmem:[#allocation5 + $0x80] sm:$0xff] }
 0x6d3   : > { %12227 = vst.msk [vmem:[#allocation5 + $0x141] sm:$0xff] %vm12145_vm6, %v12138_v15  ;;  %v12108_v49 = vadd.f32 %v25303_v20, %v31923_v2  ;;  %v12013_v33 = vpop.f32.mrb[59].mxu0  ;;  %v32071_v61 = vld [vmem:[#allocation5 + $0x109] sm:$0xff] }
 0x6d4   : > { %12226 = vst.msk [vmem:[#allocation5 + $0x139] sm:$0xff] %vm12145_vm6, %v12137_v37  ;;  %v12107_v41 = vadd.f32 %v31923_v2, %v12013_v33  ;;  %25345 = vmatprep.mubr.msk.f32.mxu1 %vm12145_vm6, %v32071_v61  ;;  %v32174_v15 = vld [vmem:[#allocation5 + $0x90] sm:$0xff]  ;;  %v32178_v37 = vld [vmem:[#allocation5 + $0x98] sm:$0xff]  ;;  %v32182_v20 = vld [vmem:[#allocation5 + $0xa8] sm:$0xff] }
 0x6d5   : > { %v12140_v13 = vmax.f32 %v12108_v49, 0.0  ;;  %25346 = vmatmul.mubr.msk.f32.gmra.mrb[150].mxu1 %vm12145_vm6, %v32077_v24  ;;  %v32186_v49 = vld [vmem:[#allocation5 + $0xb0] sm:$0xff]  ;;  %v32190_v33 = vld [vmem:[#allocation5 + $0xc0] sm:$0xff] }
 0x6d6   : > { %v12139_v28 = vmax.f32 %v12107_v41, 0.0  ;;  %v25306_v45 = vpop.f32.mrb[60].mxu0  ;;  %v32089_v52 = vld [vmem:[#allocation5 + $0x129] sm:$0xff] }
 0x6d7   : > { %12229 = vst.msk [vmem:[#allocation5 + $0x159] sm:$0xff] %vm12145_vm6, %v12140_v13  ;;  %v12110_v8 = vadd.f32 %v25306_v45, %v31923_v2  ;;  %v12023_v23 = vpop.f32.mrb[61].mxu0  ;;  %v32083_v39 = vld [vmem:[#allocation5 + $0x121] sm:$0xff]  ;;  %v32198_v13 = vld [vmem:[#allocation5 + $0xd8] sm:$0xff]  ;;  %v32206_v45 = vld [vmem:[#allocation5 + $0xf0] sm:$0xff] }
 0x6d8   : > { %12228 = vst.msk [vmem:[#allocation5 + $0x151] sm:$0xff] %vm12145_vm6, %v12139_v28  ;;  %v12109_v12 = vadd.f32 %v31923_v2, %v12023_v23  ;;  %25348 = vmatprep.mubr.msk.f32.mxu1 %vm12145_vm6, %v32083_v39  ;;  %v32194_v41 = vld [vmem:[#allocation5 + $0xc8] sm:$0xff]  ;;  %v32202_v28 = vld [vmem:[#allocation5 + $0xe0] sm:$0xff] }
 0x6d9   : > { %v12142_v3 = vmax.f32 %v12110_v8, 0.0  ;;  %25349 = vmatmul.mubr.msk.f32.gmra.mrb[152].mxu1 %vm12145_vm6, %v32089_v52  ;;  %v32210_v8 = vld [vmem:[#allocation5 + $0xf8] sm:$0xff]  ;;  %v32214_v23 = vld [vmem:[#allocation5 + $0x108] sm:$0xff] }
 0x6da   : > { %v12141_v5 = vmax.f32 %v12109_v12, 0.0  ;;  %v25309_v57 = vpop.f32.mrb[62].mxu0  ;;  %v32101_v40 = vld [vmem:[#allocation5 + $0x141] sm:$0xff]  ;;  %v32218_v12 = vld [vmem:[#allocation5 + $0x110] sm:$0xff] }
 0x6db   : > { %12231 = vst.msk [vmem:[#allocation5 + $0x171] sm:$0xff] %vm12145_vm6, %v12142_v3  ;;  %v12112_v48 = vadd.f32 %v25309_v57, %v31923_v2  ;;  %v12033_v38 = vpop.f32.mrb[63].mxu0  ;;  %v32095_v30 = vld [vmem:[#allocation5 + $0x139] sm:$0xff] }
 0x6dc   : > { %12230 = vst.msk [vmem:[#allocation5 + $0x169] sm:$0xff] %vm12145_vm6, %v12141_v5  ;;  %v12111_v63 = vadd.f32 %v31923_v2, %v12033_v38  ;;  %25351 = vmatprep.mubr.msk.f32.mxu1 %vm12145_vm6, %v32095_v30  ;;  %v32222_v3 = vld [vmem:[#allocation5 + $0x120] sm:$0xff]  ;;  %v32226_v5 = vld [vmem:[#allocation5 + $0x128] sm:$0xff]  ;;  %v32230_v57 = vld [vmem:[#allocation5 + $0x138] sm:$0xff] }
 0x6dd   : > { %v12144_v50 = vmax.f32 %v12112_v48, 0.0  ;;  %25352 = vmatmul.mubr.msk.f32.gmra.mrb[154].mxu1 %vm12145_vm6, %v32101_v40  ;;  %v32234_v48 = vld [vmem:[#allocation5 + $0x140] sm:$0xff] }
 0x6de   : > { %v12143_v44 = vmax.f32 %v12111_v63, 0.0  ;;  %v32111_v2 = vld [vmem:[#allocation5 + $0x159] sm:$0xff] }
 0x6df   : > { %12233 = vst.msk [vmem:[#allocation5 + $0x189] sm:$0xff] %vm12145_vm6, %v12144_v50  ;;  %v32106_v51 = vld [vmem:[#allocation5 + $0x151] sm:$0xff]  ;;  %34616 = vst [vmem:[#allocation52_spill] sm:$0xff] %v32111_v2 }
 0x6e0   : > { %34615 = vst [vmem:[#allocation51_spill] sm:$0xff] %v32106_v51  ;;  %12232 = vst.msk [vmem:[#allocation5 + $0x181] sm:$0xff] %vm12145_vm6, %v12143_v44  ;;  %25354 = vmatprep.mubr.msk.f32.mxu1 %vm12145_vm6, %v32106_v51  ;;  %v32238_v38 = vld [vmem:[#allocation5 + $0x150] sm:$0xff]  ;;  %v32242_v63 = vld [vmem:[#allocation5 + $0x158] sm:$0xff] }
 0x6e1   : > { %25355 = vmatmul.mubr.msk.f32.gmra.mrb[156].mxu1 %vm12145_vm6, %v32111_v2  ;;  %v12950_v44 = vld [vmem:[#allocation5 + $0x2] sm:$0xff] }
 0x6e2   : > { %v32119_v42 = vld [vmem:[#allocation5 + $0x171] sm:$0xff] }
 0x6e3   : > { %v32115_v19 = vld [vmem:[#allocation5 + $0x169] sm:$0xff]  ;;  %34618 = vst [vmem:[#allocation56_spill] sm:$0xff] %v32119_v42 }
 0x6e4   : > { %34617 = vst [vmem:[#allocation53_spill] sm:$0xff] %v32115_v19  ;;  %25357 = vmatprep.mubr.msk.f32.mxu1 %vm12145_vm6, %v32115_v19  ;;  %v32246_v50 = vld [vmem:[#allocation5 + $0x168] sm:$0xff]  ;;  %v32273_v19 = vld [vmem:[#allocation5 + $0x32] sm:$0xff] }
 0x6e5   : > { %25358 = vmatmul.mubr.msk.f32.gmra.mrb[158].mxu1 %vm12145_vm6, %v32119_v42  ;;  %v32261_v42 = vld [vmem:[#allocation5 + $0x1a] sm:$0xff]  ;;  %34621 = vst [vmem:[#allocation55_spill] sm:$0xff] %v32273_v19 }
 0x6e6   : > { %25362 = vmatprep.mubr.msk.f32.mxu1 %vm12145_vm6, %v12234_v43  ;;  %v32250_v43 = vld [vmem:[#allocation5 + $0x170] sm:$0xff]  ;;  %34619 = vst [vmem:[#allocation54_spill] sm:$0xff] %v32261_v42 }
 0x6e9   : > { %25363 = vmatmul.mubr.msk.f32.vlgmr.msra.gmra.mrb[128].mxu1 %vm12145_vm6, %v12235_v34  ;;  %v12951_v34 = vld [vmem:[#allocation5 + $0xa] sm:$0xff] }
 0x6ea   : > { %25411 = vmatpush3.msk.msra.mxu1 %vm12397_vm8, %v31938_v55  ;;  %25365 = vmatprep.mubr.msk.f32.mxu1 %vm12145_vm6, %v32130_v18  ;;  %v32150_v55 = vld [vmem:[#allocation5 + $0x48] sm:$0xff] }
 0x6eb   : > { %25460 = vmatprep.subr.msk.mxu1 %vm12397_vm8, %v32127_v10 }
 0x6ed   : > { %25366 = vmatmul.mubr.msk.f32.gmra.mrb[130].mxu1 %vm12145_vm6, %v32138_v16 }
 0x6ee   : > { %25368 = vmatprep.mubr.msk.f32.mxu1 %vm12145_vm6, %v32142_v56 }
 0x6f1   : > { %25369 = vmatmul.mubr.msk.f32.gmra.mrb[132].mxu1 %vm12145_vm6, %v32146_v1 }
 0x6f2   : > { %25371 = vmatprep.mubr.msk.f32.mxu1 %vm12145_vm6, %v32150_v55 }
 0x6f5   : > { %25372 = vmatmul.mubr.msk.f32.gmra.mrb[134].mxu1 %vm12145_vm6, %v32154_v4 }
 0x6f6   : > { %25374 = vmatprep.mubr.msk.f32.mxu1 %vm12145_vm6, %v32158_v11 }
 0x6f9   : > { %25375 = vmatmul.mubr.msk.f32.gmra.mrb[136].mxu1 %vm12145_vm6, %v32162_v26 }
 0x6fa   : > { %25377 = vmatprep.mubr.msk.f32.mxu1 %vm12145_vm6, %v32166_v29 }
 0x6fd   : > { %25378 = vmatmul.mubr.msk.f32.gmra.mrb[138].mxu1 %vm12145_vm6, %v32170_v47 }
 0x6fe   : > { %25380 = vmatprep.mubr.msk.f32.mxu1 %vm12145_vm6, %v32174_v15 }
 0x701   : > { %25381 = vmatmul.mubr.msk.f32.gmra.mrb[140].mxu1 %vm12145_vm6, %v32178_v37 }
 0x702   : > { %25383 = vmatprep.mubr.msk.f32.mxu1 %vm12145_vm6, %v32182_v20 }
 0x705   : > { %25384 = vmatmul.mubr.msk.f32.gmra.mrb[142].mxu1 %vm12145_vm6, %v32186_v49 }
 0x706   : > { %25386 = vmatprep.mubr.msk.f32.mxu1 %vm12145_vm6, %v32190_v33 }
 0x709   : > { %25387 = vmatmul.mubr.msk.f32.gmra.mrb[144].mxu1 %vm12145_vm6, %v32194_v41 }
 0x70a   : > { %25389 = vmatprep.mubr.msk.f32.mxu1 %vm12145_vm6, %v32198_v13 }
 0x70d   : > { %25390 = vmatmul.mubr.msk.f32.gmra.mrb[146].mxu1 %vm12145_vm6, %v32202_v28 }
 0x70e   : > { %25392 = vmatprep.mubr.msk.f32.mxu1 %vm12145_vm6, %v32206_v45 }
 0x711   : > { %25393 = vmatmul.mubr.msk.f32.gmra.mrb[148].mxu1 %vm12145_vm6, %v32210_v8 }
 0x712   : > { %25395 = vmatprep.mubr.msk.f32.mxu1 %vm12145_vm6, %v32214_v23 }
 0x715   : > { %25396 = vmatmul.mubr.msk.f32.gmra.mrb[150].mxu1 %vm12145_vm6, %v32218_v12 }
 0x716   : > { %25398 = vmatprep.mubr.msk.f32.mxu1 %vm12145_vm6, %v32222_v3 }
 0x719   : > { %25399 = vmatmul.mubr.msk.f32.gmra.mrb[152].mxu1 %vm12145_vm6, %v32226_v5 }
 0x71a   : > { %25401 = vmatprep.mubr.msk.f32.mxu1 %vm12145_vm6, %v32230_v57 }
 0x71d   : > { %25402 = vmatmul.mubr.msk.f32.gmra.mrb[154].mxu1 %vm12145_vm6, %v32234_v48 }
 0x71e   : > { %25404 = vmatprep.mubr.msk.f32.mxu1 %vm12145_vm6, %v32238_v38 }
 0x721   : > { %25405 = vmatmul.mubr.msk.f32.gmra.mrb[156].mxu1 %vm12145_vm6, %v32242_v63 }
 0x722   : > { %25407 = vmatprep.mubr.msk.f32.mxu1 %vm12145_vm6, %v32246_v50 }
 0x725   : > { %25408 = vmatmul.mubr.msk.f32.gmra.mrb[158].mxu1 %vm12145_vm6, %v32250_v43 }
 0x726   : > { %25412 = vmatprep.mubr.msk.f32.mxu1 %vm12145_vm6, %v12950_v44  ;;  %v32269_v44 = vld [vmem:[#allocation5 + $0x22] sm:$0xff] }
 0x727   : > { %34620 = vst [vmem:[#allocation58_spill] sm:$0xff] %v32269_v44 }
 0x729   : > { %25413 = vmatmul.mubr.msk.f32.vlgmr.msra.gmra.mrb[128].mxu1 %vm12145_vm6, %v12951_v34  ;;  %v32277_v34 = vld [vmem:[#allocation5 + $0x3a] sm:$0xff] }
 0x72a   : > { %25461 = vmatpush3.msk.msra.mxu1 %vm12397_vm8, %v32127_v10  ;;  %25415 = vmatprep.mubr.msk.f32.mxu1 %vm12145_vm6, %v32261_v42  ;;  %34622 = vst [vmem:[#allocation60_spill] sm:$0xff] %v32277_v34  ;;  %v32281_v10 = vld [vmem:[#allocation5 + $0x4a] sm:$0xff]  ;;  %v32285_v42 = vld [vmem:[#allocation5 + $0x52] sm:$0xff] }
 0x72b   : > { %25510 = vmatprep.subr.msk.mxu1 %vm12397_vm8, %v32258_v17  ;;  %34623 = vst [vmem:[#allocation57_spill] sm:$0xff] %v32281_v10  ;;  %34624 = vst [vmem:[#allocation62_spill] sm:$0xff] %v32285_v42 }
 0x72d   : > { %25416 = vmatmul.mubr.msk.f32.gmra.mrb[130].mxu1 %vm12145_vm6, %v32269_v44  ;;  %v32289_v44 = vld [vmem:[#allocation5 + $0x62] sm:$0xff] }
 0x72e   : > { %25418 = vmatprep.mubr.msk.f32.mxu1 %vm12145_vm6, %v32273_v19  ;;  %34625 = vst [vmem:[#allocation59_spill] sm:$0xff] %v32289_v44  ;;  %v32293_v19 = vld [vmem:[#allocation5 + $0x6a] sm:$0xff] }
 0x72f   : > { %34626 = vst [vmem:[#allocation64_spill] sm:$0xff] %v32293_v19 }
 0x731   : > { %25419 = vmatmul.mubr.msk.f32.gmra.mrb[132].mxu1 %vm12145_vm6, %v32277_v34  ;;  %v32297_v34 = vld [vmem:[#allocation5 + $0x7a] sm:$0xff] }
 0x732   : > { %25421 = vmatprep.mubr.msk.f32.mxu1 %vm12145_vm6, %v32281_v10  ;;  %34627 = vst [vmem:[#allocation61_spill] sm:$0xff] %v32297_v34 }
 0x735   : > { %25422 = vmatmul.mubr.msk.f32.gmra.mrb[134].mxu1 %vm12145_vm6, %v32285_v42  ;;  %v32305_v42 = vld [vmem:[#allocation5 + $0x82] sm:$0xff] }
 0x736   : > { %25424 = vmatprep.mubr.msk.f32.mxu1 %vm12145_vm6, %v32289_v44  ;;  %34630 = vst [vmem:[#allocation68_spill] sm:$0xff] %v32305_v42  ;;  %v32309_v44 = vld [vmem:[#allocation5 + $0x92] sm:$0xff] }
 0x737   : > { %34631 = vst [vmem:[#allocation65_spill] sm:$0xff] %v32309_v44 }
 0x739   : > { %25425 = vmatmul.mubr.msk.f32.gmra.mrb[136].mxu1 %vm12145_vm6, %v32293_v19 }
 0x73a   : > { %v32299_v2 = vpop.f32.mrb[96].mxu1  ;;  %25427 = vmatprep.mubr.msk.f32.mxu1 %vm12145_vm6, %v32297_v34 }
 0x73b   : > { %34628 = vst [vmem:[#allocation66_spill] sm:$0xff] %v32299_v2  ;;  %v32303_v10 = vpop.f32.mrb[97].mxu1  ;;  %v32317_v2 = vld [vmem:[#allocation5 + $0x9a] sm:$0xff] }
 0x73c   : > { %34629 = vst [vmem:[#allocation63_spill] sm:$0xff] %v32303_v10  ;;  %34634 = vst [vmem:[#allocation72_spill] sm:$0xff] %v32317_v2  ;;  %v32321_v10 = vld [vmem:[#allocation5 + $0xaa] sm:$0xff] }
 0x73d   : > { %25428 = vmatmul.mubr.msk.f32.gmra.mrb[138].mxu1 %vm12145_vm6, %v32305_v42  ;;  %34635 = vst [vmem:[#allocation69_spill] sm:$0xff] %v32321_v10 }
 0x73e   : > { %v32311_v51 = vpop.f32.mrb[98].mxu1  ;;  %25430 = vmatprep.mubr.msk.f32.mxu1 %vm12145_vm6, %v32309_v44 }
 0x73f   : > { %34632 = vst [vmem:[#allocation70_spill] sm:$0xff] %v32311_v51  ;;  %v32315_v19 = vpop.f32.mrb[99].mxu1  ;;  %v32329_v51 = vld [vmem:[#allocation5 + $0xb2] sm:$0xff] }
 0x740   : > { %34633 = vst [vmem:[#allocation67_spill] sm:$0xff] %v32315_v19  ;;  %34638 = vst [vmem:[#allocation76_spill] sm:$0xff] %v32329_v51  ;;  %v32333_v19 = vld [vmem:[#allocation5 + $0xc2] sm:$0xff] }
 0x741   : > { %25431 = vmatmul.mubr.msk.f32.gmra.mrb[140].mxu1 %vm12145_vm6, %v32317_v2  ;;  %34639 = vst [vmem:[#allocation73_spill] sm:$0xff] %v32333_v19 }
 0x742   : > { %v32323_v34 = vpop.f32.mrb[100].mxu1  ;;  %25433 = vmatprep.mubr.msk.f32.mxu1 %vm12145_vm6, %v32321_v10 }
 0x743   : > { %34636 = vst [vmem:[#allocation74_spill] sm:$0xff] %v32323_v34  ;;  %v32327_v42 = vpop.f32.mrb[101].mxu1  ;;  %v32341_v34 = vld [vmem:[#allocation5 + $0xca] sm:$0xff] }
 0x744   : > { %34637 = vst [vmem:[#allocation71_spill] sm:$0xff] %v32327_v42  ;;  %34642 = vst [vmem:[#allocation38_spill] sm:$0xff] %v32341_v34  ;;  %v32345_v42 = vld [vmem:[#allocation5 + $0xda] sm:$0xff] }
 0x745   : > { %25434 = vmatmul.mubr.msk.f32.gmra.mrb[142].mxu1 %vm12145_vm6, %v32329_v51  ;;  %34643 = vst [vmem:[#allocation78_spill] sm:$0xff] %v32345_v42 }
 0x746   : > { %v32335_v44 = vpop.f32.mrb[102].mxu1  ;;  %25436 = vmatprep.mubr.msk.f32.mxu1 %vm12145_vm6, %v32333_v19 }
 0x747   : > { %34640 = vst [vmem:[#allocation77_spill] sm:$0xff] %v32335_v44  ;;  %v32339_v2 = vpop.f32.mrb[103].mxu1  ;;  %v32353_v44 = vld [vmem:[#allocation5 + $0xe2] sm:$0xff] }
 0x748   : > { %34641 = vst [vmem:[#allocation75_spill] sm:$0xff] %v32339_v2  ;;  %34646 = vst [vmem:[#allocation39_spill] sm:$0xff] %v32353_v44  ;;  %v32357_v2 = vld [vmem:[#allocation5 + $0xf2] sm:$0xff] }
 0x749   : > { %25437 = vmatmul.mubr.msk.f32.gmra.mrb[144].mxu1 %vm12145_vm6, %v32341_v34  ;;  %34647 = vst [vmem:[#allocation42_spill] sm:$0xff] %v32357_v2 }
 0x74a   : > { %v32347_v10 = vpop.f32.mrb[104].mxu1  ;;  %25439 = vmatprep.mubr.msk.f32.mxu1 %vm12145_vm6, %v32345_v42 }
 0x74b   : > { %34644 = vst [vmem:[#allocation37_spill] sm:$0xff] %v32347_v10  ;;  %v32351_v51 = vpop.f32.mrb[105].mxu1  ;;  %v32365_v10 = vld [vmem:[#allocation5 + $0xfa] sm:$0xff] }
 0x74c   : > { %34645 = vst [vmem:[#allocation41_spill] sm:$0xff] %v32351_v51  ;;  %34650 = vst [vmem:[#allocation45_spill] sm:$0xff] %v32365_v10  ;;  %v32369_v51 = vld [vmem:[#allocation5 + $0x10a] sm:$0xff] }
 0x74d   : > { %25440 = vmatmul.mubr.msk.f32.gmra.mrb[146].mxu1 %vm12145_vm6, %v32353_v44  ;;  %34651 = vst [vmem:[#allocation47_spill] sm:$0xff] %v32369_v51 }
 0x74e   : > { %v32359_v19 = vpop.f32.mrb[106].mxu1  ;;  %25442 = vmatprep.mubr.msk.f32.mxu1 %vm12145_vm6, %v32357_v2 }
 0x74f   : > { %34648 = vst [vmem:[#allocation40_spill] sm:$0xff] %v32359_v19  ;;  %v32363_v34 = vpop.f32.mrb[107].mxu1  ;;  %v32377_v19 = vld [vmem:[#allocation5 + $0x112] sm:$0xff] }
 0x750   : > { %34649 = vst [vmem:[#allocation43_spill] sm:$0xff] %v32363_v34  ;;  %34654 = vst [vmem:[#allocation46_spill] sm:$0xff] %v32377_v19  ;;  %v32381_v34 = vld [vmem:[#allocation5 + $0x122] sm:$0xff] }
 0x751   : > { %25443 = vmatmul.mubr.msk.f32.gmra.mrb[148].mxu1 %vm12145_vm6, %v32365_v10  ;;  %34655 = vst [vmem:[#allocation79_spill] sm:$0xff] %v32381_v34 }
 0x752   : > { %v32371_v42 = vpop.f32.mrb[108].mxu1  ;;  %25445 = vmatprep.mubr.msk.f32.mxu1 %vm12145_vm6, %v32369_v51 }
 0x753   : > { %34652 = vst [vmem:[#allocation44_spill] sm:$0xff] %v32371_v42  ;;  %v32375_v44 = vpop.f32.mrb[109].mxu1  ;;  %v32389_v42 = vld [vmem:[#allocation5 + $0x12a] sm:$0xff] }
 0x754   : > { %34653 = vst [vmem:[#allocation49_spill] sm:$0xff] %v32375_v44  ;;  %34658 = vst [vmem:[#allocation50_spill] sm:$0xff] %v32389_v42  ;;  %v32393_v44 = vld [vmem:[#allocation5 + $0x13a] sm:$0xff] }
 0x755   : > { %25446 = vmatmul.mubr.msk.f32.gmra.mrb[150].mxu1 %vm12145_vm6, %v32377_v19  ;;  %34659 = vst [vmem:[#allocation83_spill] sm:$0xff] %v32393_v44 }
 0x756   : > { %v32383_v2 = vpop.f32.mrb[110].mxu1  ;;  %25448 = vmatprep.mubr.msk.f32.mxu1 %vm12145_vm6, %v32381_v34 }
 0x757   : > { %34656 = vst [vmem:[#allocation48_spill] sm:$0xff] %v32383_v2  ;;  %v32387_v10 = vpop.f32.mrb[111].mxu1  ;;  %v32401_v2 = vld [vmem:[#allocation5 + $0x142] sm:$0xff] }
 0x758   : > { %34657 = vst [vmem:[#allocation81_spill] sm:$0xff] %v32387_v10  ;;  %34662 = vst [vmem:[#allocation82_spill] sm:$0xff] %v32401_v2  ;;  %v32405_v10 = vld [vmem:[#allocation5 + $0x152] sm:$0xff] }
 0x759   : > { %25449 = vmatmul.mubr.msk.f32.gmra.mrb[152].mxu1 %vm12145_vm6, %v32389_v42 }
 0x75a   : > { %v32395_v51 = vpop.f32.mrb[112].mxu1  ;;  %25451 = vmatprep.mubr.msk.f32.mxu1 %vm12145_vm6, %v32393_v44 }
 0x75b   : > { %34660 = vst [vmem:[#allocation80_spill] sm:$0xff] %v32395_v51  ;;  %v32399_v19 = vpop.f32.mrb[113].mxu1  ;;  %v32413_v51 = vld [vmem:[#allocation5 + $0x15a] sm:$0xff] }
 0x75c   : > { %34661 = vst [vmem:[#allocation85_spill] sm:$0xff] %v32399_v19  ;;  %34665 = vst [vmem:[#allocation86_spill] sm:$0xff] %v32413_v51  ;;  %v32417_v19 = vld [vmem:[#allocation5 + $0x16a] sm:$0xff] }
 0x75d   : > { %25452 = vmatmul.mubr.msk.f32.gmra.mrb[154].mxu1 %vm12145_vm6, %v32401_v2 }
 0x75e   : > { %v32407_v34 = vpop.f32.mrb[114].mxu1  ;;  %25454 = vmatprep.mubr.msk.f32.mxu1 %vm12145_vm6, %v32405_v10 }
 0x75f   : > { %34663 = vst [vmem:[#allocation87_spill] sm:$0xff] %v32407_v34  ;;  %v32411_v42 = vpop.f32.mrb[115].mxu1  ;;  %v32425_v34 = vld [vmem:[#allocation5 + $0x172] sm:$0xff] }
 0x760   : > { %34664 = vst [vmem:[#allocation84_spill] sm:$0xff] %v32411_v42 }
 0x761   : > { %25455 = vmatmul.mubr.msk.f32.gmra.mrb[156].mxu1 %vm12145_vm6, %v32413_v51 }
 0x762   : > { %v32419_v44 = vpop.f32.mrb[116].mxu1  ;;  %25457 = vmatprep.mubr.msk.f32.mxu1 %vm12145_vm6, %v32417_v19 }
 0x763   : > { %34666 = vst [vmem:[#allocation88_spill] sm:$0xff] %v32419_v44  ;;  %v32423_v2 = vpop.f32.mrb[117].mxu1  ;;  %v21651_v44 = vld [vmem:[%s34116_s11 + $0x28] sm:$0x3f] }
 0x764   : > { %34667 = vst [vmem:[#allocation89_spill] sm:$0xff] %v32423_v2 }
 0x765   : > { %25458 = vmatmul.mubr.msk.f32.gmra.mrb[158].mxu1 %vm12145_vm6, %v32425_v34 }
 0x766   : > { %v32429_v42 = vpop.f32.mrb[118].mxu1  ;;  %25462 = vmatprep.mubr.msk.f32.mxu1 %vm12145_vm6, %v32130_v18 }
 0x767   : > { %34668 = vst [vmem:[#allocation90_spill] sm:$0xff] %v32429_v42  ;;  %v32433_v51 = vpop.f32.mrb[119].mxu1 }
 0x768   : > { %34669 = vst [vmem:[#allocation91_spill] sm:$0xff] %v32433_v51  ;;  %v21753_v51 = vld [vmem:[%s34116_s11 + $0x40] sm:$0x3f] }
 0x769   : > { %25463 = vmatmul.mubr.msk.f32.vlgmr.msra.gmra.mrb[128].mxu1 %vm12145_vm6, %v32138_v16 }
 0x76a   : > { %25511 = vmatpush3.msk.msra.mxu1 %vm12397_vm8, %v32258_v17  ;;  %v32442_v2 = vpop.f32.mrb[120].mxu1  ;;  %25465 = vmatprep.mubr.msk.f32.mxu1 %vm12145_vm6, %v32142_v56 }
 0x76b   : > { %34670 = vst [vmem:[#allocation92_spill] sm:$0xff] %v32442_v2  ;;  %v32446_v42 = vpop.f32.mrb[121].mxu1  ;;  %25560 = vmatprep.subr.msk.mxu1 %vm12397_vm8, %v21651_v44 }
 0x76c   : > { %34671 = vst [vmem:[#allocation93_spill] sm:$0xff] %v32446_v42 }
 0x76d   : > { %25466 = vmatmul.mubr.msk.f32.gmra.mrb[130].mxu1 %vm12145_vm6, %v32146_v1 }
 0x76e   : > { %v32451_v18 = vpop.f32.mrb[122].mxu1  ;;  %25468 = vmatprep.mubr.msk.f32.mxu1 %vm12145_vm6, %v32150_v55 }
 0x76f   : > { %34672 = vst [vmem:[#allocation94_spill] sm:$0xff] %v32451_v18  ;;  %v32455_v16 = vpop.f32.mrb[123].mxu1 }
 0x770   : > { %34673 = vst [vmem:[#allocation95_spill] sm:$0xff] %v32455_v16  ;;  %v32665_v16 = vld [vmem:[#allocation5 + $0x18a] sm:$0xff] }
 0x771   : > { %25469 = vmatmul.mubr.msk.f32.gmra.mrb[132].mxu1 %vm12145_vm6, %v32154_v4 }
 0x772   : > { %v32459_v17 = vpop.f32.mrb[124].mxu1  ;;  %25471 = vmatprep.mubr.msk.f32.mxu1 %vm12145_vm6, %v32158_v11 }
 0x773   : > { %34674 = vst [vmem:[#allocation96_spill] sm:$0xff] %v32459_v17  ;;  %v32463_v2 = vpop.f32.mrb[125].mxu1  ;;  %v21685_v17 = vld [vmem:[%s34116_s11 + $0x30] sm:$0x3f] }
 0x774   : > { %34675 = vst [vmem:[#allocation97_spill] sm:$0xff] %v32463_v2  ;;  %v32661_v2 = vld [vmem:[#allocation5 + $0x182] sm:$0xff] }
 0x775   : > { %25472 = vmatmul.mubr.msk.f32.gmra.mrb[134].mxu1 %vm12145_vm6, %v32162_v26 }
 0x776   : > { %v32467_v42 = vpop.f32.mrb[126].mxu1  ;;  %25474 = vmatprep.mubr.msk.f32.mxu1 %vm12145_vm6, %v32166_v29 }
 0x777   : > { %34676 = vst [vmem:[#allocation98_spill] sm:$0xff] %v32467_v42  ;;  %v32471_v18 = vpop.f32.mrb[127].mxu1  ;;  %v32515_v42 = vld [vmem:[#allocation5 + $0x180] sm:$0xff] }
 0x778   : > { %34677 = vst [vmem:[#allocation99_spill] sm:$0xff] %v32471_v18  ;;  %v32519_v18 = vld [vmem:[#allocation5 + $0x188] sm:$0xff] }
 0x779   : > { %25475 = vmatmul.mubr.msk.f32.gmra.mrb[136].mxu1 %vm12145_vm6, %v32170_v47 }
 0x77a   : > { %25477 = vmatprep.mubr.msk.f32.mxu1 %vm12145_vm6, %v32174_v15 }
 0x77d   : > { %25478 = vmatmul.mubr.msk.f32.gmra.mrb[138].mxu1 %vm12145_vm6, %v32178_v37 }
 0x77e   : > { %25480 = vmatprep.mubr.msk.f32.mxu1 %vm12145_vm6, %v32182_v20 }
 0x781   : > { %25481 = vmatmul.mubr.msk.f32.gmra.mrb[140].mxu1 %vm12145_vm6, %v32186_v49 }
 0x782   : > { %25483 = vmatprep.mubr.msk.f32.mxu1 %vm12145_vm6, %v32190_v33 }
 0x785   : > { %25484 = vmatmul.mubr.msk.f32.gmra.mrb[142].mxu1 %vm12145_vm6, %v32194_v41 }
 0x786   : > { %25486 = vmatprep.mubr.msk.f32.mxu1 %vm12145_vm6, %v32198_v13 }
 0x789   : > { %25487 = vmatmul.mubr.msk.f32.gmra.mrb[144].mxu1 %vm12145_vm6, %v32202_v28 }
 0x78a   : > { %25489 = vmatprep.mubr.msk.f32.mxu1 %vm12145_vm6, %v32206_v45 }
 0x78d   : > { %25490 = vmatmul.mubr.msk.f32.gmra.mrb[146].mxu1 %vm12145_vm6, %v32210_v8 }
 0x78e   : > { %25492 = vmatprep.mubr.msk.f32.mxu1 %vm12145_vm6, %v32214_v23 }
 0x791   : > { %25493 = vmatmul.mubr.msk.f32.gmra.mrb[148].mxu1 %vm12145_vm6, %v32218_v12 }
 0x792   : > { %25495 = vmatprep.mubr.msk.f32.mxu1 %vm12145_vm6, %v32222_v3 }
 0x795   : > { %25496 = vmatmul.mubr.msk.f32.gmra.mrb[150].mxu1 %vm12145_vm6, %v32226_v5 }
 0x796   : > { %25498 = vmatprep.mubr.msk.f32.mxu1 %vm12145_vm6, %v32230_v57 }
 0x799   : > { %25499 = vmatmul.mubr.msk.f32.gmra.mrb[152].mxu1 %vm12145_vm6, %v32234_v48 }
 0x79a   : > { %25501 = vmatprep.mubr.msk.f32.mxu1 %vm12145_vm6, %v32238_v38 }
 0x79d   : > { %25502 = vmatmul.mubr.msk.f32.gmra.mrb[154].mxu1 %vm12145_vm6, %v32242_v63 }
 0x79e   : > { %25504 = vmatprep.mubr.msk.f32.mxu1 %vm12145_vm6, %v32246_v50 }
 0x7a1   : > { %25505 = vmatmul.mubr.msk.f32.gmra.mrb[156].mxu1 %vm12145_vm6, %v32250_v43 }
 0x7a2   : > { %25507 = vmatprep.mubr.msk.f32.mxu1 %vm12145_vm6, %v32515_v42 }
 0x7a5   : > { %25508 = vmatmul.mubr.msk.f32.gmra.mrb[158].mxu1 %vm12145_vm6, %v32519_v18 }
 0x7a6   : > { %25512 = vmatprep.mubr.msk.f32.mxu1 %vm12145_vm6, %v31951_v62  ;;  %v34678_v62 = vld [vmem:[#allocation51_spill] sm:$0xff] }
 0x7a9   : > { %25513 = vmatmul.mubr.msk.f32.vlgmr.msra.gmra.mrb[128].mxu1 %vm12145_vm6, %v31957_v9  ;;  %v34679_v9 = vld [vmem:[#allocation52_spill] sm:$0xff] }
 0x7aa   : > { %25561 = vmatpush3.msk.msra.mxu1 %vm12397_vm8, %v21651_v44  ;;  %25515 = vmatprep.mubr.msk.f32.mxu1 %vm12145_vm6, %v31963_v46  ;;  %v34680_v46 = vld [vmem:[#allocation53_spill] sm:$0xff] }
 0x7ab   : > { %25610 = vmatprep.subr.msk.mxu1 %vm12397_vm8, %v21685_v17  ;;  %v34701_v44 = vld [vmem:[#allocation45_spill] sm:$0xff] }
 0x7ad   : > { %25516 = vmatmul.mubr.msk.f32.gmra.mrb[130].mxu1 %vm12145_vm6, %v31969_v25  ;;  %v34681_v25 = vld [vmem:[#allocation56_spill] sm:$0xff] }
 0x7ae   : > { %25518 = vmatprep.mubr.msk.f32.mxu1 %vm12145_vm6, %v31975_v36  ;;  %v32588_v36 = vld [vmem:[#allocation5 + $0x181] sm:$0xff] }
 0x7b1   : > { %25519 = vmatmul.mubr.msk.f32.gmra.mrb[132].mxu1 %vm12145_vm6, %v31981_v31  ;;  %v32592_v31 = vld [vmem:[#allocation5 + $0x189] sm:$0xff] }
 0x7b2   : > { %25521 = vmatprep.mubr.msk.f32.mxu1 %vm12145_vm6, %v31987_v22  ;;  %v34682_v22 = vld [vmem:[#allocation54_spill] sm:$0xff] }
 0x7b5   : > { %25522 = vmatmul.mubr.msk.f32.gmra.mrb[134].mxu1 %vm12145_vm6, %v31993_v60  ;;  %v21719_v60 = vld [vmem:[%s34116_s11 + $0x38] sm:$0x3f] }
 0x7b6   : > { %25524 = vmatprep.mubr.msk.f32.mxu1 %vm12145_vm6, %v31999_v14  ;;  %v34683_v14 = vld [vmem:[#allocation58_spill] sm:$0xff] }
 0x7b9   : > { %25525 = vmatmul.mubr.msk.f32.gmra.mrb[136].mxu1 %vm12145_vm6, %v32005_v59  ;;  %v34684_v59 = vld [vmem:[#allocation55_spill] sm:$0xff] }
 0x7ba   : > { %25527 = vmatprep.mubr.msk.f32.mxu1 %vm12145_vm6, %v32011_v0  ;;  %v34685_v0 = vld [vmem:[#allocation60_spill] sm:$0xff] }
 0x7bd   : > { %25528 = vmatmul.mubr.msk.f32.gmra.mrb[138].mxu1 %vm12145_vm6, %v32017_v6  ;;  %v34686_v6 = vld [vmem:[#allocation57_spill] sm:$0xff] }
 0x7be   : > { %25530 = vmatprep.mubr.msk.f32.mxu1 %vm12145_vm6, %v32023_v27  ;;  %v34687_v27 = vld [vmem:[#allocation62_spill] sm:$0xff] }
 0x7c1   : > { %25531 = vmatmul.mubr.msk.f32.gmra.mrb[140].mxu1 %vm12145_vm6, %v32029_v35  ;;  %v34688_v35 = vld [vmem:[#allocation59_spill] sm:$0xff] }
 0x7c2   : > { %25533 = vmatprep.mubr.msk.f32.mxu1 %vm12145_vm6, %v32035_v32  ;;  %v34689_v32 = vld [vmem:[#allocation64_spill] sm:$0xff] }
 0x7c5   : > { %25534 = vmatmul.mubr.msk.f32.gmra.mrb[142].mxu1 %vm12145_vm6, %v32041_v53  ;;  %v34690_v53 = vld [vmem:[#allocation61_spill] sm:$0xff] }
 0x7c6   : > { %25536 = vmatprep.mubr.msk.f32.mxu1 %vm12145_vm6, %v32047_v7  ;;  %v34691_v7 = vld [vmem:[#allocation68_spill] sm:$0xff] }
 0x7c9   : > { %25537 = vmatmul.mubr.msk.f32.gmra.mrb[144].mxu1 %vm12145_vm6, %v32053_v58  ;;  %v34692_v58 = vld [vmem:[#allocation65_spill] sm:$0xff] }
 0x7ca   : > { %25539 = vmatprep.mubr.msk.f32.mxu1 %vm12145_vm6, %v32059_v21  ;;  %v34693_v21 = vld [vmem:[#allocation72_spill] sm:$0xff] }
 0x7cd   : > { %25540 = vmatmul.mubr.msk.f32.gmra.mrb[146].mxu1 %vm12145_vm6, %v32065_v54  ;;  %v34694_v54 = vld [vmem:[#allocation69_spill] sm:$0xff] }
 0x7ce   : > { %25542 = vmatprep.mubr.msk.f32.mxu1 %vm12145_vm6, %v32071_v61  ;;  %v34695_v61 = vld [vmem:[#allocation76_spill] sm:$0xff] }
 0x7d1   : > { %25543 = vmatmul.mubr.msk.f32.gmra.mrb[148].mxu1 %vm12145_vm6, %v32077_v24  ;;  %v34696_v24 = vld [vmem:[#allocation73_spill] sm:$0xff] }
 0x7d2   : > { %25545 = vmatprep.mubr.msk.f32.mxu1 %vm12145_vm6, %v32083_v39  ;;  %v34697_v39 = vld [vmem:[#allocation38_spill] sm:$0xff] }
 0x7d5   : > { %25546 = vmatmul.mubr.msk.f32.gmra.mrb[150].mxu1 %vm12145_vm6, %v32089_v52  ;;  %v34698_v52 = vld [vmem:[#allocation78_spill] sm:$0xff] }
 0x7d6   : > { %25548 = vmatprep.mubr.msk.f32.mxu1 %vm12145_vm6, %v32095_v30  ;;  %v34699_v30 = vld [vmem:[#allocation39_spill] sm:$0xff] }
 0x7d9   : > { %25549 = vmatmul.mubr.msk.f32.gmra.mrb[152].mxu1 %vm12145_vm6, %v32101_v40  ;;  %v34700_v40 = vld [vmem:[#allocation42_spill] sm:$0xff] }
 0x7da   : > { %25551 = vmatprep.mubr.msk.f32.mxu1 %vm12145_vm6, %v34678_v62  ;;  %v34703_v62 = vld [vmem:[#allocation46_spill] sm:$0xff] }
 0x7dd   : > { %25552 = vmatmul.mubr.msk.f32.gmra.mrb[154].mxu1 %vm12145_vm6, %v34679_v9  ;;  %v34704_v9 = vld [vmem:[#allocation79_spill] sm:$0xff] }
 0x7de   : > { %25554 = vmatprep.mubr.msk.f32.mxu1 %vm12145_vm6, %v34680_v46  ;;  %v34705_v46 = vld [vmem:[#allocation50_spill] sm:$0xff] }
 0x7e1   : > { %25555 = vmatmul.mubr.msk.f32.gmra.mrb[156].mxu1 %vm12145_vm6, %v34681_v25  ;;  %v34706_v25 = vld [vmem:[#allocation83_spill] sm:$0xff] }
 0x7e2   : > { %25557 = vmatprep.mubr.msk.f32.mxu1 %vm12145_vm6, %v32588_v36 }
 0x7e5   : > { %25558 = vmatmul.mubr.msk.f32.gmra.mrb[158].mxu1 %vm12145_vm6, %v32592_v31 }
 0x7e6   : > { %25562 = vmatprep.mubr.msk.f32.mxu1 %vm12145_vm6, %v34682_v22  ;;  %v34707_v22 = vld [vmem:[#allocation82_spill] sm:$0xff] }
 0x7e9   : > { %25563 = vmatmul.mubr.msk.f32.vlgmr.msra.gmra.mrb[128].mxu1 %vm12145_vm6, %v34683_v14  ;;  %v34708_v14 = vld [vmem:[#allocation86_spill] sm:$0xff] }
 0x7ea   : > { %25611 = vmatpush3.msk.msra.mxu1 %vm12397_vm8, %v21685_v17  ;;  %25565 = vmatprep.mubr.msk.f32.mxu1 %vm12145_vm6, %v34684_v59  ;;  %v34702_v17 = vld [vmem:[#allocation47_spill] sm:$0xff] }
 0x7eb   : > { %25660 = vmatprep.subr.msk.mxu1 %vm12397_vm8, %v21719_v60 }
 0x7ed   : > { %25566 = vmatmul.mubr.msk.f32.gmra.mrb[130].mxu1 %vm12145_vm6, %v34685_v0 }
 0x7ee   : > { %25568 = vmatprep.mubr.msk.f32.mxu1 %vm12145_vm6, %v34686_v6 }
 0x7f1   : > { %25569 = vmatmul.mubr.msk.f32.gmra.mrb[132].mxu1 %vm12145_vm6, %v34687_v27 }
 0x7f2   : > { %25571 = vmatprep.mubr.msk.f32.mxu1 %vm12145_vm6, %v34688_v35 }
 0x7f5   : > { %25572 = vmatmul.mubr.msk.f32.gmra.mrb[134].mxu1 %vm12145_vm6, %v34689_v32 }
 0x7f6   : > { %25574 = vmatprep.mubr.msk.f32.mxu1 %vm12145_vm6, %v34690_v53 }
 0x7f9   : > { %25575 = vmatmul.mubr.msk.f32.gmra.mrb[136].mxu1 %vm12145_vm6, %v34691_v7 }
 0x7fa   : > { %25577 = vmatprep.mubr.msk.f32.mxu1 %vm12145_vm6, %v34692_v58 }
 0x7fd   : > { %25578 = vmatmul.mubr.msk.f32.gmra.mrb[138].mxu1 %vm12145_vm6, %v34693_v21 }
 0x7fe   : > { %25580 = vmatprep.mubr.msk.f32.mxu1 %vm12145_vm6, %v34694_v54 }
 0x801   : > { %25581 = vmatmul.mubr.msk.f32.gmra.mrb[140].mxu1 %vm12145_vm6, %v34695_v61 }
 0x802   : > { %25583 = vmatprep.mubr.msk.f32.mxu1 %vm12145_vm6, %v34696_v24 }
 0x805   : > { %25584 = vmatmul.mubr.msk.f32.gmra.mrb[142].mxu1 %vm12145_vm6, %v34697_v39 }
 0x806   : > { %25586 = vmatprep.mubr.msk.f32.mxu1 %vm12145_vm6, %v34698_v52 }
 0x809   : > { %25587 = vmatmul.mubr.msk.f32.gmra.mrb[144].mxu1 %vm12145_vm6, %v34699_v30 }
 0x80a   : > { %25589 = vmatprep.mubr.msk.f32.mxu1 %vm12145_vm6, %v34700_v40 }
 0x80d   : > { %25590 = vmatmul.mubr.msk.f32.gmra.mrb[146].mxu1 %vm12145_vm6, %v34701_v44 }
 0x80e   : > { %25592 = vmatprep.mubr.msk.f32.mxu1 %vm12145_vm6, %v34702_v17 }
 0x811   : > { %25593 = vmatmul.mubr.msk.f32.gmra.mrb[148].mxu1 %vm12145_vm6, %v34703_v62 }
 0x812   : > { %25595 = vmatprep.mubr.msk.f32.mxu1 %vm12145_vm6, %v34704_v9 }
 0x815   : > { %25596 = vmatmul.mubr.msk.f32.gmra.mrb[150].mxu1 %vm12145_vm6, %v34705_v46 }
 0x816   : > { %25598 = vmatprep.mubr.msk.f32.mxu1 %vm12145_vm6, %v34706_v25 }
 0x819   : > { %25599 = vmatmul.mubr.msk.f32.gmra.mrb[152].mxu1 %vm12145_vm6, %v34707_v22 }
 0x81a   : > { %25601 = vmatprep.mubr.msk.f32.mxu1 %vm12145_vm6, %v32405_v10 }
 0x81d   : > { %25602 = vmatmul.mubr.msk.f32.gmra.mrb[154].mxu1 %vm12145_vm6, %v34708_v14 }
 0x81e   : > { %25604 = vmatprep.mubr.msk.f32.mxu1 %vm12145_vm6, %v32417_v19 }
 0x821   : > { %25605 = vmatmul.mubr.msk.f32.gmra.mrb[156].mxu1 %vm12145_vm6, %v32425_v34 }
 0x822   : > { %25607 = vmatprep.mubr.msk.f32.mxu1 %vm12145_vm6, %v32661_v2 }
 0x825   : > { %25608 = vmatmul.mubr.msk.f32.gmra.mrb[158].mxu1 %vm12145_vm6, %v32665_v16 }
 0x826   : > { %25612 = vmatprep.mubr.msk.f32.mxu1 %vm12145_vm6, %v32142_v56  ;;  %v14541_v56 = vld [vmem:[#allocation5 + $0x198] sm:$0xff] }
 0x829   : > { %25613 = vmatmul.mubr.msk.f32.vlgmr.msra.gmra.mrb[128].mxu1 %vm12145_vm6, %v32146_v1  ;;  %v14542_v1 = vld [vmem:[#allocation5 + $0x1a0] sm:$0xff] }
 0x82a   : > { %25661 = vmatpush3.msk.msra.mxu1 %vm12397_vm8, %v21719_v60  ;;  %25615 = vmatprep.mubr.msk.f32.mxu1 %vm12145_vm6, %v32150_v55  ;;  %v14901_v55 = vld [vmem:[#allocation5 + $0x31] sm:$0xff]  ;;  %v14931_v60 = vld [vmem:[#allocation5 + $0x199] sm:$0xff] }
 0x82b   : > { %25710 = vmatprep.subr.msk.mxu1 %vm12397_vm8, %v21753_v51 }
 0x82d   : > { %25616 = vmatmul.mubr.msk.f32.gmra.mrb[130].mxu1 %vm12145_vm6, %v32154_v4  ;;  %v21788_v4 = vld [vmem:[%s34118_s13 + $0x8] sm:$0xff] }
 0x82e   : > { %25618 = vmatprep.mubr.msk.f32.mxu1 %vm12145_vm6, %v32158_v11  ;;  %25760 = vmatprep.subr.mxu0 %v21788_v4  ;;  %v14902_v11 = vld [vmem:[#allocation5 + $0x39] sm:$0xff] }
 0x82f   : > { %25761 = vmatpush3.msra.mxu0 %v21788_v4 }
 0x831   : > { %25619 = vmatmul.mubr.msk.f32.gmra.mrb[132].mxu1 %vm12145_vm6, %v32162_v26  ;;  %v14904_v26 = vld [vmem:[#allocation5 + $0x51] sm:$0xff] }
 0x832   : > { %25621 = vmatprep.mubr.msk.f32.mxu1 %vm12145_vm6, %v32166_v29  ;;  %v14905_v29 = vld [vmem:[#allocation5 + $0x61] sm:$0xff] }
 0x835   : > { %25622 = vmatmul.mubr.msk.f32.gmra.mrb[134].mxu1 %vm12145_vm6, %v32170_v47  ;;  %v14906_v47 = vld [vmem:[#allocation5 + $0x69] sm:$0xff] }
 0x836   : > { %25624 = vmatprep.mubr.msk.f32.mxu1 %vm12145_vm6, %v32174_v15  ;;  %v14907_v15 = vld [vmem:[#allocation5 + $0x79] sm:$0xff] }
 0x839   : > { %25625 = vmatmul.mubr.msk.f32.gmra.mrb[136].mxu1 %vm12145_vm6, %v32178_v37  ;;  %v14908_v37 = vld [vmem:[#allocation5 + $0x81] sm:$0xff] }
 0x83a   : > { %25627 = vmatprep.mubr.msk.f32.mxu1 %vm12145_vm6, %v32182_v20  ;;  %v14909_v20 = vld [vmem:[#allocation5 + $0x91] sm:$0xff] }
 0x83d   : > { %25628 = vmatmul.mubr.msk.f32.gmra.mrb[138].mxu1 %vm12145_vm6, %v32186_v49  ;;  %v14911_v49 = vld [vmem:[#allocation5 + $0xa9] sm:$0xff] }
 0x83e   : > { %25630 = vmatprep.mubr.msk.f32.mxu1 %vm12145_vm6, %v32190_v33  ;;  %v14912_v33 = vld [vmem:[#allocation5 + $0xb1] sm:$0xff] }
 0x841   : > { %25631 = vmatmul.mubr.msk.f32.gmra.mrb[140].mxu1 %vm12145_vm6, %v32194_v41  ;;  %v14913_v41 = vld [vmem:[#allocation5 + $0xc1] sm:$0xff] }
 0x842   : > { %25633 = vmatprep.mubr.msk.f32.mxu1 %vm12145_vm6, %v32198_v13  ;;  %v14914_v13 = vld [vmem:[#allocation5 + $0xc9] sm:$0xff] }
 0x845   : > { %25634 = vmatmul.mubr.msk.f32.gmra.mrb[142].mxu1 %vm12145_vm6, %v32202_v28  ;;  %v14915_v28 = vld [vmem:[#allocation5 + $0xd9] sm:$0xff] }
 0x846   : > { %25636 = vmatprep.mubr.msk.f32.mxu1 %vm12145_vm6, %v32206_v45  ;;  %v14916_v45 = vld [vmem:[#allocation5 + $0xe1] sm:$0xff] }
 0x849   : > { %25637 = vmatmul.mubr.msk.f32.gmra.mrb[144].mxu1 %vm12145_vm6, %v32210_v8  ;;  %v14917_v8 = vld [vmem:[#allocation5 + $0xf1] sm:$0xff] }
 0x84a   : > { %25639 = vmatprep.mubr.msk.f32.mxu1 %vm12145_vm6, %v32214_v23  ;;  %v14918_v23 = vld [vmem:[#allocation5 + $0xf9] sm:$0xff] }
 0x84d   : > { %25640 = vmatmul.mubr.msk.f32.gmra.mrb[146].mxu1 %vm12145_vm6, %v32218_v12  ;;  %v14919_v12 = vld [vmem:[#allocation5 + $0x109] sm:$0xff] }
 0x84e   : > { %25642 = vmatprep.mubr.msk.f32.mxu1 %vm12145_vm6, %v32222_v3  ;;  %v14920_v3 = vld [vmem:[#allocation5 + $0x111] sm:$0xff] }
 0x851   : > { %25643 = vmatmul.mubr.msk.f32.gmra.mrb[148].mxu1 %vm12145_vm6, %v32226_v5  ;;  %v14921_v5 = vld [vmem:[#allocation5 + $0x121] sm:$0xff] }
 0x852   : > { %25645 = vmatprep.mubr.msk.f32.mxu1 %vm12145_vm6, %v32230_v57  ;;  %v14922_v57 = vld [vmem:[#allocation5 + $0x129] sm:$0xff] }
 0x855   : > { %25646 = vmatmul.mubr.msk.f32.gmra.mrb[150].mxu1 %vm12145_vm6, %v32234_v48  ;;  %v14923_v48 = vld [vmem:[#allocation5 + $0x139] sm:$0xff] }
 0x856   : > { %25648 = vmatprep.mubr.msk.f32.mxu1 %vm12145_vm6, %v32238_v38  ;;  %v14924_v38 = vld [vmem:[#allocation5 + $0x141] sm:$0xff] }
 0x859   : > { %25649 = vmatmul.mubr.msk.f32.gmra.mrb[152].mxu1 %vm12145_vm6, %v32242_v63  ;;  %v14925_v63 = vld [vmem:[#allocation5 + $0x151] sm:$0xff] }
 0x85a   : > { %25651 = vmatprep.mubr.msk.f32.mxu1 %vm12145_vm6, %v32246_v50  ;;  %v14926_v50 = vld [vmem:[#allocation5 + $0x159] sm:$0xff] }
 0x85d   : > { %25652 = vmatmul.mubr.msk.f32.gmra.mrb[154].mxu1 %vm12145_vm6, %v32250_v43  ;;  %v14927_v43 = vld [vmem:[#allocation5 + $0x169] sm:$0xff] }
 0x85e   : > { %25654 = vmatprep.mubr.msk.f32.mxu1 %vm12145_vm6, %v32515_v42  ;;  %v14903_v42 = vld [vmem:[#allocation5 + $0x49] sm:$0xff] }
 0x861   : > { %25655 = vmatmul.mubr.msk.f32.gmra.mrb[156].mxu1 %vm12145_vm6, %v32519_v18  ;;  %v14928_v18 = vld [vmem:[#allocation5 + $0x171] sm:$0xff] }
 0x862   : > { %25657 = vmatprep.mubr.msk.f32.mxu1 %vm12145_vm6, %v14541_v56  ;;  %v14932_v56 = vld [vmem:[#allocation5 + $0x1a1] sm:$0xff] }
 0x865   : > { %25658 = vmatmul.mubr.msk.f32.gmra.mrb[158].mxu1 %vm12145_vm6, %v14542_v1 }
 0x866   : > { %25662 = vmatprep.mubr.msk.f32.mxu1 %vm12145_vm6, %v14901_v55 }
 0x869   : > { %25663 = vmatmul.mubr.msk.f32.vlgmr.msra.gmra.mrb[128].mxu1 %vm12145_vm6, %v14902_v11 }
 0x86a   : > { %25711 = vmatpush3.msk.msra.mxu1 %vm12397_vm8, %v21753_v51  ;;  %25665 = vmatprep.mubr.msk.f32.mxu1 %vm12145_vm6, %v14903_v42  ;;  %v14910_v51 = vld [vmem:[#allocation5 + $0x99] sm:$0xff] }
 0x86d   : > { %25666 = vmatmul.mubr.msk.f32.gmra.mrb[130].mxu1 %vm12145_vm6, %v14904_v26 }
 0x86e   : > { %25668 = vmatprep.mubr.msk.f32.mxu1 %vm12145_vm6, %v14905_v29 }
 0x871   : > { %25669 = vmatmul.mubr.msk.f32.gmra.mrb[132].mxu1 %vm12145_vm6, %v14906_v47 }
 0x872   : > { %25671 = vmatprep.mubr.msk.f32.mxu1 %vm12145_vm6, %v14907_v15 }
 0x875   : > { %25672 = vmatmul.mubr.msk.f32.gmra.mrb[134].mxu1 %vm12145_vm6, %v14908_v37 }
 0x876   : > { %25674 = vmatprep.mubr.msk.f32.mxu1 %vm12145_vm6, %v14909_v20 }
 0x879   : > { %25675 = vmatmul.mubr.msk.f32.gmra.mrb[136].mxu1 %vm12145_vm6, %v14910_v51 }
 0x87a   : > { %25677 = vmatprep.mubr.msk.f32.mxu1 %vm12145_vm6, %v14911_v49 }
 0x87d   : > { %25678 = vmatmul.mubr.msk.f32.gmra.mrb[138].mxu1 %vm12145_vm6, %v14912_v33 }
 0x87e   : > { %25680 = vmatprep.mubr.msk.f32.mxu1 %vm12145_vm6, %v14913_v41 }
 0x881   : > { %25681 = vmatmul.mubr.msk.f32.gmra.mrb[140].mxu1 %vm12145_vm6, %v14914_v13 }
 0x882   : > { %25683 = vmatprep.mubr.msk.f32.mxu1 %vm12145_vm6, %v14915_v28 }
 0x885   : > { %25684 = vmatmul.mubr.msk.f32.gmra.mrb[142].mxu1 %vm12145_vm6, %v14916_v45 }
 0x886   : > { %25686 = vmatprep.mubr.msk.f32.mxu1 %vm12145_vm6, %v14917_v8 }
 0x889   : > { %25687 = vmatmul.mubr.msk.f32.gmra.mrb[144].mxu1 %vm12145_vm6, %v14918_v23 }
 0x88a   : > { %25689 = vmatprep.mubr.msk.f32.mxu1 %vm12145_vm6, %v14919_v12 }
 0x88d   : > { %25690 = vmatmul.mubr.msk.f32.gmra.mrb[146].mxu1 %vm12145_vm6, %v14920_v3 }
 0x88e   : > { %25692 = vmatprep.mubr.msk.f32.mxu1 %vm12145_vm6, %v14921_v5 }
 0x891   : > { %25693 = vmatmul.mubr.msk.f32.gmra.mrb[148].mxu1 %vm12145_vm6, %v14922_v57 }
 0x892   : > { %25695 = vmatprep.mubr.msk.f32.mxu1 %vm12145_vm6, %v14923_v48 }
 0x895   : > { %25696 = vmatmul.mubr.msk.f32.gmra.mrb[150].mxu1 %vm12145_vm6, %v14924_v38 }
 0x896   : > { %25698 = vmatprep.mubr.msk.f32.mxu1 %vm12145_vm6, %v14925_v63 }
 0x899   : > { %25699 = vmatmul.mubr.msk.f32.gmra.mrb[152].mxu1 %vm12145_vm6, %v14926_v50 }
 0x89a   : > { %25701 = vmatprep.mubr.msk.f32.mxu1 %vm12145_vm6, %v14927_v43 }
 0x89d   : > { %25702 = vmatmul.mubr.msk.f32.gmra.mrb[154].mxu1 %vm12145_vm6, %v14928_v18 }
 0x89e   : > { %25704 = vmatprep.mubr.msk.f32.mxu1 %vm12145_vm6, %v32588_v36  ;;  %v15321_v36 = vld [vmem:[#allocation5 + $0x19a] sm:$0xff] }
 0x8a1   : > { %25705 = vmatmul.mubr.msk.f32.gmra.mrb[156].mxu1 %vm12145_vm6, %v32592_v31  ;;  %v15322_v31 = vld [vmem:[#allocation5 + $0x1a2] sm:$0xff] }
 0x8a2   : > { %25707 = vmatprep.mubr.msk.f32.mxu1 %vm12145_vm6, %v14931_v60 }
 0x8a5   : > { %25708 = vmatmul.mubr.msk.f32.gmra.mrb[158].mxu1 %vm12145_vm6, %v14932_v56 }
 0x8a6   : > { %25712 = vmatprep.mubr.msk.f32.mxu1 %vm12145_vm6, %v34684_v59 }
 0x8a9   : > { %25713 = vmatmul.mubr.msk.f32.vlgmr.msra.gmra.mrb[128].mxu1 %vm12145_vm6, %v34685_v0  ;;  %v15889_v0 = vld [vmem:[#allocation6 + $0x33] sm:$0xff] }
 0x8aa   : > { %25715 = vmatprep.mubr.msk.f32.mxu1 %vm12145_vm6, %v34686_v6 }
 0x8ad   : > { %25716 = vmatmul.mubr.msk.f32.gmra.mrb[130].mxu1 %vm12145_vm6, %v34687_v27  ;;  %v32892_v27 = vld [vmem:[%s34118_s13 + $0x10] sm:$0xff] }
 0x8ae   : > { %25718 = vmatprep.mubr.msk.f32.mxu1 %vm12145_vm6, %v34688_v35  ;;  %v32895_v35 = vld [vmem:[#allocation16] ss:$0 sm:$0xff] }
 0x8b1   : > { %25719 = vmatmul.mubr.msk.f32.gmra.mrb[132].mxu1 %vm12145_vm6, %v34689_v32 }
 0x8b2   : > { %25721 = vmatprep.mubr.msk.f32.mxu1 %vm12145_vm6, %v34690_v53 }
 0x8b5   : > { %25722 = vmatmul.mubr.msk.f32.gmra.mrb[134].mxu1 %vm12145_vm6, %v34691_v7 }
 0x8b6   : > { %25724 = vmatprep.mubr.msk.f32.mxu1 %vm12145_vm6, %v34692_v58 }
 0x8b9   : > { %25725 = vmatmul.mubr.msk.f32.gmra.mrb[136].mxu1 %vm12145_vm6, %v34693_v21 }
 0x8ba   : > { %25727 = vmatprep.mubr.msk.f32.mxu1 %vm12145_vm6, %v34694_v54 }
 0x8bd   : > { %25728 = vmatmul.mubr.msk.f32.gmra.mrb[138].mxu1 %vm12145_vm6, %v34695_v61 }
 0x8be   : > { %25730 = vmatprep.mubr.msk.f32.mxu1 %vm12145_vm6, %v34696_v24 }
 0x8c1   : > { %25731 = vmatmul.mubr.msk.f32.gmra.mrb[140].mxu1 %vm12145_vm6, %v34697_v39 }
 0x8c2   : > { %25733 = vmatprep.mubr.msk.f32.mxu1 %vm12145_vm6, %v34698_v52 }
 0x8c5   : > { %25734 = vmatmul.mubr.msk.f32.gmra.mrb[142].mxu1 %vm12145_vm6, %v34699_v30 }
 0x8c6   : > { %25736 = vmatprep.mubr.msk.f32.mxu1 %vm12145_vm6, %v34700_v40 }
 0x8c9   : > { %25737 = vmatmul.mubr.msk.f32.gmra.mrb[144].mxu1 %vm12145_vm6, %v34701_v44 }
 0x8ca   : > { %25739 = vmatprep.mubr.msk.f32.mxu1 %vm12145_vm6, %v34702_v17 }
 0x8cd   : > { %25740 = vmatmul.mubr.msk.f32.gmra.mrb[146].mxu1 %vm12145_vm6, %v34703_v62 }
 0x8ce   : > { %25742 = vmatprep.mubr.msk.f32.mxu1 %vm12145_vm6, %v34704_v9 }
 0x8d1   : > { %25743 = vmatmul.mubr.msk.f32.gmra.mrb[148].mxu1 %vm12145_vm6, %v34705_v46 }
 0x8d2   : > { %25745 = vmatprep.mubr.msk.f32.mxu1 %vm12145_vm6, %v34706_v25 }
 0x8d5   : > { %25746 = vmatmul.mubr.msk.f32.gmra.mrb[150].mxu1 %vm12145_vm6, %v34707_v22 }
 0x8d6   : > { %25748 = vmatprep.mubr.msk.f32.mxu1 %vm12145_vm6, %v32405_v10  ;;  %v34709_v10 = vmov 0.0  }
 0x8d7   : > { %15764 = vst.msk [vmem:[#allocation6 + $0x58] sm:$0x3f] %vm15754_vm9, %v34709_v10  ;;  %15755 = vst.msk [vmem:[#allocation6 + $0x10] sm:$0x3f] %vm15754_vm9, %v34709_v10 }
 0x8d8   : > { %15758 = vst.msk [vmem:[#allocation6 + $0x28] sm:$0x3f] %vm15754_vm9, %v34709_v10  ;;  %15761 = vst.msk [vmem:[#allocation6 + $0x40] sm:$0x3f] %vm15754_vm9, %v34709_v10 }
 0x8d9   : > { %25749 = vmatmul.mubr.msk.f32.gmra.mrb[152].mxu1 %vm12145_vm6, %v34708_v14  ;;  %15767 = vst.msk [vmem:[#allocation6 + $0x70] sm:$0x3f] %vm15754_vm9, %v34709_v10  ;;  %15770 = vst.msk [vmem:[#allocation6 + $0x88] sm:$0x3f] %vm15754_vm9, %v34709_v10 }
 0x8da   : > { %25751 = vmatprep.mubr.msk.f32.mxu1 %vm12145_vm6, %v32417_v19  ;;  %15773 = vst.msk [vmem:[#allocation6 + $0xa0] sm:$0x3f] %vm15754_vm9, %v34709_v10  ;;  %15776 = vst.msk [vmem:[#allocation6 + $0xb8] sm:$0x3f] %vm15754_vm9, %v34709_v10  ;;  %v15884_v19 = vld [vmem:[%s34118_s13] sm:$0xff] }
 0x8db   : > { %15779 = vst.msk [vmem:[#allocation6 + $0xd0] sm:$0x3f] %vm15754_vm9, %v34709_v10  ;;  %15782 = vst.msk [vmem:[#allocation6 + $0xe8] sm:$0x3f] %vm15754_vm9, %v34709_v10  ;;  %25810 = vmatprep.subr.mxu0 %v15884_v19 }
 0x8dc   : > { %15785 = vst.msk [vmem:[#allocation6 + $0x100] sm:$0x3f] %vm15754_vm9, %v34709_v10  ;;  %15788 = vst.msk [vmem:[#allocation6 + $0x118] sm:$0x3f] %vm15754_vm9, %v34709_v10 }
 0x8dd   : > { %25752 = vmatmul.mubr.msk.f32.gmra.mrb[154].mxu1 %vm12145_vm6, %v32425_v34  ;;  %15791 = vst.msk [vmem:[#allocation6 + $0x130] sm:$0x3f] %vm15754_vm9, %v34709_v10  ;;  %15794 = vst.msk [vmem:[#allocation6 + $0x148] sm:$0x3f] %vm15754_vm9, %v34709_v10 }
 0x8de   : > { %25754 = vmatprep.mubr.msk.f32.mxu1 %vm12145_vm6, %v32661_v2  ;;  %15797 = vst.msk [vmem:[#allocation6 + $0x160] sm:$0x3f] %vm15754_vm9, %v34709_v10  ;;  %15800 = vst.msk [vmem:[#allocation6 + $0x178] sm:$0x3f] %vm15754_vm9, %v34709_v10  ;;  %v15885_v2 = vld [vmem:[#allocation6 + $0x3] sm:$0xff]  ;;  %v15886_v34 = vld [vmem:[#allocation6 + $0xb] sm:$0xff] }
 0x8df   : > { %15803 = vst.msk [vmem:[#allocation6 + $0x190] sm:$0x3f] %vm15754_vm9, %v34709_v10  ;;  %15806 = vst.msk [vmem:[#allocation6 + $0x1a8] sm:$0x3f] %vm15754_vm9, %v34709_v10  ;;  %25762 = vmatprep.mubr.msk.f32.mxu0 %vm4988_vm4, %v15885_v2  ;;  %v15888_v59 = vld [vmem:[#allocation6 + $0x23] sm:$0xff]  ;;  %v15890_v6 = vld [vmem:[#allocation6 + $0x3b] sm:$0xff] }
 0x8e0   : > { %15809 = vst.msk [vmem:[#allocation6 + $0x1c0] sm:$0x3f] %vm15754_vm9, %v34709_v10  ;;  %15812 = vst.msk [vmem:[#allocation6 + $0x1d8] sm:$0x3f] %vm15754_vm9, %v34709_v10  ;;  %25763 = vmatmul.mubr.msk.f32.vlgmr.msra.gmra.mrb[64].mxu0 %vm4988_vm4, %v15886_v34 }
 0x8e1   : > { %25755 = vmatmul.mubr.msk.f32.gmra.mrb[156].mxu1 %vm12145_vm6, %v32665_v16  ;;  %15815 = vst.msk [vmem:[#allocation6 + $0x1f0] sm:$0x3f] %vm15754_vm9, %v34709_v10  ;;  %15818 = vst.msk [vmem:[#allocation6 + $0x208] sm:$0x3f] %vm15754_vm9, %v34709_v10  ;;  %v15887_v16 = vld [vmem:[#allocation6 + $0x1b] sm:$0xff]  ;;  %25811 = vmatpush3.msra.mxu0 %v15884_v19 }
 0x8e2   : > { %25757 = vmatprep.mubr.msk.f32.mxu1 %vm12145_vm6, %v15321_v36  ;;  %25765 = vmatprep.mubr.msk.f32.mxu0 %vm4988_vm4, %v15887_v16 }
 0x8e3   : > { %25860 = vmatprep.subr.mxu0 %v32892_v27 }
 0x8e4   : > { %25766 = vmatmul.mubr.msk.f32.gmra.mrb[66].mxu0 %vm4988_vm4, %v15888_v59 }
 0x8e5   : > { %25758 = vmatmul.mubr.msk.f32.gmra.mrb[158].mxu1 %vm12145_vm6, %v15322_v31  ;;  %25768 = vmatprep.mubr.msk.f32.mxu0 %vm4988_vm4, %v15889_v0 }
 0x8e8   : > { %25769 = vmatmul.mubr.msk.f32.gmra.mrb[68].mxu0 %vm4988_vm4, %v15890_v6 }
 0x97c   : > { %v25714_v32 = vpop.f32.mrb[128].mxu1 }
 0x97d   : > { %v15689_v53 = vadd.f32 %v25714_v32, %v32895_v35  ;;  %v15490_v7 = vpop.f32.mrb[129].mxu1 }
 0x97e   : > { %v15688_v58 = vadd.f32 %v32895_v35, %v15490_v7 }
 0x97f   : > { %v15721_v21 = vmax.f32 %v15689_v53, 0.0 }
 0x980   : > { %v15720_v54 = vmax.f32 %v15688_v58, 0.0  ;;  %v25717_v61 = vpop.f32.mrb[130].mxu1 }
 0x981   : > { %15821 = vst.msk [vmem:[#allocation6 + $0x53] sm:$0xff] %vm4988_vm4, %v15721_v21  ;;  %v15691_v24 = vadd.f32 %v25717_v61, %v32895_v35  ;;  %v15500_v39 = vpop.f32.mrb[131].mxu1 }
 0x982   : > { %15820 = vst.msk [vmem:[#allocation6 + $0x4b] sm:$0xff] %vm4988_vm4, %v15720_v54  ;;  %v15690_v52 = vadd.f32 %v32895_v35, %v15500_v39 }
 0x983   : > { %v15723_v30 = vmax.f32 %v15691_v24, 0.0 }
 0x984   : > { %v15722_v40 = vmax.f32 %v15690_v52, 0.0  ;;  %v25720_v44 = vpop.f32.mrb[132].mxu1 }
 0x985   : > { %15823 = vst.msk [vmem:[#allocation6 + $0x6b] sm:$0xff] %vm4988_vm4, %v15723_v30  ;;  %v15693_v17 = vadd.f32 %v25720_v44, %v32895_v35  ;;  %v15510_v62 = vpop.f32.mrb[133].mxu1 }
 0x986   : > { %15822 = vst.msk [vmem:[#allocation6 + $0x63] sm:$0xff] %vm4988_vm4, %v15722_v40  ;;  %v15692_v9 = vadd.f32 %v32895_v35, %v15510_v62 }
 0x987   : > { %v15725_v46 = vmax.f32 %v15693_v17, 0.0 }
 0x988   : > { %v15724_v25 = vmax.f32 %v15692_v9, 0.0  ;;  %v25723_v22 = vpop.f32.mrb[134].mxu1  ;;  %v32915_v11 = vld [vmem:[#allocation6 + $0x53] sm:$0xff] }
 0x989   : > { %15825 = vst.msk [vmem:[#allocation6 + $0x83] sm:$0xff] %vm4988_vm4, %v15725_v46  ;;  %v15695_v14 = vadd.f32 %v25723_v22, %v32895_v35  ;;  %v15520_v1 = vpop.f32.mrb[135].mxu1  ;;  %v32909_v55 = vld [vmem:[#allocation6 + $0x4b] sm:$0xff] }
 0x98a   : > { %15824 = vst.msk [vmem:[#allocation6 + $0x7b] sm:$0xff] %vm4988_vm4, %v15724_v25  ;;  %v15694_v4 = vadd.f32 %v32895_v35, %v15520_v1  ;;  %25771 = vmatprep.mubr.msk.f32.mxu0 %vm4988_vm4, %v32909_v55 }
 0x98b   : > { %v15727_v42 = vmax.f32 %v15695_v14, 0.0  ;;  %25772 = vmatmul.mubr.msk.f32.gmra.mrb[70].mxu0 %vm4988_vm4, %v32915_v11 }
 0x98c   : > { %v15726_v26 = vmax.f32 %v15694_v4, 0.0  ;;  %v25726_v29 = vpop.f32.mrb[136].mxu1  ;;  %v32927_v51 = vld [vmem:[#allocation6 + $0x6b] sm:$0xff] }
 0x98d   : > { %15827 = vst.msk [vmem:[#allocation6 + $0x9b] sm:$0xff] %vm4988_vm4, %v15727_v42  ;;  %v15697_v47 = vadd.f32 %v25726_v29, %v32895_v35  ;;  %v15530_v15 = vpop.f32.mrb[137].mxu1  ;;  %v32921_v37 = vld [vmem:[#allocation6 + $0x63] sm:$0xff] }
 0x98e   : > { %15826 = vst.msk [vmem:[#allocation6 + $0x93] sm:$0xff] %vm4988_vm4, %v15726_v26  ;;  %v15696_v20 = vadd.f32 %v32895_v35, %v15530_v15  ;;  %25774 = vmatprep.mubr.msk.f32.mxu0 %vm4988_vm4, %v32921_v37 }
 0x98f   : > { %v15729_v49 = vmax.f32 %v15697_v47, 0.0  ;;  %25775 = vmatmul.mubr.msk.f32.gmra.mrb[72].mxu0 %vm4988_vm4, %v32927_v51 }
 0x990   : > { %v15728_v33 = vmax.f32 %v15696_v20, 0.0  ;;  %v25729_v41 = vpop.f32.mrb[138].mxu1  ;;  %v32939_v23 = vld [vmem:[#allocation6 + $0x83] sm:$0xff] }
 0x991   : > { %15829 = vst.msk [vmem:[#allocation6 + $0xb3] sm:$0xff] %vm4988_vm4, %v15729_v49  ;;  %v15699_v13 = vadd.f32 %v25729_v41, %v32895_v35  ;;  %v15540_v28 = vpop.f32.mrb[139].mxu1  ;;  %v32933_v45 = vld [vmem:[#allocation6 + $0x7b] sm:$0xff] }
 0x992   : > { %15828 = vst.msk [vmem:[#allocation6 + $0xab] sm:$0xff] %vm4988_vm4, %v15728_v33  ;;  %v15698_v8 = vadd.f32 %v32895_v35, %v15540_v28  ;;  %25777 = vmatprep.mubr.msk.f32.mxu0 %vm4988_vm4, %v32933_v45 }
 0x993   : > { %v15731_v12 = vmax.f32 %v15699_v13, 0.0  ;;  %25778 = vmatmul.mubr.msk.f32.gmra.mrb[74].mxu0 %vm4988_vm4, %v32939_v23 }
 0x994   : > { %v15730_v3 = vmax.f32 %v15698_v8, 0.0  ;;  %v25732_v5 = vpop.f32.mrb[140].mxu1  ;;  %v32951_v50 = vld [vmem:[#allocation6 + $0x9b] sm:$0xff] }
 0x995   : > { %15831 = vst.msk [vmem:[#allocation6 + $0xcb] sm:$0xff] %vm4988_vm4, %v15731_v12  ;;  %v15701_v57 = vadd.f32 %v25732_v5, %v32895_v35  ;;  %v15550_v48 = vpop.f32.mrb[141].mxu1  ;;  %v32945_v38 = vld [vmem:[#allocation6 + $0x93] sm:$0xff] }
 0x996   : > { %15830 = vst.msk [vmem:[#allocation6 + $0xc3] sm:$0xff] %vm4988_vm4, %v15730_v3  ;;  %v15700_v63 = vadd.f32 %v32895_v35, %v15550_v48  ;;  %25780 = vmatprep.mubr.msk.f32.mxu0 %vm4988_vm4, %v32945_v38 }
 0x997   : > { %v15733_v43 = vmax.f32 %v15701_v57, 0.0  ;;  %25781 = vmatmul.mubr.msk.f32.gmra.mrb[76].mxu0 %vm4988_vm4, %v32951_v50 }
 0x998   : > { %v15732_v18 = vmax.f32 %v15700_v63, 0.0  ;;  %v25735_v60 = vpop.f32.mrb[142].mxu1  ;;  %v32963_v2 = vld [vmem:[#allocation6 + $0xb3] sm:$0xff] }
 0x999   : > { %15833 = vst.msk [vmem:[#allocation6 + $0xe3] sm:$0xff] %vm4988_vm4, %v15733_v43  ;;  %v15703_v56 = vadd.f32 %v25735_v60, %v32895_v35  ;;  %v15560_v36 = vpop.f32.mrb[143].mxu1  ;;  %v32957_v31 = vld [vmem:[#allocation6 + $0xab] sm:$0xff] }
 0x99a   : > { %15832 = vst.msk [vmem:[#allocation6 + $0xdb] sm:$0xff] %vm4988_vm4, %v15732_v18  ;;  %v15702_v10 = vadd.f32 %v32895_v35, %v15560_v36  ;;  %25783 = vmatprep.mubr.msk.f32.mxu0 %vm4988_vm4, %v32957_v31 }
 0x99b   : > { %v15735_v19 = vmax.f32 %v15703_v56, 0.0  ;;  %25784 = vmatmul.mubr.msk.f32.gmra.mrb[78].mxu0 %vm4988_vm4, %v32963_v2 }
 0x99c   : > { %v15734_v34 = vmax.f32 %v15702_v10, 0.0  ;;  %v25738_v16 = vpop.f32.mrb[144].mxu1  ;;  %v32975_v53 = vld [vmem:[#allocation6 + $0xcb] sm:$0xff] }
 0x99d   : > { %15835 = vst.msk [vmem:[#allocation6 + $0xfb] sm:$0xff] %vm4988_vm4, %v15735_v19  ;;  %v15705_v59 = vadd.f32 %v25738_v16, %v32895_v35  ;;  %v15570_v0 = vpop.f32.mrb[145].mxu1  ;;  %v32969_v6 = vld [vmem:[#allocation6 + $0xc3] sm:$0xff] }
 0x99e   : > { %15834 = vst.msk [vmem:[#allocation6 + $0xf3] sm:$0xff] %vm4988_vm4, %v15734_v34  ;;  %v15704_v32 = vadd.f32 %v32895_v35, %v15570_v0  ;;  %25786 = vmatprep.mubr.msk.f32.mxu0 %vm4988_vm4, %v32969_v6 }
 0x99f   : > { %v15737_v7 = vmax.f32 %v15705_v59, 0.0  ;;  %25787 = vmatmul.mubr.msk.f32.gmra.mrb[80].mxu0 %vm4988_vm4, %v32975_v53 }
 0x9a0   : > { %v15736_v58 = vmax.f32 %v15704_v32, 0.0  ;;  %v25741_v21 = vpop.f32.mrb[146].mxu1  ;;  %v32987_v52 = vld [vmem:[#allocation6 + $0xe3] sm:$0xff] }
 0x9a1   : > { %15837 = vst.msk [vmem:[#allocation6 + $0x113] sm:$0xff] %vm4988_vm4, %v15737_v7  ;;  %v15707_v54 = vadd.f32 %v25741_v21, %v32895_v35  ;;  %v15580_v61 = vpop.f32.mrb[147].mxu1  ;;  %v32981_v24 = vld [vmem:[#allocation6 + $0xdb] sm:$0xff] }
 0x9a2   : > { %15836 = vst.msk [vmem:[#allocation6 + $0x10b] sm:$0xff] %vm4988_vm4, %v15736_v58  ;;  %v15706_v39 = vadd.f32 %v32895_v35, %v15580_v61  ;;  %25789 = vmatprep.mubr.msk.f32.mxu0 %vm4988_vm4, %v32981_v24  ;;  %v15852_v61 = vld [vmem:[#allocation6] sm:$0xff] }
 0x9a3   : > { %v15739_v30 = vmax.f32 %v15707_v54, 0.0  ;;  %25790 = vmatmul.mubr.msk.f32.gmra.mrb[82].mxu0 %vm4988_vm4, %v32987_v52 }
 0x9a4   : > { %v15738_v40 = vmax.f32 %v15706_v39, 0.0  ;;  %v25744_v44 = vpop.f32.mrb[148].mxu1  ;;  %v32999_v25 = vld [vmem:[#allocation6 + $0xfb] sm:$0xff] }
 0x9a5   : > { %15839 = vst.msk [vmem:[#allocation6 + $0x12b] sm:$0xff] %vm4988_vm4, %v15739_v30  ;;  %v15709_v17 = vadd.f32 %v25744_v44, %v32895_v35  ;;  %v15590_v62 = vpop.f32.mrb[149].mxu1  ;;  %v32993_v9 = vld [vmem:[#allocation6 + $0xf3] sm:$0xff] }
 0x9a6   : > { %15838 = vst.msk [vmem:[#allocation6 + $0x123] sm:$0xff] %vm4988_vm4, %v15738_v40  ;;  %v15708_v46 = vadd.f32 %v32895_v35, %v15590_v62  ;;  %25792 = vmatprep.mubr.msk.f32.mxu0 %vm4988_vm4, %v32993_v9  ;;  %v15854_v62 = vld [vmem:[#allocation6 + $0x18] sm:$0xff] }
 0x9a7   : > { %v15741_v22 = vmax.f32 %v15709_v17, 0.0  ;;  %25793 = vmatmul.mubr.msk.f32.gmra.mrb[84].mxu0 %vm4988_vm4, %v32999_v25  ;;  %v15853_v17 = vld [vmem:[#allocation6 + $0x8] sm:$0xff] }
 0x9a8   : > { %v15740_v14 = vmax.f32 %v15708_v46, 0.0  ;;  %v25747_v1 = vpop.f32.mrb[150].mxu1  ;;  %v33011_v47 = vld [vmem:[#allocation6 + $0x113] sm:$0xff]  ;;  %v15855_v46 = vld [vmem:[#allocation6 + $0x20] sm:$0xff] }
 0x9a9   : > { %15841 = vst.msk [vmem:[#allocation6 + $0x143] sm:$0xff] %vm4988_vm4, %v15741_v22  ;;  %v15711_v4 = vadd.f32 %v25747_v1, %v32895_v35  ;;  %v15600_v42 = vpop.f32.mrb[151].mxu1  ;;  %v33005_v26 = vld [vmem:[#allocation6 + $0x10b] sm:$0xff] }
 0x9aa   : > { %15840 = vst.msk [vmem:[#allocation6 + $0x13b] sm:$0xff] %vm4988_vm4, %v15740_v14  ;;  %v15710_v29 = vadd.f32 %v32895_v35, %v15600_v42  ;;  %25795 = vmatprep.mubr.msk.f32.mxu0 %vm4988_vm4, %v33005_v26  ;;  %v15856_v22 = vld [vmem:[#allocation6 + $0x30] sm:$0xff]  ;;  %v15857_v14 = vld [vmem:[#allocation6 + $0x38] sm:$0xff]  ;;  %v33078_v1 = vld [vmem:[#allocation6 + $0x48] sm:$0xff] }
 0x9ab   : > { %v15743_v15 = vmax.f32 %v15711_v4, 0.0  ;;  %25796 = vmatmul.mubr.msk.f32.gmra.mrb[86].mxu0 %vm4988_vm4, %v33011_v47  ;;  %v33082_v4 = vld [vmem:[#allocation6 + $0x50] sm:$0xff]  ;;  %v33090_v42 = vld [vmem:[#allocation6 + $0x68] sm:$0xff] }
 0x9ac   : > { %v15742_v20 = vmax.f32 %v15710_v29, 0.0  ;;  %v25750_v49 = vpop.f32.mrb[152].mxu1  ;;  %v33023_v8 = vld [vmem:[#allocation6 + $0x12b] sm:$0xff]  ;;  %v33094_v29 = vld [vmem:[#allocation6 + $0x78] sm:$0xff] }
 0x9ad   : > { %15843 = vst.msk [vmem:[#allocation6 + $0x15b] sm:$0xff] %vm4988_vm4, %v15743_v15  ;;  %v15713_v33 = vadd.f32 %v25750_v49, %v32895_v35  ;;  %v15610_v41 = vpop.f32.mrb[153].mxu1  ;;  %v33017_v13 = vld [vmem:[#allocation6 + $0x123] sm:$0xff]  ;;  %v33106_v49 = vld [vmem:[#allocation6 + $0x98] sm:$0xff] }
 0x9ae   : > { %15842 = vst.msk [vmem:[#allocation6 + $0x153] sm:$0xff] %vm4988_vm4, %v15742_v20  ;;  %v15712_v28 = vadd.f32 %v32895_v35, %v15610_v41  ;;  %25798 = vmatprep.mubr.msk.f32.mxu0 %vm4988_vm4, %v33017_v13  ;;  %v33098_v15 = vld [vmem:[#allocation6 + $0x80] sm:$0xff]  ;;  %v33102_v20 = vld [vmem:[#allocation6 + $0x90] sm:$0xff] }
 0x9af   : > { %v15745_v12 = vmax.f32 %v15713_v33, 0.0  ;;  %25799 = vmatmul.mubr.msk.f32.gmra.mrb[88].mxu0 %vm4988_vm4, %v33023_v8  ;;  %v33110_v33 = vld [vmem:[#allocation6 + $0xa8] sm:$0xff]  ;;  %v33114_v41 = vld [vmem:[#allocation6 + $0xb0] sm:$0xff] }
 0x9b0   : > { %v15744_v3 = vmax.f32 %v15712_v28, 0.0  ;;  %v25753_v5 = vpop.f32.mrb[154].mxu1  ;;  %v33035_v18 = vld [vmem:[#allocation6 + $0x143] sm:$0xff] }
 0x9b1   : > { %15845 = vst.msk [vmem:[#allocation6 + $0x173] sm:$0xff] %vm4988_vm4, %v15745_v12  ;;  %v15715_v57 = vadd.f32 %v25753_v5, %v32895_v35  ;;  %v15620_v48 = vpop.f32.mrb[155].mxu1  ;;  %v33029_v63 = vld [vmem:[#allocation6 + $0x13b] sm:$0xff]  ;;  %v33122_v12 = vld [vmem:[#allocation6 + $0xc8] sm:$0xff] }
 0x9b2   : > { %15844 = vst.msk [vmem:[#allocation6 + $0x16b] sm:$0xff] %vm4988_vm4, %v15744_v3  ;;  %v15714_v43 = vadd.f32 %v32895_v35, %v15620_v48  ;;  %25801 = vmatprep.mubr.msk.f32.mxu0 %vm4988_vm4, %v33029_v63  ;;  %v33118_v28 = vld [vmem:[#allocation6 + $0xc0] sm:$0xff]  ;;  %v33126_v3 = vld [vmem:[#allocation6 + $0xd8] sm:$0xff] }
 0x9b3   : > { %v15747_v60 = vmax.f32 %v15715_v57, 0.0  ;;  %25802 = vmatmul.mubr.msk.f32.gmra.mrb[90].mxu0 %vm4988_vm4, %v33035_v18  ;;  %v33130_v5 = vld [vmem:[#allocation6 + $0xe0] sm:$0xff]  ;;  %v33134_v57 = vld [vmem:[#allocation6 + $0xf0] sm:$0xff]  ;;  %v33138_v48 = vld [vmem:[#allocation6 + $0xf8] sm:$0xff] }
 0x9b4   : > { %v15746_v56 = vmax.f32 %v15714_v43, 0.0  ;;  %v25756_v36 = vpop.f32.mrb[156].mxu1  ;;  %v33047_v59 = vld [vmem:[#allocation6 + $0x15b] sm:$0xff]  ;;  %v33142_v43 = vld [vmem:[#allocation6 + $0x108] sm:$0xff] }
 0x9b5   : > { %15847 = vst.msk [vmem:[#allocation6 + $0x18b] sm:$0xff] %vm4988_vm4, %v15747_v60  ;;  %v15717_v10 = vadd.f32 %v25756_v36, %v32895_v35  ;;  %v15630_v19 = vpop.f32.mrb[157].mxu1  ;;  %v33041_v34 = vld [vmem:[#allocation6 + $0x153] sm:$0xff]  ;;  %v33154_v36 = vld [vmem:[#allocation6 + $0x128] sm:$0xff] }
 0x9b6   : > { %15846 = vst.msk [vmem:[#allocation6 + $0x183] sm:$0xff] %vm4988_vm4, %v15746_v56  ;;  %v15716_v16 = vadd.f32 %v32895_v35, %v15630_v19  ;;  %25804 = vmatprep.mubr.msk.f32.mxu0 %vm4988_vm4, %v33041_v34  ;;  %v33146_v60 = vld [vmem:[#allocation6 + $0x110] sm:$0xff]  ;;  %v33150_v56 = vld [vmem:[#allocation6 + $0x120] sm:$0xff] }
 0x9b7   : > { %v15749_v0 = vmax.f32 %v15717_v10, 0.0  ;;  %25805 = vmatmul.mubr.msk.f32.gmra.mrb[92].mxu0 %vm4988_vm4, %v33047_v59  ;;  %v33158_v10 = vld [vmem:[#allocation6 + $0x138] sm:$0xff]  ;;  %v33162_v19 = vld [vmem:[#allocation6 + $0x140] sm:$0xff] }
 0x9b8   : > { %v15748_v32 = vmax.f32 %v15716_v16, 0.0  ;;  %v25759_v7 = vpop.f32.mrb[158].mxu1  ;;  %v33059_v30 = vld [vmem:[#allocation6 + $0x173] sm:$0xff] }
 0x9b9   : > { %15849 = vst.msk [vmem:[#allocation6 + $0x1a3] sm:$0xff] %vm4988_vm4, %v15749_v0  ;;  %v15719_v58 = vadd.f32 %v25759_v7, %v32895_v35  ;;  %v15640_v21 = vpop.f32.mrb[159].mxu1  ;;  %v33053_v54 = vld [vmem:[#allocation6 + $0x16b] sm:$0xff]  ;;  %v33170_v0 = vld [vmem:[#allocation6 + $0x158] sm:$0xff] }
 0x9ba   : > { %15848 = vst.msk [vmem:[#allocation6 + $0x19b] sm:$0xff] %vm4988_vm4, %v15748_v32  ;;  %v15718_v39 = vadd.f32 %v32895_v35, %v15640_v21  ;;  %25807 = vmatprep.mubr.msk.f32.mxu0 %vm4988_vm4, %v33053_v54  ;;  %v33069_v35 = vld [vmem:[%s34118_s13 + $0x18] sm:$0xff]  ;;  %v33166_v16 = vld [vmem:[#allocation6 + $0x150] sm:$0xff] }
 0x9bb   : > { %v15751_v40 = vmax.f32 %v15719_v58, 0.0  ;;  %25808 = vmatmul.mubr.msk.f32.gmra.mrb[94].mxu0 %vm4988_vm4, %v33059_v30  ;;  %v33174_v32 = vld [vmem:[#allocation6 + $0x168] sm:$0xff]  ;;  %v33178_v58 = vld [vmem:[#allocation6 + $0x170] sm:$0xff] }
 0x9bc   : > { %v15750_v44 = vmax.f32 %v15718_v39, 0.0  ;;  %25812 = vmatprep.mubr.msk.f32.mxu0 %vm4988_vm4, %v15852_v61  ;;  %v16561_v7 = vld [vmem:[#allocation6 + $0x6] sm:$0xff]  ;;  %v16562_v21 = vld [vmem:[#allocation6 + $0xe] sm:$0xff]  ;;  %v16563_v61 = vld [vmem:[#allocation6 + $0x1e] sm:$0xff] }
 0x9bd   : > { %15851 = vst.msk [vmem:[#allocation6 + $0x1bb] sm:$0xff] %vm4988_vm4, %v15751_v40  ;;  %v33186_v39 = vld [vmem:[%s34118_s13 + $0x20] sm:$0xff]  ;;  %v16564_v40 = vld [vmem:[#allocation6 + $0x26] sm:$0xff] }
 0x9be   : > { %15850 = vst.msk [vmem:[#allocation6 + $0x1b3] sm:$0xff] %vm4988_vm4, %v15750_v44  ;;  %v16565_v44 = vld [vmem:[#allocation6 + $0x36] sm:$0xff] }
 0x9bf   : > { %25813 = vmatmul.mubr.msk.f32.vlgmr.msra.gmra.mrb[64].mxu0 %vm4988_vm4, %v15853_v17  ;;  %v16566_v17 = vld [vmem:[#allocation6 + $0x3e] sm:$0xff] }
 0x9c0   : > { %25861 = vmatpush3.msra.mxu0 %v32892_v27  ;;  %25815 = vmatprep.mubr.msk.f32.mxu0 %vm4988_vm4, %v15854_v62  ;;  %v33086_v27 = vld [vmem:[#allocation6 + $0x60] sm:$0xff]  ;;  %v33195_v62 = vld [vmem:[#allocation6 + $0x4e] sm:$0xff] }
 0x9c1   : > { %25910 = vmatprep.subr.mxu0 %v33069_v35 }
 0x9c3   : > { %25816 = vmatmul.mubr.msk.f32.gmra.mrb[66].mxu0 %vm4988_vm4, %v15855_v46  ;;  %v33199_v46 = vld [vmem:[#allocation6 + $0x56] sm:$0xff] }
 0x9c4   : > { %25818 = vmatprep.mubr.msk.f32.mxu0 %vm4988_vm4, %v15856_v22  ;;  %v33207_v22 = vld [vmem:[#allocation6 + $0x6e] sm:$0xff] }
 0x9c7   : > { %25819 = vmatmul.mubr.msk.f32.gmra.mrb[68].mxu0 %vm4988_vm4, %v15857_v14  ;;  %v33211_v14 = vld [vmem:[#allocation6 + $0x7e] sm:$0xff] }
 0x9c8   : > { %25821 = vmatprep.mubr.msk.f32.mxu0 %vm4988_vm4, %v33078_v1 }
 0x9cb   : > { %25822 = vmatmul.mubr.msk.f32.gmra.mrb[70].mxu0 %vm4988_vm4, %v33082_v4 }
 0x9cc   : > { %25824 = vmatprep.mubr.msk.f32.mxu0 %vm4988_vm4, %v33086_v27 }
 0x9cf   : > { %25825 = vmatmul.mubr.msk.f32.gmra.mrb[72].mxu0 %vm4988_vm4, %v33090_v42 }
 0x9d0   : > { %25827 = vmatprep.mubr.msk.f32.mxu0 %vm4988_vm4, %v33094_v29 }
 0x9d3   : > { %25828 = vmatmul.mubr.msk.f32.gmra.mrb[74].mxu0 %vm4988_vm4, %v33098_v15 }
 0x9d4   : > { %25830 = vmatprep.mubr.msk.f32.mxu0 %vm4988_vm4, %v33102_v20 }
 0x9d7   : > { %25831 = vmatmul.mubr.msk.f32.gmra.mrb[76].mxu0 %vm4988_vm4, %v33106_v49 }
 0x9d8   : > { %25833 = vmatprep.mubr.msk.f32.mxu0 %vm4988_vm4, %v33110_v33 }
 0x9db   : > { %25834 = vmatmul.mubr.msk.f32.gmra.mrb[78].mxu0 %vm4988_vm4, %v33114_v41 }
 0x9dc   : > { %25836 = vmatprep.mubr.msk.f32.mxu0 %vm4988_vm4, %v33118_v28 }
 0x9df   : > { %25837 = vmatmul.mubr.msk.f32.gmra.mrb[80].mxu0 %vm4988_vm4, %v33122_v12 }
 0x9e0   : > { %25839 = vmatprep.mubr.msk.f32.mxu0 %vm4988_vm4, %v33126_v3 }
 0x9e3   : > { %25840 = vmatmul.mubr.msk.f32.gmra.mrb[82].mxu0 %vm4988_vm4, %v33130_v5 }
 0x9e4   : > { %25842 = vmatprep.mubr.msk.f32.mxu0 %vm4988_vm4, %v33134_v57 }
 0x9e7   : > { %25843 = vmatmul.mubr.msk.f32.gmra.mrb[84].mxu0 %vm4988_vm4, %v33138_v48 }
 0x9e8   : > { %25845 = vmatprep.mubr.msk.f32.mxu0 %vm4988_vm4, %v33142_v43 }
 0x9eb   : > { %25846 = vmatmul.mubr.msk.f32.gmra.mrb[86].mxu0 %vm4988_vm4, %v33146_v60 }
 0x9ec   : > { %25848 = vmatprep.mubr.msk.f32.mxu0 %vm4988_vm4, %v33150_v56 }
 0x9ef   : > { %25849 = vmatmul.mubr.msk.f32.gmra.mrb[88].mxu0 %vm4988_vm4, %v33154_v36 }
 0x9f0   : > { %25851 = vmatprep.mubr.msk.f32.mxu0 %vm4988_vm4, %v33158_v10 }
 0x9f3   : > { %25852 = vmatmul.mubr.msk.f32.gmra.mrb[90].mxu0 %vm4988_vm4, %v33162_v19 }
 0x9f4   : > { %25854 = vmatprep.mubr.msk.f32.mxu0 %vm4988_vm4, %v33166_v16 }
 0x9f7   : > { %25855 = vmatmul.mubr.msk.f32.gmra.mrb[92].mxu0 %vm4988_vm4, %v33170_v0 }
 0x9f8   : > { %25857 = vmatprep.mubr.msk.f32.mxu0 %vm4988_vm4, %v33174_v32 }
 0x9fb   : > { %25858 = vmatmul.mubr.msk.f32.gmra.mrb[94].mxu0 %vm4988_vm4, %v33178_v58 }
 0x9fc   : > { %25862 = vmatprep.mubr.msk.f32.mxu0 %vm4988_vm4, %v16561_v7  ;;  %v33215_v7 = vld [vmem:[#allocation6 + $0x86] sm:$0xff] }
 0x9ff   : > { %25863 = vmatmul.mubr.msk.f32.vlgmr.msra.gmra.mrb[64].mxu0 %vm4988_vm4, %v16562_v21  ;;  %v33219_v21 = vld [vmem:[#allocation6 + $0x96] sm:$0xff] }
 0xa00   : > { %25911 = vmatpush3.msra.mxu0 %v33069_v35  ;;  %25865 = vmatprep.mubr.msk.f32.mxu0 %vm4988_vm4, %v16563_v61  ;;  %v33203_v35 = vld [vmem:[#allocation6 + $0x66] sm:$0xff]  ;;  %34710 = vst [vmem:[#allocation51_spill] sm:$0xff] %v33219_v21  ;;  %v33223_v61 = vld [vmem:[#allocation6 + $0x9e] sm:$0xff] }
 0xa01   : > { %25960 = vmatprep.subr.mxu0 %v33186_v39  ;;  %34711 = vst [vmem:[#allocation52_spill] sm:$0xff] %v33223_v61 }
 0xa03   : > { %25866 = vmatmul.mubr.msk.f32.gmra.mrb[66].mxu0 %vm4988_vm4, %v16564_v40  ;;  %v33227_v40 = vld [vmem:[#allocation6 + $0xae] sm:$0xff] }
 0xa04   : > { %25868 = vmatprep.mubr.msk.f32.mxu0 %vm4988_vm4, %v16565_v44  ;;  %34712 = vst [vmem:[#allocation53_spill] sm:$0xff] %v33227_v40  ;;  %v33231_v44 = vld [vmem:[#allocation6 + $0xb6] sm:$0xff] }
 0xa05   : > { %34713 = vst [vmem:[#allocation56_spill] sm:$0xff] %v33231_v44 }
 0xa07   : > { %25869 = vmatmul.mubr.msk.f32.gmra.mrb[68].mxu0 %vm4988_vm4, %v16566_v17  ;;  %v33235_v17 = vld [vmem:[#allocation6 + $0xc6] sm:$0xff] }
 0xa08   : > { %25871 = vmatprep.mubr.msk.f32.mxu0 %vm4988_vm4, %v33195_v62  ;;  %34714 = vst [vmem:[#allocation54_spill] sm:$0xff] %v33235_v17 }
 0xa0b   : > { %25872 = vmatmul.mubr.msk.f32.gmra.mrb[70].mxu0 %vm4988_vm4, %v33199_v46 }
 0xa0c   : > { %25874 = vmatprep.mubr.msk.f32.mxu0 %vm4988_vm4, %v33203_v35 }
 0xa0f   : > { %25875 = vmatmul.mubr.msk.f32.gmra.mrb[72].mxu0 %vm4988_vm4, %v33207_v22 }
 0xa10   : > { %25877 = vmatprep.mubr.msk.f32.mxu0 %vm4988_vm4, %v33211_v14 }
 0xa13   : > { %25878 = vmatmul.mubr.msk.f32.gmra.mrb[74].mxu0 %vm4988_vm4, %v33215_v7 }
 0xa14   : > { %25880 = vmatprep.mubr.msk.f32.mxu0 %vm4988_vm4, %v33219_v21  ;;  %v33239_v21 = vld [vmem:[#allocation6 + $0xce] sm:$0xff] }
 0xa15   : > { %34715 = vst [vmem:[#allocation58_spill] sm:$0xff] %v33239_v21 }
 0xa17   : > { %25881 = vmatmul.mubr.msk.f32.gmra.mrb[76].mxu0 %vm4988_vm4, %v33223_v61  ;;  %v33243_v61 = vld [vmem:[#allocation6 + $0xde] sm:$0xff] }
 0xa18   : > { %25883 = vmatprep.mubr.msk.f32.mxu0 %vm4988_vm4, %v33227_v40  ;;  %34716 = vst [vmem:[#allocation55_spill] sm:$0xff] %v33243_v61  ;;  %v33247_v40 = vld [vmem:[#allocation6 + $0xe6] sm:$0xff] }
 0xa19   : > { %34717 = vst [vmem:[#allocation60_spill] sm:$0xff] %v33247_v40 }
 0xa1b   : > { %25884 = vmatmul.mubr.msk.f32.gmra.mrb[78].mxu0 %vm4988_vm4, %v33231_v44  ;;  %v33251_v44 = vld [vmem:[#allocation6 + $0xf6] sm:$0xff] }
 0xa1c   : > { %25886 = vmatprep.mubr.msk.f32.mxu0 %vm4988_vm4, %v33235_v17  ;;  %34718 = vst [vmem:[#allocation57_spill] sm:$0xff] %v33251_v44  ;;  %v33255_v17 = vld [vmem:[#allocation6 + $0xfe] sm:$0xff] }
 0xa1d   : > { %34719 = vst [vmem:[#allocation62_spill] sm:$0xff] %v33255_v17 }
 0xa1f   : > { %25887 = vmatmul.mubr.msk.f32.gmra.mrb[80].mxu0 %vm4988_vm4, %v33239_v21  ;;  %v33259_v21 = vld [vmem:[#allocation6 + $0x10e] sm:$0xff] }
 0xa20   : > { %25889 = vmatprep.mubr.msk.f32.mxu0 %vm4988_vm4, %v33243_v61  ;;  %34720 = vst [vmem:[#allocation59_spill] sm:$0xff] %v33259_v21  ;;  %v33263_v61 = vld [vmem:[#allocation6 + $0x116] sm:$0xff] }
 0xa21   : > { %34721 = vst [vmem:[#allocation64_spill] sm:$0xff] %v33263_v61 }
 0xa23   : > { %25890 = vmatmul.mubr.msk.f32.gmra.mrb[82].mxu0 %vm4988_vm4, %v33247_v40  ;;  %v33267_v40 = vld [vmem:[#allocation6 + $0x126] sm:$0xff] }
 0xa24   : > { %25892 = vmatprep.mubr.msk.f32.mxu0 %vm4988_vm4, %v33251_v44  ;;  %34722 = vst [vmem:[#allocation61_spill] sm:$0xff] %v33267_v40  ;;  %v33271_v44 = vld [vmem:[#allocation6 + $0x12e] sm:$0xff] }
 0xa25   : > { %34723 = vst [vmem:[#allocation68_spill] sm:$0xff] %v33271_v44 }
 0xa27   : > { %25893 = vmatmul.mubr.msk.f32.gmra.mrb[84].mxu0 %vm4988_vm4, %v33255_v17  ;;  %v33275_v17 = vld [vmem:[#allocation6 + $0x13e] sm:$0xff] }
 0xa28   : > { %25895 = vmatprep.mubr.msk.f32.mxu0 %vm4988_vm4, %v33259_v21  ;;  %34724 = vst [vmem:[#allocation65_spill] sm:$0xff] %v33275_v17  ;;  %v33279_v21 = vld [vmem:[#allocation6 + $0x146] sm:$0xff] }
 0xa2b   : > { %25896 = vmatmul.mubr.msk.f32.gmra.mrb[86].mxu0 %vm4988_vm4, %v33263_v61  ;;  %v33283_v61 = vld [vmem:[#allocation6 + $0x156] sm:$0xff] }
 0xa2c   : > { %25898 = vmatprep.mubr.msk.f32.mxu0 %vm4988_vm4, %v33267_v40  ;;  %34725 = vst [vmem:[#allocation72_spill] sm:$0xff] %v33283_v61  ;;  %v33287_v40 = vld [vmem:[#allocation6 + $0x15e] sm:$0xff] }
 0xa2d   : > { %34726 = vst [vmem:[#allocation69_spill] sm:$0xff] %v33287_v40 }
 0xa2f   : > { %25899 = vmatmul.mubr.msk.f32.gmra.mrb[88].mxu0 %vm4988_vm4, %v33271_v44  ;;  %v33291_v44 = vld [vmem:[#allocation6 + $0x16e] sm:$0xff] }
 0xa30   : > { %25901 = vmatprep.mubr.msk.f32.mxu0 %vm4988_vm4, %v33275_v17  ;;  %v33295_v17 = vld [vmem:[#allocation6 + $0x176] sm:$0xff] }
 0xa31   : > { %34727 = vst [vmem:[#allocation76_spill] sm:$0xff] %v33295_v17 }
 0xa33   : > { %25902 = vmatmul.mubr.msk.f32.gmra.mrb[90].mxu0 %vm4988_vm4, %v33279_v21 }
 0xa34   : > { %25904 = vmatprep.mubr.msk.f32.mxu0 %vm4988_vm4, %v33283_v61  ;;  %v21952_v61 = vld [vmem:[%s34118_s13 + $0x28] sm:$0xff] }
 0xa37   : > { %25905 = vmatmul.mubr.msk.f32.gmra.mrb[92].mxu0 %vm4988_vm4, %v33287_v40 }
 0xa38   : > { %25907 = vmatprep.mubr.msk.f32.mxu0 %vm4988_vm4, %v33291_v44 }
 0xa3b   : > { %25908 = vmatmul.mubr.msk.f32.gmra.mrb[94].mxu0 %vm4988_vm4, %v33295_v17 }
 0xa3c   : > { %25912 = vmatprep.mubr.msk.f32.mxu0 %vm4988_vm4, %v33078_v1  ;;  %v33355_v1 = vld [vmem:[#allocation6 + $0x180] sm:$0xff] }
 0xa3f   : > { %25913 = vmatmul.mubr.msk.f32.vlgmr.msra.gmra.mrb[64].mxu0 %vm4988_vm4, %v33082_v4  ;;  %v33359_v4 = vld [vmem:[#allocation6 + $0x188] sm:$0xff] }
 0xa40   : > { %25961 = vmatpush3.msra.mxu0 %v33186_v39  ;;  %25915 = vmatprep.mubr.msk.f32.mxu0 %vm4988_vm4, %v33086_v27  ;;  %v33363_v27 = vld [vmem:[#allocation6 + $0x198] sm:$0xff]  ;;  %v21985_v39 = vld [vmem:[%s34118_s13 + $0x30] sm:$0xff] }
 0xa41   : > { %26010 = vmatprep.subr.mxu0 %v21952_v61 }
 0xa43   : > { %25916 = vmatmul.mubr.msk.f32.gmra.mrb[66].mxu0 %vm4988_vm4, %v33090_v42  ;;  %v33367_v42 = vld [vmem:[#allocation6 + $0x1a0] sm:$0xff] }
 0xa44   : > { %25918 = vmatprep.mubr.msk.f32.mxu0 %vm4988_vm4, %v33094_v29  ;;  %v33371_v29 = vld [vmem:[#allocation6 + $0x1b0] sm:$0xff] }
 0xa47   : > { %25919 = vmatmul.mubr.msk.f32.gmra.mrb[68].mxu0 %vm4988_vm4, %v33098_v15  ;;  %v33375_v15 = vld [vmem:[#allocation6 + $0x1b8] sm:$0xff] }
 0xa48   : > { %25921 = vmatprep.mubr.msk.f32.mxu0 %vm4988_vm4, %v33102_v20 }
 0xa4b   : > { %25922 = vmatmul.mubr.msk.f32.gmra.mrb[70].mxu0 %vm4988_vm4, %v33106_v49 }
 0xa4c   : > { %25924 = vmatprep.mubr.msk.f32.mxu0 %vm4988_vm4, %v33110_v33 }
 0xa4f   : > { %25925 = vmatmul.mubr.msk.f32.gmra.mrb[72].mxu0 %vm4988_vm4, %v33114_v41 }
 0xa50   : > { %25927 = vmatprep.mubr.msk.f32.mxu0 %vm4988_vm4, %v33118_v28 }
 0xa53   : > { %25928 = vmatmul.mubr.msk.f32.gmra.mrb[74].mxu0 %vm4988_vm4, %v33122_v12 }
 0xa54   : > { %25930 = vmatprep.mubr.msk.f32.mxu0 %vm4988_vm4, %v33126_v3 }
 0xa57   : > { %25931 = vmatmul.mubr.msk.f32.gmra.mrb[76].mxu0 %vm4988_vm4, %v33130_v5 }
 0xa58   : > { %25933 = vmatprep.mubr.msk.f32.mxu0 %vm4988_vm4, %v33134_v57 }
 0xa5b   : > { %25934 = vmatmul.mubr.msk.f32.gmra.mrb[78].mxu0 %vm4988_vm4, %v33138_v48 }
 0xa5c   : > { %25936 = vmatprep.mubr.msk.f32.mxu0 %vm4988_vm4, %v33142_v43 }
 0xa5f   : > { %25937 = vmatmul.mubr.msk.f32.gmra.mrb[80].mxu0 %vm4988_vm4, %v33146_v60 }
 0xa60   : > { %25939 = vmatprep.mubr.msk.f32.mxu0 %vm4988_vm4, %v33150_v56 }
 0xa63   : > { %25940 = vmatmul.mubr.msk.f32.gmra.mrb[82].mxu0 %vm4988_vm4, %v33154_v36 }
 0xa64   : > { %25942 = vmatprep.mubr.msk.f32.mxu0 %vm4988_vm4, %v33158_v10 }
 0xa67   : > { %25943 = vmatmul.mubr.msk.f32.gmra.mrb[84].mxu0 %vm4988_vm4, %v33162_v19 }
 0xa68   : > { %25945 = vmatprep.mubr.msk.f32.mxu0 %vm4988_vm4, %v33166_v16 }
 0xa6b   : > { %25946 = vmatmul.mubr.msk.f32.gmra.mrb[86].mxu0 %vm4988_vm4, %v33170_v0 }
 0xa6c   : > { %25948 = vmatprep.mubr.msk.f32.mxu0 %vm4988_vm4, %v33174_v32 }
 0xa6f   : > { %25949 = vmatmul.mubr.msk.f32.gmra.mrb[88].mxu0 %vm4988_vm4, %v33178_v58 }
 0xa70   : > { %25951 = vmatprep.mubr.msk.f32.mxu0 %vm4988_vm4, %v33355_v1 }
 0xa73   : > { %25952 = vmatmul.mubr.msk.f32.gmra.mrb[90].mxu0 %vm4988_vm4, %v33359_v4 }
 0xa74   : > { %25954 = vmatprep.mubr.msk.f32.mxu0 %vm4988_vm4, %v33363_v27 }
 0xa77   : > { %25955 = vmatmul.mubr.msk.f32.gmra.mrb[92].mxu0 %vm4988_vm4, %v33367_v42 }
 0xa78   : > { %25957 = vmatprep.mubr.msk.f32.mxu0 %vm4988_vm4, %v33371_v29 }
 0xa7b   : > { %25958 = vmatmul.mubr.msk.f32.gmra.mrb[94].mxu0 %vm4988_vm4, %v33375_v15 }
 0xa7c   : > { %25962 = vmatprep.mubr.msk.f32.mxu0 %vm4988_vm4, %v32909_v55  ;;  %v33434_v55 = vld [vmem:[#allocation6 + $0x183] sm:$0xff] }
 0xa7f   : > { %25963 = vmatmul.mubr.msk.f32.vlgmr.msra.gmra.mrb[64].mxu0 %vm4988_vm4, %v32915_v11  ;;  %v33438_v11 = vld [vmem:[#allocation6 + $0x18b] sm:$0xff] }
 0xa80   : > { %26011 = vmatpush3.msra.mxu0 %v21952_v61  ;;  %25965 = vmatprep.mubr.msk.f32.mxu0 %vm4988_vm4, %v32921_v37  ;;  %v33442_v37 = vld [vmem:[#allocation6 + $0x19b] sm:$0xff]  ;;  %v34732_v61 = vld [vmem:[#allocation54_spill] sm:$0xff] }
 0xa81   : > { %26060 = vmatprep.subr.mxu0 %v21985_v39 }
 0xa83   : > { %25966 = vmatmul.mubr.msk.f32.gmra.mrb[66].mxu0 %vm4988_vm4, %v32927_v51  ;;  %v33446_v51 = vld [vmem:[#allocation6 + $0x1a3] sm:$0xff] }
 0xa84   : > { %25968 = vmatprep.mubr.msk.f32.mxu0 %vm4988_vm4, %v32933_v45  ;;  %v33450_v45 = vld [vmem:[#allocation6 + $0x1b3] sm:$0xff] }
 0xa87   : > { %25969 = vmatmul.mubr.msk.f32.gmra.mrb[68].mxu0 %vm4988_vm4, %v32939_v23  ;;  %v33454_v23 = vld [vmem:[#allocation6 + $0x1bb] sm:$0xff] }
 0xa88   : > { %25971 = vmatprep.mubr.msk.f32.mxu0 %vm4988_vm4, %v32945_v38  ;;  %v22018_v38 = vld [vmem:[%s34118_s13 + $0x38] sm:$0xff] }
 0xa8b   : > { %25972 = vmatmul.mubr.msk.f32.gmra.mrb[70].mxu0 %vm4988_vm4, %v32951_v50  ;;  %v34728_v50 = vld [vmem:[#allocation51_spill] sm:$0xff] }
 0xa8c   : > { %25974 = vmatprep.mubr.msk.f32.mxu0 %vm4988_vm4, %v32957_v31 }
 0xa8f   : > { %25975 = vmatmul.mubr.msk.f32.gmra.mrb[72].mxu0 %vm4988_vm4, %v32963_v2 }
 0xa90   : > { %25977 = vmatprep.mubr.msk.f32.mxu0 %vm4988_vm4, %v32969_v6 }
 0xa93   : > { %25978 = vmatmul.mubr.msk.f32.gmra.mrb[74].mxu0 %vm4988_vm4, %v32975_v53 }
 0xa94   : > { %25980 = vmatprep.mubr.msk.f32.mxu0 %vm4988_vm4, %v32981_v24 }
 0xa97   : > { %25981 = vmatmul.mubr.msk.f32.gmra.mrb[76].mxu0 %vm4988_vm4, %v32987_v52 }
 0xa98   : > { %25983 = vmatprep.mubr.msk.f32.mxu0 %vm4988_vm4, %v32993_v9 }
 0xa9b   : > { %25984 = vmatmul.mubr.msk.f32.gmra.mrb[78].mxu0 %vm4988_vm4, %v32999_v25 }
 0xa9c   : > { %25986 = vmatprep.mubr.msk.f32.mxu0 %vm4988_vm4, %v33005_v26 }
 0xa9f   : > { %25987 = vmatmul.mubr.msk.f32.gmra.mrb[80].mxu0 %vm4988_vm4, %v33011_v47 }
 0xaa0   : > { %25989 = vmatprep.mubr.msk.f32.mxu0 %vm4988_vm4, %v33017_v13 }
 0xaa3   : > { %25990 = vmatmul.mubr.msk.f32.gmra.mrb[82].mxu0 %vm4988_vm4, %v33023_v8 }
 0xaa4   : > { %25992 = vmatprep.mubr.msk.f32.mxu0 %vm4988_vm4, %v33029_v63 }
 0xaa7   : > { %25993 = vmatmul.mubr.msk.f32.gmra.mrb[84].mxu0 %vm4988_vm4, %v33035_v18 }
 0xaa8   : > { %25995 = vmatprep.mubr.msk.f32.mxu0 %vm4988_vm4, %v33041_v34 }
 0xaab   : > { %25996 = vmatmul.mubr.msk.f32.gmra.mrb[86].mxu0 %vm4988_vm4, %v33047_v59 }
 0xaac   : > { %25998 = vmatprep.mubr.msk.f32.mxu0 %vm4988_vm4, %v33053_v54 }
 0xaaf   : > { %25999 = vmatmul.mubr.msk.f32.gmra.mrb[88].mxu0 %vm4988_vm4, %v33059_v30 }
 0xab0   : > { %26001 = vmatprep.mubr.msk.f32.mxu0 %vm4988_vm4, %v33434_v55 }
 0xab3   : > { %26002 = vmatmul.mubr.msk.f32.gmra.mrb[90].mxu0 %vm4988_vm4, %v33438_v11 }
 0xab4   : > { %26004 = vmatprep.mubr.msk.f32.mxu0 %vm4988_vm4, %v33442_v37 }
 0xab7   : > { %26005 = vmatmul.mubr.msk.f32.gmra.mrb[92].mxu0 %vm4988_vm4, %v33446_v51 }
 0xab8   : > { %26007 = vmatprep.mubr.msk.f32.mxu0 %vm4988_vm4, %v33450_v45 }
 0xabb   : > { %26008 = vmatmul.mubr.msk.f32.gmra.mrb[94].mxu0 %vm4988_vm4, %v33454_v23 }
 0xabc   : > { %26012 = vmatprep.mubr.msk.f32.mxu0 %vm4988_vm4, %v33195_v62  ;;  %v34729_v62 = vld [vmem:[#allocation52_spill] sm:$0xff] }
 0xabf   : > { %26013 = vmatmul.mubr.msk.f32.vlgmr.msra.gmra.mrb[64].mxu0 %vm4988_vm4, %v33199_v46  ;;  %v34730_v46 = vld [vmem:[#allocation53_spill] sm:$0xff] }
 0xac0   : > { %26061 = vmatpush3.msra.mxu0 %v21985_v39  ;;  %26015 = vmatprep.mubr.msk.f32.mxu0 %vm4988_vm4, %v33203_v35  ;;  %v34731_v35 = vld [vmem:[#allocation56_spill] sm:$0xff]  ;;  %v34736_v39 = vld [vmem:[#allocation57_spill] sm:$0xff] }
 0xac1   : > { %26110 = vmatprep.subr.mxu0 %v22018_v38 }
 0xac3   : > { %26016 = vmatmul.mubr.msk.f32.gmra.mrb[66].mxu0 %vm4988_vm4, %v33207_v22  ;;  %v34733_v22 = vld [vmem:[#allocation58_spill] sm:$0xff] }
 0xac4   : > { %26018 = vmatprep.mubr.msk.f32.mxu0 %vm4988_vm4, %v33211_v14  ;;  %v34734_v14 = vld [vmem:[#allocation55_spill] sm:$0xff] }
 0xac7   : > { %26019 = vmatmul.mubr.msk.f32.gmra.mrb[68].mxu0 %vm4988_vm4, %v33215_v7  ;;  %v34735_v7 = vld [vmem:[#allocation60_spill] sm:$0xff] }
 0xac8   : > { %26021 = vmatprep.mubr.msk.f32.mxu0 %vm4988_vm4, %v34728_v50 }
 0xacb   : > { %26022 = vmatmul.mubr.msk.f32.gmra.mrb[70].mxu0 %vm4988_vm4, %v34729_v62  ;;  %v34737_v62 = vld [vmem:[#allocation62_spill] sm:$0xff] }
 0xacc   : > { %26024 = vmatprep.mubr.msk.f32.mxu0 %vm4988_vm4, %v34730_v46  ;;  %v34738_v46 = vld [vmem:[#allocation59_spill] sm:$0xff] }
 0xacf   : > { %26025 = vmatmul.mubr.msk.f32.gmra.mrb[72].mxu0 %vm4988_vm4, %v34731_v35  ;;  %v34739_v35 = vld [vmem:[#allocation64_spill] sm:$0xff] }
 0xad0   : > { %26027 = vmatprep.mubr.msk.f32.mxu0 %vm4988_vm4, %v34732_v61  ;;  %v34740_v61 = vld [vmem:[#allocation61_spill] sm:$0xff] }
 0xad3   : > { %26028 = vmatmul.mubr.msk.f32.gmra.mrb[74].mxu0 %vm4988_vm4, %v34733_v22  ;;  %v34741_v22 = vld [vmem:[#allocation68_spill] sm:$0xff] }
 0xad4   : > { %26030 = vmatprep.mubr.msk.f32.mxu0 %vm4988_vm4, %v34734_v14  ;;  %v34742_v14 = vld [vmem:[#allocation65_spill] sm:$0xff] }
 0xad7   : > { %26031 = vmatmul.mubr.msk.f32.gmra.mrb[76].mxu0 %vm4988_vm4, %v34735_v7 }
 0xad8   : > { %26033 = vmatprep.mubr.msk.f32.mxu0 %vm4988_vm4, %v34736_v39  ;;  %v34743_v39 = vld [vmem:[#allocation72_spill] sm:$0xff] }
 0xadb   : > { %26034 = vmatmul.mubr.msk.f32.gmra.mrb[78].mxu0 %vm4988_vm4, %v34737_v62 }
 0xadc   : > { %26036 = vmatprep.mubr.msk.f32.mxu0 %vm4988_vm4, %v34738_v46 }
 0xadf   : > { %26037 = vmatmul.mubr.msk.f32.gmra.mrb[80].mxu0 %vm4988_vm4, %v34739_v35 }
 0xae0   : > { %26039 = vmatprep.mubr.msk.f32.mxu0 %vm4988_vm4, %v34740_v61  ;;  %v33513_v61 = vld [vmem:[#allocation6 + $0x186] sm:$0xff] }
 0xae1   : > { %34744 = vst [vmem:[#allocation73_spill] sm:$0xff] %v33513_v61 }
 0xae3   : > { %26040 = vmatmul.mubr.msk.f32.gmra.mrb[82].mxu0 %vm4988_vm4, %v34741_v22 }
 0xae4   : > { %26042 = vmatprep.mubr.msk.f32.mxu0 %vm4988_vm4, %v34742_v14  ;;  %v33517_v14 = vld [vmem:[#allocation6 + $0x18e] sm:$0xff] }
 0xae7   : > { %26043 = vmatmul.mubr.msk.f32.gmra.mrb[84].mxu0 %vm4988_vm4, %v33279_v21 }
 0xae8   : > { %26045 = vmatprep.mubr.msk.f32.mxu0 %vm4988_vm4, %v34743_v39  ;;  %v33521_v39 = vld [vmem:[#allocation6 + $0x19e] sm:$0xff] }
 0xae9   : > { %34745 = vst [vmem:[#allocation38_spill] sm:$0xff] %v33521_v39 }
 0xaeb   : > { %26046 = vmatmul.mubr.msk.f32.gmra.mrb[86].mxu0 %vm4988_vm4, %v33287_v40  ;;  %v33525_v40 = vld [vmem:[#allocation6 + $0x1a6] sm:$0xff] }
 0xaec   : > { %26048 = vmatprep.mubr.msk.f32.mxu0 %vm4988_vm4, %v33291_v44 }
 0xaef   : > { %26049 = vmatmul.mubr.msk.f32.gmra.mrb[88].mxu0 %vm4988_vm4, %v33295_v17  ;;  %v33529_v17 = vld [vmem:[#allocation6 + $0x1b6] sm:$0xff] }
 0xaf0   : > { %26051 = vmatprep.mubr.msk.f32.mxu0 %vm4988_vm4, %v33513_v61  ;;  %v33533_v61 = vld [vmem:[#allocation6 + $0x1be] sm:$0xff] }
 0xaf3   : > { %26052 = vmatmul.mubr.msk.f32.gmra.mrb[90].mxu0 %vm4988_vm4, %v33517_v14 }
 0xaf4   : > { %26054 = vmatprep.mubr.msk.f32.mxu0 %vm4988_vm4, %v33521_v39  ;;  %v22051_v39 = vld [vmem:[%s34118_s13 + $0x40] sm:$0xff] }
 0xaf7   : > { %26055 = vmatmul.mubr.msk.f32.gmra.mrb[92].mxu0 %vm4988_vm4, %v33525_v40 }
 0xaf8   : > { %26057 = vmatprep.mubr.msk.f32.mxu0 %vm4988_vm4, %v33529_v17 }
 0xafb   : > { %26058 = vmatmul.mubr.msk.f32.gmra.mrb[94].mxu0 %vm4988_vm4, %v33533_v61 }
 0xafc   : > { %26062 = vmatprep.mubr.msk.f32.mxu0 %vm4988_vm4, %v33102_v20  ;;  %v18136_v20 = vld [vmem:[#allocation6 + $0x1c8] sm:$0xff] }
 0xaff   : > { %26063 = vmatmul.mubr.msk.f32.vlgmr.msra.gmra.mrb[64].mxu0 %vm4988_vm4, %v33106_v49  ;;  %v18137_v49 = vld [vmem:[#allocation6 + $0x1d0] sm:$0xff] }
 0xb00   : > { %26111 = vmatpush3.msra.mxu0 %v22018_v38  ;;  %26065 = vmatprep.mubr.msk.f32.mxu0 %vm4988_vm4, %v33110_v33  ;;  %v18138_v33 = vld [vmem:[#allocation6 + $0x1e0] sm:$0xff] }
 0xb01   : > { %26160 = vmatprep.subr.mxu0 %v22051_v39 }
 0xb03   : > { %26066 = vmatmul.mubr.msk.f32.gmra.mrb[66].mxu0 %vm4988_vm4, %v33114_v41  ;;  %v18139_v41 = vld [vmem:[#allocation6 + $0x1e8] sm:$0xff] }
 0xb04   : > { %26068 = vmatprep.mubr.msk.f32.mxu0 %vm4988_vm4, %v33118_v28  ;;  %v18140_v28 = vld [vmem:[#allocation6 + $0x1f8] sm:$0xff] }
 0xb07   : > { %26069 = vmatmul.mubr.msk.f32.gmra.mrb[68].mxu0 %vm4988_vm4, %v33122_v12  ;;  %v18141_v12 = vld [vmem:[#allocation6 + $0x200] sm:$0xff] }
 0xb08   : > { %26071 = vmatprep.mubr.msk.f32.mxu0 %vm4988_vm4, %v33126_v3  ;;  %v18497_v3 = vld [vmem:[#allocation6 + $0x93] sm:$0xff] }
 0xb0b   : > { %26072 = vmatmul.mubr.msk.f32.gmra.mrb[70].mxu0 %vm4988_vm4, %v33130_v5  ;;  %v19311_v5 = vld [vmem:[%s34121_s16] sm:$0xff] }
 0xb0c   : > { %26074 = vmatprep.mubr.msk.f32.mxu0 %vm4988_vm4, %v33134_v57  ;;  %26210 = vmatprep.subr.mxu1 %v19311_v5  ;;  %v18498_v57 = vld [vmem:[#allocation6 + $0x9b] sm:$0xff] }
 0xb0d   : > { %26211 = vmatpush3.msra.mxu1 %v19311_v5 }
 0xb0f   : > { %26075 = vmatmul.mubr.msk.f32.gmra.mrb[72].mxu0 %vm4988_vm4, %v33138_v48  ;;  %v34758_v48 = vld [vmem:[#allocation73_spill] sm:$0xff] }
 0xb10   : > { %26077 = vmatprep.mubr.msk.f32.mxu0 %vm4988_vm4, %v33142_v43  ;;  %v34759_v43 = vld [vmem:[#allocation38_spill] sm:$0xff] }
 0xb13   : > { %26078 = vmatmul.mubr.msk.f32.gmra.mrb[74].mxu0 %vm4988_vm4, %v33146_v60  ;;  %v18910_v60 = vld [vmem:[#allocation6 + $0x1ce] sm:$0xff] }
 0xb14   : > { %26080 = vmatprep.mubr.msk.f32.mxu0 %vm4988_vm4, %v33150_v56  ;;  %v18911_v56 = vld [vmem:[#allocation6 + $0x1d6] sm:$0xff] }
 0xb17   : > { %26081 = vmatmul.mubr.msk.f32.gmra.mrb[76].mxu0 %vm4988_vm4, %v33154_v36  ;;  %v18912_v36 = vld [vmem:[#allocation6 + $0x1e6] sm:$0xff] }
 0xb18   : > { %26083 = vmatprep.mubr.msk.f32.mxu0 %vm4988_vm4, %v33158_v10  ;;  %v18913_v10 = vld [vmem:[#allocation6 + $0x1ee] sm:$0xff] }
 0xb1b   : > { %26084 = vmatmul.mubr.msk.f32.gmra.mrb[78].mxu0 %vm4988_vm4, %v33162_v19  ;;  %v18914_v19 = vld [vmem:[#allocation6 + $0x1fe] sm:$0xff] }
 0xb1c   : > { %26086 = vmatprep.mubr.msk.f32.mxu0 %vm4988_vm4, %v33166_v16  ;;  %v18915_v16 = vld [vmem:[#allocation6 + $0x206] sm:$0xff] }
 0xb1f   : > { %26087 = vmatmul.mubr.msk.f32.gmra.mrb[80].mxu0 %vm4988_vm4, %v33170_v0  ;;  %v19310_v0 = vld [vmem:[%s34760_s23] sm:$0xff] }
 0xb20   : > { %26089 = vmatprep.mubr.msk.f32.mxu0 %vm4988_vm4, %v33174_v32  ;;  %26260 = vmatprep.subr.mxu1 %v19310_v0  ;;  %v33718_v32 = vld [vmem:[#allocation18] ss:$0 sm:$0xff] }
 0xb23   : > { %26090 = vmatmul.mubr.msk.f32.gmra.mrb[82].mxu0 %vm4988_vm4, %v33178_v58 }
 0xb24   : > { %26092 = vmatprep.mubr.msk.f32.mxu0 %vm4988_vm4, %v33355_v1 }
 0xb27   : > { %26093 = vmatmul.mubr.msk.f32.gmra.mrb[84].mxu0 %vm4988_vm4, %v33359_v4 }
 0xb28   : > { %26095 = vmatprep.mubr.msk.f32.mxu0 %vm4988_vm4, %v33363_v27 }
 0xb2b   : > { %26096 = vmatmul.mubr.msk.f32.gmra.mrb[86].mxu0 %vm4988_vm4, %v33367_v42 }
 0xb2c   : > { %26098 = vmatprep.mubr.msk.f32.mxu0 %vm4988_vm4, %v33371_v29 }
 0xb2f   : > { %26099 = vmatmul.mubr.msk.f32.gmra.mrb[88].mxu0 %vm4988_vm4, %v33375_v15 }
 0xb30   : > { %26101 = vmatprep.mubr.msk.f32.mxu0 %vm4988_vm4, %v18136_v20 }
 0xb33   : > { %26102 = vmatmul.mubr.msk.f32.gmra.mrb[90].mxu0 %vm4988_vm4, %v18137_v49 }
 0xb34   : > { %26104 = vmatprep.mubr.msk.f32.mxu0 %vm4988_vm4, %v18138_v33 }
 0xb37   : > { %26105 = vmatmul.mubr.msk.f32.gmra.mrb[92].mxu0 %vm4988_vm4, %v18139_v41 }
 0xb38   : > { %26107 = vmatprep.mubr.msk.f32.mxu0 %vm4988_vm4, %v18140_v28 }
 0xb3b   : > { %26108 = vmatmul.mubr.msk.f32.gmra.mrb[94].mxu0 %vm4988_vm4, %v18141_v12 }
 0xb3c   : > { %26112 = vmatprep.mubr.msk.f32.mxu0 %vm4988_vm4, %v18497_v3 }
 0xb3f   : > { %26113 = vmatmul.mubr.msk.f32.vlgmr.msra.gmra.mrb[64].mxu0 %vm4988_vm4, %v18498_v57 }
 0xb40   : > { %26161 = vmatpush3.msra.mxu0 %v22051_v39  ;;  %26115 = vmatprep.mubr.msk.f32.mxu0 %vm4988_vm4, %v32957_v31  ;;  %v18523_v31 = vld [vmem:[#allocation6 + $0x1cb] sm:$0xff] }
 0xb43   : > { %26116 = vmatmul.mubr.msk.f32.gmra.mrb[66].mxu0 %vm4988_vm4, %v32963_v2  ;;  %v18524_v2 = vld [vmem:[#allocation6 + $0x1d3] sm:$0xff] }
 0xb44   : > { %26118 = vmatprep.mubr.msk.f32.mxu0 %vm4988_vm4, %v32969_v6  ;;  %v18525_v6 = vld [vmem:[#allocation6 + $0x1e3] sm:$0xff] }
 0xb47   : > { %26119 = vmatmul.mubr.msk.f32.gmra.mrb[68].mxu0 %vm4988_vm4, %v32975_v53  ;;  %v18526_v53 = vld [vmem:[#allocation6 + $0x1eb] sm:$0xff] }
 0xb48   : > { %26121 = vmatprep.mubr.msk.f32.mxu0 %vm4988_vm4, %v32981_v24  ;;  %v18527_v24 = vld [vmem:[#allocation6 + $0x1fb] sm:$0xff] }
 0xb4b   : > { %26122 = vmatmul.mubr.msk.f32.gmra.mrb[70].mxu0 %vm4988_vm4, %v32987_v52  ;;  %v18528_v52 = vld [vmem:[#allocation6 + $0x203] sm:$0xff] }
 0xb4c   : > { %26124 = vmatprep.mubr.msk.f32.mxu0 %vm4988_vm4, %v32993_v9  ;;  %v34746_v9 = vld [vmem:[#allocation52_spill] sm:$0xff] }
 0xb4f   : > { %26125 = vmatmul.mubr.msk.f32.gmra.mrb[72].mxu0 %vm4988_vm4, %v32999_v25  ;;  %v34747_v25 = vld [vmem:[#allocation53_spill] sm:$0xff] }
 0xb50   : > { %26127 = vmatprep.mubr.msk.f32.mxu0 %vm4988_vm4, %v33005_v26  ;;  %v34748_v26 = vld [vmem:[#allocation56_spill] sm:$0xff] }
 0xb53   : > { %26128 = vmatmul.mubr.msk.f32.gmra.mrb[74].mxu0 %vm4988_vm4, %v33011_v47  ;;  %v34749_v47 = vld [vmem:[#allocation54_spill] sm:$0xff] }
 0xb54   : > { %26130 = vmatprep.mubr.msk.f32.mxu0 %vm4988_vm4, %v33017_v13  ;;  %v34750_v13 = vld [vmem:[#allocation58_spill] sm:$0xff] }
 0xb57   : > { %26131 = vmatmul.mubr.msk.f32.gmra.mrb[76].mxu0 %vm4988_vm4, %v33023_v8  ;;  %v34751_v8 = vld [vmem:[#allocation55_spill] sm:$0xff] }
 0xb58   : > { %26133 = vmatprep.mubr.msk.f32.mxu0 %vm4988_vm4, %v33029_v63  ;;  %v34752_v63 = vld [vmem:[#allocation57_spill] sm:$0xff] }
 0xb5b   : > { %26134 = vmatmul.mubr.msk.f32.gmra.mrb[78].mxu0 %vm4988_vm4, %v33035_v18  ;;  %v34753_v18 = vld [vmem:[#allocation61_spill] sm:$0xff] }
 0xb5c   : > { %26136 = vmatprep.mubr.msk.f32.mxu0 %vm4988_vm4, %v33041_v34  ;;  %v34754_v34 = vld [vmem:[#allocation65_spill] sm:$0xff] }
 0xb5f   : > { %26137 = vmatmul.mubr.msk.f32.gmra.mrb[80].mxu0 %vm4988_vm4, %v33047_v59  ;;  %v34755_v59 = vld [vmem:[#allocation72_spill] sm:$0xff] }
 0xb60   : > { %26139 = vmatprep.mubr.msk.f32.mxu0 %vm4988_vm4, %v33053_v54  ;;  %v34756_v54 = vld [vmem:[#allocation69_spill] sm:$0xff] }
 0xb63   : > { %26140 = vmatmul.mubr.msk.f32.gmra.mrb[82].mxu0 %vm4988_vm4, %v33059_v30  ;;  %v34757_v30 = vld [vmem:[#allocation76_spill] sm:$0xff] }
 0xb64   : > { %26142 = vmatprep.mubr.msk.f32.mxu0 %vm4988_vm4, %v33434_v55 }
 0xb67   : > { %26143 = vmatmul.mubr.msk.f32.gmra.mrb[84].mxu0 %vm4988_vm4, %v33438_v11 }
 0xb68   : > { %26145 = vmatprep.mubr.msk.f32.mxu0 %vm4988_vm4, %v33442_v37 }
 0xb6b   : > { %26146 = vmatmul.mubr.msk.f32.gmra.mrb[86].mxu0 %vm4988_vm4, %v33446_v51 }
 0xb6c   : > { %26148 = vmatprep.mubr.msk.f32.mxu0 %vm4988_vm4, %v33450_v45 }
 0xb6f   : > { %26149 = vmatmul.mubr.msk.f32.gmra.mrb[88].mxu0 %vm4988_vm4, %v33454_v23 }
 0xb70   : > { %26151 = vmatprep.mubr.msk.f32.mxu0 %vm4988_vm4, %v18523_v31 }
 0xb73   : > { %26152 = vmatmul.mubr.msk.f32.gmra.mrb[90].mxu0 %vm4988_vm4, %v18524_v2 }
 0xb74   : > { %26154 = vmatprep.mubr.msk.f32.mxu0 %vm4988_vm4, %v18525_v6 }
 0xb77   : > { %26155 = vmatmul.mubr.msk.f32.gmra.mrb[92].mxu0 %vm4988_vm4, %v18526_v53 }
 0xb78   : > { %26157 = vmatprep.mubr.msk.f32.mxu0 %vm4988_vm4, %v18527_v24 }
 0xb7b   : > { %26158 = vmatmul.mubr.msk.f32.gmra.mrb[94].mxu0 %vm4988_vm4, %v18528_v52 }
 0xb7c   : > { %26162 = vmatprep.mubr.msk.f32.mxu0 %vm4988_vm4, %v34728_v50 }
 0xb7f   : > { %26163 = vmatmul.mubr.msk.f32.vlgmr.msra.gmra.mrb[64].mxu0 %vm4988_vm4, %v34746_v9 }
 0xb80   : > { %26165 = vmatprep.mubr.msk.f32.mxu0 %vm4988_vm4, %v34747_v25 }
 0xb83   : > { %26166 = vmatmul.mubr.msk.f32.gmra.mrb[66].mxu0 %vm4988_vm4, %v34748_v26 }
 0xb84   : > { %26168 = vmatprep.mubr.msk.f32.mxu0 %vm4988_vm4, %v34749_v47 }
 0xb87   : > { %26169 = vmatmul.mubr.msk.f32.gmra.mrb[68].mxu0 %vm4988_vm4, %v34750_v13 }
 0xb88   : > { %26171 = vmatprep.mubr.msk.f32.mxu0 %vm4988_vm4, %v34751_v8 }
 0xb8b   : > { %26172 = vmatmul.mubr.msk.f32.gmra.mrb[70].mxu0 %vm4988_vm4, %v34735_v7 }
 0xb8c   : > { %26174 = vmatprep.mubr.msk.f32.mxu0 %vm4988_vm4, %v34752_v63 }
 0xb8f   : > { %26175 = vmatmul.mubr.msk.f32.gmra.mrb[72].mxu0 %vm4988_vm4, %v34737_v62 }
 0xb90   : > { %26177 = vmatprep.mubr.msk.f32.mxu0 %vm4988_vm4, %v34738_v46 }
 0xb93   : > { %26178 = vmatmul.mubr.msk.f32.gmra.mrb[74].mxu0 %vm4988_vm4, %v34739_v35 }
 0xb94   : > { %26180 = vmatprep.mubr.msk.f32.mxu0 %vm4988_vm4, %v34753_v18 }
 0xb97   : > { %26181 = vmatmul.mubr.msk.f32.gmra.mrb[76].mxu0 %vm4988_vm4, %v34741_v22 }
 0xb98   : > { %26183 = vmatprep.mubr.msk.f32.mxu0 %vm4988_vm4, %v34754_v34 }
 0xb9b   : > { %26184 = vmatmul.mubr.msk.f32.gmra.mrb[78].mxu0 %vm4988_vm4, %v33279_v21  ;;  %v19954_v21 = vld [vmem:[#allocation19] sm:$0xff] }
 0xb9c   : > { %26186 = vmatprep.mubr.msk.f32.mxu0 %vm4988_vm4, %v34755_v59 }
 0xb9f   : > { %26187 = vmatmul.mubr.msk.f32.gmra.mrb[80].mxu0 %vm4988_vm4, %v34756_v54 }
 0xba0   : > { %26189 = vmatprep.mubr.msk.f32.mxu0 %vm4988_vm4, %v33291_v44 }
 0xba3   : > { %26190 = vmatmul.mubr.msk.f32.gmra.mrb[82].mxu0 %vm4988_vm4, %v34757_v30 }
 0xba4   : > { %26192 = vmatprep.mubr.msk.f32.mxu0 %vm4988_vm4, %v34758_v48 }
 0xba7   : > { %26193 = vmatmul.mubr.msk.f32.gmra.mrb[84].mxu0 %vm4988_vm4, %v33517_v14 }
 0xba8   : > { %26195 = vmatprep.mubr.msk.f32.mxu0 %vm4988_vm4, %v34759_v43 }
 0xbab   : > { %26196 = vmatmul.mubr.msk.f32.gmra.mrb[86].mxu0 %vm4988_vm4, %v33525_v40  ;;  %v19955_v40 = vld [vmem:[#allocation19 + $0x8] sm:$0xff] }
 0xbac   : > { %26198 = vmatprep.mubr.msk.f32.mxu0 %vm4988_vm4, %v33529_v17  ;;  %v33722_v4 = vpack.c.bf16 %v19955_v40, %v19954_v21  ;;  %v33782_v21 = vld [vmem:[#allocation13] ss:$0 sm:$0xff] }
 0xbaf   : > { %26199 = vmatmul.mubr.msk.f32.gmra.mrb[88].mxu0 %vm4988_vm4, %v33533_v61 }
 0xbb0   : > { %26201 = vmatprep.mubr.msk.f32.mxu0 %vm4988_vm4, %v18910_v60 }
 0xbb3   : > { %26202 = vmatmul.mubr.msk.f32.gmra.mrb[90].mxu0 %vm4988_vm4, %v18911_v56 }
 0xbb4   : > { %26204 = vmatprep.mubr.msk.f32.mxu0 %vm4988_vm4, %v18912_v36 }
 0xbb7   : > { %26205 = vmatmul.mubr.msk.f32.gmra.mrb[92].mxu0 %vm4988_vm4, %v18913_v10 }
 0xbb8   : > { %26207 = vmatprep.mubr.msk.f32.mxu0 %vm4988_vm4, %v18914_v19 }
 0xbbb   : > { %26208 = vmatmul.mubr.msk.f32.gmra.mrb[94].mxu0 %vm4988_vm4, %v18915_v16 }
 0xc52   : > { %v26164_v58 = vpop.f32.mrb[64].mxu0 }
 0xc53   : > { %v19080_v44 = vpop.f32.mrb[65].mxu0  ;;  %v19279_v1 = vadd.f32 %v26164_v58, %v33718_v32 }
 0xc54   : > { %v19278_v17 = vadd.f32 %v33718_v32, %v19080_v44 }
 0xc56   : > { %v26167_v27 = vpop.f32.mrb[66].mxu0  ;;  %26212 = vmatprep.mubr.msk.f32.mxu1 %vm4988_vm4, %v19278_v17 }
 0xc57   : > { %v19090_v42 = vpop.f32.mrb[67].mxu0  ;;  %26213 = vmatmul.mubr.msk.f32.vlgmr.msra.gmra.mrb[160].mxu1 %vm4988_vm4, %v19279_v1  ;;  %v19281_v15 = vadd.f32 %v26167_v27, %v33718_v32  ;;  %v34761_v1 = vld [vmem:[#allocation63_spill] sm:$0xff] }
 0xc58   : > { %v19280_v29 = vadd.f32 %v33718_v32, %v19090_v42  ;;  %26261 = vmatpush3.msra.mxu1 %v19310_v0  ;;  %v8509_v27 = vadd.f32 %v33782_v21, %v34761_v1  ;;  %v19956_v42 = vld [vmem:[#allocation19 + $0x10] sm:$0xff] }
 0xc59   : > { %26383 = vmatprep.subr.bf16.mxu1 %v33722_v4  ;;  %v34791_v1 = vld [vmem:[#allocation99_spill] sm:$0xff] }
 0xc5a   : > { %v26170_v55 = vpop.f32.mrb[68].mxu0  ;;  %26215 = vmatprep.mubr.msk.f32.mxu1 %vm4988_vm4, %v19280_v29  ;;  %v19957_v29 = vld [vmem:[#allocation19 + $0x18] sm:$0xff] }
 0xc5b   : > { %v19100_v11 = vpop.f32.mrb[69].mxu0  ;;  %26216 = vmatmul.mubr.msk.f32.gmra.mrb[162].mxu1 %vm4988_vm4, %v19281_v15  ;;  %v19283_v51 = vadd.f32 %v26170_v55, %v33718_v32  ;;  %v34762_v15 = vld [vmem:[#allocation66_spill] sm:$0xff] }
 0xc5c   : > { %v19282_v37 = vadd.f32 %v33718_v32, %v19100_v11  ;;  %v8510_v55 = vadd.f32 %v34762_v15, %v33782_v21  ;;  %v26386_v11 = vpack.c.bf16 %v19957_v29, %v19956_v42  ;;  %v34792_v42 = vld [vmem:[#allocation98_spill] sm:$0xff]  ;;  %v27871_v15 = vld [vmem:[%s28642_s26] sm:$0xff] }
 0xc5d   : > { %v8540_v29 = vadd.f32 %v34792_v42, %v33782_v21 }
 0xc5e   : > { %v26173_v45 = vpop.f32.mrb[70].mxu0  ;;  %26218 = vmatprep.mubr.msk.f32.mxu1 %vm4988_vm4, %v19282_v37  ;;  %v34763_v37 = vld [vmem:[#allocation67_spill] sm:$0xff] }
 0xc5f   : > { %v19110_v23 = vpop.f32.mrb[71].mxu0  ;;  %26219 = vmatmul.mubr.msk.f32.gmra.mrb[164].mxu1 %vm4988_vm4, %v19283_v51  ;;  %v19285_v50 = vadd.f32 %v26173_v45, %v33718_v32  ;;  %v8511_v51 = vadd.f32 %v33782_v21, %v34763_v37  ;;  %v27874_v37 = vld [vmem:[%s28642_s26 + $0x18] sm:$0xff] }
 0xc60   : > { %v19284_v38 = vadd.f32 %v33718_v32, %v19110_v23  ;;  %v34765_v23 = vld [vmem:[#allocation71_spill] sm:$0xff] }
 0xc62   : > { %v26176_v62 = vpop.f32.mrb[72].mxu0  ;;  %26221 = vmatprep.mubr.msk.f32.mxu1 %vm4988_vm4, %v19284_v38  ;;  %v8513_v38 = vadd.f32 %v33782_v21, %v34765_v23  ;;  %v27879_v23 = vld [vmem:[%s28642_s26 + $0x40] sm:$0xff] }
 0xc63   : > { %v19120_v46 = vpop.f32.mrb[73].mxu0  ;;  %26222 = vmatmul.mubr.msk.f32.gmra.mrb[166].mxu1 %vm4988_vm4, %v19285_v50  ;;  %v19287_v61 = vadd.f32 %v26176_v62, %v33718_v32  ;;  %v34766_v50 = vld [vmem:[#allocation74_spill] sm:$0xff] }
 0xc64   : > { %v19286_v35 = vadd.f32 %v33718_v32, %v19120_v46  ;;  %v8514_v62 = vadd.f32 %v34766_v50, %v33782_v21  ;;  %v34767_v46 = vld [vmem:[#allocation75_spill] sm:$0xff]  ;;  %v27881_v50 = vld [vmem:[%s28642_s26 + $0x50] sm:$0xff] }
 0xc66   : > { %v26179_v22 = vpop.f32.mrb[74].mxu0  ;;  %26224 = vmatprep.mubr.msk.f32.mxu1 %vm4988_vm4, %v19286_v35  ;;  %v34768_v35 = vld [vmem:[#allocation77_spill] sm:$0xff] }
 0xc67   : > { %v19130_v14 = vpop.f32.mrb[75].mxu0  ;;  %26225 = vmatmul.mubr.msk.f32.gmra.mrb[168].mxu1 %vm4988_vm4, %v19287_v61  ;;  %v19289_v39 = vadd.f32 %v26179_v22, %v33718_v32  ;;  %v8516_v61 = vadd.f32 %v34768_v35, %v33782_v21  ;;  %v34769_v22 = vld [vmem:[#allocation41_spill] sm:$0xff] }
 0xc68   : > { %v19288_v7 = vadd.f32 %v33718_v32, %v19130_v14  ;;  %v8517_v14 = vadd.f32 %v33782_v21, %v34769_v22  ;;  %v27885_v35 = vld [vmem:[%s28642_s26 + $0x70] sm:$0xff]  ;;  %v27887_v22 = vld [vmem:[%s28642_s26 + $0x80] sm:$0xff] }
 0xc6a   : > { %v26182_v20 = vpop.f32.mrb[76].mxu0  ;;  %26227 = vmatprep.mubr.msk.f32.mxu1 %vm4988_vm4, %v19288_v7  ;;  %v34770_v7 = vld [vmem:[#allocation37_spill] sm:$0xff] }
 0xc6b   : > { %v19140_v49 = vpop.f32.mrb[77].mxu0  ;;  %26228 = vmatmul.mubr.msk.f32.gmra.mrb[170].mxu1 %vm4988_vm4, %v19289_v39  ;;  %v19291_v41 = vadd.f32 %v26182_v20, %v33718_v32  ;;  %v8518_v39 = vadd.f32 %v34770_v7, %v33782_v21  ;;  %v34771_v20 = vld [vmem:[#allocation43_spill] sm:$0xff]  ;;  %v27889_v7 = vld [vmem:[%s28642_s26 + $0x90] sm:$0xff] }
 0xc6c   : > { %v19290_v33 = vadd.f32 %v33718_v32, %v19140_v49  ;;  %v8519_v49 = vadd.f32 %v33782_v21, %v34771_v20  ;;  %v27891_v20 = vld [vmem:[%s28642_s26 + $0xa0] sm:$0xff] }
 0xc6e   : > { %v26185_v28 = vpop.f32.mrb[78].mxu0  ;;  %26230 = vmatprep.mubr.msk.f32.mxu1 %vm4988_vm4, %v19290_v33  ;;  %v34772_v33 = vld [vmem:[#allocation40_spill] sm:$0xff] }
 0xc6f   : > { %v19150_v12 = vpop.f32.mrb[79].mxu0  ;;  %26231 = vmatmul.mubr.msk.f32.gmra.mrb[172].mxu1 %vm4988_vm4, %v19291_v41  ;;  %v19293_v5 = vadd.f32 %v26185_v28, %v33718_v32  ;;  %v8520_v41 = vadd.f32 %v34772_v33, %v33782_v21  ;;  %v34773_v28 = vld [vmem:[#allocation49_spill] sm:$0xff] }
 0xc70   : > { %v19292_v3 = vadd.f32 %v33718_v32, %v19150_v12  ;;  %v8521_v12 = vadd.f32 %v33782_v21, %v34773_v28  ;;  %v27893_v33 = vld [vmem:[%s28642_s26 + $0xb0] sm:$0xff]  ;;  %v27895_v28 = vld [vmem:[%s28642_s26 + $0xc0] sm:$0xff] }
 0xc72   : > { %v26188_v57 = vpop.f32.mrb[80].mxu0  ;;  %26233 = vmatprep.mubr.msk.f32.mxu1 %vm4988_vm4, %v19292_v3  ;;  %v34774_v3 = vld [vmem:[#allocation44_spill] sm:$0xff] }
 0xc73   : > { %v19160_v31 = vpop.f32.mrb[81].mxu0  ;;  %26234 = vmatmul.mubr.msk.f32.gmra.mrb[174].mxu1 %vm4988_vm4, %v19293_v5  ;;  %v19295_v6 = vadd.f32 %v26188_v57, %v33718_v32  ;;  %v8522_v5 = vadd.f32 %v34774_v3, %v33782_v21  ;;  %v34775_v57 = vld [vmem:[#allocation81_spill] sm:$0xff] }
 0xc74   : > { %v19294_v2 = vadd.f32 %v33718_v32, %v19160_v31  ;;  %v8523_v31 = vadd.f32 %v33782_v21, %v34775_v57  ;;  %v27897_v3 = vld [vmem:[%s28642_s26 + $0xd0] sm:$0xff]  ;;  %v27899_v57 = vld [vmem:[%s28642_s26 + $0xe0] sm:$0xff] }
 0xc76   : > { %v26191_v53 = vpop.f32.mrb[82].mxu0  ;;  %26236 = vmatprep.mubr.msk.f32.mxu1 %vm4988_vm4, %v19294_v2  ;;  %v34776_v2 = vld [vmem:[#allocation48_spill] sm:$0xff] }
 0xc77   : > { %v19170_v24 = vpop.f32.mrb[83].mxu0  ;;  %26237 = vmatmul.mubr.msk.f32.gmra.mrb[176].mxu1 %vm4988_vm4, %v19295_v6  ;;  %v19297_v9 = vadd.f32 %v26191_v53, %v33718_v32  ;;  %v8524_v6 = vadd.f32 %v34776_v2, %v33782_v21  ;;  %v34777_v53 = vld [vmem:[#allocation85_spill] sm:$0xff] }
 0xc78   : > { %v19296_v52 = vadd.f32 %v33718_v32, %v19170_v24  ;;  %v8525_v24 = vadd.f32 %v33782_v21, %v34777_v53  ;;  %v27901_v2 = vld [vmem:[%s28642_s26 + $0xf0] sm:$0xff]  ;;  %v33951_v53 = vld [vmem:[#allocation21] ss:$0 sm:$0xff] }
 0xc7a   : > { %v26194_v25 = vpop.f32.mrb[84].mxu0  ;;  %26239 = vmatprep.mubr.msk.f32.mxu1 %vm4988_vm4, %v19296_v52  ;;  %v34778_v52 = vld [vmem:[#allocation80_spill] sm:$0xff] }
 0xc7b   : > { %v19180_v26 = vpop.f32.mrb[85].mxu0  ;;  %26240 = vmatmul.mubr.msk.f32.gmra.mrb[178].mxu1 %vm4988_vm4, %v19297_v9  ;;  %v19299_v13 = vadd.f32 %v26194_v25, %v33718_v32  ;;  %v8526_v9 = vadd.f32 %v34778_v52, %v33782_v21  ;;  %v34779_v25 = vld [vmem:[#allocation84_spill] sm:$0xff] }
 0xc7c   : > { %v19298_v47 = vadd.f32 %v33718_v32, %v19180_v26  ;;  %v8527_v26 = vadd.f32 %v33782_v21, %v34779_v25 }
 0xc7e   : > { %v26197_v8 = vpop.f32.mrb[86].mxu0  ;;  %26242 = vmatprep.mubr.msk.f32.mxu1 %vm4988_vm4, %v19298_v47  ;;  %v34780_v47 = vld [vmem:[#allocation87_spill] sm:$0xff] }
 0xc7f   : > { %v19190_v63 = vpop.f32.mrb[87].mxu0  ;;  %26243 = vmatmul.mubr.msk.f32.gmra.mrb[180].mxu1 %vm4988_vm4, %v19299_v13  ;;  %v19301_v34 = vadd.f32 %v26197_v8, %v33718_v32  ;;  %v8528_v13 = vadd.f32 %v34780_v47, %v33782_v21  ;;  %v34781_v8 = vld [vmem:[#allocation89_spill] sm:$0xff] }
 0xc80   : > { %v19300_v18 = vadd.f32 %v33718_v32, %v19190_v63  ;;  %v8529_v63 = vadd.f32 %v33782_v21, %v34781_v8 }
 0xc82   : > { %v26200_v59 = vpop.f32.mrb[88].mxu0  ;;  %26245 = vmatprep.mubr.msk.f32.mxu1 %vm4988_vm4, %v19300_v18  ;;  %v34782_v18 = vld [vmem:[#allocation88_spill] sm:$0xff] }
 0xc83   : > { %v19200_v54 = vpop.f32.mrb[89].mxu0  ;;  %26246 = vmatmul.mubr.msk.f32.gmra.mrb[182].mxu1 %vm4988_vm4, %v19301_v34  ;;  %v19303_v48 = vadd.f32 %v26200_v59, %v33718_v32  ;;  %v8530_v34 = vadd.f32 %v34782_v18, %v33782_v21  ;;  %v34783_v59 = vld [vmem:[#allocation91_spill] sm:$0xff] }
 0xc84   : > { %v19302_v30 = vadd.f32 %v33718_v32, %v19200_v54  ;;  %v8531_v54 = vadd.f32 %v33782_v21, %v34783_v59 }
 0xc86   : > { %v26203_v43 = vpop.f32.mrb[90].mxu0  ;;  %26248 = vmatprep.mubr.msk.f32.mxu1 %vm4988_vm4, %v19302_v30  ;;  %v34784_v30 = vld [vmem:[#allocation90_spill] sm:$0xff] }
 0xc87   : > { %v19210_v60 = vpop.f32.mrb[91].mxu0  ;;  %26249 = vmatmul.mubr.msk.f32.gmra.mrb[184].mxu1 %vm4988_vm4, %v19303_v48  ;;  %v19305_v36 = vadd.f32 %v26203_v43, %v33718_v32  ;;  %v8532_v48 = vadd.f32 %v34784_v30, %v33782_v21  ;;  %v34785_v43 = vld [vmem:[#allocation93_spill] sm:$0xff] }
 0xc88   : > { %v19304_v56 = vadd.f32 %v33718_v32, %v19210_v60  ;;  %v8533_v60 = vadd.f32 %v33782_v21, %v34785_v43 }
 0xc8a   : > { %v26206_v10 = vpop.f32.mrb[92].mxu0  ;;  %26251 = vmatprep.mubr.msk.f32.mxu1 %vm4988_vm4, %v19304_v56  ;;  %v34786_v56 = vld [vmem:[#allocation92_spill] sm:$0xff] }
 0xc8b   : > { %v19220_v19 = vpop.f32.mrb[93].mxu0  ;;  %26252 = vmatmul.mubr.msk.f32.gmra.mrb[186].mxu1 %vm4988_vm4, %v19305_v36  ;;  %v19307_v0 = vadd.f32 %v26206_v10, %v33718_v32  ;;  %v8534_v36 = vadd.f32 %v34786_v56, %v33782_v21  ;;  %v34787_v10 = vld [vmem:[#allocation95_spill] sm:$0xff] }
 0xc8c   : > { %v19306_v16 = vadd.f32 %v33718_v32, %v19220_v19  ;;  %v8535_v19 = vadd.f32 %v33782_v21, %v34787_v10 }
 0xc8e   : > { %v26209_v58 = vpop.f32.mrb[94].mxu0  ;;  %26254 = vmatprep.mubr.msk.f32.mxu1 %vm4988_vm4, %v19306_v16  ;;  %v34788_v16 = vld [vmem:[#allocation94_spill] sm:$0xff] }
 0xc8f   : > { %v19230_v40 = vpop.f32.mrb[95].mxu0  ;;  %26255 = vmatmul.mubr.msk.f32.gmra.mrb[188].mxu1 %vm4988_vm4, %v19307_v0  ;;  %v19309_v17 = vadd.f32 %v26209_v58, %v33718_v32  ;;  %v8536_v0 = vadd.f32 %v34788_v16, %v33782_v21  ;;  %v34789_v58 = vld [vmem:[#allocation97_spill] sm:$0xff] }
 0xc90   : > { %v19308_v44 = vadd.f32 %v33718_v32, %v19230_v40  ;;  %v34764_v32 = vld [vmem:[#allocation70_spill] sm:$0xff]  ;;  %v8537_v40 = vadd.f32 %v33782_v21, %v34789_v58 }
 0xc91   : > { %v8512_v45 = vadd.f32 %v34764_v32, %v33782_v21  ;;  %v27877_v32 = vld [vmem:[%s28642_s26 + $0x30] sm:$0xff] }
 0xc92   : > { %26257 = vmatprep.mubr.msk.f32.mxu1 %vm4988_vm4, %v19308_v44  ;;  %v34790_v44 = vld [vmem:[#allocation96_spill] sm:$0xff] }
 0xc93   : > { %26258 = vmatmul.mubr.msk.f32.gmra.mrb[190].mxu1 %vm4988_vm4, %v19309_v17  ;;  %v8538_v17 = vadd.f32 %v34790_v44, %v33782_v21 }
 0xc94   : > { %26262 = vmatprep.mubr.msk.f32.mxu1 %vm4988_vm4, %v8509_v27  ;;  %v8539_v27 = vadd.f32 %v33782_v21, %v34791_v1 }
 0xc97   : > { %26263 = vmatmul.mubr.msk.f32.vlgmr.msra.gmra.mrb[160].mxu1 %vm4988_vm4, %v8510_v55  ;;  %v27872_v55 = vld [vmem:[%s28642_s26 + $0x8] sm:$0xff] }
 0xc98   : > { %26385 = vmatpush3.bf16.msra.mxu1 %v33722_v4  ;;  %26265 = vmatprep.mubr.msk.f32.mxu1 %vm4988_vm4, %v8511_v51  ;;  %v8515_v4 = vadd.f32 %v33782_v21, %v34767_v46  ;;  %v27875_v21 = vld [vmem:[%s28642_s26 + $0x20] sm:$0xff]  ;;  %v27876_v51 = vld [vmem:[%s28642_s26 + $0x28] sm:$0xff] }
 0xc99   : > { %26387 = vmatprep.subr.bf16.mxu1 %v26386_v11  ;;  %v27883_v46 = vld [vmem:[%s28642_s26 + $0x60] sm:$0xff] }
 0xc9b   : > { %26266 = vmatmul.mubr.msk.f32.gmra.mrb[162].mxu1 %vm4988_vm4, %v8512_v45  ;;  %v27878_v45 = vld [vmem:[%s28642_s26 + $0x38] sm:$0xff] }
 0xc9c   : > { %26268 = vmatprep.mubr.msk.f32.mxu1 %vm4988_vm4, %v8513_v38  ;;  %26389 = vmatpush3.bf16.msra.mxu1 %v26386_v11  ;;  %v27873_v11 = vld [vmem:[%s28642_s26 + $0x10] sm:$0xff]  ;;  %v27880_v38 = vld [vmem:[%s28642_s26 + $0x48] sm:$0xff] }
 0xc9f   : > { %26269 = vmatmul.mubr.msk.f32.gmra.mrb[164].mxu1 %vm4988_vm4, %v8514_v62  ;;  %v27882_v62 = vld [vmem:[%s28642_s26 + $0x58] sm:$0xff] }
 0xca0   : > { %26271 = vmatprep.mubr.msk.f32.mxu1 %vm4988_vm4, %v8515_v4  ;;  %v27884_v4 = vld [vmem:[%s28642_s26 + $0x68] sm:$0xff] }
 0xca3   : > { %26272 = vmatmul.mubr.msk.f32.gmra.mrb[166].mxu1 %vm4988_vm4, %v8516_v61  ;;  %v27886_v61 = vld [vmem:[%s28642_s26 + $0x78] sm:$0xff] }
 0xca4   : > { %26274 = vmatprep.mubr.msk.f32.mxu1 %vm4988_vm4, %v8517_v14  ;;  %v27888_v14 = vld [vmem:[%s28642_s26 + $0x88] sm:$0xff] }
 0xca7   : > { %26275 = vmatmul.mubr.msk.f32.gmra.mrb[168].mxu1 %vm4988_vm4, %v8518_v39  ;;  %v27890_v39 = vld [vmem:[%s28642_s26 + $0x98] sm:$0xff] }
 0xca8   : > { %26277 = vmatprep.mubr.msk.f32.mxu1 %vm4988_vm4, %v8519_v49  ;;  %v27892_v49 = vld [vmem:[%s28642_s26 + $0xa8] sm:$0xff] }
 0xcab   : > { %26278 = vmatmul.mubr.msk.f32.gmra.mrb[170].mxu1 %vm4988_vm4, %v8520_v41  ;;  %v27894_v41 = vld [vmem:[%s28642_s26 + $0xb8] sm:$0xff] }
 0xcac   : > { %26280 = vmatprep.mubr.msk.f32.mxu1 %vm4988_vm4, %v8521_v12  ;;  %v27896_v12 = vld [vmem:[%s28642_s26 + $0xc8] sm:$0xff] }
 0xcaf   : > { %26281 = vmatmul.mubr.msk.f32.gmra.mrb[172].mxu1 %vm4988_vm4, %v8522_v5  ;;  %v27898_v5 = vld [vmem:[%s28642_s26 + $0xd8] sm:$0xff] }
 0xcb0   : > { %26283 = vmatprep.mubr.msk.f32.mxu1 %vm4988_vm4, %v8523_v31  ;;  %v27900_v31 = vld [vmem:[%s28642_s26 + $0xe8] sm:$0xff] }
 0xcb3   : > { %26284 = vmatmul.mubr.msk.f32.gmra.mrb[174].mxu1 %vm4988_vm4, %v8524_v6  ;;  %v27902_v6 = vld [vmem:[%s28642_s26 + $0xf8] sm:$0xff]  ;;  %s22188_s26 = sshll.u32 %s28375_s1, 12  ;;  %s34064_s1 = scalar_lea.sflag [#allocation9], %s708_s30 }
 0xcb4   : > { %26286 = vmatprep.mubr.msk.f32.mxu1 %vm4988_vm4, %v8525_v24  ;;  %s34054_s3 = scalar_lea.hbm %s34795_s19, %s22188_s26 }
 0xcb7   : > { %26287 = vmatmul.mubr.msk.f32.gmra.mrb[176].mxu1 %vm4988_vm4, %v8526_v9 }
 0xcb8   : > { %26289 = vmatprep.mubr.msk.f32.mxu1 %vm4988_vm4, %v8527_v26 }
 0xcbb   : > { %26290 = vmatmul.mubr.msk.f32.gmra.mrb[178].mxu1 %vm4988_vm4, %v8528_v13 }
 0xcbc   : > { %26292 = vmatprep.mubr.msk.f32.mxu1 %vm4988_vm4, %v8529_v63 }
 0xcbf   : > { %26293 = vmatmul.mubr.msk.f32.gmra.mrb[180].mxu1 %vm4988_vm4, %v8530_v34 }
 0xcc0   : > { %26295 = vmatprep.mubr.msk.f32.mxu1 %vm4988_vm4, %v8531_v54 }
 0xcc3   : > { %26296 = vmatmul.mubr.msk.f32.gmra.mrb[182].mxu1 %vm4988_vm4, %v8532_v48 }
 0xcc4   : > { %26298 = vmatprep.mubr.msk.f32.mxu1 %vm4988_vm4, %v8533_v60 }
 0xcc7   : > { %26299 = vmatmul.mubr.msk.f32.gmra.mrb[184].mxu1 %vm4988_vm4, %v8534_v36 }
 0xcc8   : > { %26301 = vmatprep.mubr.msk.f32.mxu1 %vm4988_vm4, %v8535_v19 }
 0xccb   : > { %26302 = vmatmul.mubr.msk.f32.gmra.mrb[186].mxu1 %vm4988_vm4, %v8536_v0 }
 0xccc   : > { %26304 = vmatprep.mubr.msk.f32.mxu1 %vm4988_vm4, %v8537_v40 }
 0xccf   : > { %26305 = vmatmul.mubr.msk.f32.gmra.mrb[188].mxu1 %vm4988_vm4, %v8538_v17 }
 0xcd0   : > { %26307 = vmatprep.mubr.msk.f32.mxu1 %vm4988_vm4, %v8539_v27 }
 0xcd3   : > { %26308 = vmatmul.mubr.msk.f32.gmra.mrb[190].mxu1 %vm4988_vm4, %v8540_v29 }
 0xcd4   : > { %26318 = vmatprep.mubr.msk.f32.mxu1 %vm759_vm0, %v27871_v15 }
 0xcd7   : > { %26319 = vmatmul.mubr.msk.f32.vlgmr.msra.gmra.mrb[160].mxu1 %vm759_vm0, %v27872_v55 }
 0xcd8   : > { %26321 = vmatprep.mubr.msk.f32.mxu1 %vm759_vm0, %v27873_v11 }
 0xcdb   : > { %26322 = vmatmul.mubr.msk.f32.gmra.mrb[162].mxu1 %vm759_vm0, %v27874_v37 }
 0xcdc   : > { %26324 = vmatprep.mubr.msk.f32.mxu1 %vm759_vm0, %v27875_v21 }
 0xcdf   : > { %26325 = vmatmul.mubr.msk.f32.gmra.mrb[164].mxu1 %vm759_vm0, %v27876_v51 }
 0xce0   : > { %26327 = vmatprep.mubr.msk.f32.mxu1 %vm759_vm0, %v27877_v32 }
 0xce3   : > { %26328 = vmatmul.mubr.msk.f32.gmra.mrb[166].mxu1 %vm759_vm0, %v27878_v45 }
 0xce4   : > { %26330 = vmatprep.mubr.msk.f32.mxu1 %vm759_vm0, %v27879_v23 }
 0xce7   : > { %26331 = vmatmul.mubr.msk.f32.gmra.mrb[168].mxu1 %vm759_vm0, %v27880_v38 }
 0xce8   : > { %26333 = vmatprep.mubr.msk.f32.mxu1 %vm759_vm0, %v27881_v50 }
 0xceb   : > { %26334 = vmatmul.mubr.msk.f32.gmra.mrb[170].mxu1 %vm759_vm0, %v27882_v62 }
 0xcec   : > { %26336 = vmatprep.mubr.msk.f32.mxu1 %vm759_vm0, %v27883_v46 }
 0xcef   : > { %26337 = vmatmul.mubr.msk.f32.gmra.mrb[172].mxu1 %vm759_vm0, %v27884_v4 }
 0xcf0   : > { %26339 = vmatprep.mubr.msk.f32.mxu1 %vm759_vm0, %v27885_v35 }
 0xcf3   : > { %26340 = vmatmul.mubr.msk.f32.gmra.mrb[174].mxu1 %vm759_vm0, %v27886_v61 }
 0xcf4   : > { %26342 = vmatprep.mubr.msk.f32.mxu1 %vm759_vm0, %v27887_v22 }
 0xcf7   : > { %26343 = vmatmul.mubr.msk.f32.gmra.mrb[176].mxu1 %vm759_vm0, %v27888_v14 }
 0xcf8   : > { %26345 = vmatprep.mubr.msk.f32.mxu1 %vm759_vm0, %v27889_v7 }
 0xcfb   : > { %26346 = vmatmul.mubr.msk.f32.gmra.mrb[178].mxu1 %vm759_vm0, %v27890_v39 }
 0xcfc   : > { %26348 = vmatprep.mubr.msk.f32.mxu1 %vm759_vm0, %v27891_v20 }
 0xcff   : > { %26349 = vmatmul.mubr.msk.f32.gmra.mrb[180].mxu1 %vm759_vm0, %v27892_v49 }
 0xd00   : > { %26351 = vmatprep.mubr.msk.f32.mxu1 %vm759_vm0, %v27893_v33 }
 0xd03   : > { %26352 = vmatmul.mubr.msk.f32.gmra.mrb[182].mxu1 %vm759_vm0, %v27894_v41 }
 0xd04   : > { %26354 = vmatprep.mubr.msk.f32.mxu1 %vm759_vm0, %v27895_v28 }
 0xd07   : > { %26355 = vmatmul.mubr.msk.f32.gmra.mrb[184].mxu1 %vm759_vm0, %v27896_v12 }
 0xd08   : > { %26357 = vmatprep.mubr.msk.f32.mxu1 %vm759_vm0, %v27897_v3 }
 0xd0b   : > { %26358 = vmatmul.mubr.msk.f32.gmra.mrb[186].mxu1 %vm759_vm0, %v27898_v5 }
 0xd0c   : > { %26360 = vmatprep.mubr.msk.f32.mxu1 %vm759_vm0, %v27899_v57 }
 0xd0f   : > { %26361 = vmatmul.mubr.msk.f32.gmra.mrb[188].mxu1 %vm759_vm0, %v27900_v31 }
 0xd10   : > { %26363 = vmatprep.mubr.msk.f32.mxu1 %vm759_vm0, %v27901_v2 }
 0xd13   : > { %26364 = vmatmul.mubr.msk.f32.gmra.mrb[190].mxu1 %vm759_vm0, %v27902_v6 }
 0xdaa   : > { %v26320_v24 = vpop.f32.mrb[160].mxu1 }
 0xdab   : > { %v20223_v52 = vadd.f32 %v26320_v24, %v33951_v53  ;;  %v20024_v9 = vpop.f32.mrb[161].mxu1 }
 0xdac   : > { %v20222_v25 = vadd.f32 %v33951_v53, %v20024_v9 }
 0xdad   : > { %v20255_v26 = vmax.f32 %v20223_v52, 0.0 }
 0xdae   : > { %v20254_v47 = vmax.f32 %v20222_v25, 0.0  ;;  %v26323_v13 = vpop.f32.mrb[162].mxu1 }
 0xdaf   : > { %20287 = vst.msk [vmem:[%s33957_s20 + $0x8] sm:$0xff] %vm759_vm0, %v20255_v26  ;;  %v20225_v8 = vadd.f32 %v26323_v13, %v33951_v53  ;;  %v20034_v63 = vpop.f32.mrb[163].mxu1 }
 0xdb0   : > { %20286 = vst.msk [vmem:[%s33957_s20] sm:$0xff] %vm759_vm0, %v20254_v47  ;;  %v20224_v18 = vadd.f32 %v33951_v53, %v20034_v63 }
 0xdb1   : > { %v20257_v34 = vmax.f32 %v20225_v8, 0.0 }
 0xdb2   : > { %v20256_v59 = vmax.f32 %v20224_v18, 0.0  ;;  %v26326_v54 = vpop.f32.mrb[164].mxu1 }
 0xdb3   : > { %20289 = vst.msk [vmem:[%s33957_s20 + $0x18] sm:$0xff] %vm759_vm0, %v20257_v34  ;;  %v20227_v30 = vadd.f32 %v26326_v54, %v33951_v53  ;;  %v20044_v48 = vpop.f32.mrb[165].mxu1 }
 0xdb4   : > { %20288 = vst.msk [vmem:[%s33957_s20 + $0x10] sm:$0xff] %vm759_vm0, %v20256_v59  ;;  %v20226_v43 = vadd.f32 %v33951_v53, %v20044_v48 }
 0xdb5   : > { %v20259_v60 = vmax.f32 %v20227_v30, 0.0 }
 0xdb6   : > { %v20258_v56 = vmax.f32 %v20226_v43, 0.0  ;;  %v26329_v36 = vpop.f32.mrb[166].mxu1 }
 0xdb7   : > { %20291 = vst.msk [vmem:[%s33957_s20 + $0x28] sm:$0xff] %vm759_vm0, %v20259_v60  ;;  %v20229_v10 = vadd.f32 %v26329_v36, %v33951_v53  ;;  %v20054_v19 = vpop.f32.mrb[167].mxu1 }
 0xdb8   : > { %20290 = vst.msk [vmem:[%s33957_s20 + $0x20] sm:$0xff] %vm759_vm0, %v20258_v56  ;;  %v20228_v16 = vadd.f32 %v33951_v53, %v20054_v19 }
 0xdb9   : > { %v20261_v0 = vmax.f32 %v20229_v10, 0.0 }
 0xdba   : > { %v20260_v58 = vmax.f32 %v20228_v16, 0.0  ;;  %v26332_v40 = vpop.f32.mrb[168].mxu1 }
 0xdbb   : > { %20293 = vst.msk [vmem:[%s33957_s20 + $0x38] sm:$0xff] %vm759_vm0, %v20261_v0  ;;  %v20231_v44 = vadd.f32 %v26332_v40, %v33951_v53  ;;  %v20064_v17 = vpop.f32.mrb[169].mxu1 }
 0xdbc   : > { %20292 = vst.msk [vmem:[%s33957_s20 + $0x30] sm:$0xff] %vm759_vm0, %v20260_v58  ;;  %v20230_v1 = vadd.f32 %v33951_v53, %v20064_v17 }
 0xdbd   : > { %v20263_v27 = vmax.f32 %v20231_v44, 0.0 }
 0xdbe   : > { %v20262_v42 = vmax.f32 %v20230_v1, 0.0  ;;  %v26335_v29 = vpop.f32.mrb[170].mxu1 }
 0xdbf   : > { %20295 = vst.msk [vmem:[%s33957_s20 + $0x48] sm:$0xff] %vm759_vm0, %v20263_v27  ;;  %v20233_v15 = vadd.f32 %v26335_v29, %v33951_v53  ;;  %v20074_v55 = vpop.f32.mrb[171].mxu1 }
 0xdc0   : > { %20294 = vst.msk [vmem:[%s33957_s20 + $0x40] sm:$0xff] %vm759_vm0, %v20262_v42  ;;  %v20232_v11 = vadd.f32 %v33951_v53, %v20074_v55 }
 0xdc1   : > { %v20265_v37 = vmax.f32 %v20233_v15, 0.0 }
 0xdc2   : > { %v20264_v21 = vmax.f32 %v20232_v11, 0.0  ;;  %v26338_v51 = vpop.f32.mrb[172].mxu1 }
 0xdc3   : > { %20297 = vst.msk [vmem:[%s33957_s20 + $0x58] sm:$0xff] %vm759_vm0, %v20265_v37  ;;  %v20235_v32 = vadd.f32 %v26338_v51, %v33951_v53  ;;  %v20084_v45 = vpop.f32.mrb[173].mxu1 }
 0xdc4   : > { %20296 = vst.msk [vmem:[%s33957_s20 + $0x50] sm:$0xff] %vm759_vm0, %v20264_v21  ;;  %v20234_v23 = vadd.f32 %v33951_v53, %v20084_v45 }
 0xdc5   : > { %v20267_v38 = vmax.f32 %v20235_v32, 0.0 }
 0xdc6   : > { %v20266_v50 = vmax.f32 %v20234_v23, 0.0  ;;  %v26341_v62 = vpop.f32.mrb[174].mxu1 }
 0xdc7   : > { %20299 = vst.msk [vmem:[%s33957_s20 + $0x68] sm:$0xff] %vm759_vm0, %v20267_v38  ;;  %v20237_v46 = vadd.f32 %v26341_v62, %v33951_v53  ;;  %v20094_v4 = vpop.f32.mrb[175].mxu1 }
 0xdc8   : > { %20298 = vst.msk [vmem:[%s33957_s20 + $0x60] sm:$0xff] %vm759_vm0, %v20266_v50  ;;  %v20236_v35 = vadd.f32 %v33951_v53, %v20094_v4 }
 0xdc9   : > { %v20269_v61 = vmax.f32 %v20237_v46, 0.0 }
 0xdca   : > { %v20268_v22 = vmax.f32 %v20236_v35, 0.0  ;;  %v26344_v14 = vpop.f32.mrb[176].mxu1 }
 0xdcb   : > { %20301 = vst.msk [vmem:[%s33957_s20 + $0x78] sm:$0xff] %vm759_vm0, %v20269_v61  ;;  %v20239_v7 = vadd.f32 %v26344_v14, %v33951_v53  ;;  %v20104_v39 = vpop.f32.mrb[177].mxu1 }
 0xdcc   : > { %20300 = vst.msk [vmem:[%s33957_s20 + $0x70] sm:$0xff] %vm759_vm0, %v20268_v22  ;;  %v20238_v20 = vadd.f32 %v33951_v53, %v20104_v39 }
 0xdcd   : > { %v20271_v49 = vmax.f32 %v20239_v7, 0.0 }
 0xdce   : > { %v20270_v33 = vmax.f32 %v20238_v20, 0.0  ;;  %v26347_v41 = vpop.f32.mrb[178].mxu1 }
 0xdcf   : > { %20303 = vst.msk [vmem:[%s33957_s20 + $0x88] sm:$0xff] %vm759_vm0, %v20271_v49  ;;  %v20241_v28 = vadd.f32 %v26347_v41, %v33951_v53  ;;  %v20114_v12 = vpop.f32.mrb[179].mxu1 }
 0xdd0   : > { %20302 = vst.msk [vmem:[%s33957_s20 + $0x80] sm:$0xff] %vm759_vm0, %v20270_v33  ;;  %v20240_v3 = vadd.f32 %v33951_v53, %v20114_v12 }
 0xdd1   : > { %v20273_v5 = vmax.f32 %v20241_v28, 0.0 }
 0xdd2   : > { %v20272_v57 = vmax.f32 %v20240_v3, 0.0  ;;  %v26350_v31 = vpop.f32.mrb[180].mxu1 }
 0xdd3   : > { %20305 = vst.msk [vmem:[%s33957_s20 + $0x98] sm:$0xff] %vm759_vm0, %v20273_v5  ;;  %v20243_v2 = vadd.f32 %v26350_v31, %v33951_v53  ;;  %v20124_v6 = vpop.f32.mrb[181].mxu1 }
 0xdd4   : > { %20304 = vst.msk [vmem:[%s33957_s20 + $0x90] sm:$0xff] %vm759_vm0, %v20272_v57  ;;  %v20242_v24 = vadd.f32 %v33951_v53, %v20124_v6 }
 0xdd5   : > { %v20275_v52 = vmax.f32 %v20243_v2, 0.0 }
 0xdd6   : > { %v20274_v9 = vmax.f32 %v20242_v24, 0.0  ;;  %v26353_v25 = vpop.f32.mrb[182].mxu1 }
 0xdd7   : > { %20307 = vst.msk [vmem:[%s33957_s20 + $0xa8] sm:$0xff] %vm759_vm0, %v20275_v52  ;;  %v20245_v26 = vadd.f32 %v26353_v25, %v33951_v53  ;;  %v20134_v47 = vpop.f32.mrb[183].mxu1 }
 0xdd8   : > { %20306 = vst.msk [vmem:[%s33957_s20 + $0xa0] sm:$0xff] %vm759_vm0, %v20274_v9  ;;  %v20244_v13 = vadd.f32 %v33951_v53, %v20134_v47 }
 0xdd9   : > { %v20277_v8 = vmax.f32 %v20245_v26, 0.0 }
 0xdda   : > { %v20276_v63 = vmax.f32 %v20244_v13, 0.0  ;;  %v26356_v18 = vpop.f32.mrb[184].mxu1 }
 0xddb   : > { %20309 = vst.msk [vmem:[%s33957_s20 + $0xb8] sm:$0xff] %vm759_vm0, %v20277_v8  ;;  %v20247_v34 = vadd.f32 %v26356_v18, %v33951_v53  ;;  %v20144_v59 = vpop.f32.mrb[185].mxu1 }
 0xddc   : > { %20308 = vst.msk [vmem:[%s33957_s20 + $0xb0] sm:$0xff] %vm759_vm0, %v20276_v63  ;;  %v20246_v54 = vadd.f32 %v33951_v53, %v20144_v59 }
 0xddd   : > { %v20279_v30 = vmax.f32 %v20247_v34, 0.0 }
 0xdde   : > { %v20278_v48 = vmax.f32 %v20246_v54, 0.0  ;;  %v26359_v43 = vpop.f32.mrb[186].mxu1 }
 0xddf   : > { %20311 = vst.msk [vmem:[%s33957_s20 + $0xc8] sm:$0xff] %vm759_vm0, %v20279_v30  ;;  %v20249_v60 = vadd.f32 %v26359_v43, %v33951_v53  ;;  %v20154_v56 = vpop.f32.mrb[187].mxu1 }
 0xde0   : > { %20310 = vst.msk [vmem:[%s33957_s20 + $0xc0] sm:$0xff] %vm759_vm0, %v20278_v48  ;;  %v20248_v36 = vadd.f32 %v33951_v53, %v20154_v56 }
 0xde1   : > { %v20281_v10 = vmax.f32 %v20249_v60, 0.0 }
 0xde2   : > { %v20280_v19 = vmax.f32 %v20248_v36, 0.0  ;;  %v26362_v16 = vpop.f32.mrb[188].mxu1 }
 0xde3   : > { %20313 = vst.msk [vmem:[%s33957_s20 + $0xd8] sm:$0xff] %vm759_vm0, %v20281_v10  ;;  %v20251_v0 = vadd.f32 %v26362_v16, %v33951_v53  ;;  %v20164_v58 = vpop.f32.mrb[189].mxu1 }
 0xde4   : > { %20312 = vst.msk [vmem:[%s33957_s20 + $0xd0] sm:$0xff] %vm759_vm0, %v20280_v19  ;;  %v20250_v40 = vadd.f32 %v33951_v53, %v20164_v58 }
 0xde5   : > { %v20283_v44 = vmax.f32 %v20251_v0, 0.0 }
 0xde6   : > { %v20282_v17 = vmax.f32 %v20250_v40, 0.0  ;;  %v26365_v1 = vpop.f32.mrb[190].mxu1 }
 0xde7   : > { %20315 = vst.msk [vmem:[%s33957_s20 + $0xe8] sm:$0xff] %vm759_vm0, %v20283_v44  ;;  %v20253_v27 = vadd.f32 %v26365_v1, %v33951_v53  ;;  %v20174_v42 = vpop.f32.mrb[191].mxu1 }
 0xde8   : > { %20314 = vst.msk [vmem:[%s33957_s20 + $0xe0] sm:$0xff] %vm759_vm0, %v20282_v17  ;;  %v20252_v29 = vadd.f32 %v33951_v53, %v20174_v42 }
 0xde9   : > { %v20285_v15 = vmax.f32 %v20253_v27, 0.0 }
 0xdea   : > { %v20284_v55 = vmax.f32 %v20252_v29, 0.0 }
 0xdeb   : > { %20317 = vst.msk [vmem:[%s33957_s20 + $0xf8] sm:$0xff] %vm759_vm0, %v20285_v15 }
 0xdec   : > { %20316 = vst.msk [vmem:[%s33957_s20 + $0xf0] sm:$0xff] %vm759_vm0, %v20284_v55 }
 0xded   : > { %28168 = shalt.err (!%p28165_p9)
}
 0xdee   : > { %s28169_s23 = scalar_lea.hbm %s34054_s3, 4096  ;;  %s28173_s12 = scalar_lea.hbm %s34795_s19, 8192 }
 0xdef   : > { %p28170_p12 = scmp.ne.s32.totalorder %s34054_s3, %s28169_s23  ;;  %p28174_p3 = scmp.lt.u32.totalorder %s34054_s3, %s34795_s19 }
 0xdf0   : > { %p28175_p4 = scmp.lt.u32.totalorder %s28173_s12, %s28169_s23  ;;  %p28177_p8 = scmp.lt.u32.totalorder %s28169_s23, %s34054_s3 }
 0xdf1   : > { %p28171_p10 = pnand %p28170_p12, %p34796_p11 }
 0xdf2   : > { %p28176_p7 = por %p28175_p4, %p28174_p3 }
 0xdf3   : > { %p28172_p2 = pneg %p28171_p10 }
 0xdf4   : > { %p28178_p13 = por %p28177_p8, %p28176_p7 }
 0xdf6   : > { %p28179_p1 = pnand %p28178_p13, %p28172_p2 }
 0xdf8   : > { %28182 = shalt.err (!%p28179_p1)
}
 0xdf9   : > { %s28252_s29 = smov 128   ;;  %s28253_s2 = smov 8  }
 0xdfa   : > { %27772 = dma.vmem_to_hbm [thread:$0]  (%p34796_p11), %s34056_s22, 4096, %s34054_s3, %s34064_s1, %s28252_s29, %s28252_s29, %s28253_s2  }
 0xdfb PF: > { %s34797_s21 = sld [smem:[#allocation32_spill]]  ;;  %s34798_s28 = sld [smem:[#allocation29_spill]] }
 0xdfc   : > { %s34799_s25 = sld [smem:[#allocation36_spill]] }
 0xe01   : > { %p27824_p0 = scmp.ge.s32.totalorder %s34797_s21, 2  ;;  %s20347_s0 = sand.u32 1, %s34798_s28  }
 0xe02   : > { %p34800_p6 = scmp.ne.s32.totalorder %s34799_s25, 0  ;;  %s20348_s23 = scalar_lea.sflag [#allocation9], %s20347_s0 }
 0xe04   : > { %p27803_p5 = pnand %p27824_p0, %p34800_p6 }
 0xe06   : > { %28220 = dma.done.wait (!%p27803_p5), %s20348_s23, 4096  }
 0xe07   : > { %28222 = vsyncadd (!%p27803_p5), %s20348_s23, 4294963200  ;;  %s34801_s21 = sld [smem:[#allocation33_spill]]  ;;  %s34802_s0 = sld [smem:[#allocation30_spill]] }
 0xe08   : > { %s34803_s30 = sld [smem:[#allocation31_spill]]  ;;  %s34804_s20 = sld [smem:[#allocation34_spill]] }
 0xe0d   : > { %p34_p9 = scmp.ge.s32.totalorder %s34801_s21, 4  }
 0xe0f   :  { %36 = sbr.rel (!%p34_p9) target bundleno = 18 (0x12), region = 218 }
 0xe16   :  { %20353 = vsyncpa [#allocation8], 1 }
 0xe17   :  { %20355 = vsyncpa [#allocation8 + $0x1], 1 }
 0xe18   :  { %20356 = vsyncpa [#allocation11], 1 }
 0xe19   :  { %20357 = vsyncpa [#allocation14], 1 }
 0xe1a   :  { %20358 = vsyncpa [#allocation17], 1 }
 0xe1b   :  { %20359 = vsyncpa [#allocation20], 1 }
 0xe1c   :  { %20360 = vsyncpa [#allocation9], 1 }
 0xe1d   :  { %20362 = vsyncpa [#allocation9 + $0x1], 1 }

</bundles_post_ra>
